<compile_context>
chip_gen: v7x
topology: tpu7x:2x2x1
jax: 0.10.0
libtpu: 0.0.40
codegen_flags: <defaults>
</compile_context>

<pallas_src>
import functools

import jax
import jax.numpy as jnp
from jax import lax
from jax.experimental import pallas as pl
from jax.experimental.pallas import tpu as pltpu  # noqa: F401  (TPU backend assumed)


# ----------------------------- Pallas kernels -----------------------------

def _conv_kernel(x_ref, w_ref, b_ref, *rest, offs, mp, leaky, has_res):
    """Fused conv (tap-accumulated GEMM) + bias + optional LeakyReLU + optional residual.

    x_ref: (Mp + maxoff, Cin) f32  flat padded-input rows (row = n*Hp*Wp + hp*Wp + wp)
    w_ref: (k*k, Cin, F)      bf16 per-tap weights (BN scale already folded in)
    b_ref: (1, F)             f32
    rest : [res_ref (Mp, F) f32 if has_res], o_ref (Mp, F) f32
    """
    if has_res:
        res_ref, o_ref = rest
    else:
        (o_ref,) = rest
    for t, off in enumerate(offs):
        xt = x_ref[off:off + mp, :].astype(jnp.bfloat16)       # static row-shifted slice
        part = jnp.dot(xt, w_ref[t], preferred_element_type=jnp.float32)
        if t == 0:
            o_ref[...] = part
        else:
            o_ref[...] += part
    y = o_ref[...] + b_ref[...]
    if leaky:
        y = jnp.where(y > 0, y, 0.1 * y)
    if has_res:
        y = y + res_ref[...]
    o_ref[...] = y


def _pool_kernel(x_ref, o_ref):
    """2x2/stride-2 max pool. x_ref: (N*Ho, 2, Wo, 2*C), o_ref: (N*Ho, Wo, C)."""
    c = o_ref.shape[-1]
    v = x_ref[...]
    m = jnp.maximum(v[..., :c], v[..., c:])        # max over the W-phase (lane halves)
    o_ref[...] = jnp.maximum(m[:, 0], m[:, 1])     # max over the H-phase (leading dim)


def _add_kernel(a_ref, b_ref, o_ref):
    o_ref[...] = a_ref[...] + b_ref[...]


def _head_kernel(x_ref, w_ref, b_ref, c_ref, p_ref, io_ref, *, ng, stride):
    """Fused 1x1 detection conv + YOLO box transform.

    x_ref: (M, Cin) f32, rows in (n, gy, gx) order; w_ref: (1, Cin, F) bf16;
    b_ref: (1, F) f32; c_ref: (4, F) f32 rows = [mul, is_wh, sel_x, sel_y].
    Outputs: p_ref (M, F) raw conv logits, io_ref (M, F) decoded boxes.
    """
    x = x_ref[...].astype(jnp.bfloat16)
    p = jnp.dot(x, w_ref[0], preferred_element_type=jnp.float32) + b_ref[...]
    p_ref[...] = p

    mul = c_ref[0:1, :]
    selx = c_ref[2:3, :]
    sely = c_ref[3:4, :]
    wh = jnp.broadcast_to(c_ref[1:2, :], p.shape) > 0.5

    m = x_ref.shape[0]
    inv = 1.0 / float(ng)
    rf = lax.broadcasted_iota(jnp.int32, (m, 1), 0).astype(jnp.float32)
    q1 = ((rf + 0.5) * inv).astype(jnp.int32).astype(jnp.float32)   # floor(row / nG)
    gx = (rf - q1 * ng) * stride                                    # grid_x * stride
    q2 = ((q1 + 0.5) * inv).astype(jnp.int32).astype(jnp.float32)   # floor(row / nG^2)
    gy = (q1 - q2 * ng) * stride                                    # grid_y * stride

    # exp on wh channels (input clamped elsewhere to avoid inf), sigmoid everywhere else
    t = jnp.where(wh, jnp.exp(jnp.where(wh, p, 0.0)), jax.nn.sigmoid(p))
    io_ref[...] = t * mul + selx * gx + sely * gy


# ----------------------------- wrappers -----------------------------

def conv_block(x, w3, bias, *, k, pad, stride=1, leaky=True, residual=None):
    """x: (N,H,W,Cin) f32; w3: (k*k,Cin,F) bf16; bias: (1,F) f32 -> (N,Ho,Wo,F) f32."""
    N, H, W, Cin = x.shape
    F = w3.shape[2]
    Hp, Wp = H + 2 * pad, W + 2 * pad
    Hf, Wf = Hp - k + 1, Wp - k + 1          # full (stride-1) conv output extent
    Mp = N * Hp * Wp
    maxoff = (k - 1) * Wp + (k - 1)

    xp = jnp.pad(x, ((0, 0), (pad, pad), (pad, pad), (0, 0))) if pad else x
    xf = xp.reshape(Mp, Cin)
    if maxoff:
        xf = jnp.pad(xf, ((0, maxoff), (0, 0)))

    args = [xf, w3, bias]
    if residual is not None:
        rp = jnp.pad(residual, ((0, 0), (pad, pad), (pad, pad), (0, 0))) if pad else residual
        args.append(rp.reshape(Mp, F))

    offs = tuple(di * Wp + dj for di in range(k) for dj in range(k))
    kernel = functools.partial(_conv_kernel, offs=offs, mp=Mp, leaky=leaky,
                               has_res=residual is not None)
    out = pl.pallas_call(
        kernel, out_shape=jax.ShapeDtypeStruct((Mp, F), jnp.float32),
    )(*args)

    out = out.reshape(N, Hp, Wp, F)
    if (Hf, Wf) != (Hp, Wp):
        out = out[:, :Hf, :Wf, :]
    if stride > 1:
        # TODO(synk): dense-then-subsample; wasteful for stride>1 (unused by this cfg)
        out = out[:, ::stride, ::stride, :]
    return out


def maxpool2x2(x):
    """NHWC max-pool, kernel=2, stride=2, pad=0 -- one kernel, no strided HBM gathers."""
    N, H, W, C = x.shape
    Ho, Wo = H // 2, W // 2
    x4 = x.reshape(N * Ho, 2, Wo, 2 * C)   # free, contiguous reshape
    out = pl.pallas_call(
        _pool_kernel, out_shape=jax.ShapeDtypeStruct((N * Ho, Wo, C), jnp.float32),
    )(x4)
    return out.reshape(N, Ho, Wo, C)


def shortcut_add(x, y):
    """Elementwise residual add (fallback when not fused into the conv kernel)."""
    shape = x.shape
    n = x.size
    if n % 128 == 0:
        a, b = x.reshape(n // 128, 128), y.reshape(n // 128, 128)   # lane-dense
    else:
        a, b = x.reshape(-1, shape[-1]), y.reshape(-1, shape[-1])
    out = pl.pallas_call(_add_kernel, out_shape=jax.ShapeDtypeStruct(a.shape, x.dtype))(a, b)
    return out.reshape(shape)


def upsample_nearest(x, s):
    N, H, W, C = x.shape
    y = jnp.broadcast_to(x[:, :, None, :, None, :], (N, H, s, W, s, C))
    return y.reshape(N, H * s, W * s, C)


def head_conv_yolo(x, w3, bias, anchors, nC, img_size):
    """Fused 1x1 detection conv + YOLOLayer.forward.  x: (N, nG, nG, Cin) NHWC.
    Returns (io.view(N,-1,5+nC), p (N,nA,nG,nG,5+nC), conv output NHWC)."""
    N, nG, nG2, Cin = x.shape
    assert nG == nG2
    F = w3.shape[2]
    nA, E = len(anchors), 5 + nC
    assert F == nA * E
    stride = float(img_size) / float(nG)
    M = N * nG * nG

    # per-output-channel constants (c = a*E + e), only a (4, F) table is shipped to VMEM
    mul, iswh, selx, sely = [], [], [], []
    for a in range(nA):
        aw, ah = anchors[a]
        for e in range(E):
            mul.append(stride if e in (0, 1) else (aw if e == 2 else (ah if e == 3 else 1.0)))
            iswh.append(1.0 if e in (2, 3) else 0.0)
            selx.append(1.0 if e == 0 else 0.0)
            sely.append(1.0 if e == 1 else 0.0)
    consts = jnp.asarray([mul, iswh, selx, sely], jnp.float32)   # (4, F)

    kernel = functools.partial(_head_kernel, ng=nG, stride=stride)
    p_flat, io_flat = pl.pallas_call(
        kernel,
        out_shape=(jax.ShapeDtypeStruct((M, F), jnp.float32),
                   jax.ShapeDtypeStruct((M, F), jnp.float32)),
    )(x.reshape(M, Cin), w3, bias, consts)

    # NHWC channel c = a*E + e ; reproduce torch's view+permute -> (bs, nA, nG, nG, E)
    p5 = p_flat.reshape(N, nG, nG, nA, E).transpose(0, 3, 1, 2, 4)
    io5 = io_flat.reshape(N, nG, nG, nA, E).transpose(0, 3, 1, 2, 4)
    if nC == 1:
        io5 = io5.at[..., 5].set(1.0)
    return io5.reshape(N, -1, E), p5, p_flat.reshape(N, nG, nG, F)


def yolo_layer_ref(x_nhwc, anchors, nC, img_size):
    """Plain-JAX YOLOLayer.forward (fallback path; this cfg always uses the fused head)."""
    bs, nG = x_nhwc.shape[0], x_nhwc.shape[1]
    nA, E = len(anchors), 5 + nC
    stride = float(img_size) / float(nG)
    p = x_nhwc.reshape(bs, nG, nG, nA, E).transpose(0, 3, 1, 2, 4)
    g = jnp.arange(nG, dtype=jnp.float32)
    grid_xy = jnp.stack(jnp.meshgrid(g, g, indexing='xy'), axis=-1)[None, None]
    av = jnp.asarray(anchors, jnp.float32) / stride
    xy = (jax.nn.sigmoid(p[..., 0:2]) + grid_xy) * stride
    wh = jnp.exp(p[..., 2:4]) * av[None, :, None, None, :] * stride
    rest = jax.nn.sigmoid(p[..., 4:])
    io = jnp.concatenate([xy, wh, rest], axis=-1)
    if nC == 1:
        io = io.at[..., 5].set(1.0)
    return io.reshape(bs, -1, E), p


# ----------------------------- Darknet model -----------------------------

def make_module_defs():
    """Tiny synthetic darknet cfg (in lieu of parse_model_cfg on a .cfg file)."""
    A = '10,13, 16,30, 33,23, 30,61, 62,45, 59,119'
    return [
        {'type': 'net', 'channels': '3', 'cfg': 'synthetic'},
        {'type': 'convolutional', 'batch_normalize': '1', 'filters': '8',  'size': '3', 'stride': '1', 'pad': '1', 'activation': 'leaky'},   # 0
        {'type': 'maxpool', 'size': '2', 'stride': '2'},                                                                                       # 1
        {'type': 'convolutional', 'batch_normalize': '1', 'filters': '16', 'size': '3', 'stride': '1', 'pad': '1', 'activation': 'leaky'},   # 2
        {'type': 'maxpool', 'size': '2', 'stride': '2'},                                                                                       # 3
        {'type': 'convolutional', 'batch_normalize': '1', 'filters': '16', 'size': '3', 'stride': '1', 'pad': '1', 'activation': 'leaky'},   # 4
        {'type': 'shortcut', 'from': '-2', 'activation': 'linear'},                                                                            # 5
        {'type': 'convolutional', 'batch_normalize': '0', 'filters': '21', 'size': '1', 'stride': '1', 'pad': '1', 'activation': 'linear'},  # 6
        {'type': 'yolo', 'mask': '0,1,2', 'anchors': A, 'classes': '2', 'num': '6'},                                                           # 7
        {'type': 'route', 'layers': '-3'},                                                                                                     # 8
        {'type': 'convolutional', 'batch_normalize': '1', 'filters': '8',  'size': '1', 'stride': '1', 'pad': '1', 'activation': 'leaky'},   # 9
        {'type': 'upsample', 'stride': '2'},                                                                                                   # 10
        {'type': 'route', 'layers': '-1,-9'},                                                                                                  # 11
        {'type': 'convolutional', 'batch_normalize': '1', 'filters': '16', 'size': '3', 'stride': '1', 'pad': '1', 'activation': 'leaky'},   # 12
        {'type': 'convolutional', 'batch_normalize': '0', 'filters': '21', 'size': '1', 'stride': '1', 'pad': '1', 'activation': 'linear'},  # 13
        {'type': 'yolo', 'mask': '3,4,5', 'anchors': A, 'classes': '2', 'num': '6'},                                                           # 14
    ]


class DarknetPallas:
    def __init__(self, module_defs, key):
        self.module_defs = module_defs
        self.hyperparams = module_defs[0]
        self.params = []
        output_filters = [int(self.hyperparams['channels'])]
        for mdef in module_defs[1:]:
            mtype = mdef['type']
            if mtype == 'convolutional':
                bn = int(mdef['batch_normalize'])
                f = int(mdef['filters'])
                k = int(mdef['size'])
                c_in = output_filters[-1]
                key, k1, k2, k3, k4, k5 = jax.random.split(key, 6)
                w = jax.random.normal(k1, (f, c_in, k, k), jnp.float32) * (1.0 / (c_in * k * k) ** 0.5)
                if bn:
                    gamma = 1.0 + 0.1 * jax.random.normal(k2, (f,), jnp.float32)
                    beta = 0.1 * jax.random.normal(k3, (f,), jnp.float32)
                    mean = 0.1 * jax.random.normal(k4, (f,), jnp.float32)
                    var = 1.0 + 0.1 * jnp.abs(jax.random.normal(k5, (f,), jnp.float32))
                    scale = gamma / jnp.sqrt(var + 1e-5)   # eval-mode folded BN
                    bias = beta - mean * scale
                else:
                    scale = jnp.ones((f,), jnp.float32)
                    bias = 0.1 * jax.random.normal(k2, (f,), jnp.float32)
                # (F,Cin,kh,kw) -> (kh,kw,Cin,F) -> (kh*kw,Cin,F); fold BN scale; bf16 for the MXU
                w3 = jnp.transpose(w, (2, 3, 1, 0)).reshape(k * k, c_in, f)
                w3 = (w3 * scale[None, None, :]).astype(jnp.bfloat16)
                self.params.append({'w3': w3, 'b': bias[None, :].astype(jnp.float32)})
                filters = f
            elif mtype == 'route':
                layers = [int(v) for v in mdef['layers'].split(',')]
                filters = sum(output_filters[j + 1 if j >= 0 else j] for j in layers)
                self.params.append(None)
            elif mtype == 'shortcut':
                filters = output_filters[int(mdef['from'])]
                self.params.append(None)
            else:
                filters = output_filters[-1]
                self.params.append(None)
            output_filters.append(filters)

        # absolute layer indices referenced by later route/shortcut layers (fusion guard)
        referenced = set()
        for j, mdef in enumerate(module_defs[1:]):
            if mdef['type'] == 'route':
                for r in (int(v) for v in mdef['layers'].split(',')):
                    referenced.add(j + r if r < 0 else r)
            elif mdef['type'] == 'shortcut':
                r = int(mdef['from'])
                referenced.add(j + r if r < 0 else r)
        self.referenced = referenced

    def __call__(self, x_nchw):
        img_size = x_nchw.shape[-1]
        x = jnp.transpose(x_nchw, (0, 2, 3, 1)).astype(jnp.float32)  # NCHW -> NHWC
        defs = self.module_defs[1:]
        layer_outputs = []
        output = []
        i = 0
        while i < len(defs):
            mdef = defs[i]
            mtype = mdef['type']
            if mtype == 'convolutional':
                prm = self.params[i]
                k = int(mdef['size'])
                stride = int(mdef['stride'])
                pad = (k - 1) // 2 if int(mdef['pad']) else 0
                leaky = mdef['activation'] == 'leaky'
                nxt = defs[i + 1] if i + 1 < len(defs) else None

                # fusion: 1x1 linear detection conv + YOLO head (one kernel, two outputs)
                if (nxt is not None and nxt['type'] == 'yolo' and k == 1 and stride == 1
                        and not leaky and x.shape[1] == x.shape[2]):
                    anchor_idxs = [int(v) for v in nxt['mask'].split(',')]
                    a = [float(v) for v in nxt['anchors'].split(',')]
                    anchors = [(a[t], a[t + 1]) for t in range(0, len(a), 2)]
                    anchors = [anchors[t] for t in anchor_idxs]
                    nC = int(nxt['classes'])
                    io, p5, p_feat = head_conv_yolo(x, prm['w3'], prm['b'],
                                                    anchors, nC, img_size)
                    layer_outputs.append(p_feat)     # conv layer output (exact)
                    x = (io, p5)
                    output.append(x)
                    layer_outputs.append(x)          # yolo layer output
                    i += 2
                    continue

                # fusion: conv + following shortcut add (only if conv output unused elsewhere)
                residual = None
                fuse_sc = (nxt is not None and nxt['type'] == 'shortcut'
                           and stride == 1 and 2 * pad + 1 == k
                           and i not in self.referenced)
                if fuse_sc:
                    f_rel = int(nxt['from'])
                    res_abs = (i + 1) + f_rel if f_rel < 0 else f_rel
                    cand = layer_outputs[res_abs]
                    if isinstance(cand, tuple) or cand.shape != x.shape[:3] + (prm['w3'].shape[2],):
                        fuse_sc = False
                    else:
                        residual = cand

                x = conv_block(x, prm['w3'], prm['b'], k=k, pad=pad, stride=stride,
                               leaky=leaky, residual=residual)
                layer_outputs.append(x)
                if fuse_sc:
                    layer_outputs.append(x)          # shortcut layer output (== fused result)
                    i += 2
                else:
                    i += 1
                continue

            if mtype == 'maxpool':
                ksz, pstride = int(mdef['size']), int(mdef['stride'])
                # TODO(synk): size=2/stride=1 zero-pad path of the original code not implemented
                assert ksz == 2 and pstride == 2
                x = maxpool2x2(x)
            elif mtype == 'upsample':
                x = upsample_nearest(x, int(mdef['stride']))
            elif mtype == 'route':
                layer_i = [int(v) for v in mdef['layers'].split(',')]
                if len(layer_i) == 1:
                    x = layer_outputs[layer_i[0]]
                else:
                    x = jnp.concatenate([layer_outputs[j] for j in layer_i], axis=-1)
            elif mtype == 'shortcut':
                x = shortcut_add(layer_outputs[-1], layer_outputs[int(mdef['from'])])
            elif mtype == 'yolo':
                anchor_idxs = [int(v) for v in mdef['mask'].split(',')]
                a = [float(v) for v in mdef['anchors'].split(',')]
                anchors = [(a[t], a[t + 1]) for t in range(0, len(a), 2)]
                anchors = [anchors[t] for t in anchor_idxs]
                nC = int(mdef['classes'])
                x = yolo_layer_ref(x, anchors, nC, img_size)   # fallback (unused by this cfg)
                output.append(x)
            layer_outputs.append(x)
            i += 1

        io, p = zip(*output)
        return jnp.concatenate(io, axis=1), p


# ----------------------------- main -----------------------------

if __name__ == "__main__":
    key = jax.random.PRNGKey(0)
    kx, kp = jax.random.split(key)
    x = jax.random.normal(kx, (2, 3, 16, 16), jnp.float32)  # NCHW, img_size=16

    model = DarknetPallas(make_module_defs(), kp)
    io, p = model(x)
    io = jax.block_until_ready(io)
    p = jax.block_until_ready(p)

    # sanity on shapes: yolo1 nG=4 -> (2, 3*4*4, 7); yolo2 nG=8 -> (2, 3*8*8, 7)
    assert io.shape == (2, 48 + 192, 7), io.shape
    assert p[0].shape == (2, 3, 4, 4, 7) and p[1].shape == (2, 3, 8, 8, 7)
    assert bool(jnp.all(jnp.isfinite(io)))
    print("KERNEL_OK")
</pallas_src>

<mosaic_0001>
module attributes {stable_mosaic.version = 11 : i64} {
  func.func @_conv_kernel(%arg0: memref<686x3xf32, #tpu.memory_space<vmem>>, %arg1: memref<9x3x8xbf16, #tpu.memory_space<vmem>>, %arg2: memref<1x8xf32, #tpu.memory_space<vmem>>, %arg3: memref<648x8xf32, #tpu.memory_space<vmem>>) attributes {dimension_semantics = [], scalar_prefetch = 0 : i64, scratch_operands = 0 : i64, tpu.core_type = #tpu.core_type<tc>} {
    %c0 = arith.constant 0 : index
    %c0_0 = arith.constant 0 : index
    %0 = vector.load %arg0[%c0, %c0_0] : memref<686x3xf32, #tpu.memory_space<vmem>>, vector<648x3xf32>
    %1 = arith.truncf %0 : vector<648x3xf32> to vector<648x3xbf16>
    %c0_1 = arith.constant 0 : index
    %c0_2 = arith.constant 0 : index
    %c0_3 = arith.constant 0 : index
    %2 = vector.load %arg1[%c0_1, %c0_2, %c0_3] : memref<9x3x8xbf16, #tpu.memory_space<vmem>>, vector<1x3x8xbf16>
    %3 = vector.shape_cast %2 : vector<1x3x8xbf16> to vector<3x8xbf16>
    %cst = arith.constant dense<0.000000e+00> : vector<648x8xf32>
    %4 = tpu.matmul %1, %3, %cst {dimension_numbers = #tpu.dot_dimension_numbers<[1], [0], [0], [1], [0, 0, 1, 1], [], []>} : vector<648x3xbf16>, vector<3x8xbf16>, vector<648x8xf32> -> vector<648x8xf32>
    %c0_4 = arith.constant 0 : index
    %c0_5 = arith.constant 0 : index
    %5 = vector.load %arg3[%c0_4, %c0_5] : memref<648x8xf32, #tpu.memory_space<vmem>>, vector<648x8xf32>
    tpu.vector_store %arg3[%c0_4, %c0_5], %4 {strides = array<i32>} : memref<648x8xf32, #tpu.memory_space<vmem>>, vector<648x8xf32>,
    %c1 = arith.constant 1 : index
    %c0_6 = arith.constant 0 : index
    %6 = vector.load %arg0[%c1, %c0_6] : memref<686x3xf32, #tpu.memory_space<vmem>>, vector<648x3xf32>
    %7 = arith.truncf %6 : vector<648x3xf32> to vector<648x3xbf16>
    %c1_7 = arith.constant 1 : index
    %c0_8 = arith.constant 0 : index
    %c0_9 = arith.constant 0 : index
    %8 = vector.load %arg1[%c1_7, %c0_8, %c0_9] : memref<9x3x8xbf16, #tpu.memory_space<vmem>>, vector<1x3x8xbf16>
    %9 = vector.shape_cast %8 : vector<1x3x8xbf16> to vector<3x8xbf16>
    %cst_10 = arith.constant dense<0.000000e+00> : vector<648x8xf32>
    %10 = tpu.matmul %7, %9, %cst_10 {dimension_numbers = #tpu.dot_dimension_numbers<[1], [0], [0], [1], [0, 0, 1, 1], [], []>} : vector<648x3xbf16>, vector<3x8xbf16>, vector<648x8xf32> -> vector<648x8xf32>
    %c0_11 = arith.constant 0 : index
    %c0_12 = arith.constant 0 : index
    %11 = vector.load %arg3[%c0_11, %c0_12] : memref<648x8xf32, #tpu.memory_space<vmem>>, vector<648x8xf32>
    %12 = arith.addf %11, %10 : vector<648x8xf32>
    %c0_13 = arith.constant 0 : index
    %c0_14 = arith.constant 0 : index
    %13 = vector.load %arg3[%c0_13, %c0_14] : memref<648x8xf32, #tpu.memory_space<vmem>>, vector<648x8xf32>
    tpu.vector_store %arg3[%c0_13, %c0_14], %12 {strides = array<i32>} : memref<648x8xf32, #tpu.memory_space<vmem>>, vector<648x8xf32>,
    %c2 = arith.constant 2 : index
    %c0_15 = arith.constant 0 : index
    %14 = vector.load %arg0[%c2, %c0_15] : memref<686x3xf32, #tpu.memory_space<vmem>>, vector<648x3xf32>
    %15 = arith.truncf %14 : vector<648x3xf32> to vector<648x3xbf16>
    %c2_16 = arith.constant 2 : index
    %c0_17 = arith.constant 0 : index
    %c0_18 = arith.constant 0 : index
    %16 = vector.load %arg1[%c2_16, %c0_17, %c0_18] : memref<9x3x8xbf16, #tpu.memory_space<vmem>>, vector<1x3x8xbf16>
    %17 = vector.shape_cast %16 : vector<1x3x8xbf16> to vector<3x8xbf16>
    %cst_19 = arith.constant dense<0.000000e+00> : vector<648x8xf32>
    %18 = tpu.matmul %15, %17, %cst_19 {dimension_numbers = #tpu.dot_dimension_numbers<[1], [0], [0], [1], [0, 0, 1, 1], [], []>} : vector<648x3xbf16>, vector<3x8xbf16>, vector<648x8xf32> -> vector<648x8xf32>
    %c0_20 = arith.constant 0 : index
    %c0_21 = arith.constant 0 : index
    %19 = vector.load %arg3[%c0_20, %c0_21] : memref<648x8xf32, #tpu.memory_space<vmem>>, vector<648x8xf32>
    %20 = arith.addf %19, %18 : vector<648x8xf32>
    %c0_22 = arith.constant 0 : index
    %c0_23 = arith.constant 0 : index
    %21 = vector.load %arg3[%c0_22, %c0_23] : memref<648x8xf32, #tpu.memory_space<vmem>>, vector<648x8xf32>
    tpu.vector_store %arg3[%c0_22, %c0_23], %20 {strides = array<i32>} : memref<648x8xf32, #tpu.memory_space<vmem>>, vector<648x8xf32>,
    %c18 = arith.constant 18 : index
    %c0_24 = arith.constant 0 : index
    %22 = vector.load %arg0[%c18, %c0_24] : memref<686x3xf32, #tpu.memory_space<vmem>>, vector<648x3xf32>
    %23 = arith.truncf %22 : vector<648x3xf32> to vector<648x3xbf16>
    %c3 = arith.constant 3 : index
    %c0_25 = arith.constant 0 : index
    %c0_26 = arith.constant 0 : index
    %24 = vector.load %arg1[%c3, %c0_25, %c0_26] : memref<9x3x8xbf16, #tpu.memory_space<vmem>>, vector<1x3x8xbf16>
    %25 = vector.shape_cast %24 : vector<1x3x8xbf16> to vector<3x8xbf16>
    %cst_27 = arith.constant dense<0.000000e+00> : vector<648x8xf32>
    %26 = tpu.matmul %23, %25, %cst_27 {dimension_numbers = #tpu.dot_dimension_numbers<[1], [0], [0], [1], [0, 0, 1, 1], [], []>} : vector<648x3xbf16>, vector<3x8xbf16>, vector<648x8xf32> -> vector<648x8xf32>
    %c0_28 = arith.constant 0 : index
    %c0_29 = arith.constant 0 : index
    %27 = vector.load %arg3[%c0_28, %c0_29] : memref<648x8xf32, #tpu.memory_space<vmem>>, vector<648x8xf32>
    %28 = arith.addf %27, %26 : vector<648x8xf32>
    %c0_30 = arith.constant 0 : index
    %c0_31 = arith.constant 0 : index
    %29 = vector.load %arg3[%c0_30, %c0_31] : memref<648x8xf32, #tpu.memory_space<vmem>>, vector<648x8xf32>
    tpu.vector_store %arg3[%c0_30, %c0_31], %28 {strides = array<i32>} : memref<648x8xf32, #tpu.memory_space<vmem>>, vector<648x8xf32>,
    %c19 = arith.constant 19 : index
    %c0_32 = arith.constant 0 : index
    %30 = vector.load %arg0[%c19, %c0_32] : memref<686x3xf32, #tpu.memory_space<vmem>>, vector<648x3xf32>
    %31 = arith.truncf %30 : vector<648x3xf32> to vector<648x3xbf16>
    %c4 = arith.constant 4 : index
    %c0_33 = arith.constant 0 : index
    %c0_34 = arith.constant 0 : index
    %32 = vector.load %arg1[%c4, %c0_33, %c0_34] : memref<9x3x8xbf16, #tpu.memory_space<vmem>>, vector<1x3x8xbf16>
    %33 = vector.shape_cast %32 : vector<1x3x8xbf16> to vector<3x8xbf16>
    %cst_35 = arith.constant dense<0.000000e+00> : vector<648x8xf32>
    %34 = tpu.matmul %31, %33, %cst_35 {dimension_numbers = #tpu.dot_dimension_numbers<[1], [0], [0], [1], [0, 0, 1, 1], [], []>} : vector<648x3xbf16>, vector<3x8xbf16>, vector<648x8xf32> -> vector<648x8xf32>
    %c0_36 = arith.constant 0 : index
    %c0_37 = arith.constant 0 : index
    %35 = vector.load %arg3[%c0_36, %c0_37] : memref<648x8xf32, #tpu.memory_space<vmem>>, vector<648x8xf32>
    %36 = arith.addf %35, %34 : vector<648x8xf32>
    %c0_38 = arith.constant 0 : index
    %c0_39 = arith.constant 0 : index
    %37 = vector.load %arg3[%c0_38, %c0_39] : memref<648x8xf32, #tpu.memory_space<vmem>>, vector<648x8xf32>
    tpu.vector_store %arg3[%c0_38, %c0_39], %36 {strides = array<i32>} : memref<648x8xf32, #tpu.memory_space<vmem>>, vector<648x8xf32>,
    %c20 = arith.constant 20 : index
    %c0_40 = arith.constant 0 : index
    %38 = vector.load %arg0[%c20, %c0_40] : memref<686x3xf32, #tpu.memory_space<vmem>>, vector<648x3xf32>
    %39 = arith.truncf %38 : vector<648x3xf32> to vector<648x3xbf16>
    %c5 = arith.constant 5 : index
    %c0_41 = arith.constant 0 : index
    %c0_42 = arith.constant 0 : index
    %40 = vector.load %arg1[%c5, %c0_41, %c0_42] : memref<9x3x8xbf16, #tpu.memory_space<vmem>>, vector<1x3x8xbf16>
    %41 = vector.shape_cast %40 : vector<1x3x8xbf16> to vector<3x8xbf16>
    %cst_43 = arith.constant dense<0.000000e+00> : vector<648x8xf32>
    %42 = tpu.matmul %39, %41, %cst_43 {dimension_numbers = #tpu.dot_dimension_numbers<[1], [0], [0], [1], [0, 0, 1, 1], [], []>} : vector<648x3xbf16>, vector<3x8xbf16>, vector<648x8xf32> -> vector<648x8xf32>
    %c0_44 = arith.constant 0 : index
    %c0_45 = arith.constant 0 : index
    %43 = vector.load %arg3[%c0_44, %c0_45] : memref<648x8xf32, #tpu.memory_space<vmem>>, vector<648x8xf32>
    %44 = arith.addf %43, %42 : vector<648x8xf32>
    %c0_46 = arith.constant 0 : index
    %c0_47 = arith.constant 0 : index
    %45 = vector.load %arg3[%c0_46, %c0_47] : memref<648x8xf32, #tpu.memory_space<vmem>>, vector<648x8xf32>
    tpu.vector_store %arg3[%c0_46, %c0_47], %44 {strides = array<i32>} : memref<648x8xf32, #tpu.memory_space<vmem>>, vector<648x8xf32>,
    %c36 = arith.constant 36 : index
    %c0_48 = arith.constant 0 : index
    %46 = vector.load %arg0[%c36, %c0_48] : memref<686x3xf32, #tpu.memory_space<vmem>>, vector<648x3xf32>
    %47 = arith.truncf %46 : vector<648x3xf32> to vector<648x3xbf16>
    %c6 = arith.constant 6 : index
    %c0_49 = arith.constant 0 : index
    %c0_50 = arith.constant 0 : index
    %48 = vector.load %arg1[%c6, %c0_49, %c0_50] : memref<9x3x8xbf16, #tpu.memory_space<vmem>>, vector<1x3x8xbf16>
    %49 = vector.shape_cast %48 : vector<1x3x8xbf16> to vector<3x8xbf16>
    %cst_51 = arith.constant dense<0.000000e+00> : vector<648x8xf32>
    %50 = tpu.matmul %47, %49, %cst_51 {dimension_numbers = #tpu.dot_dimension_numbers<[1], [0], [0], [1], [0, 0, 1, 1], [], []>} : vector<648x3xbf16>, vector<3x8xbf16>, vector<648x8xf32> -> vector<648x8xf32>
    %c0_52 = arith.constant 0 : index
    %c0_53 = arith.constant 0 : index
    %51 = vector.load %arg3[%c0_52, %c0_53] : memref<648x8xf32, #tpu.memory_space<vmem>>, vector<648x8xf32>
    %52 = arith.addf %51, %50 : vector<648x8xf32>
    %c0_54 = arith.constant 0 : index
    %c0_55 = arith.constant 0 : index
    %53 = vector.load %arg3[%c0_54, %c0_55] : memref<648x8xf32, #tpu.memory_space<vmem>>, vector<648x8xf32>
    tpu.vector_store %arg3[%c0_54, %c0_55], %52 {strides = array<i32>} : memref<648x8xf32, #tpu.memory_space<vmem>>, vector<648x8xf32>,
    %c37 = arith.constant 37 : index
    %c0_56 = arith.constant 0 : index
    %54 = vector.load %arg0[%c37, %c0_56] : memref<686x3xf32, #tpu.memory_space<vmem>>, vector<648x3xf32>
    %55 = arith.truncf %54 : vector<648x3xf32> to vector<648x3xbf16>
    %c7 = arith.constant 7 : index
    %c0_57 = arith.constant 0 : index
    %c0_58 = arith.constant 0 : index
    %56 = vector.load %arg1[%c7, %c0_57, %c0_58] : memref<9x3x8xbf16, #tpu.memory_space<vmem>>, vector<1x3x8xbf16>
    %57 = vector.shape_cast %56 : vector<1x3x8xbf16> to vector<3x8xbf16>
    %cst_59 = arith.constant dense<0.000000e+00> : vector<648x8xf32>
    %58 = tpu.matmul %55, %57, %cst_59 {dimension_numbers = #tpu.dot_dimension_numbers<[1], [0], [0], [1], [0, 0, 1, 1], [], []>} : vector<648x3xbf16>, vector<3x8xbf16>, vector<648x8xf32> -> vector<648x8xf32>
    %c0_60 = arith.constant 0 : index
    %c0_61 = arith.constant 0 : index
    %59 = vector.load %arg3[%c0_60, %c0_61] : memref<648x8xf32, #tpu.memory_space<vmem>>, vector<648x8xf32>
    %60 = arith.addf %59, %58 : vector<648x8xf32>
    %c0_62 = arith.constant 0 : index
    %c0_63 = arith.constant 0 : index
    %61 = vector.load %arg3[%c0_62, %c0_63] : memref<648x8xf32, #tpu.memory_space<vmem>>, vector<648x8xf32>
    tpu.vector_store %arg3[%c0_62, %c0_63], %60 {strides = array<i32>} : memref<648x8xf32, #tpu.memory_space<vmem>>, vector<648x8xf32>,
    %c38 = arith.constant 38 : index
    %c0_64 = arith.constant 0 : index
    %62 = vector.load %arg0[%c38, %c0_64] : memref<686x3xf32, #tpu.memory_space<vmem>>, vector<648x3xf32>
    %63 = arith.truncf %62 : vector<648x3xf32> to vector<648x3xbf16>
    %c8 = arith.constant 8 : index
    %c0_65 = arith.constant 0 : index
    %c0_66 = arith.constant 0 : index
    %64 = vector.load %arg1[%c8, %c0_65, %c0_66] : memref<9x3x8xbf16, #tpu.memory_space<vmem>>, vector<1x3x8xbf16>
    %65 = vector.shape_cast %64 : vector<1x3x8xbf16> to vector<3x8xbf16>
    %cst_67 = arith.constant dense<0.000000e+00> : vector<648x8xf32>
    %66 = tpu.matmul %63, %65, %cst_67 {dimension_numbers = #tpu.dot_dimension_numbers<[1], [0], [0], [1], [0, 0, 1, 1], [], []>} : vector<648x3xbf16>, vector<3x8xbf16>, vector<648x8xf32> -> vector<648x8xf32>
    %c0_68 = arith.constant 0 : index
    %c0_69 = arith.constant 0 : index
    %67 = vector.load %arg3[%c0_68, %c0_69] : memref<648x8xf32, #tpu.memory_space<vmem>>, vector<648x8xf32>
    %68 = arith.addf %67, %66 : vector<648x8xf32>
    %c0_70 = arith.constant 0 : index
    %c0_71 = arith.constant 0 : index
    %69 = vector.load %arg3[%c0_70, %c0_71] : memref<648x8xf32, #tpu.memory_space<vmem>>, vector<648x8xf32>
    tpu.vector_store %arg3[%c0_70, %c0_71], %68 {strides = array<i32>} : memref<648x8xf32, #tpu.memory_space<vmem>>, vector<648x8xf32>,
    %c0_72 = arith.constant 0 : index
    %c0_73 = arith.constant 0 : index
    %70 = vector.load %arg3[%c0_72, %c0_73] : memref<648x8xf32, #tpu.memory_space<vmem>>, vector<648x8xf32>
    %c0_74 = arith.constant 0 : index
    %c0_75 = arith.constant 0 : index
    %71 = vector.load %arg2[%c0_74, %c0_75] : memref<1x8xf32, #tpu.memory_space<vmem>>, vector<1x8xf32>
    %72 = vector.broadcast %71 : vector<1x8xf32> to vector<648x8xf32>
    %73 = arith.addf %70, %72 : vector<648x8xf32>
    %cst_76 = arith.constant 0.000000e+00 : f32
    %74 = vector.broadcast %cst_76 : f32 to vector<648x8xf32>
    %75 = arith.cmpf ogt, %73, %74 : vector<648x8xf32>
    %cst_77 = arith.constant 1.000000e-01 : f32
    %76 = vector.broadcast %cst_77 : f32 to vector<648x8xf32>
    %77 = arith.mulf %76, %73 : vector<648x8xf32>
    %78 = arith.select %75, %73, %77 : vector<648x8xi1>, vector<648x8xf32>
    %c0_78 = arith.constant 0 : index
    %c0_79 = arith.constant 0 : index
    %79 = vector.load %arg3[%c0_78, %c0_79] : memref<648x8xf32, #tpu.memory_space<vmem>>, vector<648x8xf32>
    tpu.vector_store %arg3[%c0_78, %c0_79], %78 {strides = array<i32>} : memref<648x8xf32, #tpu.memory_space<vmem>>, vector<648x8xf32>,
    return
  }
}

</mosaic_0001>

<bundles_post_ra>
// kernel: tpu_custom_call.1
= control target key start
LH: loop header
LB: loop body
LE: loop exit
PB: predicated region body
PF: predicated region fallthrough
CT: control target
= control target key end

     0   :  { %vm262_vm0 = vcmask 1040384   ;;  %vm263_vm1 = vcmask 1041408   ;;  %v10289_v0 = vmov 0.0   ;;  %v10290_v2 = vmov 65535   ;;  %s18940_s1 = inlined_call_operand.vmem [shape: bf16[9,3,8], index: 1, kind: input, shape index: {}]   ;;  %s18941_s0 = inlined_call_operand.vmem [shape: f32[686,3], index: 0, kind: input, shape index: {}]   ;;  %s18942_s3 = inlined_call_operand.vmem [shape: f32[648,8], index: 3, kind: output, shape index: {}]   ;;  %s18943_s2 = inlined_call_operand.vmem [shape: f32[1,8], index: 2, kind: input, shape index: {}]  }
   0x1   :  { %8788 = vmatprep.subr.bf16.mxu0 %v10289_v0  ;;  %10282 = vmatprep.subr.bf16.mxu1 %v10289_v0  ;;  %v137_v1 = vld [vmem:[%s18940_s1] sm:$0x3]  ;;  %v264_v3 = vsel %vm262_vm0, 4294967295, %v10290_v2  ;;  %v16_v5 = vld [vmem:[%s18941_s0 + $0x8] sm:$0xff]  ;;  %vm10291_vm2 = vmmov 0   ;;  %v57_v7 = vld [vmem:[%s18941_s0 + $0x150] sm:$0xff] }
   0x2   :  { %v15_v4 = vld [vmem:[%s18941_s0] sm:$0xff]  ;;  %v10323_v6 = vsel %vm263_vm1, %v264_v3, 0  ;;  %8790 = vmatprep.mubr.msk.bf16.mxu0 %vm10291_vm2, %v10289_v0  ;;  %8874 = vmatprep.mubr.msk.bf16.mxu1 %vm10291_vm2, %v10289_v0  ;;  %v58_v8 = vld [vmem:[%s18941_s0 + $0x158] sm:$0xff]  ;;  %vm138_vm3 = vcmask 23552   ;;  %v17_v16 = vld [vmem:[%s18941_s0 + $0x10] sm:$0xff]  ;;  %vm629_vm4 = vcmask 64512  }
   0x3   :  { %v8073_v9 = vld [vmem:[%s18940_s1 + $0x2] sm:$0x3]  ;;  %v267_v10 = vand.u32 %v10323_v6, %v137_v1  ;;  %v8115_v11 = vld [vmem:[%s18940_s1 + $0x4] sm:$0x3]  ;;  %v96_v12 = vpack.c.bf16 %v16_v5, %v15_v4  ;;  %v117_v13 = vpack.c.bf16 %v58_v8, %v57_v7  ;;  %v18_v17 = vld [vmem:[%s18941_s0 + $0x18] sm:$0xff] }
   0x4   :  { %v959_v14 = vand.u32 %v8073_v9, %v10323_v6  ;;  %v1812_v15 = vand.u32 %v8115_v11, %v10323_v6  ;;  %v59_v18 = vld [vmem:[%s18941_s0 + $0x160] sm:$0xff]  ;;  %v60_v19 = vld [vmem:[%s18941_s0 + $0x168] sm:$0xff]  ;;  %v97_v20 = vpack.c.bf16 %v18_v17, %v17_v16  ;;  %v61_v24 = vld [vmem:[%s18941_s0 + $0x170] sm:$0xff] }
   0x5   :  { %8789 = vmatpush3.bf16.msra.mxu0 %v267_v10  ;;  %10283 = vmatpush3.bf16.msra.mxu1 %v267_v10  ;;  %v118_v21 = vpack.c.bf16 %v60_v19, %v59_v18  ;;  %v19_v22 = vld [vmem:[%s18941_s0 + $0x20] sm:$0xff]  ;;  %v20_v23 = vld [vmem:[%s18941_s0 + $0x28] sm:$0xff]  ;;  %v62_v25 = vld [vmem:[%s18941_s0 + $0x178] sm:$0xff] }
   0x6   :  { %8954 = vmatprep.subr.bf16.mxu1 %v10289_v0  ;;  %9120 = vmatprep.subr.bf16.mxu0 %v10289_v0  ;;  %v98_v26 = vpack.c.bf16 %v20_v23, %v19_v22  ;;  %v119_v27 = vpack.c.bf16 %v62_v25, %v61_v24  ;;  %v21_v28 = vld [vmem:[%s18941_s0 + $0x30] sm:$0xff]  ;;  %v22_v29 = vld [vmem:[%s18941_s0 + $0x38] sm:$0xff]  ;;  %v63_v30 = vld [vmem:[%s18941_s0 + $0x180] sm:$0xff] }
   0x7   :  { %v64_v31 = vld [vmem:[%s18941_s0 + $0x188] sm:$0xff]  ;;  %v99_v32 = vpack.c.bf16 %v22_v29, %v21_v28  ;;  %v23_v34 = vld [vmem:[%s18941_s0 + $0x40] sm:$0xff]  ;;  %v65_v36 = vld [vmem:[%s18941_s0 + $0x190] sm:$0xff] }
   0x8   :  { %8791 = vmatmul.mubr.msk.bf16.vlgmr.msra.gmra.mrb[0].mxu0 %vm138_vm3, %v96_v12  ;;  %8875 = vmatmul.mubr.msk.bf16.vlgmr.msra.gmra.mrb[0].mxu1 %vm138_vm3, %v117_v13  ;;  %v120_v33 = vpack.c.bf16 %v64_v31, %v63_v30  ;;  %v24_v35 = vld [vmem:[%s18941_s0 + $0x48] sm:$0xff]  ;;  %v66_v37 = vld [vmem:[%s18941_s0 + $0x198] sm:$0xff]  ;;  %v25_v40 = vld [vmem:[%s18941_s0 + $0x50] sm:$0xff] }
   0x9   :  { %8955 = vmatpush3.bf16.msra.mxu1 %v959_v14  ;;  %9121 = vmatpush3.bf16.msra.mxu0 %v1812_v15  ;;  %v100_v38 = vpack.c.bf16 %v24_v35, %v23_v34  ;;  %v121_v39 = vpack.c.bf16 %v66_v37, %v65_v36  ;;  %v26_v41 = vld [vmem:[%s18941_s0 + $0x58] sm:$0xff]  ;;  %v67_v42 = vld [vmem:[%s18941_s0 + $0x1a0] sm:$0xff]  ;;  %v68_v43 = vld [vmem:[%s18941_s0 + $0x1a8] sm:$0xff] }
   0xa   :  { %8794 = vmatprep.mubr.msk.bf16.mxu0 %vm10291_vm2, %v10289_v0  ;;  %8878 = vmatprep.mubr.msk.bf16.mxu1 %vm10291_vm2, %v10289_v0  ;;  %v101_v44 = vpack.c.bf16 %v26_v41, %v25_v40  ;;  %v122_v45 = vpack.c.bf16 %v68_v43, %v67_v42  ;;  %v27_v46 = vld [vmem:[%s18941_s0 + $0x60] sm:$0xff]  ;;  %v28_v47 = vld [vmem:[%s18941_s0 + $0x68] sm:$0xff]  ;;  %v69_v48 = vld [vmem:[%s18941_s0 + $0x1b0] sm:$0xff] }
   0xb   :  { %9286 = vmatprep.subr.bf16.mxu1 %v10289_v0  ;;  %9452 = vmatprep.subr.bf16.mxu0 %v10289_v0  ;;  %v70_v49 = vld [vmem:[%s18941_s0 + $0x1b8] sm:$0xff]  ;;  %v102_v50 = vpack.c.bf16 %v28_v47, %v27_v46  ;;  %v29_v52 = vld [vmem:[%s18941_s0 + $0x70] sm:$0xff]  ;;  %v71_v54 = vld [vmem:[%s18941_s0 + $0x1c0] sm:$0xff] }
   0xc   :  { %v123_v51 = vpack.c.bf16 %v70_v49, %v69_v48  ;;  %v30_v53 = vld [vmem:[%s18941_s0 + $0x78] sm:$0xff]  ;;  %v72_v55 = vld [vmem:[%s18941_s0 + $0x1c8] sm:$0xff]  ;;  %v31_v58 = vld [vmem:[%s18941_s0 + $0x80] sm:$0xff] }
   0xd   :  { %v103_v56 = vpack.c.bf16 %v30_v53, %v29_v52  ;;  %v124_v57 = vpack.c.bf16 %v72_v55, %v71_v54  ;;  %v32_v59 = vld [vmem:[%s18941_s0 + $0x88] sm:$0xff]  ;;  %v73_v60 = vld [vmem:[%s18941_s0 + $0x1d0] sm:$0xff]  ;;  %v74_v61 = vld [vmem:[%s18941_s0 + $0x1d8] sm:$0xff] }
   0xe   :  { %v104_v62 = vpack.c.bf16 %v32_v59, %v31_v58  ;;  %v125_v63 = vpack.c.bf16 %v74_v61, %v73_v60  ;;  %v33_v1 = vld [vmem:[%s18941_s0 + $0x90] sm:$0xff]  ;;  %v34_v2 = vld [vmem:[%s18941_s0 + $0x98] sm:$0xff]  ;;  %v75_v3 = vld [vmem:[%s18941_s0 + $0x1e0] sm:$0xff] }
   0xf   :  { %v76_v4 = vld [vmem:[%s18941_s0 + $0x1e8] sm:$0xff]  ;;  %v105_v5 = vpack.c.bf16 %v34_v2, %v33_v1  ;;  %v35_v8 = vld [vmem:[%s18941_s0 + $0xa0] sm:$0xff]  ;;  %v77_v10 = vld [vmem:[%s18941_s0 + $0x1f0] sm:$0xff] }
  0x10   :  { %8795 = vmatmul.mubr.msk.bf16.gmra.mrb[4].mxu0 %vm138_vm3, %v97_v20  ;;  %8879 = vmatmul.mubr.msk.bf16.gmra.mrb[4].mxu1 %vm138_vm3, %v118_v21  ;;  %v126_v7 = vpack.c.bf16 %v76_v4, %v75_v3  ;;  %v36_v9 = vld [vmem:[%s18941_s0 + $0xa8] sm:$0xff]  ;;  %v78_v11 = vld [vmem:[%s18941_s0 + $0x1f8] sm:$0xff]  ;;  %v37_v14 = vld [vmem:[%s18941_s0 + $0xb0] sm:$0xff] }
  0x11   :  { %8798 = vmatprep.mubr.msk.bf16.mxu0 %vm10291_vm2, %v10289_v0  ;;  %8882 = vmatprep.mubr.msk.bf16.mxu1 %vm10291_vm2, %v10289_v0  ;;  %v106_v12 = vpack.c.bf16 %v36_v9, %v35_v8  ;;  %v127_v13 = vpack.c.bf16 %v78_v11, %v77_v10  ;;  %v38_v15 = vld [vmem:[%s18941_s0 + $0xb8] sm:$0xff]  ;;  %v79_v16 = vld [vmem:[%s18941_s0 + $0x200] sm:$0xff]  ;;  %v80_v17 = vld [vmem:[%s18941_s0 + $0x208] sm:$0xff] }
  0x12   :  { %v107_v18 = vpack.c.bf16 %v38_v15, %v37_v14  ;;  %v128_v19 = vpack.c.bf16 %v80_v17, %v79_v16  ;;  %v39_v20 = vld [vmem:[%s18941_s0 + $0xc0] sm:$0xff]  ;;  %v40_v21 = vld [vmem:[%s18941_s0 + $0xc8] sm:$0xff]  ;;  %v81_v22 = vld [vmem:[%s18941_s0 + $0x210] sm:$0xff] }
  0x13   :  { %v82_v23 = vld [vmem:[%s18941_s0 + $0x218] sm:$0xff]  ;;  %v108_v24 = vpack.c.bf16 %v40_v21, %v39_v20  ;;  %v83_v28 = vld [vmem:[%s18941_s0 + $0x220] sm:$0xff]  ;;  %v84_v29 = vld [vmem:[%s18941_s0 + $0x228] sm:$0xff] }
  0x14   :  { %v129_v25 = vpack.c.bf16 %v82_v23, %v81_v22  ;;  %v130_v31 = vpack.c.bf16 %v84_v29, %v83_v28  ;;  %v85_v34 = vld [vmem:[%s18941_s0 + $0x230] sm:$0xff]  ;;  %v86_v35 = vld [vmem:[%s18941_s0 + $0x238] sm:$0xff]  ;;  %v87_v40 = vld [vmem:[%s18941_s0 + $0x240] sm:$0xff] }
  0x15   :  { %v131_v37 = vpack.c.bf16 %v86_v35, %v85_v34  ;;  %v88_v41 = vld [vmem:[%s18941_s0 + $0x248] sm:$0xff]  ;;  %v89_v46 = vld [vmem:[%s18941_s0 + $0x250] sm:$0xff]  ;;  %v90_v47 = vld [vmem:[%s18941_s0 + $0x258] sm:$0xff] }
  0x16   :  { %v132_v43 = vpack.c.bf16 %v88_v41, %v87_v40  ;;  %v133_v49 = vpack.c.bf16 %v90_v47, %v89_v46  ;;  %v91_v52 = vld [vmem:[%s18941_s0 + $0x260] sm:$0xff]  ;;  %v92_v53 = vld [vmem:[%s18941_s0 + $0x268] sm:$0xff]  ;;  %v93_v58 = vld [vmem:[%s18941_s0 + $0x270] sm:$0xff] }
  0x17   :  { %v134_v55 = vpack.c.bf16 %v92_v53, %v91_v52  ;;  %v94_v59 = vld [vmem:[%s18941_s0 + $0x278] sm:$0xff]  ;;  %v95_v1 = vld [vmem:[%s18941_s0 + $0x280] sm:$0xff]  ;;  %v712_v8 = vld [vmem:[%s18941_s0 + $0x9] sm:$0xff] }
  0x18   :  { %8799 = vmatmul.mubr.msk.bf16.gmra.mrb[8].mxu0 %vm138_vm3, %v98_v26  ;;  %8883 = vmatmul.mubr.msk.bf16.gmra.mrb[8].mxu1 %vm138_vm3, %v119_v27  ;;  %v41_v26 = vld [vmem:[%s18941_s0 + $0xd0] sm:$0xff]  ;;  %v42_v27 = vld [vmem:[%s18941_s0 + $0xd8] sm:$0xff]  ;;  %v135_v61 = vpack.c.bf16 %v94_v59, %v93_v58  ;;  %v136_v3 = vpack.c.bf16 %v95_v1, %v95_v1  ;;  %v55_v4 = vld [vmem:[%s18941_s0 + $0x140] sm:$0xff] }
  0x19   :  { %8802 = vmatprep.mubr.msk.bf16.mxu0 %vm10291_vm2, %v10289_v0  ;;  %8886 = vmatprep.mubr.msk.bf16.mxu1 %vm10291_vm2, %v10289_v0  ;;  %v109_v30 = vpack.c.bf16 %v42_v27, %v41_v26  ;;  %v8157_v9 = vld [vmem:[%s18940_s1 + $0x6] sm:$0x3]  ;;  %v714_v14 = vld [vmem:[%s18941_s0 + $0x19] sm:$0xff]  ;;  %v1565_v16 = vld [vmem:[%s18941_s0 + $0xa] sm:$0xff] }
  0x1a   :  { %v1564_v15 = vld [vmem:[%s18941_s0 + $0x2] sm:$0xff]  ;;  %v1566_v23 = vld [vmem:[%s18941_s0 + $0x12] sm:$0xff] }
  0x1b   :  { %v8199_v17 = vld [vmem:[%s18940_s1 + $0x8] sm:$0x3]  ;;  %v717_v27 = vld [vmem:[%s18941_s0 + $0x31] sm:$0xff]  ;;  %v718_v28 = vld [vmem:[%s18941_s0 + $0x39] sm:$0xff] }
  0x1c   :  { %v3518_v20 = vand.u32 %v8199_v17, %v10323_v6  ;;  %v715_v21 = vld [vmem:[%s18941_s0 + $0x21] sm:$0xff]  ;;  %v716_v22 = vld [vmem:[%s18941_s0 + $0x29] sm:$0xff]  ;;  %v1570_v35 = vld [vmem:[%s18941_s0 + $0x32] sm:$0xff] }
  0x1d   :  { %v1568_v29 = vld [vmem:[%s18941_s0 + $0x22] sm:$0xff]  ;;  %v722_v40 = vld [vmem:[%s18941_s0 + $0x59] sm:$0xff]  ;;  %v729_v17 = vld [vmem:[%s18941_s0 + $0x91] sm:$0xff] }
  0x1e   :  { %v720_v34 = vld [vmem:[%s18941_s0 + $0x49] sm:$0xff]  ;;  %v1574_v47 = vld [vmem:[%s18941_s0 + $0x52] sm:$0xff] }
  0x1f   :  { %v1572_v41 = vld [vmem:[%s18941_s0 + $0x42] sm:$0xff]  ;;  %v726_v52 = vld [vmem:[%s18941_s0 + $0x79] sm:$0xff] }
  0x20   :  { %8803 = vmatmul.mubr.msk.bf16.gmra.mrb[12].mxu0 %vm138_vm3, %v99_v32  ;;  %8887 = vmatmul.mubr.msk.bf16.gmra.mrb[12].mxu1 %vm138_vm3, %v120_v33  ;;  %v43_v32 = vld [vmem:[%s18941_s0 + $0xe0] sm:$0xff]  ;;  %v44_v33 = vld [vmem:[%s18941_s0 + $0xe8] sm:$0xff] }
  0x21   :  { %8806 = vmatprep.mubr.msk.bf16.mxu0 %vm10291_vm2, %v10289_v0  ;;  %8890 = vmatprep.mubr.msk.bf16.mxu1 %vm10291_vm2, %v10289_v0  ;;  %v110_v36 = vpack.c.bf16 %v44_v33, %v43_v32  ;;  %v719_v33 = vld [vmem:[%s18941_s0 + $0x41] sm:$0xff]  ;;  %v724_v46 = vld [vmem:[%s18941_s0 + $0x69] sm:$0xff] }
  0x22   :  { %v1576_v53 = vld [vmem:[%s18941_s0 + $0x62] sm:$0xff] }
  0x28   :  { %8807 = vmatmul.mubr.msk.bf16.gmra.mrb[16].mxu0 %vm138_vm3, %v100_v38  ;;  %8891 = vmatmul.mubr.msk.bf16.gmra.mrb[16].mxu1 %vm138_vm3, %v121_v39  ;;  %v45_v38 = vld [vmem:[%s18941_s0 + $0xf0] sm:$0xff]  ;;  %v46_v39 = vld [vmem:[%s18941_s0 + $0xf8] sm:$0xff] }
  0x29   :  { %8810 = vmatprep.mubr.msk.bf16.mxu0 %vm10291_vm2, %v10289_v0  ;;  %8894 = vmatprep.mubr.msk.bf16.mxu1 %vm10291_vm2, %v10289_v0  ;;  %v111_v42 = vpack.c.bf16 %v46_v39, %v45_v38  ;;  %v721_v39 = vld [vmem:[%s18941_s0 + $0x51] sm:$0xff] }
  0x30   :  { %8811 = vmatmul.mubr.msk.bf16.gmra.mrb[20].mxu0 %vm138_vm3, %v101_v44  ;;  %8895 = vmatmul.mubr.msk.bf16.gmra.mrb[20].mxu1 %vm138_vm3, %v122_v45  ;;  %v47_v44 = vld [vmem:[%s18941_s0 + $0x100] sm:$0xff]  ;;  %v48_v45 = vld [vmem:[%s18941_s0 + $0x108] sm:$0xff] }
  0x31   :  { %8814 = vmatprep.mubr.msk.bf16.mxu0 %vm10291_vm2, %v10289_v0  ;;  %8898 = vmatprep.mubr.msk.bf16.mxu1 %vm10291_vm2, %v10289_v0  ;;  %v112_v48 = vpack.c.bf16 %v48_v45, %v47_v44  ;;  %v723_v45 = vld [vmem:[%s18941_s0 + $0x61] sm:$0xff] }
  0x38   :  { %8815 = vmatmul.mubr.msk.bf16.gmra.mrb[24].mxu0 %vm138_vm3, %v102_v50  ;;  %8899 = vmatmul.mubr.msk.bf16.gmra.mrb[24].mxu1 %vm138_vm3, %v123_v51  ;;  %v49_v50 = vld [vmem:[%s18941_s0 + $0x110] sm:$0xff]  ;;  %v50_v51 = vld [vmem:[%s18941_s0 + $0x118] sm:$0xff] }
  0x39   :  { %8818 = vmatprep.mubr.msk.bf16.mxu0 %vm10291_vm2, %v10289_v0  ;;  %8902 = vmatprep.mubr.msk.bf16.mxu1 %vm10291_vm2, %v10289_v0  ;;  %v113_v54 = vpack.c.bf16 %v50_v51, %v49_v50  ;;  %v725_v51 = vld [vmem:[%s18941_s0 + $0x71] sm:$0xff] }
  0x3a   :  { %v799_v59 = vpack.c.bf16 %v726_v52, %v725_v51 }
  0x40   :  { %8819 = vmatmul.mubr.msk.bf16.gmra.mrb[28].mxu0 %vm138_vm3, %v103_v56  ;;  %8903 = vmatmul.mubr.msk.bf16.gmra.mrb[28].mxu1 %vm138_vm3, %v124_v57  ;;  %v51_v56 = vld [vmem:[%s18941_s0 + $0x120] sm:$0xff]  ;;  %v52_v57 = vld [vmem:[%s18941_s0 + $0x128] sm:$0xff] }
  0x41   :  { %8822 = vmatprep.mubr.msk.bf16.mxu0 %vm10291_vm2, %v10289_v0  ;;  %8906 = vmatprep.mubr.msk.bf16.mxu1 %vm10291_vm2, %v10289_v0  ;;  %v114_v60 = vpack.c.bf16 %v52_v57, %v51_v56 }
  0x48   :  { %8823 = vmatmul.mubr.msk.bf16.gmra.mrb[32].mxu0 %vm138_vm3, %v104_v62  ;;  %8907 = vmatmul.mubr.msk.bf16.gmra.mrb[32].mxu1 %vm138_vm3, %v125_v63  ;;  %v53_v62 = vld [vmem:[%s18941_s0 + $0x130] sm:$0xff]  ;;  %v54_v63 = vld [vmem:[%s18941_s0 + $0x138] sm:$0xff] }
  0x49   :  { %8826 = vmatprep.mubr.msk.bf16.mxu0 %vm10291_vm2, %v10289_v0  ;;  %8910 = vmatprep.mubr.msk.bf16.mxu1 %vm10291_vm2, %v10289_v0  ;;  %v115_v2 = vpack.c.bf16 %v54_v63, %v53_v62 }
  0x50   :  { %8827 = vmatmul.mubr.msk.bf16.gmra.mrb[36].mxu0 %vm138_vm3, %v105_v5  ;;  %8911 = vmatmul.mubr.msk.bf16.gmra.mrb[36].mxu1 %vm138_vm3, %v126_v7  ;;  %v56_v5 = vld [vmem:[%s18941_s0 + $0x148] sm:$0xff] }
  0x51   :  { %8830 = vmatprep.mubr.msk.bf16.mxu0 %vm10291_vm2, %v10289_v0  ;;  %8914 = vmatprep.mubr.msk.bf16.mxu1 %vm10291_vm2, %v10289_v0  ;;  %v711_v7 = vld [vmem:[%s18941_s0 + $0x1] sm:$0xff]  ;;  %v116_v10 = vpack.c.bf16 %v56_v5, %v55_v4  ;;  %v1578_v4 = vld [vmem:[%s18941_s0 + $0x72] sm:$0xff] }
  0x52   :  { %v792_v11 = vpack.c.bf16 %v712_v8, %v711_v7  ;;  %v1579_v5 = vld [vmem:[%s18941_s0 + $0x7a] sm:$0xff] }
  0x58   :  { %8831 = vmatmul.mubr.msk.bf16.gmra.mrb[40].mxu0 %vm138_vm3, %v106_v12  ;;  %8915 = vmatmul.mubr.msk.bf16.gmra.mrb[40].mxu1 %vm138_vm3, %v127_v13  ;;  %v2665_v12 = vand.u32 %v8157_v9, %v10323_v6  ;;  %v713_v13 = vld [vmem:[%s18941_s0 + $0x11] sm:$0xff] }
  0x59   :  { %8834 = vmatprep.mubr.msk.bf16.mxu0 %vm10291_vm2, %v10289_v0  ;;  %8918 = vmatprep.mubr.msk.bf16.mxu1 %vm10291_vm2, %v10289_v0 }
  0x60   :  { %8835 = vmatmul.mubr.msk.bf16.gmra.mrb[44].mxu0 %vm138_vm3, %v107_v18  ;;  %8919 = vmatmul.mubr.msk.bf16.gmra.mrb[44].mxu1 %vm138_vm3, %v128_v19  ;;  %v793_v18 = vpack.c.bf16 %v714_v14, %v713_v13  ;;  %v1645_v19 = vpack.c.bf16 %v1565_v16, %v1564_v15 }
  0x61   :  { %8838 = vmatprep.mubr.msk.bf16.mxu0 %vm10291_vm2, %v10289_v0  ;;  %8922 = vmatprep.mubr.msk.bf16.mxu1 %vm10291_vm2, %v10289_v0 }
  0x68   :  { %8839 = vmatmul.mubr.msk.bf16.gmra.mrb[48].mxu0 %vm138_vm3, %v108_v24  ;;  %8923 = vmatmul.mubr.msk.bf16.gmra.mrb[48].mxu1 %vm138_vm3, %v129_v25  ;;  %v1567_v24 = vld [vmem:[%s18941_s0 + $0x1a] sm:$0xff]  ;;  %v794_v25 = vpack.c.bf16 %v716_v22, %v715_v21 }
  0x69   :  { %8842 = vmatprep.mubr.msk.bf16.mxu0 %vm10291_vm2, %v10289_v0  ;;  %8926 = vmatprep.mubr.msk.bf16.mxu1 %vm10291_vm2, %v10289_v0  ;;  %v1646_v26 = vpack.c.bf16 %v1567_v24, %v1566_v23 }
  0x70   :  { %8843 = vmatmul.mubr.msk.bf16.gmra.mrb[52].mxu0 %vm138_vm3, %v109_v30  ;;  %8927 = vmatmul.mubr.msk.bf16.gmra.mrb[52].mxu1 %vm138_vm3, %v130_v31  ;;  %v1569_v30 = vld [vmem:[%s18941_s0 + $0x2a] sm:$0xff]  ;;  %v795_v31 = vpack.c.bf16 %v718_v28, %v717_v27 }
  0x71   :  { %8846 = vmatprep.mubr.msk.bf16.mxu0 %vm10291_vm2, %v10289_v0  ;;  %8930 = vmatprep.mubr.msk.bf16.mxu1 %vm10291_vm2, %v10289_v0  ;;  %v1647_v32 = vpack.c.bf16 %v1569_v30, %v1568_v29 }
  0x78   :  { %8847 = vmatmul.mubr.msk.bf16.gmra.mrb[56].mxu0 %vm138_vm3, %v110_v36  ;;  %8931 = vmatmul.mubr.msk.bf16.gmra.mrb[56].mxu1 %vm138_vm3, %v131_v37  ;;  %v1571_v36 = vld [vmem:[%s18941_s0 + $0x3a] sm:$0xff]  ;;  %v796_v37 = vpack.c.bf16 %v720_v34, %v719_v33  ;;  %v1582_v33 = vld [vmem:[%s18941_s0 + $0x92] sm:$0xff] }
  0x79   :  { %8850 = vmatprep.mubr.msk.bf16.mxu0 %vm10291_vm2, %v10289_v0  ;;  %8934 = vmatprep.mubr.msk.bf16.mxu1 %vm10291_vm2, %v10289_v0  ;;  %v1648_v38 = vpack.c.bf16 %v1571_v36, %v1570_v35  ;;  %v1583_v34 = vld [vmem:[%s18941_s0 + $0x9a] sm:$0xff] }
  0x80   :  { %8851 = vmatmul.mubr.msk.bf16.gmra.mrb[60].mxu0 %vm138_vm3, %v111_v42  ;;  %8935 = vmatmul.mubr.msk.bf16.gmra.mrb[60].mxu1 %vm138_vm3, %v132_v43  ;;  %v1573_v42 = vld [vmem:[%s18941_s0 + $0x4a] sm:$0xff]  ;;  %v797_v43 = vpack.c.bf16 %v722_v40, %v721_v39  ;;  %v1654_v40 = vpack.c.bf16 %v1583_v34, %v1582_v33 }
  0x81   :  { %8854 = vmatprep.mubr.msk.bf16.mxu0 %vm10291_vm2, %v10289_v0  ;;  %8938 = vmatprep.mubr.msk.bf16.mxu1 %vm10291_vm2, %v10289_v0  ;;  %v1649_v44 = vpack.c.bf16 %v1573_v42, %v1572_v41 }
  0x88   :  { %8855 = vmatmul.mubr.msk.bf16.gmra.mrb[64].mxu0 %vm138_vm3, %v112_v48  ;;  %8939 = vmatmul.mubr.msk.bf16.gmra.mrb[64].mxu1 %vm138_vm3, %v133_v49  ;;  %v1575_v48 = vld [vmem:[%s18941_s0 + $0x5a] sm:$0xff]  ;;  %v798_v49 = vpack.c.bf16 %v724_v46, %v723_v45  ;;  %v733_v45 = vld [vmem:[%s18941_s0 + $0xb1] sm:$0xff] }
  0x89   :  { %8858 = vmatprep.mubr.msk.bf16.mxu0 %vm10291_vm2, %v10289_v0  ;;  %8942 = vmatprep.mubr.msk.bf16.mxu1 %vm10291_vm2, %v10289_v0  ;;  %v1650_v50 = vpack.c.bf16 %v1575_v48, %v1574_v47  ;;  %v734_v46 = vld [vmem:[%s18941_s0 + $0xb9] sm:$0xff]  ;;  %v1584_v47 = vld [vmem:[%s18941_s0 + $0xa2] sm:$0xff]  ;;  %v1585_v48 = vld [vmem:[%s18941_s0 + $0xaa] sm:$0xff] }
  0x90   :  { %8859 = vmatmul.mubr.msk.bf16.gmra.mrb[68].mxu0 %vm138_vm3, %v113_v54  ;;  %8943 = vmatmul.mubr.msk.bf16.gmra.mrb[68].mxu1 %vm138_vm3, %v134_v55  ;;  %v1577_v54 = vld [vmem:[%s18941_s0 + $0x6a] sm:$0xff] }
  0x91   :  { %8862 = vmatprep.mubr.msk.bf16.mxu0 %vm10291_vm2, %v10289_v0  ;;  %8946 = vmatprep.mubr.msk.bf16.mxu1 %vm10291_vm2, %v10289_v0 }
  0x98   :  { %8863 = vmatmul.mubr.msk.bf16.gmra.mrb[72].mxu0 %vm138_vm3, %v114_v60  ;;  %8947 = vmatmul.mubr.msk.bf16.gmra.mrb[72].mxu1 %vm138_vm3, %v135_v61  ;;  %v1651_v60 = vpack.c.bf16 %v1577_v54, %v1576_v53  ;;  %v803_v53 = vpack.c.bf16 %v734_v46, %v733_v45  ;;  %v1655_v54 = vpack.c.bf16 %v1585_v48, %v1584_v47 }
  0x99   :  { %8866 = vmatprep.mubr.msk.bf16.mxu0 %vm10291_vm2, %v10289_v0  ;;  %8950 = vmatprep.mubr.msk.bf16.mxu1 %vm10291_vm2, %v10289_v0 }
  0xa0   :  { %8867 = vmatmul.mubr.msk.bf16.gmra.mrb[76].mxu0 %vm138_vm3, %v115_v2  ;;  %8951 = vmatmul.mubr.msk.bf16.gmra.mrb[76].mxu1 %vm138_vm3, %v136_v3  ;;  %v727_v2 = vld [vmem:[%s18941_s0 + $0x81] sm:$0xff]  ;;  %v728_v3 = vld [vmem:[%s18941_s0 + $0x89] sm:$0xff] }
  0xa1   :  { %8870 = vmatprep.mubr.msk.bf16.mxu0 %vm10291_vm2, %v10289_v0  ;;  %8956 = vmatprep.mubr.msk.bf16.mxu1 %vm10291_vm2, %v10289_v0 }
  0xa8   :  { %8871 = vmatmul.mubr.msk.bf16.gmra.mrb[80].mxu0 %vm138_vm3, %v116_v10  ;;  %8957 = vmatmul.mubr.msk.bf16.vlgmr.msra.gmra.mrb[80].mxu1 %vm138_vm3, %v792_v11  ;;  %v800_v11 = vpack.c.bf16 %v728_v3, %v727_v2 }
  0xa9   :  { %9287 = vmatpush3.bf16.msra.mxu1 %v2665_v12  ;;  %8960 = vmatprep.mubr.msk.bf16.mxu1 %vm10291_vm2, %v10289_v0  ;;  %v1652_v12 = vpack.c.bf16 %v1579_v5, %v1578_v4 }
  0xaa   :  { %9122 = vmatprep.mubr.msk.bf16.mxu0 %vm10291_vm2, %v10289_v0  ;;  %9618 = vmatprep.subr.bf16.mxu1 %v10289_v0 }
  0xb0   :  { %8961 = vmatmul.mubr.msk.bf16.gmra.mrb[84].mxu1 %vm138_vm3, %v793_v18  ;;  %9123 = vmatmul.mubr.msk.bf16.vlgmr.msra.gmra.mrb[84].mxu0 %vm138_vm3, %v1645_v19  ;;  %v730_v18 = vld [vmem:[%s18941_s0 + $0x99] sm:$0xff]  ;;  %v1580_v19 = vld [vmem:[%s18941_s0 + $0x82] sm:$0xff] }
  0xb1   :  { %9453 = vmatpush3.bf16.msra.mxu0 %v3518_v20  ;;  %8964 = vmatprep.mubr.msk.bf16.mxu1 %vm10291_vm2, %v10289_v0  ;;  %v1581_v20 = vld [vmem:[%s18941_s0 + $0x8a] sm:$0xff] }
  0xb2   :  { %9126 = vmatprep.mubr.msk.bf16.mxu0 %vm10291_vm2, %v10289_v0  ;;  %9784 = vmatprep.subr.bf16.mxu0 %v10289_v0 }
  0xb8   :  { %8965 = vmatmul.mubr.msk.bf16.gmra.mrb[88].mxu1 %vm138_vm3, %v794_v25  ;;  %9127 = vmatmul.mubr.msk.bf16.gmra.mrb[88].mxu0 %vm138_vm3, %v1646_v26  ;;  %v801_v25 = vpack.c.bf16 %v730_v18, %v729_v17  ;;  %v1653_v26 = vpack.c.bf16 %v1581_v20, %v1580_v19 }
  0xb9   :  { %8968 = vmatprep.mubr.msk.bf16.mxu1 %vm10291_vm2, %v10289_v0  ;;  %9130 = vmatprep.mubr.msk.bf16.mxu0 %vm10291_vm2, %v10289_v0 }
  0xc0   :  { %8969 = vmatmul.mubr.msk.bf16.gmra.mrb[92].mxu1 %vm138_vm3, %v795_v31  ;;  %9131 = vmatmul.mubr.msk.bf16.gmra.mrb[92].mxu0 %vm138_vm3, %v1647_v32  ;;  %v731_v31 = vld [vmem:[%s18941_s0 + $0xa1] sm:$0xff]  ;;  %v732_v32 = vld [vmem:[%s18941_s0 + $0xa9] sm:$0xff] }
  0xc1   :  { %8972 = vmatprep.mubr.msk.bf16.mxu1 %vm10291_vm2, %v10289_v0  ;;  %9134 = vmatprep.mubr.msk.bf16.mxu0 %vm10291_vm2, %v10289_v0  ;;  %v802_v39 = vpack.c.bf16 %v732_v32, %v731_v31 }
  0xc8   :  { %8973 = vmatmul.mubr.msk.bf16.gmra.mrb[96].mxu1 %vm138_vm3, %v796_v37  ;;  %9135 = vmatmul.mubr.msk.bf16.gmra.mrb[96].mxu0 %vm138_vm3, %v1648_v38 }
  0xc9   :  { %8976 = vmatprep.mubr.msk.bf16.mxu1 %vm10291_vm2, %v10289_v0  ;;  %9138 = vmatprep.mubr.msk.bf16.mxu0 %vm10291_vm2, %v10289_v0 }
  0xd0   :  { %8977 = vmatmul.mubr.msk.bf16.gmra.mrb[100].mxu1 %vm138_vm3, %v797_v43  ;;  %9139 = vmatmul.mubr.msk.bf16.gmra.mrb[100].mxu0 %vm138_vm3, %v1649_v44 }
  0xd1   :  { %8980 = vmatprep.mubr.msk.bf16.mxu1 %vm10291_vm2, %v10289_v0  ;;  %9142 = vmatprep.mubr.msk.bf16.mxu0 %vm10291_vm2, %v10289_v0 }
  0xd8   :  { %8981 = vmatmul.mubr.msk.bf16.gmra.mrb[104].mxu1 %vm138_vm3, %v798_v49  ;;  %9143 = vmatmul.mubr.msk.bf16.gmra.mrb[104].mxu0 %vm138_vm3, %v1650_v50 }
  0xd9   :  { %8984 = vmatprep.mubr.msk.bf16.mxu1 %vm10291_vm2, %v10289_v0  ;;  %9146 = vmatprep.mubr.msk.bf16.mxu0 %vm10291_vm2, %v10289_v0 }
  0xdb   :  { %v303_v55 = vpop.f32.mrb[0].mxu0  ;;  %v471_v56 = vpop.f32.mrb[0].mxu1 }
  0xdc   :  { %630 = vst.msk [vmem:[%s18942_s3] sm:$0xff] %vm629_vm4, %v303_v55  ;;  %672 = vst.msk [vmem:[%s18942_s3 + $0x150] sm:$0xff] %vm629_vm4, %v471_v56  ;;  %v8792_v57 = vpop.f32.mrb[1].mxu0  ;;  %v8876_v58 = vpop.f32.mrb[1].mxu1 }
  0xdd   :  { %v306_v61 = vpop.f32.mrb[2].mxu0  ;;  %v474_v62 = vpop.f32.mrb[2].mxu1 }
  0xde   :  { %631 = vst.msk [vmem:[%s18942_s3 + $0x8] sm:$0xff] %vm629_vm4, %v306_v61  ;;  %673 = vst.msk [vmem:[%s18942_s3 + $0x158] sm:$0xff] %vm629_vm4, %v474_v62  ;;  %v8793_v63 = vpop.f32.mrb[3].mxu0  ;;  %v8877_v1 = vpop.f32.mrb[3].mxu1  ;;  %v1586_v61 = vld [vmem:[%s18941_s0 + $0xb2] sm:$0xff]  ;;  %v1587_v62 = vld [vmem:[%s18941_s0 + $0xba] sm:$0xff] }
  0xdf   :  { %v1656_v5 = vpack.c.bf16 %v1587_v62, %v1586_v61 }
  0xe0   :  { %8985 = vmatmul.mubr.msk.bf16.gmra.mrb[108].mxu1 %vm138_vm3, %v799_v59  ;;  %9147 = vmatmul.mubr.msk.bf16.gmra.mrb[108].mxu0 %vm138_vm3, %v1651_v60  ;;  %v735_v59 = vld [vmem:[%s18941_s0 + $0xc1] sm:$0xff]  ;;  %v736_v60 = vld [vmem:[%s18941_s0 + $0xc9] sm:$0xff] }
  0xe1   :  { %8988 = vmatprep.mubr.msk.bf16.mxu1 %vm10291_vm2, %v10289_v0  ;;  %9150 = vmatprep.mubr.msk.bf16.mxu0 %vm10291_vm2, %v10289_v0  ;;  %v804_v4 = vpack.c.bf16 %v736_v60, %v735_v59 }
  0xe3   :  { %v311_v7 = vpop.f32.mrb[4].mxu0  ;;  %v479_v8 = vpop.f32.mrb[4].mxu1 }
  0xe4   :  { %632 = vst.msk [vmem:[%s18942_s3 + $0x10] sm:$0xff] %vm629_vm4, %v311_v7  ;;  %674 = vst.msk [vmem:[%s18942_s3 + $0x160] sm:$0xff] %vm629_vm4, %v479_v8  ;;  %v8796_v9 = vpop.f32.mrb[5].mxu0  ;;  %v8880_v10 = vpop.f32.mrb[5].mxu1 }
  0xe5   :  { %v314_v13 = vpop.f32.mrb[6].mxu0  ;;  %v482_v14 = vpop.f32.mrb[6].mxu1 }
  0xe6   :  { %633 = vst.msk [vmem:[%s18942_s3 + $0x18] sm:$0xff] %vm629_vm4, %v314_v13  ;;  %675 = vst.msk [vmem:[%s18942_s3 + $0x168] sm:$0xff] %vm629_vm4, %v482_v14  ;;  %v8797_v15 = vpop.f32.mrb[7].mxu0  ;;  %v8881_v16 = vpop.f32.mrb[7].mxu1  ;;  %v1588_v13 = vld [vmem:[%s18941_s0 + $0xc2] sm:$0xff]  ;;  %v1589_v14 = vld [vmem:[%s18941_s0 + $0xca] sm:$0xff] }
  0xe7   :  { %v1657_v20 = vpack.c.bf16 %v1589_v14, %v1588_v13 }
  0xe8   :  { %8989 = vmatmul.mubr.msk.bf16.gmra.mrb[112].mxu1 %vm138_vm3, %v800_v11  ;;  %9151 = vmatmul.mubr.msk.bf16.gmra.mrb[112].mxu0 %vm138_vm3, %v1652_v12  ;;  %v737_v11 = vld [vmem:[%s18941_s0 + $0xd1] sm:$0xff]  ;;  %v738_v12 = vld [vmem:[%s18941_s0 + $0xd9] sm:$0xff] }
  0xe9   :  { %8992 = vmatprep.mubr.msk.bf16.mxu1 %vm10291_vm2, %v10289_v0  ;;  %9154 = vmatprep.mubr.msk.bf16.mxu0 %vm10291_vm2, %v10289_v0  ;;  %v805_v19 = vpack.c.bf16 %v738_v12, %v737_v11 }
  0xeb   :  { %v319_v21 = vpop.f32.mrb[8].mxu0  ;;  %v487_v22 = vpop.f32.mrb[8].mxu1 }
  0xec   :  { %634 = vst.msk [vmem:[%s18942_s3 + $0x20] sm:$0xff] %vm629_vm4, %v319_v21  ;;  %676 = vst.msk [vmem:[%s18942_s3 + $0x170] sm:$0xff] %vm629_vm4, %v487_v22  ;;  %v8800_v23 = vpop.f32.mrb[9].mxu0  ;;  %v8884_v24 = vpop.f32.mrb[9].mxu1 }
  0xed   :  { %v322_v27 = vpop.f32.mrb[10].mxu0  ;;  %v490_v28 = vpop.f32.mrb[10].mxu1 }
  0xee   :  { %635 = vst.msk [vmem:[%s18942_s3 + $0x28] sm:$0xff] %vm629_vm4, %v322_v27  ;;  %677 = vst.msk [vmem:[%s18942_s3 + $0x178] sm:$0xff] %vm629_vm4, %v490_v28  ;;  %v8801_v29 = vpop.f32.mrb[11].mxu0  ;;  %v8885_v30 = vpop.f32.mrb[11].mxu1  ;;  %v1590_v27 = vld [vmem:[%s18941_s0 + $0xd2] sm:$0xff]  ;;  %v1591_v28 = vld [vmem:[%s18941_s0 + $0xda] sm:$0xff] }
  0xef   :  { %v1658_v34 = vpack.c.bf16 %v1591_v28, %v1590_v27 }
  0xf0   :  { %8993 = vmatmul.mubr.msk.bf16.gmra.mrb[116].mxu1 %vm138_vm3, %v801_v25  ;;  %9155 = vmatmul.mubr.msk.bf16.gmra.mrb[116].mxu0 %vm138_vm3, %v1653_v26  ;;  %v739_v25 = vld [vmem:[%s18941_s0 + $0xe1] sm:$0xff]  ;;  %v740_v26 = vld [vmem:[%s18941_s0 + $0xe9] sm:$0xff] }
  0xf1   :  { %8996 = vmatprep.mubr.msk.bf16.mxu1 %vm10291_vm2, %v10289_v0  ;;  %9158 = vmatprep.mubr.msk.bf16.mxu0 %vm10291_vm2, %v10289_v0  ;;  %v806_v33 = vpack.c.bf16 %v740_v26, %v739_v25 }
  0xf3   :  { %v327_v35 = vpop.f32.mrb[12].mxu0  ;;  %v495_v36 = vpop.f32.mrb[12].mxu1 }
  0xf4   :  { %636 = vst.msk [vmem:[%s18942_s3 + $0x30] sm:$0xff] %vm629_vm4, %v327_v35  ;;  %678 = vst.msk [vmem:[%s18942_s3 + $0x180] sm:$0xff] %vm629_vm4, %v495_v36  ;;  %v8804_v37 = vpop.f32.mrb[13].mxu0  ;;  %v8888_v38 = vpop.f32.mrb[13].mxu1 }
  0xf5   :  { %v330_v41 = vpop.f32.mrb[14].mxu0  ;;  %v498_v42 = vpop.f32.mrb[14].mxu1 }
  0xf6   :  { %637 = vst.msk [vmem:[%s18942_s3 + $0x38] sm:$0xff] %vm629_vm4, %v330_v41  ;;  %679 = vst.msk [vmem:[%s18942_s3 + $0x188] sm:$0xff] %vm629_vm4, %v498_v42  ;;  %v8805_v43 = vpop.f32.mrb[15].mxu0  ;;  %v8889_v44 = vpop.f32.mrb[15].mxu1  ;;  %v1592_v41 = vld [vmem:[%s18941_s0 + $0xe2] sm:$0xff]  ;;  %v1593_v42 = vld [vmem:[%s18941_s0 + $0xea] sm:$0xff] }
  0xf7   :  { %v1659_v48 = vpack.c.bf16 %v1593_v42, %v1592_v41 }
  0xf8   :  { %8997 = vmatmul.mubr.msk.bf16.gmra.mrb[120].mxu1 %vm138_vm3, %v802_v39  ;;  %9159 = vmatmul.mubr.msk.bf16.gmra.mrb[120].mxu0 %vm138_vm3, %v1654_v40  ;;  %v741_v39 = vld [vmem:[%s18941_s0 + $0xf1] sm:$0xff]  ;;  %v742_v40 = vld [vmem:[%s18941_s0 + $0xf9] sm:$0xff] }
  0xf9   :  { %9000 = vmatprep.mubr.msk.bf16.mxu1 %vm10291_vm2, %v10289_v0  ;;  %9162 = vmatprep.mubr.msk.bf16.mxu0 %vm10291_vm2, %v10289_v0  ;;  %v807_v47 = vpack.c.bf16 %v742_v40, %v741_v39 }
  0xfb   :  { %v335_v49 = vpop.f32.mrb[16].mxu0  ;;  %v503_v50 = vpop.f32.mrb[16].mxu1 }
  0xfc   :  { %638 = vst.msk [vmem:[%s18942_s3 + $0x40] sm:$0xff] %vm629_vm4, %v335_v49  ;;  %680 = vst.msk [vmem:[%s18942_s3 + $0x190] sm:$0xff] %vm629_vm4, %v503_v50  ;;  %v8808_v51 = vpop.f32.mrb[17].mxu0  ;;  %v8892_v52 = vpop.f32.mrb[17].mxu1 }
  0xfd   :  { %v338_v55 = vpop.f32.mrb[18].mxu0  ;;  %v506_v56 = vpop.f32.mrb[18].mxu1 }
  0xfe   :  { %639 = vst.msk [vmem:[%s18942_s3 + $0x48] sm:$0xff] %vm629_vm4, %v338_v55  ;;  %681 = vst.msk [vmem:[%s18942_s3 + $0x198] sm:$0xff] %vm629_vm4, %v506_v56  ;;  %v8809_v57 = vpop.f32.mrb[19].mxu0  ;;  %v8893_v58 = vpop.f32.mrb[19].mxu1  ;;  %v1594_v55 = vld [vmem:[%s18941_s0 + $0xf2] sm:$0xff]  ;;  %v1595_v56 = vld [vmem:[%s18941_s0 + $0xfa] sm:$0xff] }
  0xff   :  { %v1660_v62 = vpack.c.bf16 %v1595_v56, %v1594_v55 }
 0x100   :  { %9001 = vmatmul.mubr.msk.bf16.gmra.mrb[124].mxu1 %vm138_vm3, %v803_v53  ;;  %9163 = vmatmul.mubr.msk.bf16.gmra.mrb[124].mxu0 %vm138_vm3, %v1655_v54  ;;  %v743_v53 = vld [vmem:[%s18941_s0 + $0x101] sm:$0xff]  ;;  %v744_v54 = vld [vmem:[%s18941_s0 + $0x109] sm:$0xff] }
 0x101   :  { %9004 = vmatprep.mubr.msk.bf16.mxu1 %vm10291_vm2, %v10289_v0  ;;  %9166 = vmatprep.mubr.msk.bf16.mxu0 %vm10291_vm2, %v10289_v0  ;;  %v808_v61 = vpack.c.bf16 %v744_v54, %v743_v53 }
 0x103   :  { %v343_v63 = vpop.f32.mrb[20].mxu0  ;;  %v511_v1 = vpop.f32.mrb[20].mxu1 }
 0x104   :  { %640 = vst.msk [vmem:[%s18942_s3 + $0x50] sm:$0xff] %vm629_vm4, %v343_v63  ;;  %682 = vst.msk [vmem:[%s18942_s3 + $0x1a0] sm:$0xff] %vm629_vm4, %v511_v1  ;;  %v8812_v2 = vpop.f32.mrb[21].mxu0  ;;  %v8896_v3 = vpop.f32.mrb[21].mxu1 }
 0x105   :  { %v346_v7 = vpop.f32.mrb[22].mxu0  ;;  %v514_v8 = vpop.f32.mrb[22].mxu1 }
 0x106   :  { %641 = vst.msk [vmem:[%s18942_s3 + $0x58] sm:$0xff] %vm629_vm4, %v346_v7  ;;  %683 = vst.msk [vmem:[%s18942_s3 + $0x1a8] sm:$0xff] %vm629_vm4, %v514_v8  ;;  %v8813_v9 = vpop.f32.mrb[23].mxu0  ;;  %v8897_v10 = vpop.f32.mrb[23].mxu1  ;;  %v1596_v7 = vld [vmem:[%s18941_s0 + $0x102] sm:$0xff]  ;;  %v1597_v8 = vld [vmem:[%s18941_s0 + $0x10a] sm:$0xff] }
 0x107   :  { %v1661_v14 = vpack.c.bf16 %v1597_v8, %v1596_v7 }
 0x108   :  { %9005 = vmatmul.mubr.msk.bf16.gmra.mrb[128].mxu1 %vm138_vm3, %v804_v4  ;;  %9167 = vmatmul.mubr.msk.bf16.gmra.mrb[128].mxu0 %vm138_vm3, %v1656_v5  ;;  %v745_v4 = vld [vmem:[%s18941_s0 + $0x111] sm:$0xff]  ;;  %v746_v5 = vld [vmem:[%s18941_s0 + $0x119] sm:$0xff] }
 0x109   :  { %9008 = vmatprep.mubr.msk.bf16.mxu1 %vm10291_vm2, %v10289_v0  ;;  %9170 = vmatprep.mubr.msk.bf16.mxu0 %vm10291_vm2, %v10289_v0  ;;  %v809_v13 = vpack.c.bf16 %v746_v5, %v745_v4 }
 0x10b   :  { %v351_v15 = vpop.f32.mrb[24].mxu0  ;;  %v519_v16 = vpop.f32.mrb[24].mxu1 }
 0x10c   :  { %642 = vst.msk [vmem:[%s18942_s3 + $0x60] sm:$0xff] %vm629_vm4, %v351_v15  ;;  %684 = vst.msk [vmem:[%s18942_s3 + $0x1b0] sm:$0xff] %vm629_vm4, %v519_v16  ;;  %v8816_v17 = vpop.f32.mrb[25].mxu0  ;;  %v8900_v18 = vpop.f32.mrb[25].mxu1 }
 0x10d   :  { %v354_v21 = vpop.f32.mrb[26].mxu0  ;;  %v522_v22 = vpop.f32.mrb[26].mxu1 }
 0x10e   :  { %643 = vst.msk [vmem:[%s18942_s3 + $0x68] sm:$0xff] %vm629_vm4, %v354_v21  ;;  %685 = vst.msk [vmem:[%s18942_s3 + $0x1b8] sm:$0xff] %vm629_vm4, %v522_v22  ;;  %v8817_v23 = vpop.f32.mrb[27].mxu0  ;;  %v8901_v24 = vpop.f32.mrb[27].mxu1  ;;  %v1598_v21 = vld [vmem:[%s18941_s0 + $0x112] sm:$0xff]  ;;  %v1599_v22 = vld [vmem:[%s18941_s0 + $0x11a] sm:$0xff] }
 0x10f   :  { %v1662_v28 = vpack.c.bf16 %v1599_v22, %v1598_v21 }
 0x110   :  { %9009 = vmatmul.mubr.msk.bf16.gmra.mrb[132].mxu1 %vm138_vm3, %v805_v19  ;;  %9171 = vmatmul.mubr.msk.bf16.gmra.mrb[132].mxu0 %vm138_vm3, %v1657_v20  ;;  %v747_v19 = vld [vmem:[%s18941_s0 + $0x121] sm:$0xff]  ;;  %v748_v20 = vld [vmem:[%s18941_s0 + $0x129] sm:$0xff] }
 0x111   :  { %9012 = vmatprep.mubr.msk.bf16.mxu1 %vm10291_vm2, %v10289_v0  ;;  %9174 = vmatprep.mubr.msk.bf16.mxu0 %vm10291_vm2, %v10289_v0  ;;  %v810_v27 = vpack.c.bf16 %v748_v20, %v747_v19 }
 0x113   :  { %v359_v29 = vpop.f32.mrb[28].mxu0  ;;  %v527_v30 = vpop.f32.mrb[28].mxu1 }
 0x114   :  { %644 = vst.msk [vmem:[%s18942_s3 + $0x70] sm:$0xff] %vm629_vm4, %v359_v29  ;;  %686 = vst.msk [vmem:[%s18942_s3 + $0x1c0] sm:$0xff] %vm629_vm4, %v527_v30  ;;  %v8820_v31 = vpop.f32.mrb[29].mxu0  ;;  %v8904_v32 = vpop.f32.mrb[29].mxu1 }
 0x115   :  { %v362_v35 = vpop.f32.mrb[30].mxu0  ;;  %v530_v36 = vpop.f32.mrb[30].mxu1 }
 0x116   :  { %645 = vst.msk [vmem:[%s18942_s3 + $0x78] sm:$0xff] %vm629_vm4, %v362_v35  ;;  %687 = vst.msk [vmem:[%s18942_s3 + $0x1c8] sm:$0xff] %vm629_vm4, %v530_v36  ;;  %v8821_v37 = vpop.f32.mrb[31].mxu0  ;;  %v8905_v38 = vpop.f32.mrb[31].mxu1  ;;  %v1600_v35 = vld [vmem:[%s18941_s0 + $0x122] sm:$0xff]  ;;  %v1601_v36 = vld [vmem:[%s18941_s0 + $0x12a] sm:$0xff] }
 0x117   :  { %v1663_v42 = vpack.c.bf16 %v1601_v36, %v1600_v35 }
 0x118   :  { %9013 = vmatmul.mubr.msk.bf16.gmra.mrb[136].mxu1 %vm138_vm3, %v806_v33  ;;  %9175 = vmatmul.mubr.msk.bf16.gmra.mrb[136].mxu0 %vm138_vm3, %v1658_v34  ;;  %v749_v33 = vld [vmem:[%s18941_s0 + $0x131] sm:$0xff]  ;;  %v750_v34 = vld [vmem:[%s18941_s0 + $0x139] sm:$0xff] }
 0x119   :  { %9016 = vmatprep.mubr.msk.bf16.mxu1 %vm10291_vm2, %v10289_v0  ;;  %9178 = vmatprep.mubr.msk.bf16.mxu0 %vm10291_vm2, %v10289_v0  ;;  %v811_v41 = vpack.c.bf16 %v750_v34, %v749_v33 }
 0x11b   :  { %v367_v43 = vpop.f32.mrb[32].mxu0  ;;  %v535_v44 = vpop.f32.mrb[32].mxu1 }
 0x11c   :  { %646 = vst.msk [vmem:[%s18942_s3 + $0x80] sm:$0xff] %vm629_vm4, %v367_v43  ;;  %688 = vst.msk [vmem:[%s18942_s3 + $0x1d0] sm:$0xff] %vm629_vm4, %v535_v44  ;;  %v8824_v45 = vpop.f32.mrb[33].mxu0  ;;  %v8908_v46 = vpop.f32.mrb[33].mxu1 }
 0x11d   :  { %v370_v49 = vpop.f32.mrb[34].mxu0  ;;  %v538_v50 = vpop.f32.mrb[34].mxu1 }
 0x11e   :  { %647 = vst.msk [vmem:[%s18942_s3 + $0x88] sm:$0xff] %vm629_vm4, %v370_v49  ;;  %689 = vst.msk [vmem:[%s18942_s3 + $0x1d8] sm:$0xff] %vm629_vm4, %v538_v50  ;;  %v8825_v51 = vpop.f32.mrb[35].mxu0  ;;  %v8909_v52 = vpop.f32.mrb[35].mxu1  ;;  %v1602_v49 = vld [vmem:[%s18941_s0 + $0x132] sm:$0xff]  ;;  %v1603_v50 = vld [vmem:[%s18941_s0 + $0x13a] sm:$0xff] }
 0x11f   :  { %v1664_v56 = vpack.c.bf16 %v1603_v50, %v1602_v49 }
 0x120   :  { %9017 = vmatmul.mubr.msk.bf16.gmra.mrb[140].mxu1 %vm138_vm3, %v807_v47  ;;  %9179 = vmatmul.mubr.msk.bf16.gmra.mrb[140].mxu0 %vm138_vm3, %v1659_v48  ;;  %v751_v47 = vld [vmem:[%s18941_s0 + $0x141] sm:$0xff]  ;;  %v752_v48 = vld [vmem:[%s18941_s0 + $0x149] sm:$0xff] }
 0x121   :  { %9020 = vmatprep.mubr.msk.bf16.mxu1 %vm10291_vm2, %v10289_v0  ;;  %9182 = vmatprep.mubr.msk.bf16.mxu0 %vm10291_vm2, %v10289_v0  ;;  %v812_v55 = vpack.c.bf16 %v752_v48, %v751_v47 }
 0x123   :  { %v375_v57 = vpop.f32.mrb[36].mxu0  ;;  %v543_v58 = vpop.f32.mrb[36].mxu1 }
 0x124   :  { %648 = vst.msk [vmem:[%s18942_s3 + $0x90] sm:$0xff] %vm629_vm4, %v375_v57  ;;  %690 = vst.msk [vmem:[%s18942_s3 + $0x1e0] sm:$0xff] %vm629_vm4, %v543_v58  ;;  %v8828_v59 = vpop.f32.mrb[37].mxu0  ;;  %v8912_v60 = vpop.f32.mrb[37].mxu1 }
 0x125   :  { %v378_v63 = vpop.f32.mrb[38].mxu0  ;;  %v546_v1 = vpop.f32.mrb[38].mxu1 }
 0x126   :  { %649 = vst.msk [vmem:[%s18942_s3 + $0x98] sm:$0xff] %vm629_vm4, %v378_v63  ;;  %691 = vst.msk [vmem:[%s18942_s3 + $0x1e8] sm:$0xff] %vm629_vm4, %v546_v1  ;;  %v8829_v2 = vpop.f32.mrb[39].mxu0  ;;  %v8913_v3 = vpop.f32.mrb[39].mxu1  ;;  %v1604_v63 = vld [vmem:[%s18941_s0 + $0x142] sm:$0xff]  ;;  %v1605_v1 = vld [vmem:[%s18941_s0 + $0x14a] sm:$0xff] }
 0x127   :  { %v1665_v8 = vpack.c.bf16 %v1605_v1, %v1604_v63 }
 0x128   :  { %9021 = vmatmul.mubr.msk.bf16.gmra.mrb[144].mxu1 %vm138_vm3, %v808_v61  ;;  %9183 = vmatmul.mubr.msk.bf16.gmra.mrb[144].mxu0 %vm138_vm3, %v1660_v62  ;;  %v753_v61 = vld [vmem:[%s18941_s0 + $0x151] sm:$0xff]  ;;  %v754_v62 = vld [vmem:[%s18941_s0 + $0x159] sm:$0xff] }
 0x129   :  { %9024 = vmatprep.mubr.msk.bf16.mxu1 %vm10291_vm2, %v10289_v0  ;;  %9186 = vmatprep.mubr.msk.bf16.mxu0 %vm10291_vm2, %v10289_v0  ;;  %v813_v7 = vpack.c.bf16 %v754_v62, %v753_v61 }
 0x12b   :  { %v383_v9 = vpop.f32.mrb[40].mxu0  ;;  %v551_v10 = vpop.f32.mrb[40].mxu1 }
 0x12c   :  { %650 = vst.msk [vmem:[%s18942_s3 + $0xa0] sm:$0xff] %vm629_vm4, %v383_v9  ;;  %692 = vst.msk [vmem:[%s18942_s3 + $0x1f0] sm:$0xff] %vm629_vm4, %v551_v10  ;;  %v8832_v11 = vpop.f32.mrb[41].mxu0  ;;  %v8916_v12 = vpop.f32.mrb[41].mxu1 }
 0x12d   :  { %v386_v15 = vpop.f32.mrb[42].mxu0  ;;  %v554_v16 = vpop.f32.mrb[42].mxu1 }
 0x12e   :  { %651 = vst.msk [vmem:[%s18942_s3 + $0xa8] sm:$0xff] %vm629_vm4, %v386_v15  ;;  %693 = vst.msk [vmem:[%s18942_s3 + $0x1f8] sm:$0xff] %vm629_vm4, %v554_v16  ;;  %v8833_v17 = vpop.f32.mrb[43].mxu0  ;;  %v8917_v18 = vpop.f32.mrb[43].mxu1  ;;  %v1606_v15 = vld [vmem:[%s18941_s0 + $0x152] sm:$0xff]  ;;  %v1607_v16 = vld [vmem:[%s18941_s0 + $0x15a] sm:$0xff] }
 0x12f   :  { %v1666_v22 = vpack.c.bf16 %v1607_v16, %v1606_v15 }
 0x130   :  { %9025 = vmatmul.mubr.msk.bf16.gmra.mrb[148].mxu1 %vm138_vm3, %v809_v13  ;;  %9187 = vmatmul.mubr.msk.bf16.gmra.mrb[148].mxu0 %vm138_vm3, %v1661_v14  ;;  %v755_v13 = vld [vmem:[%s18941_s0 + $0x161] sm:$0xff]  ;;  %v756_v14 = vld [vmem:[%s18941_s0 + $0x169] sm:$0xff] }
 0x131   :  { %9028 = vmatprep.mubr.msk.bf16.mxu1 %vm10291_vm2, %v10289_v0  ;;  %9190 = vmatprep.mubr.msk.bf16.mxu0 %vm10291_vm2, %v10289_v0  ;;  %v814_v21 = vpack.c.bf16 %v756_v14, %v755_v13 }
 0x133   :  { %v391_v23 = vpop.f32.mrb[44].mxu0  ;;  %v559_v24 = vpop.f32.mrb[44].mxu1 }
 0x134   :  { %652 = vst.msk [vmem:[%s18942_s3 + $0xb0] sm:$0xff] %vm629_vm4, %v391_v23  ;;  %694 = vst.msk [vmem:[%s18942_s3 + $0x200] sm:$0xff] %vm629_vm4, %v559_v24  ;;  %v8836_v25 = vpop.f32.mrb[45].mxu0  ;;  %v8920_v26 = vpop.f32.mrb[45].mxu1 }
 0x135   :  { %v394_v29 = vpop.f32.mrb[46].mxu0  ;;  %v562_v30 = vpop.f32.mrb[46].mxu1 }
 0x136   :  { %653 = vst.msk [vmem:[%s18942_s3 + $0xb8] sm:$0xff] %vm629_vm4, %v394_v29  ;;  %695 = vst.msk [vmem:[%s18942_s3 + $0x208] sm:$0xff] %vm629_vm4, %v562_v30  ;;  %v8837_v31 = vpop.f32.mrb[47].mxu0  ;;  %v8921_v32 = vpop.f32.mrb[47].mxu1  ;;  %v1608_v29 = vld [vmem:[%s18941_s0 + $0x162] sm:$0xff]  ;;  %v1609_v30 = vld [vmem:[%s18941_s0 + $0x16a] sm:$0xff] }
 0x137   :  { %v1667_v36 = vpack.c.bf16 %v1609_v30, %v1608_v29 }
 0x138   :  { %9029 = vmatmul.mubr.msk.bf16.gmra.mrb[152].mxu1 %vm138_vm3, %v810_v27  ;;  %9191 = vmatmul.mubr.msk.bf16.gmra.mrb[152].mxu0 %vm138_vm3, %v1662_v28  ;;  %v757_v27 = vld [vmem:[%s18941_s0 + $0x171] sm:$0xff]  ;;  %v758_v28 = vld [vmem:[%s18941_s0 + $0x179] sm:$0xff] }
 0x139   :  { %9032 = vmatprep.mubr.msk.bf16.mxu1 %vm10291_vm2, %v10289_v0  ;;  %9194 = vmatprep.mubr.msk.bf16.mxu0 %vm10291_vm2, %v10289_v0  ;;  %v815_v35 = vpack.c.bf16 %v758_v28, %v757_v27  ;;  %v1321_v27 = vld [vmem:[%s18942_s3] sm:$0xff] }
 0x13b   :  { %v399_v37 = vpop.f32.mrb[48].mxu0  ;;  %v567_v38 = vpop.f32.mrb[48].mxu1 }
 0x13c   :  { %654 = vst.msk [vmem:[%s18942_s3 + $0xc0] sm:$0xff] %vm629_vm4, %v399_v37  ;;  %696 = vst.msk [vmem:[%s18942_s3 + $0x210] sm:$0xff] %vm629_vm4, %v567_v38  ;;  %v8840_v39 = vpop.f32.mrb[49].mxu0  ;;  %v8924_v40 = vpop.f32.mrb[49].mxu1 }
 0x13d   :  { %v402_v43 = vpop.f32.mrb[50].mxu0  ;;  %v570_v44 = vpop.f32.mrb[50].mxu1 }
 0x13e   :  { %655 = vst.msk [vmem:[%s18942_s3 + $0xc8] sm:$0xff] %vm629_vm4, %v402_v43  ;;  %697 = vst.msk [vmem:[%s18942_s3 + $0x218] sm:$0xff] %vm629_vm4, %v570_v44  ;;  %v8841_v45 = vpop.f32.mrb[51].mxu0  ;;  %v8925_v46 = vpop.f32.mrb[51].mxu1  ;;  %v1610_v43 = vld [vmem:[%s18941_s0 + $0x172] sm:$0xff]  ;;  %v1611_v44 = vld [vmem:[%s18941_s0 + $0x17a] sm:$0xff] }
 0x13f   :  { %v1668_v50 = vpack.c.bf16 %v1611_v44, %v1610_v43  ;;  %v1323_v44 = vld [vmem:[%s18942_s3 + $0x10] sm:$0xff] }
 0x140   :  { %9033 = vmatmul.mubr.msk.bf16.gmra.mrb[156].mxu1 %vm138_vm3, %v811_v41  ;;  %9195 = vmatmul.mubr.msk.bf16.gmra.mrb[156].mxu0 %vm138_vm3, %v1663_v42  ;;  %v759_v41 = vld [vmem:[%s18941_s0 + $0x181] sm:$0xff]  ;;  %v760_v42 = vld [vmem:[%s18941_s0 + $0x189] sm:$0xff] }
 0x141   :  { %9036 = vmatprep.mubr.msk.bf16.mxu1 %vm10291_vm2, %v10289_v0  ;;  %9198 = vmatprep.mubr.msk.bf16.mxu0 %vm10291_vm2, %v10289_v0  ;;  %v816_v49 = vpack.c.bf16 %v760_v42, %v759_v41  ;;  %v1618_v41 = vld [vmem:[%s18941_s0 + $0x1b2] sm:$0xff]  ;;  %v1619_v42 = vld [vmem:[%s18941_s0 + $0x1ba] sm:$0xff] }
 0x143   :  { %v407_v51 = vpop.f32.mrb[52].mxu0  ;;  %v575_v52 = vpop.f32.mrb[52].mxu1 }
 0x144   :  { %656 = vst.msk [vmem:[%s18942_s3 + $0xd0] sm:$0xff] %vm629_vm4, %v407_v51  ;;  %698 = vst.msk [vmem:[%s18942_s3 + $0x220] sm:$0xff] %vm629_vm4, %v575_v52  ;;  %v8844_v53 = vpop.f32.mrb[53].mxu0  ;;  %v8928_v54 = vpop.f32.mrb[53].mxu1 }
 0x145   :  { %v410_v57 = vpop.f32.mrb[54].mxu0  ;;  %v578_v58 = vpop.f32.mrb[54].mxu1 }
 0x146   :  { %657 = vst.msk [vmem:[%s18942_s3 + $0xd8] sm:$0xff] %vm629_vm4, %v410_v57  ;;  %699 = vst.msk [vmem:[%s18942_s3 + $0x228] sm:$0xff] %vm629_vm4, %v578_v58  ;;  %v8845_v59 = vpop.f32.mrb[55].mxu0  ;;  %v8929_v60 = vpop.f32.mrb[55].mxu1  ;;  %v1612_v57 = vld [vmem:[%s18941_s0 + $0x182] sm:$0xff]  ;;  %v1613_v58 = vld [vmem:[%s18941_s0 + $0x18a] sm:$0xff] }
 0x147   :  { %v1669_v1 = vpack.c.bf16 %v1613_v58, %v1612_v57 }
 0x148   :  { %9037 = vmatmul.mubr.msk.bf16.gmra.mrb[160].mxu1 %vm138_vm3, %v812_v55  ;;  %9199 = vmatmul.mubr.msk.bf16.gmra.mrb[160].mxu0 %vm138_vm3, %v1664_v56  ;;  %v761_v55 = vld [vmem:[%s18941_s0 + $0x191] sm:$0xff]  ;;  %v762_v56 = vld [vmem:[%s18941_s0 + $0x199] sm:$0xff] }
 0x149   :  { %9040 = vmatprep.mubr.msk.bf16.mxu1 %vm10291_vm2, %v10289_v0  ;;  %9202 = vmatprep.mubr.msk.bf16.mxu0 %vm10291_vm2, %v10289_v0  ;;  %v817_v63 = vpack.c.bf16 %v762_v56, %v761_v55 }
 0x14b   :  { %v415_v2 = vpop.f32.mrb[56].mxu0  ;;  %v583_v3 = vpop.f32.mrb[56].mxu1 }
 0x14c   :  { %658 = vst.msk [vmem:[%s18942_s3 + $0xe0] sm:$0xff] %vm629_vm4, %v415_v2  ;;  %700 = vst.msk [vmem:[%s18942_s3 + $0x230] sm:$0xff] %vm629_vm4, %v583_v3  ;;  %v8848_v4 = vpop.f32.mrb[57].mxu0  ;;  %v8932_v5 = vpop.f32.mrb[57].mxu1 }
 0x14d   :  { %v418_v9 = vpop.f32.mrb[58].mxu0  ;;  %v586_v10 = vpop.f32.mrb[58].mxu1 }
 0x14e   :  { %659 = vst.msk [vmem:[%s18942_s3 + $0xe8] sm:$0xff] %vm629_vm4, %v418_v9  ;;  %701 = vst.msk [vmem:[%s18942_s3 + $0x238] sm:$0xff] %vm629_vm4, %v586_v10  ;;  %v8849_v11 = vpop.f32.mrb[59].mxu0  ;;  %v8933_v12 = vpop.f32.mrb[59].mxu1  ;;  %v1614_v9 = vld [vmem:[%s18941_s0 + $0x192] sm:$0xff]  ;;  %v1615_v10 = vld [vmem:[%s18941_s0 + $0x19a] sm:$0xff] }
 0x14f   :  { %v1670_v16 = vpack.c.bf16 %v1615_v10, %v1614_v9 }
 0x150   :  { %9041 = vmatmul.mubr.msk.bf16.gmra.mrb[164].mxu1 %vm138_vm3, %v813_v7  ;;  %9203 = vmatmul.mubr.msk.bf16.gmra.mrb[164].mxu0 %vm138_vm3, %v1665_v8  ;;  %v763_v7 = vld [vmem:[%s18941_s0 + $0x1a1] sm:$0xff]  ;;  %v764_v8 = vld [vmem:[%s18941_s0 + $0x1a9] sm:$0xff] }
 0x151   :  { %9044 = vmatprep.mubr.msk.bf16.mxu1 %vm10291_vm2, %v10289_v0  ;;  %9206 = vmatprep.mubr.msk.bf16.mxu0 %vm10291_vm2, %v10289_v0  ;;  %v818_v15 = vpack.c.bf16 %v764_v8, %v763_v7 }
 0x153   :  { %v423_v17 = vpop.f32.mrb[60].mxu0  ;;  %v591_v18 = vpop.f32.mrb[60].mxu1 }
 0x154   :  { %660 = vst.msk [vmem:[%s18942_s3 + $0xf0] sm:$0xff] %vm629_vm4, %v423_v17  ;;  %702 = vst.msk [vmem:[%s18942_s3 + $0x240] sm:$0xff] %vm629_vm4, %v591_v18  ;;  %v8852_v19 = vpop.f32.mrb[61].mxu0  ;;  %v8936_v20 = vpop.f32.mrb[61].mxu1 }
 0x155   :  { %v426_v23 = vpop.f32.mrb[62].mxu0  ;;  %v594_v24 = vpop.f32.mrb[62].mxu1 }
 0x156   :  { %661 = vst.msk [vmem:[%s18942_s3 + $0xf8] sm:$0xff] %vm629_vm4, %v426_v23  ;;  %703 = vst.msk [vmem:[%s18942_s3 + $0x248] sm:$0xff] %vm629_vm4, %v594_v24  ;;  %v8853_v25 = vpop.f32.mrb[63].mxu0  ;;  %v8937_v26 = vpop.f32.mrb[63].mxu1  ;;  %v1616_v23 = vld [vmem:[%s18941_s0 + $0x1a2] sm:$0xff]  ;;  %v1617_v24 = vld [vmem:[%s18941_s0 + $0x1aa] sm:$0xff] }
 0x158   :  { %9045 = vmatmul.mubr.msk.bf16.gmra.mrb[168].mxu1 %vm138_vm3, %v814_v21  ;;  %9207 = vmatmul.mubr.msk.bf16.gmra.mrb[168].mxu0 %vm138_vm3, %v1666_v22  ;;  %v765_v21 = vld [vmem:[%s18941_s0 + $0x1b1] sm:$0xff]  ;;  %v766_v22 = vld [vmem:[%s18941_s0 + $0x1b9] sm:$0xff] }
 0x159   :  { %9048 = vmatprep.mubr.msk.bf16.mxu1 %vm10291_vm2, %v10289_v0  ;;  %9210 = vmatprep.mubr.msk.bf16.mxu0 %vm10291_vm2, %v10289_v0 }
 0x15b   :  { %v431_v31 = vpop.f32.mrb[64].mxu0  ;;  %v599_v32 = vpop.f32.mrb[64].mxu1 }
 0x15c   :  { %662 = vst.msk [vmem:[%s18942_s3 + $0x100] sm:$0xff] %vm629_vm4, %v431_v31  ;;  %704 = vst.msk [vmem:[%s18942_s3 + $0x250] sm:$0xff] %vm629_vm4, %v599_v32  ;;  %v8856_v33 = vpop.f32.mrb[65].mxu0  ;;  %v8940_v34 = vpop.f32.mrb[65].mxu1  ;;  %v819_v31 = vpack.c.bf16 %v766_v22, %v765_v21  ;;  %v1671_v32 = vpack.c.bf16 %v1617_v24, %v1616_v23  ;;  %v771_v21 = vld [vmem:[%s18941_s0 + $0x1e1] sm:$0xff]  ;;  %v772_v22 = vld [vmem:[%s18941_s0 + $0x1e9] sm:$0xff] }
 0x15d   :  { %v434_v37 = vpop.f32.mrb[66].mxu0  ;;  %v602_v38 = vpop.f32.mrb[66].mxu1  ;;  %v1622_v23 = vld [vmem:[%s18941_s0 + $0x1d2] sm:$0xff]  ;;  %v1623_v24 = vld [vmem:[%s18941_s0 + $0x1da] sm:$0xff] }
 0x15e   :  { %663 = vst.msk [vmem:[%s18942_s3 + $0x108] sm:$0xff] %vm629_vm4, %v434_v37  ;;  %705 = vst.msk [vmem:[%s18942_s3 + $0x258] sm:$0xff] %vm629_vm4, %v602_v38  ;;  %v8857_v39 = vpop.f32.mrb[67].mxu0  ;;  %v8941_v40 = vpop.f32.mrb[67].mxu1 }
 0x15f   :  { %v767_v39 = vld [vmem:[%s18941_s0 + $0x1c1] sm:$0xff]  ;;  %v768_v40 = vld [vmem:[%s18941_s0 + $0x1c9] sm:$0xff] }
 0x160   :  { %9049 = vmatmul.mubr.msk.bf16.gmra.mrb[172].mxu1 %vm138_vm3, %v815_v35  ;;  %9211 = vmatmul.mubr.msk.bf16.gmra.mrb[172].mxu0 %vm138_vm3, %v1667_v36  ;;  %v1322_v35 = vld [vmem:[%s18942_s3 + $0x8] sm:$0xff] }
 0x161   :  { %9052 = vmatprep.mubr.msk.bf16.mxu1 %vm10291_vm2, %v10289_v0  ;;  %9214 = vmatprep.mubr.msk.bf16.mxu0 %vm10291_vm2, %v10289_v0 }
 0x163   :  { %v439_v45 = vpop.f32.mrb[68].mxu0  ;;  %v607_v46 = vpop.f32.mrb[68].mxu1 }
 0x164   :  { %664 = vst.msk [vmem:[%s18942_s3 + $0x110] sm:$0xff] %vm629_vm4, %v439_v45  ;;  %706 = vst.msk [vmem:[%s18942_s3 + $0x260] sm:$0xff] %vm629_vm4, %v607_v46  ;;  %v8860_v47 = vpop.f32.mrb[69].mxu0  ;;  %v8944_v48 = vpop.f32.mrb[69].mxu1 }
 0x165   :  { %v442_v51 = vpop.f32.mrb[70].mxu0  ;;  %v610_v52 = vpop.f32.mrb[70].mxu1 }
 0x166   :  { %665 = vst.msk [vmem:[%s18942_s3 + $0x118] sm:$0xff] %vm629_vm4, %v442_v51  ;;  %707 = vst.msk [vmem:[%s18942_s3 + $0x268] sm:$0xff] %vm629_vm4, %v610_v52  ;;  %v8861_v53 = vpop.f32.mrb[71].mxu0  ;;  %v8945_v54 = vpop.f32.mrb[71].mxu1 }
 0x167   :  { %v1324_v53 = vld [vmem:[%s18942_s3 + $0x18] sm:$0xff] }
 0x168   :  { %9053 = vmatmul.mubr.msk.bf16.gmra.mrb[176].mxu1 %vm138_vm3, %v816_v49  ;;  %9215 = vmatmul.mubr.msk.bf16.gmra.mrb[176].mxu0 %vm138_vm3, %v1668_v50  ;;  %v820_v49 = vpack.c.bf16 %v768_v40, %v767_v39  ;;  %v1672_v50 = vpack.c.bf16 %v1619_v42, %v1618_v41 }
 0x169   :  { %9056 = vmatprep.mubr.msk.bf16.mxu1 %vm10291_vm2, %v10289_v0  ;;  %9218 = vmatprep.mubr.msk.bf16.mxu0 %vm10291_vm2, %v10289_v0 }
 0x16b   :  { %v447_v59 = vpop.f32.mrb[72].mxu0  ;;  %v615_v60 = vpop.f32.mrb[72].mxu1 }
 0x16c   :  { %666 = vst.msk [vmem:[%s18942_s3 + $0x120] sm:$0xff] %vm629_vm4, %v447_v59  ;;  %708 = vst.msk [vmem:[%s18942_s3 + $0x270] sm:$0xff] %vm629_vm4, %v615_v60  ;;  %v8864_v61 = vpop.f32.mrb[73].mxu0  ;;  %v8948_v62 = vpop.f32.mrb[73].mxu1 }
 0x16d   :  { %v450_v2 = vpop.f32.mrb[74].mxu0  ;;  %v618_v3 = vpop.f32.mrb[74].mxu1  ;;  %v769_v61 = vld [vmem:[%s18941_s0 + $0x1d1] sm:$0xff]  ;;  %v770_v62 = vld [vmem:[%s18941_s0 + $0x1d9] sm:$0xff] }
 0x16e   :  { %667 = vst.msk [vmem:[%s18942_s3 + $0x128] sm:$0xff] %vm629_vm4, %v450_v2  ;;  %709 = vst.msk [vmem:[%s18942_s3 + $0x278] sm:$0xff] %vm629_vm4, %v618_v3  ;;  %v8865_v4 = vpop.f32.mrb[75].mxu0  ;;  %v8949_v5 = vpop.f32.mrb[75].mxu1  ;;  %v1325_v3 = vld [vmem:[%s18942_s3 + $0x20] sm:$0xff]  ;;  %v821_v9 = vpack.c.bf16 %v770_v62, %v769_v61 }
 0x170   :  { %9057 = vmatmul.mubr.msk.bf16.gmra.mrb[180].mxu1 %vm138_vm3, %v817_v63  ;;  %9219 = vmatmul.mubr.msk.bf16.gmra.mrb[180].mxu0 %vm138_vm3, %v1669_v1  ;;  %v1620_v63 = vld [vmem:[%s18941_s0 + $0x1c2] sm:$0xff]  ;;  %v1621_v1 = vld [vmem:[%s18941_s0 + $0x1ca] sm:$0xff] }
 0x171   :  { %9060 = vmatprep.mubr.msk.bf16.mxu1 %vm10291_vm2, %v10289_v0  ;;  %9222 = vmatprep.mubr.msk.bf16.mxu0 %vm10291_vm2, %v10289_v0  ;;  %v1673_v10 = vpack.c.bf16 %v1621_v1, %v1620_v63 }
 0x173   :  { %v455_v11 = vpop.f32.mrb[76].mxu0  ;;  %v623_v12 = vpop.f32.mrb[76].mxu1 }
 0x174   :  { %668 = vst.msk [vmem:[%s18942_s3 + $0x130] sm:$0xff] %vm629_vm4, %v455_v11  ;;  %710 = vst.msk [vmem:[%s18942_s3 + $0x280] sm:$0xff] %vm629_vm4, %v623_v12  ;;  %v8868_v13 = vpop.f32.mrb[77].mxu0  ;;  %v8952_v14 = vpop.f32.mrb[77].mxu1 }
 0x175   :  { %v458_v17 = vpop.f32.mrb[78].mxu0  ;;  %v626_v18 = vpop.f32.mrb[78].mxu1  ;;  %v1326_v13 = vld [vmem:[%s18942_s3 + $0x28] sm:$0xff] }
 0x176   :  { %669 = vst.msk [vmem:[%s18942_s3 + $0x138] sm:$0xff] %vm629_vm4, %v458_v17  ;;  %v8869_v19 = vpop.f32.mrb[79].mxu0  ;;  %v8953_v20 = vpop.f32.mrb[79].mxu1 }
 0x178   :  { %9061 = vmatmul.mubr.msk.bf16.gmra.mrb[184].mxu1 %vm138_vm3, %v818_v15  ;;  %9223 = vmatmul.mubr.msk.bf16.gmra.mrb[184].mxu0 %vm138_vm3, %v1670_v16 }
 0x179   :  { %9064 = vmatprep.mubr.msk.bf16.mxu1 %vm10291_vm2, %v10289_v0  ;;  %9226 = vmatprep.mubr.msk.bf16.mxu0 %vm10291_vm2, %v10289_v0 }
 0x17b   :  { %v463_v25 = vpop.f32.mrb[80].mxu0  ;;  %v995_v26 = vpop.f32.mrb[80].mxu1 }
 0x17c   :  { %670 = vst.msk [vmem:[%s18942_s3 + $0x140] sm:$0xff] %vm629_vm4, %v463_v25  ;;  %v1402_v28 = vadd.f32 %v1321_v27, %v995_v26  ;;  %v8872_v29 = vpop.f32.mrb[81].mxu0  ;;  %v8958_v30 = vpop.f32.mrb[81].mxu1  ;;  %v1327_v26 = vld [vmem:[%s18942_s3 + $0x30] sm:$0xff] }
 0x17d   :  { %v466_v33 = vpop.f32.mrb[82].mxu0  ;;  %v998_v34 = vpop.f32.mrb[82].mxu1 }
 0x17e   :  { %1483 = vst.msk [vmem:[%s18942_s3] sm:$0xff] %vm629_vm4, %v1402_v28  ;;  %671 = vst.msk [vmem:[%s18942_s3 + $0x148] sm:$0xff] %vm629_vm4, %v466_v33  ;;  %v1403_v36 = vadd.f32 %v1322_v35, %v998_v34  ;;  %v8873_v37 = vpop.f32.mrb[83].mxu0  ;;  %v8959_v38 = vpop.f32.mrb[83].mxu1  ;;  %v1328_v35 = vld [vmem:[%s18942_s3 + $0x38] sm:$0xff] }
 0x180   :  { %1484 = vst.msk [vmem:[%s18942_s3 + $0x8] sm:$0xff] %vm629_vm4, %v1403_v36  ;;  %9065 = vmatmul.mubr.msk.bf16.gmra.mrb[188].mxu1 %vm138_vm3, %v819_v31  ;;  %9227 = vmatmul.mubr.msk.bf16.gmra.mrb[188].mxu0 %vm138_vm3, %v1671_v32  ;;  %v822_v31 = vpack.c.bf16 %v772_v22, %v771_v21  ;;  %v1674_v32 = vpack.c.bf16 %v1623_v24, %v1622_v23 }
 0x181   :  { %9068 = vmatprep.mubr.msk.bf16.mxu1 %vm10291_vm2, %v10289_v0  ;;  %9230 = vmatprep.mubr.msk.bf16.mxu0 %vm10291_vm2, %v10289_v0 }
 0x183   :  { %v1003_v43 = vpop.f32.mrb[84].mxu1  ;;  %v1848_v45 = vpop.f32.mrb[84].mxu0 }
 0x184   :  { %v1404_v46 = vadd.f32 %v1323_v44, %v1003_v43  ;;  %v8962_v47 = vpop.f32.mrb[85].mxu1  ;;  %v9124_v48 = vpop.f32.mrb[85].mxu0  ;;  %v773_v43 = vld [vmem:[%s18941_s0 + $0x1f1] sm:$0xff]  ;;  %v774_v44 = vld [vmem:[%s18941_s0 + $0x1f9] sm:$0xff] }
 0x185   :  { %v2174_v51 = vld [vmem:[%s18942_s3] sm:$0xff]  ;;  %v1006_v52 = vpop.f32.mrb[86].mxu1  ;;  %v1851_v54 = vpop.f32.mrb[86].mxu0 }
 0x186   :  { %1485 = vst.msk [vmem:[%s18942_s3 + $0x10] sm:$0xff] %vm629_vm4, %v1404_v46  ;;  %v2255_v55 = vadd.f32 %v2174_v51, %v1848_v45  ;;  %v1405_v56 = vadd.f32 %v1324_v53, %v1006_v52  ;;  %v8963_v57 = vpop.f32.mrb[87].mxu1  ;;  %v9125_v58 = vpop.f32.mrb[87].mxu0  ;;  %v1624_v45 = vld [vmem:[%s18941_s0 + $0x1e2] sm:$0xff]  ;;  %v1625_v46 = vld [vmem:[%s18941_s0 + $0x1ea] sm:$0xff]  ;;  %v823_v53 = vpack.c.bf16 %v774_v44, %v773_v43 }
 0x187   :  { %v2175_v59 = vld [vmem:[%s18942_s3 + $0x8] sm:$0xff]  ;;  %v1329_v48 = vld [vmem:[%s18942_s3 + $0x40] sm:$0xff] }
 0x188   :  { %2336 = vst.msk [vmem:[%s18942_s3] sm:$0xff] %vm629_vm4, %v2255_v55  ;;  %1486 = vst.msk [vmem:[%s18942_s3 + $0x18] sm:$0xff] %vm629_vm4, %v1405_v56  ;;  %v2256_v60 = vadd.f32 %v2175_v59, %v1851_v54  ;;  %9069 = vmatmul.mubr.msk.bf16.gmra.mrb[192].mxu1 %vm138_vm3, %v820_v49  ;;  %9231 = vmatmul.mubr.msk.bf16.gmra.mrb[192].mxu0 %vm138_vm3, %v1672_v50  ;;  %v1675_v54 = vpack.c.bf16 %v1625_v46, %v1624_v45  ;;  %v1330_v57 = vld [vmem:[%s18942_s3 + $0x48] sm:$0xff] }
 0x189   :  { %9072 = vmatprep.mubr.msk.bf16.mxu1 %vm10291_vm2, %v10289_v0  ;;  %9234 = vmatprep.mubr.msk.bf16.mxu0 %vm10291_vm2, %v10289_v0 }
 0x18a   :  { %2337 = vst.msk [vmem:[%s18942_s3 + $0x8] sm:$0xff] %vm629_vm4, %v2256_v60 }
 0x18b   :  { %v1011_v2 = vpop.f32.mrb[88].mxu1  ;;  %v1856_v4 = vpop.f32.mrb[88].mxu0 }
 0x18c   :  { %v1406_v5 = vadd.f32 %v1325_v3, %v1011_v2  ;;  %v8966_v7 = vpop.f32.mrb[89].mxu1  ;;  %v9128_v8 = vpop.f32.mrb[89].mxu0  ;;  %v775_v2 = vld [vmem:[%s18941_s0 + $0x201] sm:$0xff]  ;;  %v776_v3 = vld [vmem:[%s18941_s0 + $0x209] sm:$0xff] }
 0x18d   :  { %v2176_v11 = vld [vmem:[%s18942_s3 + $0x10] sm:$0xff]  ;;  %v1014_v12 = vpop.f32.mrb[90].mxu1  ;;  %v1859_v14 = vpop.f32.mrb[90].mxu0 }
 0x18e   :  { %1487 = vst.msk [vmem:[%s18942_s3 + $0x20] sm:$0xff] %vm629_vm4, %v1406_v5  ;;  %v2257_v15 = vadd.f32 %v2176_v11, %v1856_v4  ;;  %v1407_v16 = vadd.f32 %v1326_v13, %v1014_v12  ;;  %v8967_v17 = vpop.f32.mrb[91].mxu1  ;;  %v9129_v18 = vpop.f32.mrb[91].mxu0  ;;  %v1626_v4 = vld [vmem:[%s18941_s0 + $0x1f2] sm:$0xff]  ;;  %v1627_v5 = vld [vmem:[%s18941_s0 + $0x1fa] sm:$0xff]  ;;  %v824_v13 = vpack.c.bf16 %v776_v3, %v775_v2 }
 0x18f   :  { %v2177_v19 = vld [vmem:[%s18942_s3 + $0x18] sm:$0xff]  ;;  %v1331_v8 = vld [vmem:[%s18942_s3 + $0x50] sm:$0xff] }
 0x190   :  { %2338 = vst.msk [vmem:[%s18942_s3 + $0x10] sm:$0xff] %vm629_vm4, %v2257_v15  ;;  %1488 = vst.msk [vmem:[%s18942_s3 + $0x28] sm:$0xff] %vm629_vm4, %v1407_v16  ;;  %v2258_v20 = vadd.f32 %v2177_v19, %v1859_v14  ;;  %9073 = vmatmul.mubr.msk.bf16.gmra.mrb[196].mxu1 %vm138_vm3, %v821_v9  ;;  %9235 = vmatmul.mubr.msk.bf16.gmra.mrb[196].mxu0 %vm138_vm3, %v1673_v10  ;;  %v1676_v14 = vpack.c.bf16 %v1627_v5, %v1626_v4  ;;  %v1332_v17 = vld [vmem:[%s18942_s3 + $0x58] sm:$0xff] }
 0x191   :  { %9076 = vmatprep.mubr.msk.bf16.mxu1 %vm10291_vm2, %v10289_v0  ;;  %9238 = vmatprep.mubr.msk.bf16.mxu0 %vm10291_vm2, %v10289_v0 }
 0x192   :  { %2339 = vst.msk [vmem:[%s18942_s3 + $0x18] sm:$0xff] %vm629_vm4, %v2258_v20 }
 0x193   :  { %v1019_v25 = vpop.f32.mrb[92].mxu1  ;;  %v1864_v27 = vpop.f32.mrb[92].mxu0 }
 0x194   :  { %v1408_v28 = vadd.f32 %v1327_v26, %v1019_v25  ;;  %v8970_v29 = vpop.f32.mrb[93].mxu1  ;;  %v9132_v30 = vpop.f32.mrb[93].mxu0  ;;  %v777_v25 = vld [vmem:[%s18941_s0 + $0x211] sm:$0xff]  ;;  %v778_v26 = vld [vmem:[%s18941_s0 + $0x219] sm:$0xff] }
 0x195   :  { %v2178_v33 = vld [vmem:[%s18942_s3 + $0x20] sm:$0xff]  ;;  %v1022_v34 = vpop.f32.mrb[94].mxu1  ;;  %v1867_v36 = vpop.f32.mrb[94].mxu0 }
 0x196   :  { %1489 = vst.msk [vmem:[%s18942_s3 + $0x30] sm:$0xff] %vm629_vm4, %v1408_v28  ;;  %v2259_v37 = vadd.f32 %v2178_v33, %v1864_v27  ;;  %v1409_v38 = vadd.f32 %v1328_v35, %v1022_v34  ;;  %v8971_v39 = vpop.f32.mrb[95].mxu1  ;;  %v9133_v40 = vpop.f32.mrb[95].mxu0  ;;  %v1628_v27 = vld [vmem:[%s18941_s0 + $0x202] sm:$0xff]  ;;  %v1629_v28 = vld [vmem:[%s18941_s0 + $0x20a] sm:$0xff]  ;;  %v825_v35 = vpack.c.bf16 %v778_v26, %v777_v25 }
 0x197   :  { %v2179_v41 = vld [vmem:[%s18942_s3 + $0x28] sm:$0xff]  ;;  %v1333_v30 = vld [vmem:[%s18942_s3 + $0x60] sm:$0xff] }
 0x198   :  { %2340 = vst.msk [vmem:[%s18942_s3 + $0x20] sm:$0xff] %vm629_vm4, %v2259_v37  ;;  %1490 = vst.msk [vmem:[%s18942_s3 + $0x38] sm:$0xff] %vm629_vm4, %v1409_v38  ;;  %v2260_v42 = vadd.f32 %v2179_v41, %v1867_v36  ;;  %9077 = vmatmul.mubr.msk.bf16.gmra.mrb[200].mxu1 %vm138_vm3, %v822_v31  ;;  %9239 = vmatmul.mubr.msk.bf16.gmra.mrb[200].mxu0 %vm138_vm3, %v1674_v32  ;;  %v1677_v36 = vpack.c.bf16 %v1629_v28, %v1628_v27  ;;  %v1334_v39 = vld [vmem:[%s18942_s3 + $0x68] sm:$0xff] }
 0x199   :  { %9080 = vmatprep.mubr.msk.bf16.mxu1 %vm10291_vm2, %v10289_v0  ;;  %9242 = vmatprep.mubr.msk.bf16.mxu0 %vm10291_vm2, %v10289_v0 }
 0x19a   :  { %2341 = vst.msk [vmem:[%s18942_s3 + $0x28] sm:$0xff] %vm629_vm4, %v2260_v42 }
 0x19b   :  { %v1027_v47 = vpop.f32.mrb[96].mxu1  ;;  %v1872_v49 = vpop.f32.mrb[96].mxu0 }
 0x19c   :  { %v1410_v50 = vadd.f32 %v1329_v48, %v1027_v47  ;;  %v8974_v51 = vpop.f32.mrb[97].mxu1  ;;  %v9136_v52 = vpop.f32.mrb[97].mxu0  ;;  %v779_v47 = vld [vmem:[%s18941_s0 + $0x221] sm:$0xff]  ;;  %v780_v48 = vld [vmem:[%s18941_s0 + $0x229] sm:$0xff] }
 0x19d   :  { %v2180_v55 = vld [vmem:[%s18942_s3 + $0x30] sm:$0xff]  ;;  %v1030_v56 = vpop.f32.mrb[98].mxu1  ;;  %v1875_v58 = vpop.f32.mrb[98].mxu0 }
 0x19e   :  { %1491 = vst.msk [vmem:[%s18942_s3 + $0x40] sm:$0xff] %vm629_vm4, %v1410_v50  ;;  %v2261_v59 = vadd.f32 %v2180_v55, %v1872_v49  ;;  %v1411_v60 = vadd.f32 %v1330_v57, %v1030_v56  ;;  %v8975_v61 = vpop.f32.mrb[99].mxu1  ;;  %v9137_v62 = vpop.f32.mrb[99].mxu0  ;;  %v1630_v49 = vld [vmem:[%s18941_s0 + $0x212] sm:$0xff]  ;;  %v1631_v50 = vld [vmem:[%s18941_s0 + $0x21a] sm:$0xff]  ;;  %v826_v57 = vpack.c.bf16 %v780_v48, %v779_v47 }
 0x19f   :  { %v2181_v63 = vld [vmem:[%s18942_s3 + $0x38] sm:$0xff]  ;;  %v1335_v52 = vld [vmem:[%s18942_s3 + $0x70] sm:$0xff] }
 0x1a0   :  { %2342 = vst.msk [vmem:[%s18942_s3 + $0x30] sm:$0xff] %vm629_vm4, %v2261_v59  ;;  %1492 = vst.msk [vmem:[%s18942_s3 + $0x48] sm:$0xff] %vm629_vm4, %v1411_v60  ;;  %v2262_v1 = vadd.f32 %v2181_v63, %v1875_v58  ;;  %9081 = vmatmul.mubr.msk.bf16.gmra.mrb[204].mxu1 %vm138_vm3, %v823_v53  ;;  %9243 = vmatmul.mubr.msk.bf16.gmra.mrb[204].mxu0 %vm138_vm3, %v1675_v54  ;;  %v1678_v58 = vpack.c.bf16 %v1631_v50, %v1630_v49  ;;  %v1336_v61 = vld [vmem:[%s18942_s3 + $0x78] sm:$0xff] }
 0x1a1   :  { %9084 = vmatprep.mubr.msk.bf16.mxu1 %vm10291_vm2, %v10289_v0  ;;  %9246 = vmatprep.mubr.msk.bf16.mxu0 %vm10291_vm2, %v10289_v0 }
 0x1a2   :  { %2343 = vst.msk [vmem:[%s18942_s3 + $0x38] sm:$0xff] %vm629_vm4, %v2262_v1 }
 0x1a3   :  { %v1035_v7 = vpop.f32.mrb[100].mxu1  ;;  %v1880_v9 = vpop.f32.mrb[100].mxu0 }
 0x1a4   :  { %v1412_v10 = vadd.f32 %v1331_v8, %v1035_v7  ;;  %v8978_v11 = vpop.f32.mrb[101].mxu1  ;;  %v9140_v12 = vpop.f32.mrb[101].mxu0  ;;  %v781_v7 = vld [vmem:[%s18941_s0 + $0x231] sm:$0xff]  ;;  %v782_v8 = vld [vmem:[%s18941_s0 + $0x239] sm:$0xff] }
 0x1a5   :  { %v2182_v15 = vld [vmem:[%s18942_s3 + $0x40] sm:$0xff]  ;;  %v1038_v16 = vpop.f32.mrb[102].mxu1  ;;  %v1883_v18 = vpop.f32.mrb[102].mxu0 }
 0x1a6   :  { %1493 = vst.msk [vmem:[%s18942_s3 + $0x50] sm:$0xff] %vm629_vm4, %v1412_v10  ;;  %v2263_v19 = vadd.f32 %v2182_v15, %v1880_v9  ;;  %v1413_v20 = vadd.f32 %v1332_v17, %v1038_v16  ;;  %v8979_v21 = vpop.f32.mrb[103].mxu1  ;;  %v9141_v22 = vpop.f32.mrb[103].mxu0  ;;  %v1632_v9 = vld [vmem:[%s18941_s0 + $0x222] sm:$0xff]  ;;  %v1633_v10 = vld [vmem:[%s18941_s0 + $0x22a] sm:$0xff]  ;;  %v827_v17 = vpack.c.bf16 %v782_v8, %v781_v7 }
 0x1a7   :  { %v2183_v23 = vld [vmem:[%s18942_s3 + $0x48] sm:$0xff]  ;;  %v1337_v12 = vld [vmem:[%s18942_s3 + $0x80] sm:$0xff] }
 0x1a8   :  { %2344 = vst.msk [vmem:[%s18942_s3 + $0x40] sm:$0xff] %vm629_vm4, %v2263_v19  ;;  %1494 = vst.msk [vmem:[%s18942_s3 + $0x58] sm:$0xff] %vm629_vm4, %v1413_v20  ;;  %v2264_v24 = vadd.f32 %v2183_v23, %v1883_v18  ;;  %9085 = vmatmul.mubr.msk.bf16.gmra.mrb[208].mxu1 %vm138_vm3, %v824_v13  ;;  %9247 = vmatmul.mubr.msk.bf16.gmra.mrb[208].mxu0 %vm138_vm3, %v1676_v14  ;;  %v1679_v18 = vpack.c.bf16 %v1633_v10, %v1632_v9  ;;  %v1338_v21 = vld [vmem:[%s18942_s3 + $0x88] sm:$0xff] }
 0x1a9   :  { %9088 = vmatprep.mubr.msk.bf16.mxu1 %vm10291_vm2, %v10289_v0  ;;  %9250 = vmatprep.mubr.msk.bf16.mxu0 %vm10291_vm2, %v10289_v0 }
 0x1aa   :  { %2345 = vst.msk [vmem:[%s18942_s3 + $0x48] sm:$0xff] %vm629_vm4, %v2264_v24 }
 0x1ab   :  { %v1043_v29 = vpop.f32.mrb[104].mxu1  ;;  %v1888_v31 = vpop.f32.mrb[104].mxu0 }
 0x1ac   :  { %v1414_v32 = vadd.f32 %v1333_v30, %v1043_v29  ;;  %v8982_v33 = vpop.f32.mrb[105].mxu1  ;;  %v9144_v34 = vpop.f32.mrb[105].mxu0  ;;  %v783_v29 = vld [vmem:[%s18941_s0 + $0x241] sm:$0xff]  ;;  %v784_v30 = vld [vmem:[%s18941_s0 + $0x249] sm:$0xff] }
 0x1ad   :  { %v2184_v37 = vld [vmem:[%s18942_s3 + $0x50] sm:$0xff]  ;;  %v1046_v38 = vpop.f32.mrb[106].mxu1  ;;  %v1891_v40 = vpop.f32.mrb[106].mxu0 }
 0x1ae   :  { %1495 = vst.msk [vmem:[%s18942_s3 + $0x60] sm:$0xff] %vm629_vm4, %v1414_v32  ;;  %v2265_v41 = vadd.f32 %v2184_v37, %v1888_v31  ;;  %v1415_v42 = vadd.f32 %v1334_v39, %v1046_v38  ;;  %v8983_v43 = vpop.f32.mrb[107].mxu1  ;;  %v9145_v44 = vpop.f32.mrb[107].mxu0  ;;  %v1634_v31 = vld [vmem:[%s18941_s0 + $0x232] sm:$0xff]  ;;  %v1635_v32 = vld [vmem:[%s18941_s0 + $0x23a] sm:$0xff]  ;;  %v828_v39 = vpack.c.bf16 %v784_v30, %v783_v29 }
 0x1af   :  { %v2185_v45 = vld [vmem:[%s18942_s3 + $0x58] sm:$0xff]  ;;  %v1339_v34 = vld [vmem:[%s18942_s3 + $0x90] sm:$0xff] }
 0x1b0   :  { %2346 = vst.msk [vmem:[%s18942_s3 + $0x50] sm:$0xff] %vm629_vm4, %v2265_v41  ;;  %1496 = vst.msk [vmem:[%s18942_s3 + $0x68] sm:$0xff] %vm629_vm4, %v1415_v42  ;;  %v2266_v46 = vadd.f32 %v2185_v45, %v1891_v40  ;;  %9089 = vmatmul.mubr.msk.bf16.gmra.mrb[212].mxu1 %vm138_vm3, %v825_v35  ;;  %9251 = vmatmul.mubr.msk.bf16.gmra.mrb[212].mxu0 %vm138_vm3, %v1677_v36  ;;  %v1680_v40 = vpack.c.bf16 %v1635_v32, %v1634_v31  ;;  %v1340_v43 = vld [vmem:[%s18942_s3 + $0x98] sm:$0xff] }
 0x1b1   :  { %9092 = vmatprep.mubr.msk.bf16.mxu1 %vm10291_vm2, %v10289_v0  ;;  %9254 = vmatprep.mubr.msk.bf16.mxu0 %vm10291_vm2, %v10289_v0 }
 0x1b2   :  { %2347 = vst.msk [vmem:[%s18942_s3 + $0x58] sm:$0xff] %vm629_vm4, %v2266_v46 }
 0x1b3   :  { %v1051_v51 = vpop.f32.mrb[108].mxu1  ;;  %v1896_v53 = vpop.f32.mrb[108].mxu0 }
 0x1b4   :  { %v1416_v54 = vadd.f32 %v1335_v52, %v1051_v51  ;;  %v8986_v55 = vpop.f32.mrb[109].mxu1  ;;  %v9148_v56 = vpop.f32.mrb[109].mxu0  ;;  %v785_v51 = vld [vmem:[%s18941_s0 + $0x251] sm:$0xff]  ;;  %v786_v52 = vld [vmem:[%s18941_s0 + $0x259] sm:$0xff] }
 0x1b5   :  { %v2186_v59 = vld [vmem:[%s18942_s3 + $0x60] sm:$0xff]  ;;  %v1054_v60 = vpop.f32.mrb[110].mxu1  ;;  %v1899_v62 = vpop.f32.mrb[110].mxu0 }
 0x1b6   :  { %1497 = vst.msk [vmem:[%s18942_s3 + $0x70] sm:$0xff] %vm629_vm4, %v1416_v54  ;;  %v2267_v63 = vadd.f32 %v2186_v59, %v1896_v53  ;;  %v1417_v1 = vadd.f32 %v1336_v61, %v1054_v60  ;;  %v8987_v2 = vpop.f32.mrb[111].mxu1  ;;  %v9149_v3 = vpop.f32.mrb[111].mxu0  ;;  %v1636_v53 = vld [vmem:[%s18941_s0 + $0x242] sm:$0xff]  ;;  %v1637_v54 = vld [vmem:[%s18941_s0 + $0x24a] sm:$0xff]  ;;  %v829_v61 = vpack.c.bf16 %v786_v52, %v785_v51 }
 0x1b7   :  { %v2187_v4 = vld [vmem:[%s18942_s3 + $0x68] sm:$0xff]  ;;  %v1341_v56 = vld [vmem:[%s18942_s3 + $0xa0] sm:$0xff] }
 0x1b8   :  { %2348 = vst.msk [vmem:[%s18942_s3 + $0x60] sm:$0xff] %vm629_vm4, %v2267_v63  ;;  %1498 = vst.msk [vmem:[%s18942_s3 + $0x78] sm:$0xff] %vm629_vm4, %v1417_v1  ;;  %v2268_v5 = vadd.f32 %v2187_v4, %v1899_v62  ;;  %9093 = vmatmul.mubr.msk.bf16.gmra.mrb[216].mxu1 %vm138_vm3, %v826_v57  ;;  %9255 = vmatmul.mubr.msk.bf16.gmra.mrb[216].mxu0 %vm138_vm3, %v1678_v58  ;;  %v1681_v62 = vpack.c.bf16 %v1637_v54, %v1636_v53  ;;  %v1342_v2 = vld [vmem:[%s18942_s3 + $0xa8] sm:$0xff] }
 0x1b9   :  { %9096 = vmatprep.mubr.msk.bf16.mxu1 %vm10291_vm2, %v10289_v0  ;;  %9258 = vmatprep.mubr.msk.bf16.mxu0 %vm10291_vm2, %v10289_v0 }
 0x1ba   :  { %2349 = vst.msk [vmem:[%s18942_s3 + $0x68] sm:$0xff] %vm629_vm4, %v2268_v5 }
 0x1bb   :  { %v1059_v11 = vpop.f32.mrb[112].mxu1  ;;  %v1904_v13 = vpop.f32.mrb[112].mxu0 }
 0x1bc   :  { %v1418_v14 = vadd.f32 %v1337_v12, %v1059_v11  ;;  %v8990_v15 = vpop.f32.mrb[113].mxu1  ;;  %v9152_v16 = vpop.f32.mrb[113].mxu0  ;;  %v787_v11 = vld [vmem:[%s18941_s0 + $0x261] sm:$0xff]  ;;  %v788_v12 = vld [vmem:[%s18941_s0 + $0x269] sm:$0xff] }
 0x1bd   :  { %v2188_v19 = vld [vmem:[%s18942_s3 + $0x70] sm:$0xff]  ;;  %v1062_v20 = vpop.f32.mrb[114].mxu1  ;;  %v1907_v22 = vpop.f32.mrb[114].mxu0 }
 0x1be   :  { %1499 = vst.msk [vmem:[%s18942_s3 + $0x80] sm:$0xff] %vm629_vm4, %v1418_v14  ;;  %v2269_v23 = vadd.f32 %v2188_v19, %v1904_v13  ;;  %v1419_v24 = vadd.f32 %v1338_v21, %v1062_v20  ;;  %v8991_v25 = vpop.f32.mrb[115].mxu1  ;;  %v9153_v26 = vpop.f32.mrb[115].mxu0  ;;  %v1638_v13 = vld [vmem:[%s18941_s0 + $0x252] sm:$0xff]  ;;  %v1639_v14 = vld [vmem:[%s18941_s0 + $0x25a] sm:$0xff]  ;;  %v830_v21 = vpack.c.bf16 %v788_v12, %v787_v11 }
 0x1bf   :  { %v2189_v27 = vld [vmem:[%s18942_s3 + $0x78] sm:$0xff]  ;;  %v1343_v16 = vld [vmem:[%s18942_s3 + $0xb0] sm:$0xff] }
 0x1c0   :  { %2350 = vst.msk [vmem:[%s18942_s3 + $0x70] sm:$0xff] %vm629_vm4, %v2269_v23  ;;  %1500 = vst.msk [vmem:[%s18942_s3 + $0x88] sm:$0xff] %vm629_vm4, %v1419_v24  ;;  %v2270_v28 = vadd.f32 %v2189_v27, %v1907_v22  ;;  %9097 = vmatmul.mubr.msk.bf16.gmra.mrb[220].mxu1 %vm138_vm3, %v827_v17  ;;  %9259 = vmatmul.mubr.msk.bf16.gmra.mrb[220].mxu0 %vm138_vm3, %v1679_v18  ;;  %v1682_v22 = vpack.c.bf16 %v1639_v14, %v1638_v13  ;;  %v1344_v25 = vld [vmem:[%s18942_s3 + $0xb8] sm:$0xff]  ;;  %v1644_v14 = vld [vmem:[%s18941_s0 + $0x282] sm:$0xff] }
 0x1c1   :  { %9100 = vmatprep.mubr.msk.bf16.mxu1 %vm10291_vm2, %v10289_v0  ;;  %9262 = vmatprep.mubr.msk.bf16.mxu0 %vm10291_vm2, %v10289_v0 }
 0x1c2   :  { %2351 = vst.msk [vmem:[%s18942_s3 + $0x78] sm:$0xff] %vm629_vm4, %v2270_v28 }
 0x1c3   :  { %v1067_v33 = vpop.f32.mrb[116].mxu1  ;;  %v1912_v35 = vpop.f32.mrb[116].mxu0 }
 0x1c4   :  { %v1420_v36 = vadd.f32 %v1339_v34, %v1067_v33  ;;  %v8994_v37 = vpop.f32.mrb[117].mxu1  ;;  %v9156_v38 = vpop.f32.mrb[117].mxu0  ;;  %v789_v33 = vld [vmem:[%s18941_s0 + $0x271] sm:$0xff]  ;;  %v790_v34 = vld [vmem:[%s18941_s0 + $0x279] sm:$0xff] }
 0x1c5   :  { %v2190_v41 = vld [vmem:[%s18942_s3 + $0x80] sm:$0xff]  ;;  %v1070_v42 = vpop.f32.mrb[118].mxu1  ;;  %v1915_v44 = vpop.f32.mrb[118].mxu0 }
 0x1c6   :  { %1501 = vst.msk [vmem:[%s18942_s3 + $0x90] sm:$0xff] %vm629_vm4, %v1420_v36  ;;  %v2271_v45 = vadd.f32 %v2190_v41, %v1912_v35  ;;  %v1421_v46 = vadd.f32 %v1340_v43, %v1070_v42  ;;  %v8995_v47 = vpop.f32.mrb[119].mxu1  ;;  %v9157_v48 = vpop.f32.mrb[119].mxu0  ;;  %v1640_v35 = vld [vmem:[%s18941_s0 + $0x262] sm:$0xff]  ;;  %v1641_v36 = vld [vmem:[%s18941_s0 + $0x26a] sm:$0xff]  ;;  %v831_v43 = vpack.c.bf16 %v790_v34, %v789_v33 }
 0x1c7   :  { %v2191_v49 = vld [vmem:[%s18942_s3 + $0x88] sm:$0xff]  ;;  %v1345_v38 = vld [vmem:[%s18942_s3 + $0xc0] sm:$0xff] }
 0x1c8   :  { %2352 = vst.msk [vmem:[%s18942_s3 + $0x80] sm:$0xff] %vm629_vm4, %v2271_v45  ;;  %1502 = vst.msk [vmem:[%s18942_s3 + $0x98] sm:$0xff] %vm629_vm4, %v1421_v46  ;;  %v2272_v50 = vadd.f32 %v2191_v49, %v1915_v44  ;;  %9101 = vmatmul.mubr.msk.bf16.gmra.mrb[224].mxu1 %vm138_vm3, %v828_v39  ;;  %9263 = vmatmul.mubr.msk.bf16.gmra.mrb[224].mxu0 %vm138_vm3, %v1680_v40  ;;  %v1683_v44 = vpack.c.bf16 %v1641_v36, %v1640_v35  ;;  %v1346_v47 = vld [vmem:[%s18942_s3 + $0xc8] sm:$0xff] }
 0x1c9   :  { %9104 = vmatprep.mubr.msk.bf16.mxu1 %vm10291_vm2, %v10289_v0  ;;  %9266 = vmatprep.mubr.msk.bf16.mxu0 %vm10291_vm2, %v10289_v0 }
 0x1ca   :  { %2353 = vst.msk [vmem:[%s18942_s3 + $0x88] sm:$0xff] %vm629_vm4, %v2272_v50 }
 0x1cb   :  { %v1075_v55 = vpop.f32.mrb[120].mxu1  ;;  %v1920_v57 = vpop.f32.mrb[120].mxu0 }
 0x1cc   :  { %v1422_v58 = vadd.f32 %v1341_v56, %v1075_v55  ;;  %v8998_v59 = vpop.f32.mrb[121].mxu1  ;;  %v9160_v60 = vpop.f32.mrb[121].mxu0  ;;  %v791_v55 = vld [vmem:[%s18941_s0 + $0x281] sm:$0xff]  ;;  %v1642_v56 = vld [vmem:[%s18941_s0 + $0x272] sm:$0xff] }
 0x1cd   :  { %v2192_v63 = vld [vmem:[%s18942_s3 + $0x90] sm:$0xff]  ;;  %v1078_v1 = vpop.f32.mrb[122].mxu1  ;;  %v1923_v3 = vpop.f32.mrb[122].mxu0 }
 0x1ce   :  { %1503 = vst.msk [vmem:[%s18942_s3 + $0xa0] sm:$0xff] %vm629_vm4, %v1422_v58  ;;  %v2273_v4 = vadd.f32 %v2192_v63, %v1920_v57  ;;  %v1423_v5 = vadd.f32 %v1342_v2, %v1078_v1  ;;  %v8999_v7 = vpop.f32.mrb[123].mxu1  ;;  %v9161_v8 = vpop.f32.mrb[123].mxu0  ;;  %v1643_v57 = vld [vmem:[%s18941_s0 + $0x27a] sm:$0xff]  ;;  %v1347_v59 = vld [vmem:[%s18942_s3 + $0xd0] sm:$0xff]  ;;  %v832_v1 = vpack.c.bf16 %v791_v55, %v791_v55 }
 0x1cf   :  { %v2193_v9 = vld [vmem:[%s18942_s3 + $0x98] sm:$0xff]  ;;  %v1684_v2 = vpack.c.bf16 %v1643_v57, %v1642_v56 }
 0x1d0   :  { %2354 = vst.msk [vmem:[%s18942_s3 + $0x90] sm:$0xff] %vm629_vm4, %v2273_v4  ;;  %1504 = vst.msk [vmem:[%s18942_s3 + $0xa8] sm:$0xff] %vm629_vm4, %v1423_v5  ;;  %v2274_v10 = vadd.f32 %v2193_v9, %v1923_v3  ;;  %9105 = vmatmul.mubr.msk.bf16.gmra.mrb[228].mxu1 %vm138_vm3, %v829_v61  ;;  %9267 = vmatmul.mubr.msk.bf16.gmra.mrb[228].mxu0 %vm138_vm3, %v1681_v62  ;;  %v1348_v5 = vld [vmem:[%s18942_s3 + $0xd8] sm:$0xff] }
 0x1d1   :  { %9108 = vmatprep.mubr.msk.bf16.mxu1 %vm10291_vm2, %v10289_v0  ;;  %9270 = vmatprep.mubr.msk.bf16.mxu0 %vm10291_vm2, %v10289_v0 }
 0x1d2   :  { %2355 = vst.msk [vmem:[%s18942_s3 + $0x98] sm:$0xff] %vm629_vm4, %v2274_v10 }
 0x1d3   :  { %v1083_v15 = vpop.f32.mrb[124].mxu1  ;;  %v1928_v17 = vpop.f32.mrb[124].mxu0 }
 0x1d4   :  { %v1424_v18 = vadd.f32 %v1343_v16, %v1083_v15  ;;  %v9002_v19 = vpop.f32.mrb[125].mxu1  ;;  %v9164_v20 = vpop.f32.mrb[125].mxu0  ;;  %v2417_v15 = vld [vmem:[%s18941_s0 + $0x12] sm:$0xff]  ;;  %v2418_v16 = vld [vmem:[%s18941_s0 + $0x1a] sm:$0xff] }
 0x1d5   :  { %v2194_v23 = vld [vmem:[%s18942_s3 + $0xa0] sm:$0xff]  ;;  %v1086_v24 = vpop.f32.mrb[126].mxu1  ;;  %v1931_v26 = vpop.f32.mrb[126].mxu0 }
 0x1d6   :  { %1505 = vst.msk [vmem:[%s18942_s3 + $0xb0] sm:$0xff] %vm629_vm4, %v1424_v18  ;;  %v2275_v27 = vadd.f32 %v2194_v23, %v1928_v17  ;;  %v1425_v28 = vadd.f32 %v1344_v25, %v1086_v24  ;;  %v9003_v29 = vpop.f32.mrb[127].mxu1  ;;  %v9165_v30 = vpop.f32.mrb[127].mxu0  ;;  %v8241_v17 = vld [vmem:[%s18940_s1 + $0xa] sm:$0x3]  ;;  %v1349_v19 = vld [vmem:[%s18942_s3 + $0xe0] sm:$0xff]  ;;  %v1685_v24 = vpack.c.bf16 %v1644_v14, %v1644_v14  ;;  %v2498_v25 = vpack.c.bf16 %v2418_v16, %v2417_v15 }
 0x1d7   :  { %v2195_v31 = vld [vmem:[%s18942_s3 + $0xa8] sm:$0xff]  ;;  %v4371_v30 = vand.u32 %v8241_v17, %v10323_v6 }
 0x1d8   :  { %2356 = vst.msk [vmem:[%s18942_s3 + $0xa0] sm:$0xff] %vm629_vm4, %v2275_v27  ;;  %1506 = vst.msk [vmem:[%s18942_s3 + $0xb8] sm:$0xff] %vm629_vm4, %v1425_v28  ;;  %v2276_v32 = vadd.f32 %v2195_v31, %v1931_v26  ;;  %9109 = vmatmul.mubr.msk.bf16.gmra.mrb[232].mxu1 %vm138_vm3, %v830_v21  ;;  %9271 = vmatmul.mubr.msk.bf16.gmra.mrb[232].mxu0 %vm138_vm3, %v1682_v22  ;;  %v1350_v28 = vld [vmem:[%s18942_s3 + $0xe8] sm:$0xff] }
 0x1d9   :  { %9112 = vmatprep.mubr.msk.bf16.mxu1 %vm10291_vm2, %v10289_v0  ;;  %9274 = vmatprep.mubr.msk.bf16.mxu0 %vm10291_vm2, %v10289_v0 }
 0x1da   :  { %2357 = vst.msk [vmem:[%s18942_s3 + $0xa8] sm:$0xff] %vm629_vm4, %v2276_v32 }
 0x1db   :  { %v1091_v37 = vpop.f32.mrb[128].mxu1  ;;  %v1936_v39 = vpop.f32.mrb[128].mxu0 }
 0x1dc   :  { %v1426_v40 = vadd.f32 %v1345_v38, %v1091_v37  ;;  %v9006_v41 = vpop.f32.mrb[129].mxu1  ;;  %v9168_v42 = vpop.f32.mrb[129].mxu0  ;;  %v2419_v37 = vld [vmem:[%s18941_s0 + $0x22] sm:$0xff]  ;;  %v2420_v38 = vld [vmem:[%s18941_s0 + $0x2a] sm:$0xff] }
 0x1dd   :  { %v2196_v45 = vld [vmem:[%s18942_s3 + $0xb0] sm:$0xff]  ;;  %v1094_v46 = vpop.f32.mrb[130].mxu1  ;;  %v1939_v48 = vpop.f32.mrb[130].mxu0  ;;  %v8283_v41 = vld [vmem:[%s18940_s1 + $0xc] sm:$0x3] }
 0x1de   :  { %1507 = vst.msk [vmem:[%s18942_s3 + $0xc0] sm:$0xff] %vm629_vm4, %v1426_v40  ;;  %v2277_v49 = vadd.f32 %v2196_v45, %v1936_v39  ;;  %v1427_v50 = vadd.f32 %v1346_v47, %v1094_v46  ;;  %v9007_v51 = vpop.f32.mrb[131].mxu1  ;;  %v9169_v52 = vpop.f32.mrb[131].mxu0  ;;  %v3270_v39 = vld [vmem:[%s18941_s0 + $0x13] sm:$0xff]  ;;  %v3271_v40 = vld [vmem:[%s18941_s0 + $0x1b] sm:$0xff] }
 0x1df   :  { %v2197_v53 = vld [vmem:[%s18942_s3 + $0xb8] sm:$0xff] }
 0x1e0   :  { %2358 = vst.msk [vmem:[%s18942_s3 + $0xb0] sm:$0xff] %vm629_vm4, %v2277_v49  ;;  %1508 = vst.msk [vmem:[%s18942_s3 + $0xc8] sm:$0xff] %vm629_vm4, %v1427_v50  ;;  %v2278_v54 = vadd.f32 %v2197_v53, %v1939_v48  ;;  %9113 = vmatmul.mubr.msk.bf16.gmra.mrb[236].mxu1 %vm138_vm3, %v831_v43  ;;  %9275 = vmatmul.mubr.msk.bf16.gmra.mrb[236].mxu0 %vm138_vm3, %v1683_v44  ;;  %v1351_v43 = vld [vmem:[%s18942_s3 + $0xf0] sm:$0xff]  ;;  %v2499_v48 = vpack.c.bf16 %v2420_v38, %v2419_v37  ;;  %v1352_v52 = vld [vmem:[%s18942_s3 + $0xf8] sm:$0xff] }
 0x1e1   :  { %9116 = vmatprep.mubr.msk.bf16.mxu1 %vm10291_vm2, %v10289_v0  ;;  %9278 = vmatprep.mubr.msk.bf16.mxu0 %vm10291_vm2, %v10289_v0  ;;  %v3351_v49 = vpack.c.bf16 %v3271_v40, %v3270_v39 }
 0x1e2   :  { %2359 = vst.msk [vmem:[%s18942_s3 + $0xb8] sm:$0xff] %vm629_vm4, %v2278_v54  ;;  %v5224_v54 = vand.u32 %v8283_v41, %v10323_v6 }
 0x1e3   :  { %v1099_v58 = vpop.f32.mrb[132].mxu1  ;;  %v1944_v60 = vpop.f32.mrb[132].mxu0 }
 0x1e4   :  { %v1428_v61 = vadd.f32 %v1347_v59, %v1099_v58  ;;  %v9010_v62 = vpop.f32.mrb[133].mxu1  ;;  %v9172_v63 = vpop.f32.mrb[133].mxu0 }
 0x1e5   :  { %v2198_v3 = vld [vmem:[%s18942_s3 + $0xc0] sm:$0xff]  ;;  %v1102_v4 = vpop.f32.mrb[134].mxu1  ;;  %v1947_v7 = vpop.f32.mrb[134].mxu0 }
 0x1e6   :  { %1509 = vst.msk [vmem:[%s18942_s3 + $0xd0] sm:$0xff] %vm629_vm4, %v1428_v61  ;;  %v2279_v8 = vadd.f32 %v2198_v3, %v1944_v60  ;;  %v1429_v9 = vadd.f32 %v1348_v5, %v1102_v4  ;;  %v9011_v10 = vpop.f32.mrb[135].mxu1  ;;  %v9173_v11 = vpop.f32.mrb[135].mxu0  ;;  %v2421_v61 = vld [vmem:[%s18941_s0 + $0x32] sm:$0xff]  ;;  %v2422_v62 = vld [vmem:[%s18941_s0 + $0x3a] sm:$0xff]  ;;  %v3272_v63 = vld [vmem:[%s18941_s0 + $0x23] sm:$0xff] }
 0x1e7   :  { %v2199_v12 = vld [vmem:[%s18942_s3 + $0xc8] sm:$0xff]  ;;  %v1353_v3 = vld [vmem:[%s18942_s3 + $0x100] sm:$0xff] }
 0x1e8   :  { %2360 = vst.msk [vmem:[%s18942_s3 + $0xc0] sm:$0xff] %vm629_vm4, %v2279_v8  ;;  %1510 = vst.msk [vmem:[%s18942_s3 + $0xd8] sm:$0xff] %vm629_vm4, %v1429_v9  ;;  %v2280_v13 = vadd.f32 %v2199_v12, %v1947_v7  ;;  %9117 = vmatmul.mubr.msk.bf16.gmra.mrb[240].mxu1 %vm138_vm3, %v832_v1  ;;  %9279 = vmatmul.mubr.msk.bf16.gmra.mrb[240].mxu0 %vm138_vm3, %v1684_v2  ;;  %v3273_v1 = vld [vmem:[%s18941_s0 + $0x2b] sm:$0xff]  ;;  %v2500_v9 = vpack.c.bf16 %v2422_v62, %v2421_v61 }
 0x1e9   :  { %9282 = vmatprep.mubr.msk.bf16.mxu0 %vm10291_vm2, %v10289_v0  ;;  %9288 = vmatprep.mubr.msk.bf16.mxu1 %vm10291_vm2, %v10289_v0  ;;  %v3352_v10 = vpack.c.bf16 %v3273_v1, %v3272_v63 }
 0x1ea   :  { %2361 = vst.msk [vmem:[%s18942_s3 + $0xc8] sm:$0xff] %vm629_vm4, %v2280_v13  ;;  %v1354_v13 = vld [vmem:[%s18942_s3 + $0x108] sm:$0xff] }
 0x1eb   :  { %v1107_v18 = vpop.f32.mrb[136].mxu1  ;;  %v1952_v20 = vpop.f32.mrb[136].mxu0 }
 0x1ec   :  { %v1430_v21 = vadd.f32 %v1349_v19, %v1107_v18  ;;  %v9014_v22 = vpop.f32.mrb[137].mxu1  ;;  %v9176_v23 = vpop.f32.mrb[137].mxu0 }
 0x1ed   :  { %v2200_v26 = vld [vmem:[%s18942_s3 + $0xd0] sm:$0xff]  ;;  %v1110_v27 = vpop.f32.mrb[138].mxu1  ;;  %v1955_v29 = vpop.f32.mrb[138].mxu0 }
 0x1ee   :  { %1511 = vst.msk [vmem:[%s18942_s3 + $0xe0] sm:$0xff] %vm629_vm4, %v1430_v21  ;;  %v2281_v31 = vadd.f32 %v2200_v26, %v1952_v20  ;;  %v1431_v32 = vadd.f32 %v1350_v28, %v1110_v27  ;;  %v9015_v33 = vpop.f32.mrb[139].mxu1  ;;  %v9177_v34 = vpop.f32.mrb[139].mxu0  ;;  %v2423_v21 = vld [vmem:[%s18941_s0 + $0x42] sm:$0xff]  ;;  %v2424_v22 = vld [vmem:[%s18941_s0 + $0x4a] sm:$0xff]  ;;  %v3274_v23 = vld [vmem:[%s18941_s0 + $0x33] sm:$0xff] }
 0x1ef   :  { %v2201_v35 = vld [vmem:[%s18942_s3 + $0xd8] sm:$0xff]  ;;  %v1355_v26 = vld [vmem:[%s18942_s3 + $0x110] sm:$0xff] }
 0x1f0   :  { %2362 = vst.msk [vmem:[%s18942_s3 + $0xd0] sm:$0xff] %vm629_vm4, %v2281_v31  ;;  %1512 = vst.msk [vmem:[%s18942_s3 + $0xe8] sm:$0xff] %vm629_vm4, %v1431_v32  ;;  %v2282_v36 = vadd.f32 %v2201_v35, %v1955_v29  ;;  %9283 = vmatmul.mubr.msk.bf16.gmra.mrb[244].mxu0 %vm138_vm3, %v1685_v24  ;;  %9289 = vmatmul.mubr.msk.bf16.vlgmr.msra.gmra.mrb[244].mxu1 %vm138_vm3, %v2498_v25  ;;  %v3275_v24 = vld [vmem:[%s18941_s0 + $0x3b] sm:$0xff]  ;;  %v2501_v31 = vpack.c.bf16 %v2424_v22, %v2423_v21 }
 0x1f1   :  { %9619 = vmatpush3.bf16.msra.mxu1 %v4371_v30  ;;  %9292 = vmatprep.mubr.msk.bf16.mxu1 %vm10291_vm2, %v10289_v0  ;;  %v3353_v32 = vpack.c.bf16 %v3275_v24, %v3274_v23  ;;  %v1356_v35 = vld [vmem:[%s18942_s3 + $0x118] sm:$0xff] }
 0x1f2   :  { %2363 = vst.msk [vmem:[%s18942_s3 + $0xd8] sm:$0xff] %vm629_vm4, %v2282_v36  ;;  %9454 = vmatprep.mubr.msk.bf16.mxu0 %vm10291_vm2, %v10289_v0  ;;  %9950 = vmatprep.subr.bf16.mxu1 %v10289_v0 }
 0x1f3   :  { %v1115_v42 = vpop.f32.mrb[140].mxu1  ;;  %v1960_v44 = vpop.f32.mrb[140].mxu0 }
 0x1f4   :  { %v1432_v45 = vadd.f32 %v1351_v43, %v1115_v42  ;;  %v9018_v46 = vpop.f32.mrb[141].mxu1  ;;  %v9180_v47 = vpop.f32.mrb[141].mxu0  ;;  %v2425_v43 = vld [vmem:[%s18941_s0 + $0x52] sm:$0xff] }
 0x1f5   :  { %v2202_v50 = vld [vmem:[%s18942_s3 + $0xe0] sm:$0xff]  ;;  %v1118_v51 = vpop.f32.mrb[142].mxu1  ;;  %v1963_v53 = vpop.f32.mrb[142].mxu0  ;;  %v3277_v46 = vld [vmem:[%s18941_s0 + $0x4b] sm:$0xff] }
 0x1f6   :  { %1513 = vst.msk [vmem:[%s18942_s3 + $0xf0] sm:$0xff] %vm629_vm4, %v1432_v45  ;;  %v2283_v55 = vadd.f32 %v2202_v50, %v1960_v44  ;;  %v1433_v56 = vadd.f32 %v1352_v52, %v1118_v51  ;;  %v9019_v57 = vpop.f32.mrb[143].mxu1  ;;  %v9181_v58 = vpop.f32.mrb[143].mxu0  ;;  %v2426_v44 = vld [vmem:[%s18941_s0 + $0x5a] sm:$0xff]  ;;  %v3276_v45 = vld [vmem:[%s18941_s0 + $0x43] sm:$0xff] }
 0x1f7   :  { %v2203_v59 = vld [vmem:[%s18942_s3 + $0xe8] sm:$0xff] }
 0x1f8   :  { %2364 = vst.msk [vmem:[%s18942_s3 + $0xe0] sm:$0xff] %vm629_vm4, %v2283_v55  ;;  %1514 = vst.msk [vmem:[%s18942_s3 + $0xf8] sm:$0xff] %vm629_vm4, %v1433_v56  ;;  %v2284_v60 = vadd.f32 %v2203_v59, %v1963_v53  ;;  %9293 = vmatmul.mubr.msk.bf16.gmra.mrb[248].mxu1 %vm138_vm3, %v2499_v48  ;;  %9455 = vmatmul.mubr.msk.bf16.vlgmr.msra.gmra.mrb[248].mxu0 %vm138_vm3, %v3351_v49  ;;  %v1357_v48 = vld [vmem:[%s18942_s3 + $0x120] sm:$0xff]  ;;  %v2502_v53 = vpack.c.bf16 %v2426_v44, %v2425_v43  ;;  %v1358_v57 = vld [vmem:[%s18942_s3 + $0x128] sm:$0xff] }
 0x1f9   :  { %9785 = vmatpush3.bf16.msra.mxu0 %v5224_v54  ;;  %9296 = vmatprep.mubr.msk.bf16.mxu1 %vm10291_vm2, %v10289_v0  ;;  %v3354_v54 = vpack.c.bf16 %v3277_v46, %v3276_v45 }
 0x1fa   :  { %2365 = vst.msk [vmem:[%s18942_s3 + $0xe8] sm:$0xff] %vm629_vm4, %v2284_v60  ;;  %9458 = vmatprep.mubr.msk.bf16.mxu0 %vm10291_vm2, %v10289_v0  ;;  %10116 = vmatprep.subr.bf16.mxu0 %v10289_v0 }
 0x1fb   :  { %v1123_v2 = vpop.f32.mrb[144].mxu1  ;;  %v1968_v4 = vpop.f32.mrb[144].mxu0 }
 0x1fc   :  { %v1434_v5 = vadd.f32 %v1353_v3, %v1123_v2  ;;  %v9022_v7 = vpop.f32.mrb[145].mxu1  ;;  %v9184_v8 = vpop.f32.mrb[145].mxu0  ;;  %v2427_v2 = vld [vmem:[%s18941_s0 + $0x62] sm:$0xff]  ;;  %v2428_v3 = vld [vmem:[%s18941_s0 + $0x6a] sm:$0xff] }
 0x1fd   :  { %v2204_v11 = vld [vmem:[%s18942_s3 + $0xf0] sm:$0xff]  ;;  %v1126_v12 = vpop.f32.mrb[146].mxu1  ;;  %v1971_v14 = vpop.f32.mrb[146].mxu0 }
 0x1fe   :  { %1515 = vst.msk [vmem:[%s18942_s3 + $0x100] sm:$0xff] %vm629_vm4, %v1434_v5  ;;  %v2285_v15 = vadd.f32 %v2204_v11, %v1968_v4  ;;  %v1435_v16 = vadd.f32 %v1354_v13, %v1126_v12  ;;  %v9023_v17 = vpop.f32.mrb[147].mxu1  ;;  %v9185_v18 = vpop.f32.mrb[147].mxu0  ;;  %v3278_v4 = vld [vmem:[%s18941_s0 + $0x53] sm:$0xff]  ;;  %v3279_v5 = vld [vmem:[%s18941_s0 + $0x5b] sm:$0xff]  ;;  %v2503_v13 = vpack.c.bf16 %v2428_v3, %v2427_v2 }
 0x1ff   :  { %v2205_v19 = vld [vmem:[%s18942_s3 + $0xf8] sm:$0xff]  ;;  %v1359_v8 = vld [vmem:[%s18942_s3 + $0x130] sm:$0xff] }
 0x200   :  { %2366 = vst.msk [vmem:[%s18942_s3 + $0xf0] sm:$0xff] %vm629_vm4, %v2285_v15  ;;  %1516 = vst.msk [vmem:[%s18942_s3 + $0x108] sm:$0xff] %vm629_vm4, %v1435_v16  ;;  %v2286_v20 = vadd.f32 %v2205_v19, %v1971_v14  ;;  %9297 = vmatmul.mubr.msk.bf16.gmra.mrb[252].mxu1 %vm138_vm3, %v2500_v9  ;;  %9459 = vmatmul.mubr.msk.bf16.gmra.mrb[252].mxu0 %vm138_vm3, %v3352_v10  ;;  %v3355_v14 = vpack.c.bf16 %v3279_v5, %v3278_v4  ;;  %v1360_v17 = vld [vmem:[%s18942_s3 + $0x138] sm:$0xff] }
 0x201   :  { %9300 = vmatprep.mubr.msk.bf16.mxu1 %vm10291_vm2, %v10289_v0  ;;  %9462 = vmatprep.mubr.msk.bf16.mxu0 %vm10291_vm2, %v10289_v0 }
 0x202   :  { %2367 = vst.msk [vmem:[%s18942_s3 + $0xf8] sm:$0xff] %vm629_vm4, %v2286_v20 }
 0x203   :  { %v1131_v25 = vpop.f32.mrb[148].mxu1  ;;  %v1976_v27 = vpop.f32.mrb[148].mxu0 }
 0x204   :  { %v1436_v28 = vadd.f32 %v1355_v26, %v1131_v25  ;;  %v9026_v29 = vpop.f32.mrb[149].mxu1  ;;  %v9188_v30 = vpop.f32.mrb[149].mxu0  ;;  %v2429_v25 = vld [vmem:[%s18941_s0 + $0x72] sm:$0xff]  ;;  %v2430_v26 = vld [vmem:[%s18941_s0 + $0x7a] sm:$0xff] }
 0x205   :  { %v2206_v33 = vld [vmem:[%s18942_s3 + $0x100] sm:$0xff]  ;;  %v1134_v34 = vpop.f32.mrb[150].mxu1  ;;  %v1979_v36 = vpop.f32.mrb[150].mxu0 }
 0x206   :  { %1517 = vst.msk [vmem:[%s18942_s3 + $0x110] sm:$0xff] %vm629_vm4, %v1436_v28  ;;  %v2287_v37 = vadd.f32 %v2206_v33, %v1976_v27  ;;  %v1437_v38 = vadd.f32 %v1356_v35, %v1134_v34  ;;  %v9027_v39 = vpop.f32.mrb[151].mxu1  ;;  %v9189_v40 = vpop.f32.mrb[151].mxu0  ;;  %v3280_v27 = vld [vmem:[%s18941_s0 + $0x63] sm:$0xff]  ;;  %v3281_v28 = vld [vmem:[%s18941_s0 + $0x6b] sm:$0xff]  ;;  %v2504_v35 = vpack.c.bf16 %v2430_v26, %v2429_v25 }
 0x207   :  { %v2207_v41 = vld [vmem:[%s18942_s3 + $0x108] sm:$0xff]  ;;  %v1361_v30 = vld [vmem:[%s18942_s3 + $0x140] sm:$0xff] }
 0x208   :  { %2368 = vst.msk [vmem:[%s18942_s3 + $0x100] sm:$0xff] %vm629_vm4, %v2287_v37  ;;  %1518 = vst.msk [vmem:[%s18942_s3 + $0x118] sm:$0xff] %vm629_vm4, %v1437_v38  ;;  %v2288_v42 = vadd.f32 %v2207_v41, %v1979_v36  ;;  %9301 = vmatmul.mubr.msk.bf16.gmra.mrb[0].mxu1 %vm138_vm3, %v2501_v31  ;;  %9463 = vmatmul.mubr.msk.bf16.gmra.mrb[0].mxu0 %vm138_vm3, %v3353_v32  ;;  %v3356_v36 = vpack.c.bf16 %v3281_v28, %v3280_v27  ;;  %v1362_v39 = vld [vmem:[%s18942_s3 + $0x148] sm:$0xff] }
 0x209   :  { %9304 = vmatprep.mubr.msk.bf16.mxu1 %vm10291_vm2, %v10289_v0  ;;  %9466 = vmatprep.mubr.msk.bf16.mxu0 %vm10291_vm2, %v10289_v0 }
 0x20a   :  { %2369 = vst.msk [vmem:[%s18942_s3 + $0x108] sm:$0xff] %vm629_vm4, %v2288_v42 }
 0x20b   :  { %v1139_v47 = vpop.f32.mrb[152].mxu1  ;;  %v1984_v49 = vpop.f32.mrb[152].mxu0 }
 0x20c   :  { %v1438_v50 = vadd.f32 %v1357_v48, %v1139_v47  ;;  %v9030_v51 = vpop.f32.mrb[153].mxu1  ;;  %v9192_v52 = vpop.f32.mrb[153].mxu0  ;;  %v2431_v47 = vld [vmem:[%s18941_s0 + $0x82] sm:$0xff]  ;;  %v2432_v48 = vld [vmem:[%s18941_s0 + $0x8a] sm:$0xff] }
 0x20d   :  { %v2208_v55 = vld [vmem:[%s18942_s3 + $0x110] sm:$0xff]  ;;  %v1142_v56 = vpop.f32.mrb[154].mxu1  ;;  %v1987_v58 = vpop.f32.mrb[154].mxu0 }
 0x20e   :  { %1519 = vst.msk [vmem:[%s18942_s3 + $0x120] sm:$0xff] %vm629_vm4, %v1438_v50  ;;  %v2289_v59 = vadd.f32 %v2208_v55, %v1984_v49  ;;  %v1439_v60 = vadd.f32 %v1358_v57, %v1142_v56  ;;  %v9031_v61 = vpop.f32.mrb[155].mxu1  ;;  %v9193_v62 = vpop.f32.mrb[155].mxu0  ;;  %v3282_v49 = vld [vmem:[%s18941_s0 + $0x73] sm:$0xff]  ;;  %v3283_v50 = vld [vmem:[%s18941_s0 + $0x7b] sm:$0xff]  ;;  %v2505_v57 = vpack.c.bf16 %v2432_v48, %v2431_v47 }
 0x20f   :  { %v2209_v63 = vld [vmem:[%s18942_s3 + $0x118] sm:$0xff]  ;;  %v1363_v52 = vld [vmem:[%s18942_s3 + $0x150] sm:$0xff] }
 0x210   :  { %2370 = vst.msk [vmem:[%s18942_s3 + $0x110] sm:$0xff] %vm629_vm4, %v2289_v59  ;;  %1520 = vst.msk [vmem:[%s18942_s3 + $0x128] sm:$0xff] %vm629_vm4, %v1439_v60  ;;  %v2290_v1 = vadd.f32 %v2209_v63, %v1987_v58  ;;  %9305 = vmatmul.mubr.msk.bf16.gmra.mrb[4].mxu1 %vm138_vm3, %v2502_v53  ;;  %9467 = vmatmul.mubr.msk.bf16.gmra.mrb[4].mxu0 %vm138_vm3, %v3354_v54  ;;  %v3357_v58 = vpack.c.bf16 %v3283_v50, %v3282_v49  ;;  %v1364_v61 = vld [vmem:[%s18942_s3 + $0x158] sm:$0xff] }
 0x211   :  { %9308 = vmatprep.mubr.msk.bf16.mxu1 %vm10291_vm2, %v10289_v0  ;;  %9470 = vmatprep.mubr.msk.bf16.mxu0 %vm10291_vm2, %v10289_v0 }
 0x212   :  { %2371 = vst.msk [vmem:[%s18942_s3 + $0x118] sm:$0xff] %vm629_vm4, %v2290_v1 }
 0x213   :  { %v1147_v7 = vpop.f32.mrb[156].mxu1  ;;  %v1992_v9 = vpop.f32.mrb[156].mxu0 }
 0x214   :  { %v1440_v10 = vadd.f32 %v1359_v8, %v1147_v7  ;;  %v9034_v11 = vpop.f32.mrb[157].mxu1  ;;  %v9196_v12 = vpop.f32.mrb[157].mxu0  ;;  %v2433_v7 = vld [vmem:[%s18941_s0 + $0x92] sm:$0xff]  ;;  %v2434_v8 = vld [vmem:[%s18941_s0 + $0x9a] sm:$0xff] }
 0x215   :  { %v2210_v15 = vld [vmem:[%s18942_s3 + $0x120] sm:$0xff]  ;;  %v1150_v16 = vpop.f32.mrb[158].mxu1  ;;  %v1995_v18 = vpop.f32.mrb[158].mxu0 }
 0x216   :  { %1521 = vst.msk [vmem:[%s18942_s3 + $0x130] sm:$0xff] %vm629_vm4, %v1440_v10  ;;  %v2291_v19 = vadd.f32 %v2210_v15, %v1992_v9  ;;  %v1441_v20 = vadd.f32 %v1360_v17, %v1150_v16  ;;  %v9035_v21 = vpop.f32.mrb[159].mxu1  ;;  %v9197_v22 = vpop.f32.mrb[159].mxu0  ;;  %v3284_v9 = vld [vmem:[%s18941_s0 + $0x83] sm:$0xff]  ;;  %v3285_v10 = vld [vmem:[%s18941_s0 + $0x8b] sm:$0xff]  ;;  %v2506_v17 = vpack.c.bf16 %v2434_v8, %v2433_v7 }
 0x217   :  { %v2211_v23 = vld [vmem:[%s18942_s3 + $0x128] sm:$0xff]  ;;  %v1365_v12 = vld [vmem:[%s18942_s3 + $0x160] sm:$0xff] }
 0x218   :  { %2372 = vst.msk [vmem:[%s18942_s3 + $0x120] sm:$0xff] %vm629_vm4, %v2291_v19  ;;  %1522 = vst.msk [vmem:[%s18942_s3 + $0x138] sm:$0xff] %vm629_vm4, %v1441_v20  ;;  %v2292_v24 = vadd.f32 %v2211_v23, %v1995_v18  ;;  %9309 = vmatmul.mubr.msk.bf16.gmra.mrb[8].mxu1 %vm138_vm3, %v2503_v13  ;;  %9471 = vmatmul.mubr.msk.bf16.gmra.mrb[8].mxu0 %vm138_vm3, %v3355_v14  ;;  %v3358_v18 = vpack.c.bf16 %v3285_v10, %v3284_v9  ;;  %v1366_v21 = vld [vmem:[%s18942_s3 + $0x168] sm:$0xff] }
 0x219   :  { %9312 = vmatprep.mubr.msk.bf16.mxu1 %vm10291_vm2, %v10289_v0  ;;  %9474 = vmatprep.mubr.msk.bf16.mxu0 %vm10291_vm2, %v10289_v0 }
 0x21a   :  { %2373 = vst.msk [vmem:[%s18942_s3 + $0x128] sm:$0xff] %vm629_vm4, %v2292_v24 }
 0x21b   :  { %v1155_v29 = vpop.f32.mrb[160].mxu1  ;;  %v2000_v31 = vpop.f32.mrb[160].mxu0 }
 0x21c   :  { %v1442_v32 = vadd.f32 %v1361_v30, %v1155_v29  ;;  %v9038_v33 = vpop.f32.mrb[161].mxu1  ;;  %v9200_v34 = vpop.f32.mrb[161].mxu0  ;;  %v2435_v29 = vld [vmem:[%s18941_s0 + $0xa2] sm:$0xff]  ;;  %v2436_v30 = vld [vmem:[%s18941_s0 + $0xaa] sm:$0xff] }
 0x21d   :  { %v2212_v37 = vld [vmem:[%s18942_s3 + $0x130] sm:$0xff]  ;;  %v1158_v38 = vpop.f32.mrb[162].mxu1  ;;  %v2003_v40 = vpop.f32.mrb[162].mxu0 }
 0x21e   :  { %1523 = vst.msk [vmem:[%s18942_s3 + $0x140] sm:$0xff] %vm629_vm4, %v1442_v32  ;;  %v2293_v41 = vadd.f32 %v2212_v37, %v2000_v31  ;;  %v1443_v42 = vadd.f32 %v1362_v39, %v1158_v38  ;;  %v9039_v43 = vpop.f32.mrb[163].mxu1  ;;  %v9201_v44 = vpop.f32.mrb[163].mxu0  ;;  %v3286_v31 = vld [vmem:[%s18941_s0 + $0x93] sm:$0xff]  ;;  %v3287_v32 = vld [vmem:[%s18941_s0 + $0x9b] sm:$0xff]  ;;  %v2507_v39 = vpack.c.bf16 %v2436_v30, %v2435_v29 }
 0x21f   :  { %v2213_v45 = vld [vmem:[%s18942_s3 + $0x138] sm:$0xff]  ;;  %v1367_v34 = vld [vmem:[%s18942_s3 + $0x170] sm:$0xff] }
 0x220   :  { %2374 = vst.msk [vmem:[%s18942_s3 + $0x130] sm:$0xff] %vm629_vm4, %v2293_v41  ;;  %1524 = vst.msk [vmem:[%s18942_s3 + $0x148] sm:$0xff] %vm629_vm4, %v1443_v42  ;;  %v2294_v46 = vadd.f32 %v2213_v45, %v2003_v40  ;;  %9313 = vmatmul.mubr.msk.bf16.gmra.mrb[12].mxu1 %vm138_vm3, %v2504_v35  ;;  %9475 = vmatmul.mubr.msk.bf16.gmra.mrb[12].mxu0 %vm138_vm3, %v3356_v36  ;;  %v3359_v40 = vpack.c.bf16 %v3287_v32, %v3286_v31  ;;  %v1368_v43 = vld [vmem:[%s18942_s3 + $0x178] sm:$0xff] }
 0x221   :  { %9316 = vmatprep.mubr.msk.bf16.mxu1 %vm10291_vm2, %v10289_v0  ;;  %9478 = vmatprep.mubr.msk.bf16.mxu0 %vm10291_vm2, %v10289_v0 }
 0x222   :  { %2375 = vst.msk [vmem:[%s18942_s3 + $0x138] sm:$0xff] %vm629_vm4, %v2294_v46 }
 0x223   :  { %v1163_v51 = vpop.f32.mrb[164].mxu1  ;;  %v2008_v53 = vpop.f32.mrb[164].mxu0 }
 0x224   :  { %v1444_v54 = vadd.f32 %v1363_v52, %v1163_v51  ;;  %v9042_v55 = vpop.f32.mrb[165].mxu1  ;;  %v9204_v56 = vpop.f32.mrb[165].mxu0  ;;  %v2437_v51 = vld [vmem:[%s18941_s0 + $0xb2] sm:$0xff]  ;;  %v2438_v52 = vld [vmem:[%s18941_s0 + $0xba] sm:$0xff] }
 0x225   :  { %v2214_v59 = vld [vmem:[%s18942_s3 + $0x140] sm:$0xff]  ;;  %v1166_v60 = vpop.f32.mrb[166].mxu1  ;;  %v2011_v62 = vpop.f32.mrb[166].mxu0 }
 0x226   :  { %1525 = vst.msk [vmem:[%s18942_s3 + $0x150] sm:$0xff] %vm629_vm4, %v1444_v54  ;;  %v2295_v63 = vadd.f32 %v2214_v59, %v2008_v53  ;;  %v1445_v1 = vadd.f32 %v1364_v61, %v1166_v60  ;;  %v9043_v2 = vpop.f32.mrb[167].mxu1  ;;  %v9205_v3 = vpop.f32.mrb[167].mxu0  ;;  %v3288_v53 = vld [vmem:[%s18941_s0 + $0xa3] sm:$0xff]  ;;  %v3289_v54 = vld [vmem:[%s18941_s0 + $0xab] sm:$0xff]  ;;  %v2508_v61 = vpack.c.bf16 %v2438_v52, %v2437_v51 }
 0x227   :  { %v2215_v4 = vld [vmem:[%s18942_s3 + $0x148] sm:$0xff]  ;;  %v1369_v56 = vld [vmem:[%s18942_s3 + $0x180] sm:$0xff] }
 0x228   :  { %2376 = vst.msk [vmem:[%s18942_s3 + $0x140] sm:$0xff] %vm629_vm4, %v2295_v63  ;;  %1526 = vst.msk [vmem:[%s18942_s3 + $0x158] sm:$0xff] %vm629_vm4, %v1445_v1  ;;  %v2296_v5 = vadd.f32 %v2215_v4, %v2011_v62  ;;  %9317 = vmatmul.mubr.msk.bf16.gmra.mrb[16].mxu1 %vm138_vm3, %v2505_v57  ;;  %9479 = vmatmul.mubr.msk.bf16.gmra.mrb[16].mxu0 %vm138_vm3, %v3357_v58  ;;  %v3360_v62 = vpack.c.bf16 %v3289_v54, %v3288_v53  ;;  %v1370_v2 = vld [vmem:[%s18942_s3 + $0x188] sm:$0xff] }
 0x229   :  { %9320 = vmatprep.mubr.msk.bf16.mxu1 %vm10291_vm2, %v10289_v0  ;;  %9482 = vmatprep.mubr.msk.bf16.mxu0 %vm10291_vm2, %v10289_v0 }
 0x22a   :  { %2377 = vst.msk [vmem:[%s18942_s3 + $0x148] sm:$0xff] %vm629_vm4, %v2296_v5 }
 0x22b   :  { %v1171_v11 = vpop.f32.mrb[168].mxu1  ;;  %v2016_v13 = vpop.f32.mrb[168].mxu0 }
 0x22c   :  { %v1446_v14 = vadd.f32 %v1365_v12, %v1171_v11  ;;  %v9046_v15 = vpop.f32.mrb[169].mxu1  ;;  %v9208_v16 = vpop.f32.mrb[169].mxu0  ;;  %v2439_v11 = vld [vmem:[%s18941_s0 + $0xc2] sm:$0xff]  ;;  %v2440_v12 = vld [vmem:[%s18941_s0 + $0xca] sm:$0xff] }
 0x22d   :  { %v2216_v19 = vld [vmem:[%s18942_s3 + $0x150] sm:$0xff]  ;;  %v1174_v20 = vpop.f32.mrb[170].mxu1  ;;  %v2019_v22 = vpop.f32.mrb[170].mxu0 }
 0x22e   :  { %1527 = vst.msk [vmem:[%s18942_s3 + $0x160] sm:$0xff] %vm629_vm4, %v1446_v14  ;;  %v2297_v23 = vadd.f32 %v2216_v19, %v2016_v13  ;;  %v1447_v24 = vadd.f32 %v1366_v21, %v1174_v20  ;;  %v9047_v25 = vpop.f32.mrb[171].mxu1  ;;  %v9209_v26 = vpop.f32.mrb[171].mxu0  ;;  %v3290_v13 = vld [vmem:[%s18941_s0 + $0xb3] sm:$0xff]  ;;  %v3291_v14 = vld [vmem:[%s18941_s0 + $0xbb] sm:$0xff]  ;;  %v2509_v21 = vpack.c.bf16 %v2440_v12, %v2439_v11 }
 0x22f   :  { %v2217_v27 = vld [vmem:[%s18942_s3 + $0x158] sm:$0xff]  ;;  %v1371_v16 = vld [vmem:[%s18942_s3 + $0x190] sm:$0xff] }
 0x230   :  { %2378 = vst.msk [vmem:[%s18942_s3 + $0x150] sm:$0xff] %vm629_vm4, %v2297_v23  ;;  %1528 = vst.msk [vmem:[%s18942_s3 + $0x168] sm:$0xff] %vm629_vm4, %v1447_v24  ;;  %v2298_v28 = vadd.f32 %v2217_v27, %v2019_v22  ;;  %9321 = vmatmul.mubr.msk.bf16.gmra.mrb[20].mxu1 %vm138_vm3, %v2506_v17  ;;  %9483 = vmatmul.mubr.msk.bf16.gmra.mrb[20].mxu0 %vm138_vm3, %v3358_v18  ;;  %v3361_v22 = vpack.c.bf16 %v3291_v14, %v3290_v13  ;;  %v1372_v25 = vld [vmem:[%s18942_s3 + $0x198] sm:$0xff] }
 0x231   :  { %9324 = vmatprep.mubr.msk.bf16.mxu1 %vm10291_vm2, %v10289_v0  ;;  %9486 = vmatprep.mubr.msk.bf16.mxu0 %vm10291_vm2, %v10289_v0 }
 0x232   :  { %2379 = vst.msk [vmem:[%s18942_s3 + $0x158] sm:$0xff] %vm629_vm4, %v2298_v28 }
 0x233   :  { %v1179_v33 = vpop.f32.mrb[172].mxu1  ;;  %v2024_v35 = vpop.f32.mrb[172].mxu0 }
 0x234   :  { %v1448_v36 = vadd.f32 %v1367_v34, %v1179_v33  ;;  %v9050_v37 = vpop.f32.mrb[173].mxu1  ;;  %v9212_v38 = vpop.f32.mrb[173].mxu0  ;;  %v2441_v33 = vld [vmem:[%s18941_s0 + $0xd2] sm:$0xff]  ;;  %v2442_v34 = vld [vmem:[%s18941_s0 + $0xda] sm:$0xff] }
 0x235   :  { %v2218_v41 = vld [vmem:[%s18942_s3 + $0x160] sm:$0xff]  ;;  %v1182_v42 = vpop.f32.mrb[174].mxu1  ;;  %v2027_v44 = vpop.f32.mrb[174].mxu0 }
 0x236   :  { %1529 = vst.msk [vmem:[%s18942_s3 + $0x170] sm:$0xff] %vm629_vm4, %v1448_v36  ;;  %v2299_v45 = vadd.f32 %v2218_v41, %v2024_v35  ;;  %v1449_v46 = vadd.f32 %v1368_v43, %v1182_v42  ;;  %v9051_v47 = vpop.f32.mrb[175].mxu1  ;;  %v9213_v48 = vpop.f32.mrb[175].mxu0  ;;  %v3292_v35 = vld [vmem:[%s18941_s0 + $0xc3] sm:$0xff]  ;;  %v3293_v36 = vld [vmem:[%s18941_s0 + $0xcb] sm:$0xff]  ;;  %v2510_v43 = vpack.c.bf16 %v2442_v34, %v2441_v33 }
 0x237   :  { %v2219_v49 = vld [vmem:[%s18942_s3 + $0x168] sm:$0xff]  ;;  %v1373_v38 = vld [vmem:[%s18942_s3 + $0x1a0] sm:$0xff] }
 0x238   :  { %2380 = vst.msk [vmem:[%s18942_s3 + $0x160] sm:$0xff] %vm629_vm4, %v2299_v45  ;;  %1530 = vst.msk [vmem:[%s18942_s3 + $0x178] sm:$0xff] %vm629_vm4, %v1449_v46  ;;  %v2300_v50 = vadd.f32 %v2219_v49, %v2027_v44  ;;  %9325 = vmatmul.mubr.msk.bf16.gmra.mrb[24].mxu1 %vm138_vm3, %v2507_v39  ;;  %9487 = vmatmul.mubr.msk.bf16.gmra.mrb[24].mxu0 %vm138_vm3, %v3359_v40  ;;  %v3362_v44 = vpack.c.bf16 %v3293_v36, %v3292_v35  ;;  %v1374_v47 = vld [vmem:[%s18942_s3 + $0x1a8] sm:$0xff] }
 0x239   :  { %9328 = vmatprep.mubr.msk.bf16.mxu1 %vm10291_vm2, %v10289_v0  ;;  %9490 = vmatprep.mubr.msk.bf16.mxu0 %vm10291_vm2, %v10289_v0 }
 0x23a   :  { %2381 = vst.msk [vmem:[%s18942_s3 + $0x168] sm:$0xff] %vm629_vm4, %v2300_v50 }
 0x23b   :  { %v1187_v55 = vpop.f32.mrb[176].mxu1  ;;  %v2032_v57 = vpop.f32.mrb[176].mxu0 }
 0x23c   :  { %v1450_v58 = vadd.f32 %v1369_v56, %v1187_v55  ;;  %v9054_v59 = vpop.f32.mrb[177].mxu1  ;;  %v9216_v60 = vpop.f32.mrb[177].mxu0  ;;  %v2443_v55 = vld [vmem:[%s18941_s0 + $0xe2] sm:$0xff]  ;;  %v2444_v56 = vld [vmem:[%s18941_s0 + $0xea] sm:$0xff] }
 0x23d   :  { %v2220_v63 = vld [vmem:[%s18942_s3 + $0x170] sm:$0xff]  ;;  %v1190_v1 = vpop.f32.mrb[178].mxu1  ;;  %v2035_v3 = vpop.f32.mrb[178].mxu0 }
 0x23e   :  { %1531 = vst.msk [vmem:[%s18942_s3 + $0x180] sm:$0xff] %vm629_vm4, %v1450_v58  ;;  %v2301_v4 = vadd.f32 %v2220_v63, %v2032_v57  ;;  %v1451_v5 = vadd.f32 %v1370_v2, %v1190_v1  ;;  %v9055_v7 = vpop.f32.mrb[179].mxu1  ;;  %v9217_v8 = vpop.f32.mrb[179].mxu0  ;;  %v3294_v57 = vld [vmem:[%s18941_s0 + $0xd3] sm:$0xff]  ;;  %v3295_v58 = vld [vmem:[%s18941_s0 + $0xdb] sm:$0xff]  ;;  %v2511_v2 = vpack.c.bf16 %v2444_v56, %v2443_v55 }
 0x23f   :  { %v2221_v9 = vld [vmem:[%s18942_s3 + $0x178] sm:$0xff]  ;;  %v1375_v60 = vld [vmem:[%s18942_s3 + $0x1b0] sm:$0xff] }
 0x240   :  { %2382 = vst.msk [vmem:[%s18942_s3 + $0x170] sm:$0xff] %vm629_vm4, %v2301_v4  ;;  %1532 = vst.msk [vmem:[%s18942_s3 + $0x188] sm:$0xff] %vm629_vm4, %v1451_v5  ;;  %v2302_v10 = vadd.f32 %v2221_v9, %v2035_v3  ;;  %9329 = vmatmul.mubr.msk.bf16.gmra.mrb[28].mxu1 %vm138_vm3, %v2508_v61  ;;  %9491 = vmatmul.mubr.msk.bf16.gmra.mrb[28].mxu0 %vm138_vm3, %v3360_v62  ;;  %v3363_v3 = vpack.c.bf16 %v3295_v58, %v3294_v57  ;;  %v1376_v7 = vld [vmem:[%s18942_s3 + $0x1b8] sm:$0xff] }
 0x241   :  { %9332 = vmatprep.mubr.msk.bf16.mxu1 %vm10291_vm2, %v10289_v0  ;;  %9494 = vmatprep.mubr.msk.bf16.mxu0 %vm10291_vm2, %v10289_v0 }
 0x242   :  { %2383 = vst.msk [vmem:[%s18942_s3 + $0x178] sm:$0xff] %vm629_vm4, %v2302_v10 }
 0x243   :  { %v1195_v15 = vpop.f32.mrb[180].mxu1  ;;  %v2040_v17 = vpop.f32.mrb[180].mxu0 }
 0x244   :  { %v1452_v18 = vadd.f32 %v1371_v16, %v1195_v15  ;;  %v9058_v19 = vpop.f32.mrb[181].mxu1  ;;  %v9220_v20 = vpop.f32.mrb[181].mxu0  ;;  %v2445_v15 = vld [vmem:[%s18941_s0 + $0xf2] sm:$0xff]  ;;  %v2446_v16 = vld [vmem:[%s18941_s0 + $0xfa] sm:$0xff] }
 0x245   :  { %v2222_v23 = vld [vmem:[%s18942_s3 + $0x180] sm:$0xff]  ;;  %v1198_v24 = vpop.f32.mrb[182].mxu1  ;;  %v2043_v26 = vpop.f32.mrb[182].mxu0 }
 0x246   :  { %1533 = vst.msk [vmem:[%s18942_s3 + $0x190] sm:$0xff] %vm629_vm4, %v1452_v18  ;;  %v2303_v27 = vadd.f32 %v2222_v23, %v2040_v17  ;;  %v1453_v28 = vadd.f32 %v1372_v25, %v1198_v24  ;;  %v9059_v29 = vpop.f32.mrb[183].mxu1  ;;  %v9221_v30 = vpop.f32.mrb[183].mxu0  ;;  %v3296_v17 = vld [vmem:[%s18941_s0 + $0xe3] sm:$0xff]  ;;  %v3297_v18 = vld [vmem:[%s18941_s0 + $0xeb] sm:$0xff]  ;;  %v2512_v25 = vpack.c.bf16 %v2446_v16, %v2445_v15 }
 0x247   :  { %v2223_v31 = vld [vmem:[%s18942_s3 + $0x188] sm:$0xff]  ;;  %v1377_v20 = vld [vmem:[%s18942_s3 + $0x1c0] sm:$0xff] }
 0x248   :  { %2384 = vst.msk [vmem:[%s18942_s3 + $0x180] sm:$0xff] %vm629_vm4, %v2303_v27  ;;  %1534 = vst.msk [vmem:[%s18942_s3 + $0x198] sm:$0xff] %vm629_vm4, %v1453_v28  ;;  %v2304_v32 = vadd.f32 %v2223_v31, %v2043_v26  ;;  %9333 = vmatmul.mubr.msk.bf16.gmra.mrb[32].mxu1 %vm138_vm3, %v2509_v21  ;;  %9495 = vmatmul.mubr.msk.bf16.gmra.mrb[32].mxu0 %vm138_vm3, %v3361_v22  ;;  %v3364_v26 = vpack.c.bf16 %v3297_v18, %v3296_v17  ;;  %v1378_v29 = vld [vmem:[%s18942_s3 + $0x1c8] sm:$0xff] }
 0x249   :  { %9336 = vmatprep.mubr.msk.bf16.mxu1 %vm10291_vm2, %v10289_v0  ;;  %9498 = vmatprep.mubr.msk.bf16.mxu0 %vm10291_vm2, %v10289_v0 }
 0x24a   :  { %2385 = vst.msk [vmem:[%s18942_s3 + $0x188] sm:$0xff] %vm629_vm4, %v2304_v32 }
 0x24b   :  { %v1203_v37 = vpop.f32.mrb[184].mxu1  ;;  %v2048_v39 = vpop.f32.mrb[184].mxu0 }
 0x24c   :  { %v1454_v40 = vadd.f32 %v1373_v38, %v1203_v37  ;;  %v9062_v41 = vpop.f32.mrb[185].mxu1  ;;  %v9224_v42 = vpop.f32.mrb[185].mxu0  ;;  %v2447_v37 = vld [vmem:[%s18941_s0 + $0x102] sm:$0xff]  ;;  %v2448_v38 = vld [vmem:[%s18941_s0 + $0x10a] sm:$0xff] }
 0x24d   :  { %v2224_v45 = vld [vmem:[%s18942_s3 + $0x190] sm:$0xff]  ;;  %v1206_v46 = vpop.f32.mrb[186].mxu1  ;;  %v2051_v48 = vpop.f32.mrb[186].mxu0 }
 0x24e   :  { %1535 = vst.msk [vmem:[%s18942_s3 + $0x1a0] sm:$0xff] %vm629_vm4, %v1454_v40  ;;  %v2305_v49 = vadd.f32 %v2224_v45, %v2048_v39  ;;  %v1455_v50 = vadd.f32 %v1374_v47, %v1206_v46  ;;  %v9063_v51 = vpop.f32.mrb[187].mxu1  ;;  %v9225_v52 = vpop.f32.mrb[187].mxu0  ;;  %v3298_v39 = vld [vmem:[%s18941_s0 + $0xf3] sm:$0xff]  ;;  %v3299_v40 = vld [vmem:[%s18941_s0 + $0xfb] sm:$0xff]  ;;  %v2513_v47 = vpack.c.bf16 %v2448_v38, %v2447_v37 }
 0x24f   :  { %v2225_v53 = vld [vmem:[%s18942_s3 + $0x198] sm:$0xff]  ;;  %v1379_v42 = vld [vmem:[%s18942_s3 + $0x1d0] sm:$0xff] }
 0x250   :  { %2386 = vst.msk [vmem:[%s18942_s3 + $0x190] sm:$0xff] %vm629_vm4, %v2305_v49  ;;  %1536 = vst.msk [vmem:[%s18942_s3 + $0x1a8] sm:$0xff] %vm629_vm4, %v1455_v50  ;;  %v2306_v54 = vadd.f32 %v2225_v53, %v2051_v48  ;;  %9337 = vmatmul.mubr.msk.bf16.gmra.mrb[36].mxu1 %vm138_vm3, %v2510_v43  ;;  %9499 = vmatmul.mubr.msk.bf16.gmra.mrb[36].mxu0 %vm138_vm3, %v3362_v44  ;;  %v3365_v48 = vpack.c.bf16 %v3299_v40, %v3298_v39  ;;  %v1380_v51 = vld [vmem:[%s18942_s3 + $0x1d8] sm:$0xff] }
 0x251   :  { %9340 = vmatprep.mubr.msk.bf16.mxu1 %vm10291_vm2, %v10289_v0  ;;  %9502 = vmatprep.mubr.msk.bf16.mxu0 %vm10291_vm2, %v10289_v0 }
 0x252   :  { %2387 = vst.msk [vmem:[%s18942_s3 + $0x198] sm:$0xff] %vm629_vm4, %v2306_v54 }
 0x253   :  { %v1211_v59 = vpop.f32.mrb[188].mxu1  ;;  %v2056_v61 = vpop.f32.mrb[188].mxu0 }
 0x254   :  { %v1456_v62 = vadd.f32 %v1375_v60, %v1211_v59  ;;  %v9066_v63 = vpop.f32.mrb[189].mxu1  ;;  %v9228_v1 = vpop.f32.mrb[189].mxu0  ;;  %v2449_v59 = vld [vmem:[%s18941_s0 + $0x112] sm:$0xff]  ;;  %v2450_v60 = vld [vmem:[%s18941_s0 + $0x11a] sm:$0xff] }
 0x255   :  { %v2226_v4 = vld [vmem:[%s18942_s3 + $0x1a0] sm:$0xff]  ;;  %v1214_v5 = vpop.f32.mrb[190].mxu1  ;;  %v2059_v8 = vpop.f32.mrb[190].mxu0 }
 0x256   :  { %1537 = vst.msk [vmem:[%s18942_s3 + $0x1b0] sm:$0xff] %vm629_vm4, %v1456_v62  ;;  %v2307_v9 = vadd.f32 %v2226_v4, %v2056_v61  ;;  %v1457_v10 = vadd.f32 %v1376_v7, %v1214_v5  ;;  %v9067_v11 = vpop.f32.mrb[191].mxu1  ;;  %v9229_v12 = vpop.f32.mrb[191].mxu0  ;;  %v3300_v61 = vld [vmem:[%s18941_s0 + $0x103] sm:$0xff]  ;;  %v3301_v62 = vld [vmem:[%s18941_s0 + $0x10b] sm:$0xff]  ;;  %v2514_v7 = vpack.c.bf16 %v2450_v60, %v2449_v59 }
 0x257   :  { %v2227_v13 = vld [vmem:[%s18942_s3 + $0x1a8] sm:$0xff]  ;;  %v1381_v1 = vld [vmem:[%s18942_s3 + $0x1e0] sm:$0xff] }
 0x258   :  { %2388 = vst.msk [vmem:[%s18942_s3 + $0x1a0] sm:$0xff] %vm629_vm4, %v2307_v9  ;;  %1538 = vst.msk [vmem:[%s18942_s3 + $0x1b8] sm:$0xff] %vm629_vm4, %v1457_v10  ;;  %v2308_v14 = vadd.f32 %v2227_v13, %v2059_v8  ;;  %9341 = vmatmul.mubr.msk.bf16.gmra.mrb[40].mxu1 %vm138_vm3, %v2511_v2  ;;  %9503 = vmatmul.mubr.msk.bf16.gmra.mrb[40].mxu0 %vm138_vm3, %v3363_v3  ;;  %v3366_v8 = vpack.c.bf16 %v3301_v62, %v3300_v61  ;;  %v1382_v11 = vld [vmem:[%s18942_s3 + $0x1e8] sm:$0xff] }
 0x259   :  { %9344 = vmatprep.mubr.msk.bf16.mxu1 %vm10291_vm2, %v10289_v0  ;;  %9506 = vmatprep.mubr.msk.bf16.mxu0 %vm10291_vm2, %v10289_v0 }
 0x25a   :  { %2389 = vst.msk [vmem:[%s18942_s3 + $0x1a8] sm:$0xff] %vm629_vm4, %v2308_v14 }
 0x25b   :  { %v1219_v19 = vpop.f32.mrb[192].mxu1  ;;  %v2064_v21 = vpop.f32.mrb[192].mxu0 }
 0x25c   :  { %v1458_v22 = vadd.f32 %v1377_v20, %v1219_v19  ;;  %v9070_v23 = vpop.f32.mrb[193].mxu1  ;;  %v9232_v24 = vpop.f32.mrb[193].mxu0  ;;  %v2451_v19 = vld [vmem:[%s18941_s0 + $0x122] sm:$0xff]  ;;  %v2452_v20 = vld [vmem:[%s18941_s0 + $0x12a] sm:$0xff] }
 0x25d   :  { %v2228_v27 = vld [vmem:[%s18942_s3 + $0x1b0] sm:$0xff]  ;;  %v1222_v28 = vpop.f32.mrb[194].mxu1  ;;  %v2067_v30 = vpop.f32.mrb[194].mxu0 }
 0x25e   :  { %1539 = vst.msk [vmem:[%s18942_s3 + $0x1c0] sm:$0xff] %vm629_vm4, %v1458_v22  ;;  %v2309_v31 = vadd.f32 %v2228_v27, %v2064_v21  ;;  %v1459_v32 = vadd.f32 %v1378_v29, %v1222_v28  ;;  %v9071_v33 = vpop.f32.mrb[195].mxu1  ;;  %v9233_v34 = vpop.f32.mrb[195].mxu0  ;;  %v3302_v21 = vld [vmem:[%s18941_s0 + $0x113] sm:$0xff]  ;;  %v3303_v22 = vld [vmem:[%s18941_s0 + $0x11b] sm:$0xff]  ;;  %v2515_v29 = vpack.c.bf16 %v2452_v20, %v2451_v19 }
 0x25f   :  { %v2229_v35 = vld [vmem:[%s18942_s3 + $0x1b8] sm:$0xff]  ;;  %v1383_v24 = vld [vmem:[%s18942_s3 + $0x1f0] sm:$0xff] }
 0x260   :  { %2390 = vst.msk [vmem:[%s18942_s3 + $0x1b0] sm:$0xff] %vm629_vm4, %v2309_v31  ;;  %1540 = vst.msk [vmem:[%s18942_s3 + $0x1c8] sm:$0xff] %vm629_vm4, %v1459_v32  ;;  %v2310_v36 = vadd.f32 %v2229_v35, %v2067_v30  ;;  %9345 = vmatmul.mubr.msk.bf16.gmra.mrb[44].mxu1 %vm138_vm3, %v2512_v25  ;;  %9507 = vmatmul.mubr.msk.bf16.gmra.mrb[44].mxu0 %vm138_vm3, %v3364_v26  ;;  %v3367_v30 = vpack.c.bf16 %v3303_v22, %v3302_v21  ;;  %v1384_v33 = vld [vmem:[%s18942_s3 + $0x1f8] sm:$0xff] }
 0x261   :  { %9348 = vmatprep.mubr.msk.bf16.mxu1 %vm10291_vm2, %v10289_v0  ;;  %9510 = vmatprep.mubr.msk.bf16.mxu0 %vm10291_vm2, %v10289_v0 }
 0x262   :  { %2391 = vst.msk [vmem:[%s18942_s3 + $0x1b8] sm:$0xff] %vm629_vm4, %v2310_v36 }
 0x263   :  { %v1227_v41 = vpop.f32.mrb[196].mxu1  ;;  %v2072_v43 = vpop.f32.mrb[196].mxu0 }
 0x264   :  { %v1460_v44 = vadd.f32 %v1379_v42, %v1227_v41  ;;  %v9074_v45 = vpop.f32.mrb[197].mxu1  ;;  %v9236_v46 = vpop.f32.mrb[197].mxu0  ;;  %v2453_v41 = vld [vmem:[%s18941_s0 + $0x132] sm:$0xff]  ;;  %v2454_v42 = vld [vmem:[%s18941_s0 + $0x13a] sm:$0xff] }
 0x265   :  { %v2230_v49 = vld [vmem:[%s18942_s3 + $0x1c0] sm:$0xff]  ;;  %v1230_v50 = vpop.f32.mrb[198].mxu1  ;;  %v2075_v52 = vpop.f32.mrb[198].mxu0 }
 0x266   :  { %1541 = vst.msk [vmem:[%s18942_s3 + $0x1d0] sm:$0xff] %vm629_vm4, %v1460_v44  ;;  %v2311_v53 = vadd.f32 %v2230_v49, %v2072_v43  ;;  %v1461_v54 = vadd.f32 %v1380_v51, %v1230_v50  ;;  %v9075_v55 = vpop.f32.mrb[199].mxu1  ;;  %v9237_v56 = vpop.f32.mrb[199].mxu0  ;;  %v3304_v43 = vld [vmem:[%s18941_s0 + $0x123] sm:$0xff]  ;;  %v3305_v44 = vld [vmem:[%s18941_s0 + $0x12b] sm:$0xff]  ;;  %v2516_v51 = vpack.c.bf16 %v2454_v42, %v2453_v41 }
 0x267   :  { %v2231_v57 = vld [vmem:[%s18942_s3 + $0x1c8] sm:$0xff]  ;;  %v1385_v46 = vld [vmem:[%s18942_s3 + $0x200] sm:$0xff] }
 0x268   :  { %2392 = vst.msk [vmem:[%s18942_s3 + $0x1c0] sm:$0xff] %vm629_vm4, %v2311_v53  ;;  %1542 = vst.msk [vmem:[%s18942_s3 + $0x1d8] sm:$0xff] %vm629_vm4, %v1461_v54  ;;  %v2312_v58 = vadd.f32 %v2231_v57, %v2075_v52  ;;  %9349 = vmatmul.mubr.msk.bf16.gmra.mrb[48].mxu1 %vm138_vm3, %v2513_v47  ;;  %9511 = vmatmul.mubr.msk.bf16.gmra.mrb[48].mxu0 %vm138_vm3, %v3365_v48  ;;  %v3368_v52 = vpack.c.bf16 %v3305_v44, %v3304_v43  ;;  %v1386_v55 = vld [vmem:[%s18942_s3 + $0x208] sm:$0xff] }
 0x269   :  { %9352 = vmatprep.mubr.msk.bf16.mxu1 %vm10291_vm2, %v10289_v0  ;;  %9514 = vmatprep.mubr.msk.bf16.mxu0 %vm10291_vm2, %v10289_v0 }
 0x26a   :  { %2393 = vst.msk [vmem:[%s18942_s3 + $0x1c8] sm:$0xff] %vm629_vm4, %v2312_v58 }
 0x26b   :  { %v1235_v63 = vpop.f32.mrb[200].mxu1  ;;  %v2080_v2 = vpop.f32.mrb[200].mxu0 }
 0x26c   :  { %v1462_v3 = vadd.f32 %v1381_v1, %v1235_v63  ;;  %v9078_v4 = vpop.f32.mrb[201].mxu1  ;;  %v9240_v5 = vpop.f32.mrb[201].mxu0  ;;  %v2455_v63 = vld [vmem:[%s18941_s0 + $0x142] sm:$0xff]  ;;  %v2456_v1 = vld [vmem:[%s18941_s0 + $0x14a] sm:$0xff] }
 0x26d   :  { %v2232_v9 = vld [vmem:[%s18942_s3 + $0x1d0] sm:$0xff]  ;;  %v1238_v10 = vpop.f32.mrb[202].mxu1  ;;  %v2083_v12 = vpop.f32.mrb[202].mxu0 }
 0x26e   :  { %1543 = vst.msk [vmem:[%s18942_s3 + $0x1e0] sm:$0xff] %vm629_vm4, %v1462_v3  ;;  %v2313_v13 = vadd.f32 %v2232_v9, %v2080_v2  ;;  %v1463_v14 = vadd.f32 %v1382_v11, %v1238_v10  ;;  %v9079_v15 = vpop.f32.mrb[203].mxu1  ;;  %v9241_v16 = vpop.f32.mrb[203].mxu0  ;;  %v3306_v2 = vld [vmem:[%s18941_s0 + $0x133] sm:$0xff]  ;;  %v3307_v3 = vld [vmem:[%s18941_s0 + $0x13b] sm:$0xff]  ;;  %v2517_v11 = vpack.c.bf16 %v2456_v1, %v2455_v63 }
 0x26f   :  { %v2233_v17 = vld [vmem:[%s18942_s3 + $0x1d8] sm:$0xff]  ;;  %v1387_v5 = vld [vmem:[%s18942_s3 + $0x210] sm:$0xff] }
 0x270   :  { %2394 = vst.msk [vmem:[%s18942_s3 + $0x1d0] sm:$0xff] %vm629_vm4, %v2313_v13  ;;  %1544 = vst.msk [vmem:[%s18942_s3 + $0x1e8] sm:$0xff] %vm629_vm4, %v1463_v14  ;;  %v2314_v18 = vadd.f32 %v2233_v17, %v2083_v12  ;;  %9353 = vmatmul.mubr.msk.bf16.gmra.mrb[52].mxu1 %vm138_vm3, %v2514_v7  ;;  %9515 = vmatmul.mubr.msk.bf16.gmra.mrb[52].mxu0 %vm138_vm3, %v3366_v8  ;;  %v3369_v12 = vpack.c.bf16 %v3307_v3, %v3306_v2  ;;  %v1388_v15 = vld [vmem:[%s18942_s3 + $0x218] sm:$0xff] }
 0x271   :  { %9356 = vmatprep.mubr.msk.bf16.mxu1 %vm10291_vm2, %v10289_v0  ;;  %9518 = vmatprep.mubr.msk.bf16.mxu0 %vm10291_vm2, %v10289_v0 }
 0x272   :  { %2395 = vst.msk [vmem:[%s18942_s3 + $0x1d8] sm:$0xff] %vm629_vm4, %v2314_v18 }
 0x273   :  { %v1243_v23 = vpop.f32.mrb[204].mxu1  ;;  %v2088_v25 = vpop.f32.mrb[204].mxu0 }
 0x274   :  { %v1464_v26 = vadd.f32 %v1383_v24, %v1243_v23  ;;  %v9082_v27 = vpop.f32.mrb[205].mxu1  ;;  %v9244_v28 = vpop.f32.mrb[205].mxu0  ;;  %v2457_v23 = vld [vmem:[%s18941_s0 + $0x152] sm:$0xff]  ;;  %v2458_v24 = vld [vmem:[%s18941_s0 + $0x15a] sm:$0xff] }
 0x275   :  { %v2234_v31 = vld [vmem:[%s18942_s3 + $0x1e0] sm:$0xff]  ;;  %v1246_v32 = vpop.f32.mrb[206].mxu1  ;;  %v2091_v34 = vpop.f32.mrb[206].mxu0 }
 0x276   :  { %1545 = vst.msk [vmem:[%s18942_s3 + $0x1f0] sm:$0xff] %vm629_vm4, %v1464_v26  ;;  %v2315_v35 = vadd.f32 %v2234_v31, %v2088_v25  ;;  %v1465_v36 = vadd.f32 %v1384_v33, %v1246_v32  ;;  %v9083_v37 = vpop.f32.mrb[207].mxu1  ;;  %v9245_v38 = vpop.f32.mrb[207].mxu0  ;;  %v3308_v25 = vld [vmem:[%s18941_s0 + $0x143] sm:$0xff]  ;;  %v3309_v26 = vld [vmem:[%s18941_s0 + $0x14b] sm:$0xff]  ;;  %v2518_v33 = vpack.c.bf16 %v2458_v24, %v2457_v23 }
 0x277   :  { %v2235_v39 = vld [vmem:[%s18942_s3 + $0x1e8] sm:$0xff]  ;;  %v1389_v28 = vld [vmem:[%s18942_s3 + $0x220] sm:$0xff] }
 0x278   :  { %2396 = vst.msk [vmem:[%s18942_s3 + $0x1e0] sm:$0xff] %vm629_vm4, %v2315_v35  ;;  %1546 = vst.msk [vmem:[%s18942_s3 + $0x1f8] sm:$0xff] %vm629_vm4, %v1465_v36  ;;  %v2316_v40 = vadd.f32 %v2235_v39, %v2091_v34  ;;  %9357 = vmatmul.mubr.msk.bf16.gmra.mrb[56].mxu1 %vm138_vm3, %v2515_v29  ;;  %9519 = vmatmul.mubr.msk.bf16.gmra.mrb[56].mxu0 %vm138_vm3, %v3367_v30  ;;  %v3370_v34 = vpack.c.bf16 %v3309_v26, %v3308_v25  ;;  %v1390_v37 = vld [vmem:[%s18942_s3 + $0x228] sm:$0xff] }
 0x279   :  { %9360 = vmatprep.mubr.msk.bf16.mxu1 %vm10291_vm2, %v10289_v0  ;;  %9522 = vmatprep.mubr.msk.bf16.mxu0 %vm10291_vm2, %v10289_v0 }
 0x27a   :  { %2397 = vst.msk [vmem:[%s18942_s3 + $0x1e8] sm:$0xff] %vm629_vm4, %v2316_v40 }
 0x27b   :  { %v1251_v45 = vpop.f32.mrb[208].mxu1  ;;  %v2096_v47 = vpop.f32.mrb[208].mxu0 }
 0x27c   :  { %v1466_v48 = vadd.f32 %v1385_v46, %v1251_v45  ;;  %v9086_v49 = vpop.f32.mrb[209].mxu1  ;;  %v9248_v50 = vpop.f32.mrb[209].mxu0  ;;  %v2459_v45 = vld [vmem:[%s18941_s0 + $0x162] sm:$0xff]  ;;  %v2460_v46 = vld [vmem:[%s18941_s0 + $0x16a] sm:$0xff] }
 0x27d   :  { %v2236_v53 = vld [vmem:[%s18942_s3 + $0x1f0] sm:$0xff]  ;;  %v1254_v54 = vpop.f32.mrb[210].mxu1  ;;  %v2099_v56 = vpop.f32.mrb[210].mxu0 }
 0x27e   :  { %1547 = vst.msk [vmem:[%s18942_s3 + $0x200] sm:$0xff] %vm629_vm4, %v1466_v48  ;;  %v2317_v57 = vadd.f32 %v2236_v53, %v2096_v47  ;;  %v1467_v58 = vadd.f32 %v1386_v55, %v1254_v54  ;;  %v9087_v59 = vpop.f32.mrb[211].mxu1  ;;  %v9249_v60 = vpop.f32.mrb[211].mxu0  ;;  %v3310_v47 = vld [vmem:[%s18941_s0 + $0x153] sm:$0xff]  ;;  %v3311_v48 = vld [vmem:[%s18941_s0 + $0x15b] sm:$0xff]  ;;  %v2519_v55 = vpack.c.bf16 %v2460_v46, %v2459_v45 }
 0x27f   :  { %v2237_v61 = vld [vmem:[%s18942_s3 + $0x1f8] sm:$0xff]  ;;  %v1391_v50 = vld [vmem:[%s18942_s3 + $0x230] sm:$0xff] }
 0x280   :  { %2398 = vst.msk [vmem:[%s18942_s3 + $0x1f0] sm:$0xff] %vm629_vm4, %v2317_v57  ;;  %1548 = vst.msk [vmem:[%s18942_s3 + $0x208] sm:$0xff] %vm629_vm4, %v1467_v58  ;;  %v2318_v62 = vadd.f32 %v2237_v61, %v2099_v56  ;;  %9361 = vmatmul.mubr.msk.bf16.gmra.mrb[60].mxu1 %vm138_vm3, %v2516_v51  ;;  %9523 = vmatmul.mubr.msk.bf16.gmra.mrb[60].mxu0 %vm138_vm3, %v3368_v52  ;;  %v3371_v56 = vpack.c.bf16 %v3311_v48, %v3310_v47  ;;  %v1392_v59 = vld [vmem:[%s18942_s3 + $0x238] sm:$0xff] }
 0x281   :  { %9364 = vmatprep.mubr.msk.bf16.mxu1 %vm10291_vm2, %v10289_v0  ;;  %9526 = vmatprep.mubr.msk.bf16.mxu0 %vm10291_vm2, %v10289_v0 }
 0x282   :  { %2399 = vst.msk [vmem:[%s18942_s3 + $0x1f8] sm:$0xff] %vm629_vm4, %v2318_v62 }
 0x283   :  { %v1259_v4 = vpop.f32.mrb[212].mxu1  ;;  %v2104_v7 = vpop.f32.mrb[212].mxu0 }
 0x284   :  { %v1468_v8 = vadd.f32 %v1387_v5, %v1259_v4  ;;  %v9090_v9 = vpop.f32.mrb[213].mxu1  ;;  %v9252_v10 = vpop.f32.mrb[213].mxu0  ;;  %v2461_v4 = vld [vmem:[%s18941_s0 + $0x172] sm:$0xff]  ;;  %v2462_v5 = vld [vmem:[%s18941_s0 + $0x17a] sm:$0xff] }
 0x285   :  { %v2238_v13 = vld [vmem:[%s18942_s3 + $0x200] sm:$0xff]  ;;  %v1262_v14 = vpop.f32.mrb[214].mxu1  ;;  %v2107_v16 = vpop.f32.mrb[214].mxu0 }
 0x286   :  { %1549 = vst.msk [vmem:[%s18942_s3 + $0x210] sm:$0xff] %vm629_vm4, %v1468_v8  ;;  %v2319_v17 = vadd.f32 %v2238_v13, %v2104_v7  ;;  %v1469_v18 = vadd.f32 %v1388_v15, %v1262_v14  ;;  %v9091_v19 = vpop.f32.mrb[215].mxu1  ;;  %v9253_v20 = vpop.f32.mrb[215].mxu0  ;;  %v3312_v7 = vld [vmem:[%s18941_s0 + $0x163] sm:$0xff]  ;;  %v3313_v8 = vld [vmem:[%s18941_s0 + $0x16b] sm:$0xff]  ;;  %v2520_v15 = vpack.c.bf16 %v2462_v5, %v2461_v4 }
 0x287   :  { %v2239_v21 = vld [vmem:[%s18942_s3 + $0x208] sm:$0xff]  ;;  %v1393_v10 = vld [vmem:[%s18942_s3 + $0x240] sm:$0xff] }
 0x288   :  { %2400 = vst.msk [vmem:[%s18942_s3 + $0x200] sm:$0xff] %vm629_vm4, %v2319_v17  ;;  %1550 = vst.msk [vmem:[%s18942_s3 + $0x218] sm:$0xff] %vm629_vm4, %v1469_v18  ;;  %v2320_v22 = vadd.f32 %v2239_v21, %v2107_v16  ;;  %9365 = vmatmul.mubr.msk.bf16.gmra.mrb[64].mxu1 %vm138_vm3, %v2517_v11  ;;  %9527 = vmatmul.mubr.msk.bf16.gmra.mrb[64].mxu0 %vm138_vm3, %v3369_v12  ;;  %v3372_v16 = vpack.c.bf16 %v3313_v8, %v3312_v7  ;;  %v1394_v19 = vld [vmem:[%s18942_s3 + $0x248] sm:$0xff] }
 0x289   :  { %9368 = vmatprep.mubr.msk.bf16.mxu1 %vm10291_vm2, %v10289_v0  ;;  %9530 = vmatprep.mubr.msk.bf16.mxu0 %vm10291_vm2, %v10289_v0 }
 0x28a   :  { %2401 = vst.msk [vmem:[%s18942_s3 + $0x208] sm:$0xff] %vm629_vm4, %v2320_v22 }
 0x28b   :  { %v1267_v27 = vpop.f32.mrb[216].mxu1  ;;  %v2112_v29 = vpop.f32.mrb[216].mxu0 }
 0x28c   :  { %v1470_v30 = vadd.f32 %v1389_v28, %v1267_v27  ;;  %v9094_v31 = vpop.f32.mrb[217].mxu1  ;;  %v9256_v32 = vpop.f32.mrb[217].mxu0  ;;  %v2463_v27 = vld [vmem:[%s18941_s0 + $0x182] sm:$0xff]  ;;  %v2464_v28 = vld [vmem:[%s18941_s0 + $0x18a] sm:$0xff] }
 0x28d   :  { %v2240_v35 = vld [vmem:[%s18942_s3 + $0x210] sm:$0xff]  ;;  %v1270_v36 = vpop.f32.mrb[218].mxu1  ;;  %v2115_v38 = vpop.f32.mrb[218].mxu0 }
 0x28e   :  { %1551 = vst.msk [vmem:[%s18942_s3 + $0x220] sm:$0xff] %vm629_vm4, %v1470_v30  ;;  %v2321_v39 = vadd.f32 %v2240_v35, %v2112_v29  ;;  %v1471_v40 = vadd.f32 %v1390_v37, %v1270_v36  ;;  %v9095_v41 = vpop.f32.mrb[219].mxu1  ;;  %v9257_v42 = vpop.f32.mrb[219].mxu0  ;;  %v3314_v29 = vld [vmem:[%s18941_s0 + $0x173] sm:$0xff]  ;;  %v3315_v30 = vld [vmem:[%s18941_s0 + $0x17b] sm:$0xff]  ;;  %v2521_v37 = vpack.c.bf16 %v2464_v28, %v2463_v27 }
 0x28f   :  { %v2241_v43 = vld [vmem:[%s18942_s3 + $0x218] sm:$0xff]  ;;  %v1395_v32 = vld [vmem:[%s18942_s3 + $0x250] sm:$0xff] }
 0x290   :  { %2402 = vst.msk [vmem:[%s18942_s3 + $0x210] sm:$0xff] %vm629_vm4, %v2321_v39  ;;  %1552 = vst.msk [vmem:[%s18942_s3 + $0x228] sm:$0xff] %vm629_vm4, %v1471_v40  ;;  %v2322_v44 = vadd.f32 %v2241_v43, %v2115_v38  ;;  %9369 = vmatmul.mubr.msk.bf16.gmra.mrb[68].mxu1 %vm138_vm3, %v2518_v33  ;;  %9531 = vmatmul.mubr.msk.bf16.gmra.mrb[68].mxu0 %vm138_vm3, %v3370_v34  ;;  %v3373_v38 = vpack.c.bf16 %v3315_v30, %v3314_v29  ;;  %v1396_v41 = vld [vmem:[%s18942_s3 + $0x258] sm:$0xff] }
 0x291   :  { %9372 = vmatprep.mubr.msk.bf16.mxu1 %vm10291_vm2, %v10289_v0  ;;  %9534 = vmatprep.mubr.msk.bf16.mxu0 %vm10291_vm2, %v10289_v0 }
 0x292   :  { %2403 = vst.msk [vmem:[%s18942_s3 + $0x218] sm:$0xff] %vm629_vm4, %v2322_v44 }
 0x293   :  { %v1275_v49 = vpop.f32.mrb[220].mxu1  ;;  %v2120_v51 = vpop.f32.mrb[220].mxu0 }
 0x294   :  { %v1472_v52 = vadd.f32 %v1391_v50, %v1275_v49  ;;  %v9098_v53 = vpop.f32.mrb[221].mxu1  ;;  %v9260_v54 = vpop.f32.mrb[221].mxu0  ;;  %v2465_v49 = vld [vmem:[%s18941_s0 + $0x192] sm:$0xff]  ;;  %v2466_v50 = vld [vmem:[%s18941_s0 + $0x19a] sm:$0xff] }
 0x295   :  { %v2242_v57 = vld [vmem:[%s18942_s3 + $0x220] sm:$0xff]  ;;  %v1278_v58 = vpop.f32.mrb[222].mxu1  ;;  %v2123_v60 = vpop.f32.mrb[222].mxu0 }
 0x296   :  { %1553 = vst.msk [vmem:[%s18942_s3 + $0x230] sm:$0xff] %vm629_vm4, %v1472_v52  ;;  %v2323_v61 = vadd.f32 %v2242_v57, %v2120_v51  ;;  %v1473_v62 = vadd.f32 %v1392_v59, %v1278_v58  ;;  %v9099_v63 = vpop.f32.mrb[223].mxu1  ;;  %v9261_v1 = vpop.f32.mrb[223].mxu0  ;;  %v3316_v51 = vld [vmem:[%s18941_s0 + $0x183] sm:$0xff]  ;;  %v3317_v52 = vld [vmem:[%s18941_s0 + $0x18b] sm:$0xff]  ;;  %v2522_v59 = vpack.c.bf16 %v2466_v50, %v2465_v49 }
 0x297   :  { %v2243_v2 = vld [vmem:[%s18942_s3 + $0x228] sm:$0xff]  ;;  %v1397_v54 = vld [vmem:[%s18942_s3 + $0x260] sm:$0xff] }
 0x298   :  { %2404 = vst.msk [vmem:[%s18942_s3 + $0x220] sm:$0xff] %vm629_vm4, %v2323_v61  ;;  %1554 = vst.msk [vmem:[%s18942_s3 + $0x238] sm:$0xff] %vm629_vm4, %v1473_v62  ;;  %v2324_v3 = vadd.f32 %v2243_v2, %v2123_v60  ;;  %9373 = vmatmul.mubr.msk.bf16.gmra.mrb[72].mxu1 %vm138_vm3, %v2519_v55  ;;  %9535 = vmatmul.mubr.msk.bf16.gmra.mrb[72].mxu0 %vm138_vm3, %v3371_v56  ;;  %v3374_v60 = vpack.c.bf16 %v3317_v52, %v3316_v51  ;;  %v1398_v63 = vld [vmem:[%s18942_s3 + $0x268] sm:$0xff] }
 0x299   :  { %9376 = vmatprep.mubr.msk.bf16.mxu1 %vm10291_vm2, %v10289_v0  ;;  %9538 = vmatprep.mubr.msk.bf16.mxu0 %vm10291_vm2, %v10289_v0  ;;  %v2471_v51 = vld [vmem:[%s18941_s0 + $0x1c2] sm:$0xff]  ;;  %v2472_v52 = vld [vmem:[%s18941_s0 + $0x1ca] sm:$0xff] }
 0x29a   :  { %2405 = vst.msk [vmem:[%s18942_s3 + $0x228] sm:$0xff] %vm629_vm4, %v2324_v3 }
 0x29b   :  { %v1283_v9 = vpop.f32.mrb[224].mxu1  ;;  %v2128_v11 = vpop.f32.mrb[224].mxu0 }
 0x29c   :  { %v1474_v12 = vadd.f32 %v1393_v10, %v1283_v9  ;;  %v9102_v13 = vpop.f32.mrb[225].mxu1  ;;  %v9264_v14 = vpop.f32.mrb[225].mxu0  ;;  %v2467_v9 = vld [vmem:[%s18941_s0 + $0x1a2] sm:$0xff]  ;;  %v2468_v10 = vld [vmem:[%s18941_s0 + $0x1aa] sm:$0xff] }
 0x29d   :  { %v2244_v17 = vld [vmem:[%s18942_s3 + $0x230] sm:$0xff]  ;;  %v1286_v18 = vpop.f32.mrb[226].mxu1  ;;  %v2131_v20 = vpop.f32.mrb[226].mxu0 }
 0x29e   :  { %1555 = vst.msk [vmem:[%s18942_s3 + $0x240] sm:$0xff] %vm629_vm4, %v1474_v12  ;;  %v2325_v21 = vadd.f32 %v2244_v17, %v2128_v11  ;;  %v1475_v22 = vadd.f32 %v1394_v19, %v1286_v18  ;;  %v9103_v23 = vpop.f32.mrb[227].mxu1  ;;  %v9265_v24 = vpop.f32.mrb[227].mxu0  ;;  %v3318_v11 = vld [vmem:[%s18941_s0 + $0x193] sm:$0xff]  ;;  %v3319_v12 = vld [vmem:[%s18941_s0 + $0x19b] sm:$0xff]  ;;  %v2523_v19 = vpack.c.bf16 %v2468_v10, %v2467_v9 }
 0x29f   :  { %v2245_v25 = vld [vmem:[%s18942_s3 + $0x238] sm:$0xff]  ;;  %v1399_v14 = vld [vmem:[%s18942_s3 + $0x270] sm:$0xff] }
 0x2a0   :  { %2406 = vst.msk [vmem:[%s18942_s3 + $0x230] sm:$0xff] %vm629_vm4, %v2325_v21  ;;  %1556 = vst.msk [vmem:[%s18942_s3 + $0x248] sm:$0xff] %vm629_vm4, %v1475_v22  ;;  %v2326_v26 = vadd.f32 %v2245_v25, %v2131_v20  ;;  %9377 = vmatmul.mubr.msk.bf16.gmra.mrb[76].mxu1 %vm138_vm3, %v2520_v15  ;;  %9539 = vmatmul.mubr.msk.bf16.gmra.mrb[76].mxu0 %vm138_vm3, %v3372_v16  ;;  %v3375_v20 = vpack.c.bf16 %v3319_v12, %v3318_v11  ;;  %v1400_v23 = vld [vmem:[%s18942_s3 + $0x278] sm:$0xff]  ;;  %v3324_v11 = vld [vmem:[%s18941_s0 + $0x1c3] sm:$0xff] }
 0x2a1   :  { %9380 = vmatprep.mubr.msk.bf16.mxu1 %vm10291_vm2, %v10289_v0  ;;  %9542 = vmatprep.mubr.msk.bf16.mxu0 %vm10291_vm2, %v10289_v0  ;;  %v2473_v9 = vld [vmem:[%s18941_s0 + $0x1d2] sm:$0xff]  ;;  %v2474_v10 = vld [vmem:[%s18941_s0 + $0x1da] sm:$0xff] }
 0x2a2   :  { %2407 = vst.msk [vmem:[%s18942_s3 + $0x238] sm:$0xff] %vm629_vm4, %v2326_v26  ;;  %v3325_v12 = vld [vmem:[%s18941_s0 + $0x1cb] sm:$0xff] }
 0x2a3   :  { %v1291_v31 = vpop.f32.mrb[228].mxu1  ;;  %v2136_v33 = vpop.f32.mrb[228].mxu0 }
 0x2a4   :  { %v1476_v34 = vadd.f32 %v1395_v32, %v1291_v31  ;;  %v9106_v35 = vpop.f32.mrb[229].mxu1  ;;  %v9268_v36 = vpop.f32.mrb[229].mxu0  ;;  %v2469_v31 = vld [vmem:[%s18941_s0 + $0x1b2] sm:$0xff]  ;;  %v2470_v32 = vld [vmem:[%s18941_s0 + $0x1ba] sm:$0xff] }
 0x2a5   :  { %v2246_v39 = vld [vmem:[%s18942_s3 + $0x240] sm:$0xff]  ;;  %v1294_v40 = vpop.f32.mrb[230].mxu1  ;;  %v2139_v42 = vpop.f32.mrb[230].mxu0 }
 0x2a6   :  { %1557 = vst.msk [vmem:[%s18942_s3 + $0x250] sm:$0xff] %vm629_vm4, %v1476_v34  ;;  %v2327_v43 = vadd.f32 %v2246_v39, %v2136_v33  ;;  %v1477_v44 = vadd.f32 %v1396_v41, %v1294_v40  ;;  %v9107_v45 = vpop.f32.mrb[231].mxu1  ;;  %v9269_v46 = vpop.f32.mrb[231].mxu0  ;;  %v3320_v33 = vld [vmem:[%s18941_s0 + $0x1a3] sm:$0xff]  ;;  %v3321_v34 = vld [vmem:[%s18941_s0 + $0x1ab] sm:$0xff]  ;;  %v2524_v41 = vpack.c.bf16 %v2470_v32, %v2469_v31 }
 0x2a7   :  { %v2247_v47 = vld [vmem:[%s18942_s3 + $0x248] sm:$0xff]  ;;  %v1401_v36 = vld [vmem:[%s18942_s3 + $0x280] sm:$0xff] }
 0x2a8   :  { %2408 = vst.msk [vmem:[%s18942_s3 + $0x240] sm:$0xff] %vm629_vm4, %v2327_v43  ;;  %1558 = vst.msk [vmem:[%s18942_s3 + $0x258] sm:$0xff] %vm629_vm4, %v1477_v44  ;;  %v2328_v48 = vadd.f32 %v2247_v47, %v2139_v42  ;;  %9381 = vmatmul.mubr.msk.bf16.gmra.mrb[80].mxu1 %vm138_vm3, %v2521_v37  ;;  %9543 = vmatmul.mubr.msk.bf16.gmra.mrb[80].mxu0 %vm138_vm3, %v3373_v38  ;;  %v3376_v42 = vpack.c.bf16 %v3321_v34, %v3320_v33  ;;  %v2475_v31 = vld [vmem:[%s18941_s0 + $0x1e2] sm:$0xff]  ;;  %v2476_v32 = vld [vmem:[%s18941_s0 + $0x1ea] sm:$0xff] }
 0x2a9   :  { %9384 = vmatprep.mubr.msk.bf16.mxu1 %vm10291_vm2, %v10289_v0  ;;  %9546 = vmatprep.mubr.msk.bf16.mxu0 %vm10291_vm2, %v10289_v0  ;;  %v3326_v33 = vld [vmem:[%s18941_s0 + $0x1d3] sm:$0xff]  ;;  %v3327_v34 = vld [vmem:[%s18941_s0 + $0x1db] sm:$0xff] }
 0x2aa   :  { %2409 = vst.msk [vmem:[%s18942_s3 + $0x248] sm:$0xff] %vm629_vm4, %v2328_v48 }
 0x2ab   :  { %v1299_v53 = vpop.f32.mrb[232].mxu1  ;;  %v2144_v55 = vpop.f32.mrb[232].mxu0 }
 0x2ac   :  { %v1478_v56 = vadd.f32 %v1397_v54, %v1299_v53  ;;  %v9110_v57 = vpop.f32.mrb[233].mxu1  ;;  %v9272_v58 = vpop.f32.mrb[233].mxu0  ;;  %v3322_v53 = vld [vmem:[%s18941_s0 + $0x1b3] sm:$0xff]  ;;  %v3323_v54 = vld [vmem:[%s18941_s0 + $0x1bb] sm:$0xff] }
 0x2ad   :  { %v2248_v61 = vld [vmem:[%s18942_s3 + $0x250] sm:$0xff]  ;;  %v1302_v62 = vpop.f32.mrb[234].mxu1  ;;  %v2147_v1 = vpop.f32.mrb[234].mxu0  ;;  %v3027_v57 = vld [vmem:[%s18942_s3] sm:$0xff] }
 0x2ae   :  { %1559 = vst.msk [vmem:[%s18942_s3 + $0x260] sm:$0xff] %vm629_vm4, %v1478_v56  ;;  %v2329_v2 = vadd.f32 %v2248_v61, %v2144_v55  ;;  %v1479_v3 = vadd.f32 %v1398_v63, %v1302_v62  ;;  %v9111_v4 = vpop.f32.mrb[235].mxu1  ;;  %v9273_v5 = vpop.f32.mrb[235].mxu0  ;;  %v2525_v61 = vpack.c.bf16 %v2472_v52, %v2471_v51  ;;  %v3377_v62 = vpack.c.bf16 %v3323_v54, %v3322_v53  ;;  %v2477_v53 = vld [vmem:[%s18941_s0 + $0x1f2] sm:$0xff]  ;;  %v2478_v54 = vld [vmem:[%s18941_s0 + $0x1fa] sm:$0xff] }
 0x2af   :  { %v2249_v7 = vld [vmem:[%s18942_s3 + $0x258] sm:$0xff] }
 0x2b0   :  { %2410 = vst.msk [vmem:[%s18942_s3 + $0x250] sm:$0xff] %vm629_vm4, %v2329_v2  ;;  %1560 = vst.msk [vmem:[%s18942_s3 + $0x268] sm:$0xff] %vm629_vm4, %v1479_v3  ;;  %v2330_v8 = vadd.f32 %v2249_v7, %v2147_v1  ;;  %9385 = vmatmul.mubr.msk.bf16.gmra.mrb[84].mxu1 %vm138_vm3, %v2522_v59  ;;  %9547 = vmatmul.mubr.msk.bf16.gmra.mrb[84].mxu0 %vm138_vm3, %v3374_v60  ;;  %v3028_v3 = vld [vmem:[%s18942_s3 + $0x8] sm:$0xff] }
 0x2b1   :  { %9388 = vmatprep.mubr.msk.bf16.mxu1 %vm10291_vm2, %v10289_v0  ;;  %9550 = vmatprep.mubr.msk.bf16.mxu0 %vm10291_vm2, %v10289_v0 }
 0x2b2   :  { %2411 = vst.msk [vmem:[%s18942_s3 + $0x258] sm:$0xff] %vm629_vm4, %v2330_v8 }
 0x2b3   :  { %v1307_v13 = vpop.f32.mrb[236].mxu1  ;;  %v2152_v15 = vpop.f32.mrb[236].mxu0 }
 0x2b4   :  { %v1480_v16 = vadd.f32 %v1399_v14, %v1307_v13  ;;  %v9114_v17 = vpop.f32.mrb[237].mxu1  ;;  %v9276_v18 = vpop.f32.mrb[237].mxu0  ;;  %v3029_v14 = vld [vmem:[%s18942_s3 + $0x10] sm:$0xff] }
 0x2b5   :  { %v2250_v21 = vld [vmem:[%s18942_s3 + $0x260] sm:$0xff]  ;;  %v1310_v22 = vpop.f32.mrb[238].mxu1  ;;  %v2155_v24 = vpop.f32.mrb[238].mxu0 }
 0x2b6   :  { %1561 = vst.msk [vmem:[%s18942_s3 + $0x270] sm:$0xff] %vm629_vm4, %v1480_v16  ;;  %v2331_v25 = vadd.f32 %v2250_v21, %v2152_v15  ;;  %v1481_v26 = vadd.f32 %v1400_v23, %v1310_v22  ;;  %v9115_v27 = vpop.f32.mrb[239].mxu1  ;;  %v9277_v28 = vpop.f32.mrb[239].mxu0  ;;  %v3030_v23 = vld [vmem:[%s18942_s3 + $0x18] sm:$0xff] }
 0x2b7   :  { %v2251_v29 = vld [vmem:[%s18942_s3 + $0x268] sm:$0xff] }
 0x2b8   :  { %2412 = vst.msk [vmem:[%s18942_s3 + $0x260] sm:$0xff] %vm629_vm4, %v2331_v25  ;;  %1562 = vst.msk [vmem:[%s18942_s3 + $0x278] sm:$0xff] %vm629_vm4, %v1481_v26  ;;  %v2332_v30 = vadd.f32 %v2251_v29, %v2155_v24  ;;  %9389 = vmatmul.mubr.msk.bf16.gmra.mrb[88].mxu1 %vm138_vm3, %v2523_v19  ;;  %9551 = vmatmul.mubr.msk.bf16.gmra.mrb[88].mxu0 %vm138_vm3, %v3375_v20  ;;  %v2526_v19 = vpack.c.bf16 %v2474_v10, %v2473_v9 }
 0x2b9   :  { %9392 = vmatprep.mubr.msk.bf16.mxu1 %vm10291_vm2, %v10289_v0  ;;  %9554 = vmatprep.mubr.msk.bf16.mxu0 %vm10291_vm2, %v10289_v0  ;;  %v3378_v20 = vpack.c.bf16 %v3325_v12, %v3324_v11 }
 0x2ba   :  { %2413 = vst.msk [vmem:[%s18942_s3 + $0x268] sm:$0xff] %vm629_vm4, %v2332_v30 }
 0x2bb   :  { %v1315_v35 = vpop.f32.mrb[240].mxu1  ;;  %v2160_v37 = vpop.f32.mrb[240].mxu0 }
 0x2bc   :  { %v1482_v38 = vadd.f32 %v1401_v36, %v1315_v35  ;;  %v9118_v39 = vpop.f32.mrb[241].mxu1  ;;  %v9280_v40 = vpop.f32.mrb[241].mxu0  ;;  %v3031_v36 = vld [vmem:[%s18942_s3 + $0x20] sm:$0xff] }
 0x2bd   :  { %v2252_v43 = vld [vmem:[%s18942_s3 + $0x270] sm:$0xff]  ;;  %v1318_v44 = vpop.f32.mrb[242].mxu1  ;;  %v2163_v45 = vpop.f32.mrb[242].mxu0 }
 0x2be   :  { %1563 = vst.msk [vmem:[%s18942_s3 + $0x280] sm:$0xff] %vm629_vm4, %v1482_v38  ;;  %v2333_v46 = vadd.f32 %v2252_v43, %v2160_v37  ;;  %v9119_v47 = vpop.f32.mrb[243].mxu1  ;;  %v9281_v48 = vpop.f32.mrb[243].mxu0 }
 0x2bf   :  { %v2253_v49 = vld [vmem:[%s18942_s3 + $0x278] sm:$0xff] }
 0x2c0   :  { %2414 = vst.msk [vmem:[%s18942_s3 + $0x270] sm:$0xff] %vm629_vm4, %v2333_v46  ;;  %v2334_v50 = vadd.f32 %v2253_v49, %v2163_v45  ;;  %9393 = vmatmul.mubr.msk.bf16.gmra.mrb[92].mxu1 %vm138_vm3, %v2524_v41  ;;  %9555 = vmatmul.mubr.msk.bf16.gmra.mrb[92].mxu0 %vm138_vm3, %v3376_v42  ;;  %v2527_v41 = vpack.c.bf16 %v2476_v32, %v2475_v31  ;;  %v3032_v45 = vld [vmem:[%s18942_s3 + $0x28] sm:$0xff] }
 0x2c1   :  { %9396 = vmatprep.mubr.msk.bf16.mxu1 %vm10291_vm2, %v10289_v0  ;;  %9558 = vmatprep.mubr.msk.bf16.mxu0 %vm10291_vm2, %v10289_v0  ;;  %v3379_v42 = vpack.c.bf16 %v3327_v34, %v3326_v33 }
 0x2c2   :  { %2415 = vst.msk [vmem:[%s18942_s3 + $0x278] sm:$0xff] %vm629_vm4, %v2334_v50 }
 0x2c3   :  { %v2168_v55 = vpop.f32.mrb[244].mxu0  ;;  %v2701_v56 = vpop.f32.mrb[244].mxu1 }
 0x2c4   :  { %v3108_v58 = vadd.f32 %v3027_v57, %v2701_v56  ;;  %v9284_v59 = vpop.f32.mrb[245].mxu0  ;;  %v9290_v60 = vpop.f32.mrb[245].mxu1  ;;  %v3329_v56 = vld [vmem:[%s18941_s0 + $0x1eb] sm:$0xff] }
 0x2c5   :  { %v2254_v63 = vld [vmem:[%s18942_s3 + $0x280] sm:$0xff]  ;;  %v2171_v1 = vpop.f32.mrb[246].mxu0  ;;  %v2704_v2 = vpop.f32.mrb[246].mxu1 }
 0x2c6   :  { %v2335_v4 = vadd.f32 %v2254_v63, %v2168_v55  ;;  %3189 = vst.msk [vmem:[%s18942_s3] sm:$0xff] %vm629_vm4, %v3108_v58  ;;  %v3109_v5 = vadd.f32 %v3028_v3, %v2704_v2  ;;  %v9285_v7 = vpop.f32.mrb[247].mxu0  ;;  %v9291_v8 = vpop.f32.mrb[247].mxu1  ;;  %v3328_v55 = vld [vmem:[%s18941_s0 + $0x1e3] sm:$0xff]  ;;  %v3033_v58 = vld [vmem:[%s18942_s3 + $0x30] sm:$0xff]  ;;  %v2528_v63 = vpack.c.bf16 %v2478_v54, %v2477_v53 }
 0x2c7   :  { %v3380_v1 = vpack.c.bf16 %v3329_v56, %v3328_v55 }
 0x2c8   :  { %2416 = vst.msk [vmem:[%s18942_s3 + $0x280] sm:$0xff] %vm629_vm4, %v2335_v4  ;;  %3190 = vst.msk [vmem:[%s18942_s3 + $0x8] sm:$0xff] %vm629_vm4, %v3109_v5  ;;  %9397 = vmatmul.mubr.msk.bf16.gmra.mrb[96].mxu1 %vm138_vm3, %v2525_v61  ;;  %9559 = vmatmul.mubr.msk.bf16.gmra.mrb[96].mxu0 %vm138_vm3, %v3377_v62  ;;  %v3034_v4 = vld [vmem:[%s18942_s3 + $0x38] sm:$0xff] }
 0x2c9   :  { %9400 = vmatprep.mubr.msk.bf16.mxu1 %vm10291_vm2, %v10289_v0  ;;  %9562 = vmatprep.mubr.msk.bf16.mxu0 %vm10291_vm2, %v10289_v0 }
 0x2cb   :  { %v2709_v13 = vpop.f32.mrb[248].mxu1  ;;  %v3554_v15 = vpop.f32.mrb[248].mxu0 }
 0x2cc   :  { %v3110_v16 = vadd.f32 %v3029_v14, %v2709_v13  ;;  %v9294_v17 = vpop.f32.mrb[249].mxu1  ;;  %v9456_v18 = vpop.f32.mrb[249].mxu0  ;;  %v2479_v13 = vld [vmem:[%s18941_s0 + $0x202] sm:$0xff]  ;;  %v2480_v14 = vld [vmem:[%s18941_s0 + $0x20a] sm:$0xff] }
 0x2cd   :  { %v3880_v21 = vld [vmem:[%s18942_s3] sm:$0xff]  ;;  %v2712_v22 = vpop.f32.mrb[250].mxu1  ;;  %v3557_v24 = vpop.f32.mrb[250].mxu0 }
 0x2ce   :  { %3191 = vst.msk [vmem:[%s18942_s3 + $0x10] sm:$0xff] %vm629_vm4, %v3110_v16  ;;  %v3961_v25 = vadd.f32 %v3880_v21, %v3554_v15  ;;  %v3111_v26 = vadd.f32 %v3030_v23, %v2712_v22  ;;  %v9295_v27 = vpop.f32.mrb[251].mxu1  ;;  %v9457_v28 = vpop.f32.mrb[251].mxu0  ;;  %v3330_v15 = vld [vmem:[%s18941_s0 + $0x1f3] sm:$0xff]  ;;  %v3331_v16 = vld [vmem:[%s18941_s0 + $0x1fb] sm:$0xff]  ;;  %v2529_v23 = vpack.c.bf16 %v2480_v14, %v2479_v13 }
 0x2cf   :  { %v3881_v29 = vld [vmem:[%s18942_s3 + $0x8] sm:$0xff]  ;;  %v3035_v18 = vld [vmem:[%s18942_s3 + $0x40] sm:$0xff] }
 0x2d0   :  { %4042 = vst.msk [vmem:[%s18942_s3] sm:$0xff] %vm629_vm4, %v3961_v25  ;;  %3192 = vst.msk [vmem:[%s18942_s3 + $0x18] sm:$0xff] %vm629_vm4, %v3111_v26  ;;  %v3962_v30 = vadd.f32 %v3881_v29, %v3557_v24  ;;  %9401 = vmatmul.mubr.msk.bf16.gmra.mrb[100].mxu1 %vm138_vm3, %v2526_v19  ;;  %9563 = vmatmul.mubr.msk.bf16.gmra.mrb[100].mxu0 %vm138_vm3, %v3378_v20  ;;  %v3381_v24 = vpack.c.bf16 %v3331_v16, %v3330_v15  ;;  %v3036_v27 = vld [vmem:[%s18942_s3 + $0x48] sm:$0xff] }
 0x2d1   :  { %9404 = vmatprep.mubr.msk.bf16.mxu1 %vm10291_vm2, %v10289_v0  ;;  %9566 = vmatprep.mubr.msk.bf16.mxu0 %vm10291_vm2, %v10289_v0 }
 0x2d2   :  { %4043 = vst.msk [vmem:[%s18942_s3 + $0x8] sm:$0xff] %vm629_vm4, %v3962_v30 }
 0x2d3   :  { %v2717_v35 = vpop.f32.mrb[252].mxu1  ;;  %v3562_v37 = vpop.f32.mrb[252].mxu0 }
 0x2d4   :  { %v3112_v38 = vadd.f32 %v3031_v36, %v2717_v35  ;;  %v9298_v39 = vpop.f32.mrb[253].mxu1  ;;  %v9460_v40 = vpop.f32.mrb[253].mxu0  ;;  %v2481_v35 = vld [vmem:[%s18941_s0 + $0x212] sm:$0xff]  ;;  %v2482_v36 = vld [vmem:[%s18941_s0 + $0x21a] sm:$0xff] }
 0x2d5   :  { %v3882_v43 = vld [vmem:[%s18942_s3 + $0x10] sm:$0xff]  ;;  %v2720_v44 = vpop.f32.mrb[254].mxu1  ;;  %v3565_v46 = vpop.f32.mrb[254].mxu0 }
 0x2d6   :  { %3193 = vst.msk [vmem:[%s18942_s3 + $0x20] sm:$0xff] %vm629_vm4, %v3112_v38  ;;  %v3963_v47 = vadd.f32 %v3882_v43, %v3562_v37  ;;  %v3113_v48 = vadd.f32 %v3032_v45, %v2720_v44  ;;  %v9299_v49 = vpop.f32.mrb[255].mxu1  ;;  %v9461_v50 = vpop.f32.mrb[255].mxu0  ;;  %v3332_v37 = vld [vmem:[%s18941_s0 + $0x203] sm:$0xff]  ;;  %v3333_v38 = vld [vmem:[%s18941_s0 + $0x20b] sm:$0xff]  ;;  %v2530_v45 = vpack.c.bf16 %v2482_v36, %v2481_v35 }
 0x2d7   :  { %v3883_v51 = vld [vmem:[%s18942_s3 + $0x18] sm:$0xff]  ;;  %v3037_v40 = vld [vmem:[%s18942_s3 + $0x50] sm:$0xff] }
 0x2d8   :  { %4044 = vst.msk [vmem:[%s18942_s3 + $0x10] sm:$0xff] %vm629_vm4, %v3963_v47  ;;  %3194 = vst.msk [vmem:[%s18942_s3 + $0x28] sm:$0xff] %vm629_vm4, %v3113_v48  ;;  %v3964_v52 = vadd.f32 %v3883_v51, %v3565_v46  ;;  %9405 = vmatmul.mubr.msk.bf16.gmra.mrb[104].mxu1 %vm138_vm3, %v2527_v41  ;;  %9567 = vmatmul.mubr.msk.bf16.gmra.mrb[104].mxu0 %vm138_vm3, %v3379_v42  ;;  %v3382_v46 = vpack.c.bf16 %v3333_v38, %v3332_v37  ;;  %v3038_v49 = vld [vmem:[%s18942_s3 + $0x58] sm:$0xff] }
 0x2d9   :  { %9408 = vmatprep.mubr.msk.bf16.mxu1 %vm10291_vm2, %v10289_v0  ;;  %9570 = vmatprep.mubr.msk.bf16.mxu0 %vm10291_vm2, %v10289_v0 }
 0x2da   :  { %4045 = vst.msk [vmem:[%s18942_s3 + $0x18] sm:$0xff] %vm629_vm4, %v3964_v52 }
 0x2db   :  { %v2725_v57 = vpop.f32.mrb[0].mxu1  ;;  %v3570_v59 = vpop.f32.mrb[0].mxu0 }
 0x2dc   :  { %v3114_v60 = vadd.f32 %v3033_v58, %v2725_v57  ;;  %v9302_v61 = vpop.f32.mrb[1].mxu1  ;;  %v9464_v62 = vpop.f32.mrb[1].mxu0  ;;  %v2483_v57 = vld [vmem:[%s18941_s0 + $0x222] sm:$0xff]  ;;  %v2484_v58 = vld [vmem:[%s18941_s0 + $0x22a] sm:$0xff] }
 0x2dd   :  { %v3884_v2 = vld [vmem:[%s18942_s3 + $0x20] sm:$0xff]  ;;  %v2728_v3 = vpop.f32.mrb[2].mxu1  ;;  %v3573_v5 = vpop.f32.mrb[2].mxu0 }
 0x2de   :  { %3195 = vst.msk [vmem:[%s18942_s3 + $0x30] sm:$0xff] %vm629_vm4, %v3114_v60  ;;  %v3965_v7 = vadd.f32 %v3884_v2, %v3570_v59  ;;  %v3115_v8 = vadd.f32 %v3034_v4, %v2728_v3  ;;  %v9303_v9 = vpop.f32.mrb[3].mxu1  ;;  %v9465_v10 = vpop.f32.mrb[3].mxu0  ;;  %v3334_v59 = vld [vmem:[%s18941_s0 + $0x213] sm:$0xff]  ;;  %v3335_v60 = vld [vmem:[%s18941_s0 + $0x21b] sm:$0xff]  ;;  %v2531_v4 = vpack.c.bf16 %v2484_v58, %v2483_v57 }
 0x2df   :  { %v3885_v11 = vld [vmem:[%s18942_s3 + $0x28] sm:$0xff]  ;;  %v3039_v62 = vld [vmem:[%s18942_s3 + $0x60] sm:$0xff] }
 0x2e0   :  { %4046 = vst.msk [vmem:[%s18942_s3 + $0x20] sm:$0xff] %vm629_vm4, %v3965_v7  ;;  %3196 = vst.msk [vmem:[%s18942_s3 + $0x38] sm:$0xff] %vm629_vm4, %v3115_v8  ;;  %v3966_v12 = vadd.f32 %v3885_v11, %v3573_v5  ;;  %9409 = vmatmul.mubr.msk.bf16.gmra.mrb[108].mxu1 %vm138_vm3, %v2528_v63  ;;  %9571 = vmatmul.mubr.msk.bf16.gmra.mrb[108].mxu0 %vm138_vm3, %v3380_v1  ;;  %v3383_v5 = vpack.c.bf16 %v3335_v60, %v3334_v59  ;;  %v3040_v9 = vld [vmem:[%s18942_s3 + $0x68] sm:$0xff] }
 0x2e1   :  { %9412 = vmatprep.mubr.msk.bf16.mxu1 %vm10291_vm2, %v10289_v0  ;;  %9574 = vmatprep.mubr.msk.bf16.mxu0 %vm10291_vm2, %v10289_v0 }
 0x2e2   :  { %4047 = vst.msk [vmem:[%s18942_s3 + $0x28] sm:$0xff] %vm629_vm4, %v3966_v12 }
 0x2e3   :  { %v2733_v17 = vpop.f32.mrb[4].mxu1  ;;  %v3578_v19 = vpop.f32.mrb[4].mxu0 }
 0x2e4   :  { %v3116_v20 = vadd.f32 %v3035_v18, %v2733_v17  ;;  %v9306_v21 = vpop.f32.mrb[5].mxu1  ;;  %v9468_v22 = vpop.f32.mrb[5].mxu0  ;;  %v2485_v17 = vld [vmem:[%s18941_s0 + $0x232] sm:$0xff]  ;;  %v2486_v18 = vld [vmem:[%s18941_s0 + $0x23a] sm:$0xff] }
 0x2e5   :  { %v3886_v25 = vld [vmem:[%s18942_s3 + $0x30] sm:$0xff]  ;;  %v2736_v26 = vpop.f32.mrb[6].mxu1  ;;  %v3581_v28 = vpop.f32.mrb[6].mxu0 }
 0x2e6   :  { %3197 = vst.msk [vmem:[%s18942_s3 + $0x40] sm:$0xff] %vm629_vm4, %v3116_v20  ;;  %v3967_v29 = vadd.f32 %v3886_v25, %v3578_v19  ;;  %v3117_v30 = vadd.f32 %v3036_v27, %v2736_v26  ;;  %v9307_v31 = vpop.f32.mrb[7].mxu1  ;;  %v9469_v32 = vpop.f32.mrb[7].mxu0  ;;  %v3336_v19 = vld [vmem:[%s18941_s0 + $0x223] sm:$0xff]  ;;  %v3337_v20 = vld [vmem:[%s18941_s0 + $0x22b] sm:$0xff]  ;;  %v2532_v27 = vpack.c.bf16 %v2486_v18, %v2485_v17 }
 0x2e7   :  { %v3887_v33 = vld [vmem:[%s18942_s3 + $0x38] sm:$0xff]  ;;  %v3041_v22 = vld [vmem:[%s18942_s3 + $0x70] sm:$0xff] }
 0x2e8   :  { %4048 = vst.msk [vmem:[%s18942_s3 + $0x30] sm:$0xff] %vm629_vm4, %v3967_v29  ;;  %3198 = vst.msk [vmem:[%s18942_s3 + $0x48] sm:$0xff] %vm629_vm4, %v3117_v30  ;;  %v3968_v34 = vadd.f32 %v3887_v33, %v3581_v28  ;;  %9413 = vmatmul.mubr.msk.bf16.gmra.mrb[112].mxu1 %vm138_vm3, %v2529_v23  ;;  %9575 = vmatmul.mubr.msk.bf16.gmra.mrb[112].mxu0 %vm138_vm3, %v3381_v24  ;;  %v3384_v28 = vpack.c.bf16 %v3337_v20, %v3336_v19  ;;  %v3042_v31 = vld [vmem:[%s18942_s3 + $0x78] sm:$0xff] }
 0x2e9   :  { %9416 = vmatprep.mubr.msk.bf16.mxu1 %vm10291_vm2, %v10289_v0  ;;  %9578 = vmatprep.mubr.msk.bf16.mxu0 %vm10291_vm2, %v10289_v0 }
 0x2ea   :  { %4049 = vst.msk [vmem:[%s18942_s3 + $0x38] sm:$0xff] %vm629_vm4, %v3968_v34 }
 0x2eb   :  { %v2741_v39 = vpop.f32.mrb[8].mxu1  ;;  %v3586_v41 = vpop.f32.mrb[8].mxu0 }
 0x2ec   :  { %v3118_v42 = vadd.f32 %v3037_v40, %v2741_v39  ;;  %v9310_v43 = vpop.f32.mrb[9].mxu1  ;;  %v9472_v44 = vpop.f32.mrb[9].mxu0  ;;  %v2487_v39 = vld [vmem:[%s18941_s0 + $0x242] sm:$0xff]  ;;  %v2488_v40 = vld [vmem:[%s18941_s0 + $0x24a] sm:$0xff] }
 0x2ed   :  { %v3888_v47 = vld [vmem:[%s18942_s3 + $0x40] sm:$0xff]  ;;  %v2744_v48 = vpop.f32.mrb[10].mxu1  ;;  %v3589_v50 = vpop.f32.mrb[10].mxu0 }
 0x2ee   :  { %3199 = vst.msk [vmem:[%s18942_s3 + $0x50] sm:$0xff] %vm629_vm4, %v3118_v42  ;;  %v3969_v51 = vadd.f32 %v3888_v47, %v3586_v41  ;;  %v3119_v52 = vadd.f32 %v3038_v49, %v2744_v48  ;;  %v9311_v53 = vpop.f32.mrb[11].mxu1  ;;  %v9473_v54 = vpop.f32.mrb[11].mxu0  ;;  %v3338_v41 = vld [vmem:[%s18941_s0 + $0x233] sm:$0xff]  ;;  %v3339_v42 = vld [vmem:[%s18941_s0 + $0x23b] sm:$0xff]  ;;  %v2533_v49 = vpack.c.bf16 %v2488_v40, %v2487_v39 }
 0x2ef   :  { %v3889_v55 = vld [vmem:[%s18942_s3 + $0x48] sm:$0xff]  ;;  %v3043_v44 = vld [vmem:[%s18942_s3 + $0x80] sm:$0xff] }
 0x2f0   :  { %4050 = vst.msk [vmem:[%s18942_s3 + $0x40] sm:$0xff] %vm629_vm4, %v3969_v51  ;;  %3200 = vst.msk [vmem:[%s18942_s3 + $0x58] sm:$0xff] %vm629_vm4, %v3119_v52  ;;  %v3970_v56 = vadd.f32 %v3889_v55, %v3589_v50  ;;  %9417 = vmatmul.mubr.msk.bf16.gmra.mrb[116].mxu1 %vm138_vm3, %v2530_v45  ;;  %9579 = vmatmul.mubr.msk.bf16.gmra.mrb[116].mxu0 %vm138_vm3, %v3382_v46  ;;  %v3385_v50 = vpack.c.bf16 %v3339_v42, %v3338_v41  ;;  %v3044_v53 = vld [vmem:[%s18942_s3 + $0x88] sm:$0xff] }
 0x2f1   :  { %9420 = vmatprep.mubr.msk.bf16.mxu1 %vm10291_vm2, %v10289_v0  ;;  %9582 = vmatprep.mubr.msk.bf16.mxu0 %vm10291_vm2, %v10289_v0 }
 0x2f2   :  { %4051 = vst.msk [vmem:[%s18942_s3 + $0x48] sm:$0xff] %vm629_vm4, %v3970_v56 }
 0x2f3   :  { %v2749_v61 = vpop.f32.mrb[12].mxu1  ;;  %v3594_v63 = vpop.f32.mrb[12].mxu0 }
 0x2f4   :  { %v3120_v1 = vadd.f32 %v3039_v62, %v2749_v61  ;;  %v9314_v2 = vpop.f32.mrb[13].mxu1  ;;  %v9476_v3 = vpop.f32.mrb[13].mxu0  ;;  %v2489_v61 = vld [vmem:[%s18941_s0 + $0x252] sm:$0xff]  ;;  %v2490_v62 = vld [vmem:[%s18941_s0 + $0x25a] sm:$0xff] }
 0x2f5   :  { %v3890_v7 = vld [vmem:[%s18942_s3 + $0x50] sm:$0xff]  ;;  %v2752_v8 = vpop.f32.mrb[14].mxu1  ;;  %v3597_v10 = vpop.f32.mrb[14].mxu0 }
 0x2f6   :  { %3201 = vst.msk [vmem:[%s18942_s3 + $0x60] sm:$0xff] %vm629_vm4, %v3120_v1  ;;  %v3971_v11 = vadd.f32 %v3890_v7, %v3594_v63  ;;  %v3121_v12 = vadd.f32 %v3040_v9, %v2752_v8  ;;  %v9315_v13 = vpop.f32.mrb[15].mxu1  ;;  %v9477_v14 = vpop.f32.mrb[15].mxu0  ;;  %v3340_v63 = vld [vmem:[%s18941_s0 + $0x243] sm:$0xff]  ;;  %v3341_v1 = vld [vmem:[%s18941_s0 + $0x24b] sm:$0xff]  ;;  %v2534_v9 = vpack.c.bf16 %v2490_v62, %v2489_v61 }
 0x2f7   :  { %v3891_v15 = vld [vmem:[%s18942_s3 + $0x58] sm:$0xff]  ;;  %v3045_v3 = vld [vmem:[%s18942_s3 + $0x90] sm:$0xff] }
 0x2f8   :  { %4052 = vst.msk [vmem:[%s18942_s3 + $0x50] sm:$0xff] %vm629_vm4, %v3971_v11  ;;  %3202 = vst.msk [vmem:[%s18942_s3 + $0x68] sm:$0xff] %vm629_vm4, %v3121_v12  ;;  %v3972_v16 = vadd.f32 %v3891_v15, %v3597_v10  ;;  %9421 = vmatmul.mubr.msk.bf16.gmra.mrb[120].mxu1 %vm138_vm3, %v2531_v4  ;;  %9583 = vmatmul.mubr.msk.bf16.gmra.mrb[120].mxu0 %vm138_vm3, %v3383_v5  ;;  %v3386_v10 = vpack.c.bf16 %v3341_v1, %v3340_v63  ;;  %v3046_v13 = vld [vmem:[%s18942_s3 + $0x98] sm:$0xff] }
 0x2f9   :  { %9424 = vmatprep.mubr.msk.bf16.mxu1 %vm10291_vm2, %v10289_v0  ;;  %9586 = vmatprep.mubr.msk.bf16.mxu0 %vm10291_vm2, %v10289_v0 }
 0x2fa   :  { %4053 = vst.msk [vmem:[%s18942_s3 + $0x58] sm:$0xff] %vm629_vm4, %v3972_v16 }
 0x2fb   :  { %v2757_v21 = vpop.f32.mrb[16].mxu1  ;;  %v3602_v23 = vpop.f32.mrb[16].mxu0 }
 0x2fc   :  { %v3122_v24 = vadd.f32 %v3041_v22, %v2757_v21  ;;  %v9318_v25 = vpop.f32.mrb[17].mxu1  ;;  %v9480_v26 = vpop.f32.mrb[17].mxu0  ;;  %v2491_v21 = vld [vmem:[%s18941_s0 + $0x262] sm:$0xff]  ;;  %v2492_v22 = vld [vmem:[%s18941_s0 + $0x26a] sm:$0xff] }
 0x2fd   :  { %v3892_v29 = vld [vmem:[%s18942_s3 + $0x60] sm:$0xff]  ;;  %v2760_v30 = vpop.f32.mrb[18].mxu1  ;;  %v3605_v32 = vpop.f32.mrb[18].mxu0 }
 0x2fe   :  { %3203 = vst.msk [vmem:[%s18942_s3 + $0x70] sm:$0xff] %vm629_vm4, %v3122_v24  ;;  %v3973_v33 = vadd.f32 %v3892_v29, %v3602_v23  ;;  %v3123_v34 = vadd.f32 %v3042_v31, %v2760_v30  ;;  %v9319_v35 = vpop.f32.mrb[19].mxu1  ;;  %v9481_v36 = vpop.f32.mrb[19].mxu0  ;;  %v3342_v23 = vld [vmem:[%s18941_s0 + $0x253] sm:$0xff]  ;;  %v3343_v24 = vld [vmem:[%s18941_s0 + $0x25b] sm:$0xff]  ;;  %v2535_v31 = vpack.c.bf16 %v2492_v22, %v2491_v21 }
 0x2ff   :  { %v3893_v37 = vld [vmem:[%s18942_s3 + $0x68] sm:$0xff]  ;;  %v3047_v26 = vld [vmem:[%s18942_s3 + $0xa0] sm:$0xff] }
 0x300   :  { %4054 = vst.msk [vmem:[%s18942_s3 + $0x60] sm:$0xff] %vm629_vm4, %v3973_v33  ;;  %3204 = vst.msk [vmem:[%s18942_s3 + $0x78] sm:$0xff] %vm629_vm4, %v3123_v34  ;;  %v3974_v38 = vadd.f32 %v3893_v37, %v3605_v32  ;;  %9425 = vmatmul.mubr.msk.bf16.gmra.mrb[124].mxu1 %vm138_vm3, %v2532_v27  ;;  %9587 = vmatmul.mubr.msk.bf16.gmra.mrb[124].mxu0 %vm138_vm3, %v3384_v28  ;;  %v3387_v32 = vpack.c.bf16 %v3343_v24, %v3342_v23  ;;  %v3048_v35 = vld [vmem:[%s18942_s3 + $0xa8] sm:$0xff] }
 0x301   :  { %9428 = vmatprep.mubr.msk.bf16.mxu1 %vm10291_vm2, %v10289_v0  ;;  %9590 = vmatprep.mubr.msk.bf16.mxu0 %vm10291_vm2, %v10289_v0 }
 0x302   :  { %4055 = vst.msk [vmem:[%s18942_s3 + $0x68] sm:$0xff] %vm629_vm4, %v3974_v38 }
 0x303   :  { %v2765_v43 = vpop.f32.mrb[20].mxu1  ;;  %v3610_v45 = vpop.f32.mrb[20].mxu0 }
 0x304   :  { %v3124_v46 = vadd.f32 %v3043_v44, %v2765_v43  ;;  %v9322_v47 = vpop.f32.mrb[21].mxu1  ;;  %v9484_v48 = vpop.f32.mrb[21].mxu0  ;;  %v2493_v43 = vld [vmem:[%s18941_s0 + $0x272] sm:$0xff]  ;;  %v2494_v44 = vld [vmem:[%s18941_s0 + $0x27a] sm:$0xff] }
 0x305   :  { %v3894_v51 = vld [vmem:[%s18942_s3 + $0x70] sm:$0xff]  ;;  %v2768_v52 = vpop.f32.mrb[22].mxu1  ;;  %v3613_v54 = vpop.f32.mrb[22].mxu0 }
 0x306   :  { %3205 = vst.msk [vmem:[%s18942_s3 + $0x80] sm:$0xff] %vm629_vm4, %v3124_v46  ;;  %v3975_v55 = vadd.f32 %v3894_v51, %v3610_v45  ;;  %v3125_v56 = vadd.f32 %v3044_v53, %v2768_v52  ;;  %v9323_v57 = vpop.f32.mrb[23].mxu1  ;;  %v9485_v58 = vpop.f32.mrb[23].mxu0  ;;  %v3344_v45 = vld [vmem:[%s18941_s0 + $0x263] sm:$0xff]  ;;  %v3345_v46 = vld [vmem:[%s18941_s0 + $0x26b] sm:$0xff]  ;;  %v2536_v53 = vpack.c.bf16 %v2494_v44, %v2493_v43 }
 0x307   :  { %v3895_v59 = vld [vmem:[%s18942_s3 + $0x78] sm:$0xff]  ;;  %v3049_v48 = vld [vmem:[%s18942_s3 + $0xb0] sm:$0xff] }
 0x308   :  { %4056 = vst.msk [vmem:[%s18942_s3 + $0x70] sm:$0xff] %vm629_vm4, %v3975_v55  ;;  %3206 = vst.msk [vmem:[%s18942_s3 + $0x88] sm:$0xff] %vm629_vm4, %v3125_v56  ;;  %v3976_v60 = vadd.f32 %v3895_v59, %v3613_v54  ;;  %9429 = vmatmul.mubr.msk.bf16.gmra.mrb[128].mxu1 %vm138_vm3, %v2533_v49  ;;  %9591 = vmatmul.mubr.msk.bf16.gmra.mrb[128].mxu0 %vm138_vm3, %v3385_v50  ;;  %v3388_v54 = vpack.c.bf16 %v3345_v46, %v3344_v45  ;;  %v3050_v57 = vld [vmem:[%s18942_s3 + $0xb8] sm:$0xff] }
 0x309   :  { %9432 = vmatprep.mubr.msk.bf16.mxu1 %vm10291_vm2, %v10289_v0  ;;  %9594 = vmatprep.mubr.msk.bf16.mxu0 %vm10291_vm2, %v10289_v0  ;;  %v3350_v46 = vld [vmem:[%s18941_s0 + $0x293] sm:$0xff] }
 0x30a   :  { %4057 = vst.msk [vmem:[%s18942_s3 + $0x78] sm:$0xff] %vm629_vm4, %v3976_v60 }
 0x30b   :  { %v2773_v2 = vpop.f32.mrb[24].mxu1  ;;  %v3618_v4 = vpop.f32.mrb[24].mxu0 }
 0x30c   :  { %v3126_v5 = vadd.f32 %v3045_v3, %v2773_v2  ;;  %v9326_v7 = vpop.f32.mrb[25].mxu1  ;;  %v9488_v8 = vpop.f32.mrb[25].mxu0  ;;  %v2495_v2 = vld [vmem:[%s18941_s0 + $0x282] sm:$0xff]  ;;  %v2496_v3 = vld [vmem:[%s18941_s0 + $0x28a] sm:$0xff] }
 0x30d   :  { %v3896_v11 = vld [vmem:[%s18942_s3 + $0x80] sm:$0xff]  ;;  %v2776_v12 = vpop.f32.mrb[26].mxu1  ;;  %v3621_v14 = vpop.f32.mrb[26].mxu0 }
 0x30e   :  { %3207 = vst.msk [vmem:[%s18942_s3 + $0x90] sm:$0xff] %vm629_vm4, %v3126_v5  ;;  %v3977_v15 = vadd.f32 %v3896_v11, %v3618_v4  ;;  %v3127_v16 = vadd.f32 %v3046_v13, %v2776_v12  ;;  %v9327_v17 = vpop.f32.mrb[27].mxu1  ;;  %v9489_v18 = vpop.f32.mrb[27].mxu0  ;;  %v3346_v4 = vld [vmem:[%s18941_s0 + $0x273] sm:$0xff]  ;;  %v3347_v5 = vld [vmem:[%s18941_s0 + $0x27b] sm:$0xff]  ;;  %v2537_v13 = vpack.c.bf16 %v2496_v3, %v2495_v2 }
 0x30f   :  { %v3897_v19 = vld [vmem:[%s18942_s3 + $0x88] sm:$0xff]  ;;  %v3051_v8 = vld [vmem:[%s18942_s3 + $0xc0] sm:$0xff] }
 0x310   :  { %4058 = vst.msk [vmem:[%s18942_s3 + $0x80] sm:$0xff] %vm629_vm4, %v3977_v15  ;;  %3208 = vst.msk [vmem:[%s18942_s3 + $0x98] sm:$0xff] %vm629_vm4, %v3127_v16  ;;  %v3978_v20 = vadd.f32 %v3897_v19, %v3621_v14  ;;  %9433 = vmatmul.mubr.msk.bf16.gmra.mrb[132].mxu1 %vm138_vm3, %v2534_v9  ;;  %9595 = vmatmul.mubr.msk.bf16.gmra.mrb[132].mxu0 %vm138_vm3, %v3386_v10  ;;  %v3389_v14 = vpack.c.bf16 %v3347_v5, %v3346_v4  ;;  %v3052_v17 = vld [vmem:[%s18942_s3 + $0xc8] sm:$0xff] }
 0x311   :  { %9436 = vmatprep.mubr.msk.bf16.mxu1 %vm10291_vm2, %v10289_v0  ;;  %9598 = vmatprep.mubr.msk.bf16.mxu0 %vm10291_vm2, %v10289_v0 }
 0x312   :  { %4059 = vst.msk [vmem:[%s18942_s3 + $0x88] sm:$0xff] %vm629_vm4, %v3978_v20 }
 0x313   :  { %v2781_v25 = vpop.f32.mrb[28].mxu1  ;;  %v3626_v27 = vpop.f32.mrb[28].mxu0 }
 0x314   :  { %v3128_v28 = vadd.f32 %v3047_v26, %v2781_v25  ;;  %v9330_v29 = vpop.f32.mrb[29].mxu1  ;;  %v9492_v30 = vpop.f32.mrb[29].mxu0  ;;  %v2497_v25 = vld [vmem:[%s18941_s0 + $0x292] sm:$0xff]  ;;  %v3348_v26 = vld [vmem:[%s18941_s0 + $0x283] sm:$0xff] }
 0x315   :  { %v3898_v33 = vld [vmem:[%s18942_s3 + $0x90] sm:$0xff]  ;;  %v2784_v34 = vpop.f32.mrb[30].mxu1  ;;  %v3629_v36 = vpop.f32.mrb[30].mxu0 }
 0x316   :  { %3209 = vst.msk [vmem:[%s18942_s3 + $0xa0] sm:$0xff] %vm629_vm4, %v3128_v28  ;;  %v3979_v37 = vadd.f32 %v3898_v33, %v3626_v27  ;;  %v3129_v38 = vadd.f32 %v3048_v35, %v2784_v34  ;;  %v9331_v39 = vpop.f32.mrb[31].mxu1  ;;  %v9493_v40 = vpop.f32.mrb[31].mxu0  ;;  %v3349_v27 = vld [vmem:[%s18941_s0 + $0x28b] sm:$0xff]  ;;  %v2538_v34 = vpack.c.bf16 %v2497_v25, %v2497_v25 }
 0x317   :  { %v3899_v41 = vld [vmem:[%s18942_s3 + $0x98] sm:$0xff]  ;;  %v3053_v29 = vld [vmem:[%s18942_s3 + $0xd0] sm:$0xff]  ;;  %v3390_v35 = vpack.c.bf16 %v3349_v27, %v3348_v26 }
 0x318   :  { %4060 = vst.msk [vmem:[%s18942_s3 + $0x90] sm:$0xff] %vm629_vm4, %v3979_v37  ;;  %3210 = vst.msk [vmem:[%s18942_s3 + $0xa8] sm:$0xff] %vm629_vm4, %v3129_v38  ;;  %v3980_v42 = vadd.f32 %v3899_v41, %v3629_v36  ;;  %9437 = vmatmul.mubr.msk.bf16.gmra.mrb[136].mxu1 %vm138_vm3, %v2535_v31  ;;  %9599 = vmatmul.mubr.msk.bf16.gmra.mrb[136].mxu0 %vm138_vm3, %v3387_v32  ;;  %v3054_v38 = vld [vmem:[%s18942_s3 + $0xd8] sm:$0xff] }
 0x319   :  { %9440 = vmatprep.mubr.msk.bf16.mxu1 %vm10291_vm2, %v10289_v0  ;;  %9602 = vmatprep.mubr.msk.bf16.mxu0 %vm10291_vm2, %v10289_v0  ;;  %v4127_v27 = vld [vmem:[%s18941_s0 + $0x34] sm:$0xff] }
 0x31a   :  { %4061 = vst.msk [vmem:[%s18942_s3 + $0x98] sm:$0xff] %vm629_vm4, %v3980_v42 }
 0x31b   :  { %v2789_v47 = vpop.f32.mrb[32].mxu1  ;;  %v3634_v49 = vpop.f32.mrb[32].mxu0 }
 0x31c   :  { %v3130_v50 = vadd.f32 %v3049_v48, %v2789_v47  ;;  %v9334_v51 = vpop.f32.mrb[33].mxu1  ;;  %v9496_v52 = vpop.f32.mrb[33].mxu0  ;;  %v4123_v47 = vld [vmem:[%s18941_s0 + $0x14] sm:$0xff]  ;;  %v4124_v48 = vld [vmem:[%s18941_s0 + $0x1c] sm:$0xff] }
 0x31d   :  { %v3900_v55 = vld [vmem:[%s18942_s3 + $0xa0] sm:$0xff]  ;;  %v2792_v56 = vpop.f32.mrb[34].mxu1  ;;  %v3637_v58 = vpop.f32.mrb[34].mxu0 }
 0x31e   :  { %3211 = vst.msk [vmem:[%s18942_s3 + $0xb0] sm:$0xff] %vm629_vm4, %v3130_v50  ;;  %v3981_v59 = vadd.f32 %v3900_v55, %v3634_v49  ;;  %v3131_v60 = vadd.f32 %v3050_v57, %v2792_v56  ;;  %v9335_v61 = vpop.f32.mrb[35].mxu1  ;;  %v9497_v62 = vpop.f32.mrb[35].mxu0  ;;  %v8325_v49 = vld [vmem:[%s18940_s1 + $0xe] sm:$0x3]  ;;  %v3055_v51 = vld [vmem:[%s18942_s3 + $0xe0] sm:$0xff]  ;;  %v3391_v56 = vpack.c.bf16 %v3350_v46, %v3350_v46  ;;  %v4204_v57 = vpack.c.bf16 %v4124_v48, %v4123_v47 }
 0x31f   :  { %v3901_v63 = vld [vmem:[%s18942_s3 + $0xa8] sm:$0xff]  ;;  %v6077_v62 = vand.u32 %v8325_v49, %v10323_v6  ;;  %v3061_v49 = vld [vmem:[%s18942_s3 + $0x110] sm:$0xff] }
 0x320   :  { %4062 = vst.msk [vmem:[%s18942_s3 + $0xa0] sm:$0xff] %vm629_vm4, %v3981_v59  ;;  %3212 = vst.msk [vmem:[%s18942_s3 + $0xb8] sm:$0xff] %vm629_vm4, %v3131_v60  ;;  %v3982_v1 = vadd.f32 %v3901_v63, %v3637_v58  ;;  %9441 = vmatmul.mubr.msk.bf16.gmra.mrb[140].mxu1 %vm138_vm3, %v2536_v53  ;;  %9603 = vmatmul.mubr.msk.bf16.gmra.mrb[140].mxu0 %vm138_vm3, %v3388_v54  ;;  %v3056_v60 = vld [vmem:[%s18942_s3 + $0xe8] sm:$0xff] }
 0x321   :  { %9444 = vmatprep.mubr.msk.bf16.mxu1 %vm10291_vm2, %v10289_v0  ;;  %9606 = vmatprep.mubr.msk.bf16.mxu0 %vm10291_vm2, %v10289_v0  ;;  %v4129_v46 = vld [vmem:[%s18941_s0 + $0x44] sm:$0xff]  ;;  %v4130_v47 = vld [vmem:[%s18941_s0 + $0x4c] sm:$0xff] }
 0x322   :  { %4063 = vst.msk [vmem:[%s18942_s3 + $0xa8] sm:$0xff] %vm629_vm4, %v3982_v1 }
 0x323   :  { %v2797_v7 = vpop.f32.mrb[36].mxu1  ;;  %v3642_v9 = vpop.f32.mrb[36].mxu0 }
 0x324   :  { %v3132_v10 = vadd.f32 %v3051_v8, %v2797_v7  ;;  %v9338_v11 = vpop.f32.mrb[37].mxu1  ;;  %v9500_v12 = vpop.f32.mrb[37].mxu0  ;;  %v4125_v7 = vld [vmem:[%s18941_s0 + $0x24] sm:$0xff]  ;;  %v4126_v8 = vld [vmem:[%s18941_s0 + $0x2c] sm:$0xff] }
 0x325   :  { %v3902_v15 = vld [vmem:[%s18942_s3 + $0xb0] sm:$0xff]  ;;  %v2800_v16 = vpop.f32.mrb[38].mxu1  ;;  %v3645_v18 = vpop.f32.mrb[38].mxu0 }
 0x326   :  { %3213 = vst.msk [vmem:[%s18942_s3 + $0xc0] sm:$0xff] %vm629_vm4, %v3132_v10  ;;  %v3983_v19 = vadd.f32 %v3902_v15, %v3642_v9  ;;  %v3133_v20 = vadd.f32 %v3052_v17, %v2800_v16  ;;  %v9339_v21 = vpop.f32.mrb[39].mxu1  ;;  %v9501_v22 = vpop.f32.mrb[39].mxu0  ;;  %v8367_v9 = vld [vmem:[%s18940_s1 + $0x10] sm:$0x3]  ;;  %v4205_v16 = vpack.c.bf16 %v4126_v8, %v4125_v7 }
 0x327   :  { %v3903_v23 = vld [vmem:[%s18942_s3 + $0xb8] sm:$0xff]  ;;  %v3057_v11 = vld [vmem:[%s18942_s3 + $0xf0] sm:$0xff]  ;;  %v6930_v21 = vand.u32 %v8367_v9, %v10323_v6 }
 0x328   :  { %4064 = vst.msk [vmem:[%s18942_s3 + $0xb0] sm:$0xff] %vm629_vm4, %v3983_v19  ;;  %3214 = vst.msk [vmem:[%s18942_s3 + $0xc8] sm:$0xff] %vm629_vm4, %v3133_v20  ;;  %v3984_v24 = vadd.f32 %v3903_v23, %v3645_v18  ;;  %9445 = vmatmul.mubr.msk.bf16.gmra.mrb[144].mxu1 %vm138_vm3, %v2537_v13  ;;  %9607 = vmatmul.mubr.msk.bf16.gmra.mrb[144].mxu0 %vm138_vm3, %v3389_v14  ;;  %v3058_v19 = vld [vmem:[%s18942_s3 + $0xf8] sm:$0xff] }
 0x329   :  { %9448 = vmatprep.mubr.msk.bf16.mxu1 %vm10291_vm2, %v10289_v0  ;;  %9610 = vmatprep.mubr.msk.bf16.mxu0 %vm10291_vm2, %v10289_v0 }
 0x32a   :  { %4065 = vst.msk [vmem:[%s18942_s3 + $0xb8] sm:$0xff] %vm629_vm4, %v3984_v24 }
 0x32b   :  { %v2805_v28 = vpop.f32.mrb[40].mxu1  ;;  %v3650_v30 = vpop.f32.mrb[40].mxu0 }
 0x32c   :  { %v3134_v31 = vadd.f32 %v3053_v29, %v2805_v28  ;;  %v9342_v32 = vpop.f32.mrb[41].mxu1  ;;  %v9504_v33 = vpop.f32.mrb[41].mxu0  ;;  %v4128_v28 = vld [vmem:[%s18941_s0 + $0x3c] sm:$0xff] }
 0x32d   :  { %v3904_v36 = vld [vmem:[%s18942_s3 + $0xc0] sm:$0xff]  ;;  %v2808_v37 = vpop.f32.mrb[42].mxu1  ;;  %v3653_v39 = vpop.f32.mrb[42].mxu0 }
 0x32e   :  { %3215 = vst.msk [vmem:[%s18942_s3 + $0xd0] sm:$0xff] %vm629_vm4, %v3134_v31  ;;  %v3985_v40 = vadd.f32 %v3904_v36, %v3650_v30  ;;  %v3135_v41 = vadd.f32 %v3054_v38, %v2808_v37  ;;  %v9343_v42 = vpop.f32.mrb[43].mxu1  ;;  %v9505_v43 = vpop.f32.mrb[43].mxu0  ;;  %v3059_v30 = vld [vmem:[%s18942_s3 + $0x100] sm:$0xff]  ;;  %v3060_v38 = vld [vmem:[%s18942_s3 + $0x108] sm:$0xff] }
 0x32f   :  { %v3905_v44 = vld [vmem:[%s18942_s3 + $0xc8] sm:$0xff] }
 0x330   :  { %4066 = vst.msk [vmem:[%s18942_s3 + $0xc0] sm:$0xff] %vm629_vm4, %v3985_v40  ;;  %3216 = vst.msk [vmem:[%s18942_s3 + $0xd8] sm:$0xff] %vm629_vm4, %v3135_v41  ;;  %v3986_v45 = vadd.f32 %v3905_v44, %v3653_v39  ;;  %9449 = vmatmul.mubr.msk.bf16.gmra.mrb[148].mxu1 %vm138_vm3, %v2538_v34  ;;  %9611 = vmatmul.mubr.msk.bf16.gmra.mrb[148].mxu0 %vm138_vm3, %v3390_v35  ;;  %v4206_v35 = vpack.c.bf16 %v4128_v28, %v4127_v27 }
 0x331   :  { %9614 = vmatprep.mubr.msk.bf16.mxu0 %vm10291_vm2, %v10289_v0  ;;  %9620 = vmatprep.mubr.msk.bf16.mxu1 %vm10291_vm2, %v10289_v0 }
 0x332   :  { %4067 = vst.msk [vmem:[%s18942_s3 + $0xc8] sm:$0xff] %vm629_vm4, %v3986_v45 }
 0x333   :  { %v2813_v50 = vpop.f32.mrb[44].mxu1  ;;  %v3658_v52 = vpop.f32.mrb[44].mxu0 }
 0x334   :  { %v3136_v53 = vadd.f32 %v3055_v51, %v2813_v50  ;;  %v9346_v54 = vpop.f32.mrb[45].mxu1  ;;  %v9508_v55 = vpop.f32.mrb[45].mxu0 }
 0x335   :  { %v3906_v58 = vld [vmem:[%s18942_s3 + $0xd0] sm:$0xff]  ;;  %v2816_v59 = vpop.f32.mrb[46].mxu1  ;;  %v3661_v61 = vpop.f32.mrb[46].mxu0  ;;  %v4207_v54 = vpack.c.bf16 %v4130_v47, %v4129_v46 }
 0x336   :  { %3217 = vst.msk [vmem:[%s18942_s3 + $0xe0] sm:$0xff] %vm629_vm4, %v3136_v53  ;;  %v3987_v63 = vadd.f32 %v3906_v58, %v3658_v52  ;;  %v3137_v1 = vadd.f32 %v3056_v60, %v2816_v59  ;;  %v9347_v2 = vpop.f32.mrb[47].mxu1  ;;  %v9509_v3 = vpop.f32.mrb[47].mxu0 }
 0x337   :  { %v3907_v4 = vld [vmem:[%s18942_s3 + $0xd8] sm:$0xff] }
 0x338   :  { %4068 = vst.msk [vmem:[%s18942_s3 + $0xd0] sm:$0xff] %vm629_vm4, %v3987_v63  ;;  %3218 = vst.msk [vmem:[%s18942_s3 + $0xe8] sm:$0xff] %vm629_vm4, %v3137_v1  ;;  %v3988_v5 = vadd.f32 %v3907_v4, %v3661_v61  ;;  %9615 = vmatmul.mubr.msk.bf16.gmra.mrb[152].mxu0 %vm138_vm3, %v3391_v56  ;;  %9621 = vmatmul.mubr.msk.bf16.vlgmr.msra.gmra.mrb[152].mxu1 %vm138_vm3, %v4204_v57  ;;  %v3062_v57 = vld [vmem:[%s18942_s3 + $0x118] sm:$0xff] }
 0x339   :  { %9951 = vmatpush3.bf16.msra.mxu1 %v6077_v62  ;;  %9624 = vmatprep.mubr.msk.bf16.mxu1 %vm10291_vm2, %v10289_v0  ;;  %v4131_v2 = vld [vmem:[%s18941_s0 + $0x54] sm:$0xff]  ;;  %v4132_v3 = vld [vmem:[%s18941_s0 + $0x5c] sm:$0xff] }
 0x33a   :  { %4069 = vst.msk [vmem:[%s18942_s3 + $0xd8] sm:$0xff] %vm629_vm4, %v3988_v5  ;;  %9786 = vmatprep.mubr.msk.bf16.mxu0 %vm10291_vm2, %v10289_v0  ;;  %v3063_v5 = vld [vmem:[%s18942_s3 + $0x120] sm:$0xff] }
 0x33b   :  { %v2821_v10 = vpop.f32.mrb[48].mxu1  ;;  %v3666_v12 = vpop.f32.mrb[48].mxu0 }
 0x33c   :  { %v3138_v13 = vadd.f32 %v3057_v11, %v2821_v10  ;;  %v9350_v14 = vpop.f32.mrb[49].mxu1  ;;  %v9512_v15 = vpop.f32.mrb[49].mxu0  ;;  %v4208_v11 = vpack.c.bf16 %v4132_v3, %v4131_v2 }
 0x33d   :  { %v3908_v17 = vld [vmem:[%s18942_s3 + $0xe0] sm:$0xff]  ;;  %v2824_v18 = vpop.f32.mrb[50].mxu1  ;;  %v3669_v20 = vpop.f32.mrb[50].mxu0  ;;  %v3064_v14 = vld [vmem:[%s18942_s3 + $0x128] sm:$0xff] }
 0x33e   :  { %3219 = vst.msk [vmem:[%s18942_s3 + $0xf0] sm:$0xff] %vm629_vm4, %v3138_v13  ;;  %v3989_v22 = vadd.f32 %v3908_v17, %v3666_v12  ;;  %v3139_v23 = vadd.f32 %v3058_v19, %v2824_v18  ;;  %v9351_v24 = vpop.f32.mrb[51].mxu1  ;;  %v9513_v25 = vpop.f32.mrb[51].mxu0 }
 0x33f   :  { %v3909_v26 = vld [vmem:[%s18942_s3 + $0xe8] sm:$0xff]  ;;  %v3065_v25 = vld [vmem:[%s18942_s3 + $0x130] sm:$0xff] }
 0x340   :  { %4070 = vst.msk [vmem:[%s18942_s3 + $0xe0] sm:$0xff] %vm629_vm4, %v3989_v22  ;;  %3220 = vst.msk [vmem:[%s18942_s3 + $0xf8] sm:$0xff] %vm629_vm4, %v3139_v23  ;;  %v3990_v6 = vadd.f32 %v3909_v26, %v3669_v20  ;;  %9625 = vmatmul.mubr.msk.bf16.gmra.mrb[156].mxu1 %vm138_vm3, %v4205_v16  ;;  %9787 = vmatmul.mubr.msk.bf16.vlgmr.msra.gmra.mrb[156].mxu0 %vm138_vm3, %v4205_v16  ;;  %v4133_v22 = vld [vmem:[%s18941_s0 + $0x64] sm:$0xff]  ;;  %v4134_v23 = vld [vmem:[%s18941_s0 + $0x6c] sm:$0xff] }
 0x341   :  { %10117 = vmatpush3.bf16.msra.mxu0 %v6930_v21  ;;  %9628 = vmatprep.mubr.msk.bf16.mxu1 %vm10291_vm2, %v10289_v0 }
 0x342   :  { %4071 = vst.msk [vmem:[%s18942_s3 + $0xe8] sm:$0xff] %vm629_vm4, %v3990_v6  ;;  %9790 = vmatprep.mubr.msk.bf16.mxu0 %vm10291_vm2, %v10289_v0 }
 0x343   :  { %v2829_v29 = vpop.f32.mrb[52].mxu1  ;;  %v3674_v31 = vpop.f32.mrb[52].mxu0 }
 0x344   :  { %v3140_v32 = vadd.f32 %v3059_v30, %v2829_v29  ;;  %v9354_v33 = vpop.f32.mrb[53].mxu1  ;;  %v9516_v34 = vpop.f32.mrb[53].mxu0  ;;  %v4209_v29 = vpack.c.bf16 %v4134_v23, %v4133_v22 }
 0x345   :  { %v3910_v36 = vld [vmem:[%s18942_s3 + $0xf0] sm:$0xff]  ;;  %v2832_v37 = vpop.f32.mrb[54].mxu1  ;;  %v3677_v39 = vpop.f32.mrb[54].mxu0 }
 0x346   :  { %3221 = vst.msk [vmem:[%s18942_s3 + $0x100] sm:$0xff] %vm629_vm4, %v3140_v32  ;;  %v3991_v40 = vadd.f32 %v3910_v36, %v3674_v31  ;;  %v3141_v41 = vadd.f32 %v3060_v38, %v2832_v37  ;;  %v9355_v42 = vpop.f32.mrb[55].mxu1  ;;  %v9517_v43 = vpop.f32.mrb[55].mxu0  ;;  %v3066_v32 = vld [vmem:[%s18942_s3 + $0x138] sm:$0xff] }
 0x347   :  { %v3911_v44 = vld [vmem:[%s18942_s3 + $0xf8] sm:$0xff]  ;;  %v3067_v43 = vld [vmem:[%s18942_s3 + $0x140] sm:$0xff] }
 0x348   :  { %4072 = vst.msk [vmem:[%s18942_s3 + $0xf0] sm:$0xff] %vm629_vm4, %v3991_v40  ;;  %3222 = vst.msk [vmem:[%s18942_s3 + $0x108] sm:$0xff] %vm629_vm4, %v3141_v41  ;;  %v3992_v45 = vadd.f32 %v3911_v44, %v3677_v39  ;;  %9629 = vmatmul.mubr.msk.bf16.gmra.mrb[160].mxu1 %vm138_vm3, %v4206_v35  ;;  %9791 = vmatmul.mubr.msk.bf16.gmra.mrb[160].mxu0 %vm138_vm3, %v4206_v35  ;;  %v4135_v40 = vld [vmem:[%s18941_s0 + $0x74] sm:$0xff]  ;;  %v4136_v41 = vld [vmem:[%s18941_s0 + $0x7c] sm:$0xff] }
 0x349   :  { %9632 = vmatprep.mubr.msk.bf16.mxu1 %vm10291_vm2, %v10289_v0  ;;  %9794 = vmatprep.mubr.msk.bf16.mxu0 %vm10291_vm2, %v10289_v0 }
 0x34a   :  { %4073 = vst.msk [vmem:[%s18942_s3 + $0xf8] sm:$0xff] %vm629_vm4, %v3992_v45 }
 0x34b   :  { %v2837_v48 = vpop.f32.mrb[56].mxu1  ;;  %v3682_v50 = vpop.f32.mrb[56].mxu0 }
 0x34c   :  { %v3142_v51 = vadd.f32 %v3061_v49, %v2837_v48  ;;  %v9358_v52 = vpop.f32.mrb[57].mxu1  ;;  %v9520_v53 = vpop.f32.mrb[57].mxu0  ;;  %v4210_v48 = vpack.c.bf16 %v4136_v41, %v4135_v40 }
 0x34d   :  { %v3912_v55 = vld [vmem:[%s18942_s3 + $0x100] sm:$0xff]  ;;  %v2840_v56 = vpop.f32.mrb[58].mxu1  ;;  %v3685_v58 = vpop.f32.mrb[58].mxu0 }
 0x34e   :  { %3223 = vst.msk [vmem:[%s18942_s3 + $0x110] sm:$0xff] %vm629_vm4, %v3142_v51  ;;  %v3993_v59 = vadd.f32 %v3912_v55, %v3682_v50  ;;  %v3143_v60 = vadd.f32 %v3062_v57, %v2840_v56  ;;  %v9359_v61 = vpop.f32.mrb[59].mxu1  ;;  %v9521_v62 = vpop.f32.mrb[59].mxu0  ;;  %v3068_v51 = vld [vmem:[%s18942_s3 + $0x148] sm:$0xff] }
 0x34f   :  { %v3913_v63 = vld [vmem:[%s18942_s3 + $0x108] sm:$0xff]  ;;  %v3069_v62 = vld [vmem:[%s18942_s3 + $0x150] sm:$0xff] }
 0x350   :  { %4074 = vst.msk [vmem:[%s18942_s3 + $0x100] sm:$0xff] %vm629_vm4, %v3993_v59  ;;  %3224 = vst.msk [vmem:[%s18942_s3 + $0x118] sm:$0xff] %vm629_vm4, %v3143_v60  ;;  %v3994_v1 = vadd.f32 %v3913_v63, %v3685_v58  ;;  %9633 = vmatmul.mubr.msk.bf16.gmra.mrb[164].mxu1 %vm138_vm3, %v4207_v54  ;;  %9795 = vmatmul.mubr.msk.bf16.gmra.mrb[164].mxu0 %vm138_vm3, %v4207_v54  ;;  %v4137_v59 = vld [vmem:[%s18941_s0 + $0x84] sm:$0xff]  ;;  %v4138_v60 = vld [vmem:[%s18941_s0 + $0x8c] sm:$0xff] }
 0x351   :  { %9636 = vmatprep.mubr.msk.bf16.mxu1 %vm10291_vm2, %v10289_v0  ;;  %9798 = vmatprep.mubr.msk.bf16.mxu0 %vm10291_vm2, %v10289_v0 }
 0x352   :  { %4075 = vst.msk [vmem:[%s18942_s3 + $0x108] sm:$0xff] %vm629_vm4, %v3994_v1 }
 0x353   :  { %v2845_v4 = vpop.f32.mrb[60].mxu1  ;;  %v3690_v7 = vpop.f32.mrb[60].mxu0 }
 0x354   :  { %v3144_v8 = vadd.f32 %v3063_v5, %v2845_v4  ;;  %v9362_v9 = vpop.f32.mrb[61].mxu1  ;;  %v9524_v10 = vpop.f32.mrb[61].mxu0  ;;  %v4211_v4 = vpack.c.bf16 %v4138_v60, %v4137_v59 }
 0x355   :  { %v3914_v12 = vld [vmem:[%s18942_s3 + $0x110] sm:$0xff]  ;;  %v2848_v13 = vpop.f32.mrb[62].mxu1  ;;  %v3693_v15 = vpop.f32.mrb[62].mxu0 }
 0x356   :  { %3225 = vst.msk [vmem:[%s18942_s3 + $0x120] sm:$0xff] %vm629_vm4, %v3144_v8  ;;  %v3995_v16 = vadd.f32 %v3914_v12, %v3690_v7  ;;  %v3145_v17 = vadd.f32 %v3064_v14, %v2848_v13  ;;  %v9363_v18 = vpop.f32.mrb[63].mxu1  ;;  %v9525_v19 = vpop.f32.mrb[63].mxu0  ;;  %v3070_v8 = vld [vmem:[%s18942_s3 + $0x158] sm:$0xff] }
 0x357   :  { %v3915_v20 = vld [vmem:[%s18942_s3 + $0x118] sm:$0xff]  ;;  %v3071_v19 = vld [vmem:[%s18942_s3 + $0x160] sm:$0xff] }
 0x358   :  { %4076 = vst.msk [vmem:[%s18942_s3 + $0x110] sm:$0xff] %vm629_vm4, %v3995_v16  ;;  %3226 = vst.msk [vmem:[%s18942_s3 + $0x128] sm:$0xff] %vm629_vm4, %v3145_v17  ;;  %v3996_v21 = vadd.f32 %v3915_v20, %v3693_v15  ;;  %9637 = vmatmul.mubr.msk.bf16.gmra.mrb[168].mxu1 %vm138_vm3, %v4208_v11  ;;  %9799 = vmatmul.mubr.msk.bf16.gmra.mrb[168].mxu0 %vm138_vm3, %v4208_v11  ;;  %v4139_v16 = vld [vmem:[%s18941_s0 + $0x94] sm:$0xff]  ;;  %v4140_v17 = vld [vmem:[%s18941_s0 + $0x9c] sm:$0xff] }
 0x359   :  { %9640 = vmatprep.mubr.msk.bf16.mxu1 %vm10291_vm2, %v10289_v0  ;;  %9802 = vmatprep.mubr.msk.bf16.mxu0 %vm10291_vm2, %v10289_v0 }
 0x35a   :  { %4077 = vst.msk [vmem:[%s18942_s3 + $0x118] sm:$0xff] %vm629_vm4, %v3996_v21 }
 0x35b   :  { %v2853_v24 = vpop.f32.mrb[64].mxu1  ;;  %v3698_v26 = vpop.f32.mrb[64].mxu0 }
 0x35c   :  { %v3146_v6 = vadd.f32 %v3065_v25, %v2853_v24  ;;  %v9366_v27 = vpop.f32.mrb[65].mxu1  ;;  %v9528_v28 = vpop.f32.mrb[65].mxu0  ;;  %v4212_v24 = vpack.c.bf16 %v4140_v17, %v4139_v16 }
 0x35d   :  { %v3916_v30 = vld [vmem:[%s18942_s3 + $0x120] sm:$0xff]  ;;  %v2856_v31 = vpop.f32.mrb[66].mxu1  ;;  %v3701_v33 = vpop.f32.mrb[66].mxu0 }
 0x35e   :  { %3227 = vst.msk [vmem:[%s18942_s3 + $0x130] sm:$0xff] %vm629_vm4, %v3146_v6  ;;  %v3997_v34 = vadd.f32 %v3916_v30, %v3698_v26  ;;  %v3147_v35 = vadd.f32 %v3066_v32, %v2856_v31  ;;  %v9367_v36 = vpop.f32.mrb[67].mxu1  ;;  %v9529_v37 = vpop.f32.mrb[67].mxu0  ;;  %v3072_v6 = vld [vmem:[%s18942_s3 + $0x168] sm:$0xff] }
 0x35f   :  { %v3917_v38 = vld [vmem:[%s18942_s3 + $0x128] sm:$0xff]  ;;  %v3073_v37 = vld [vmem:[%s18942_s3 + $0x170] sm:$0xff] }
 0x360   :  { %4078 = vst.msk [vmem:[%s18942_s3 + $0x120] sm:$0xff] %vm629_vm4, %v3997_v34  ;;  %3228 = vst.msk [vmem:[%s18942_s3 + $0x138] sm:$0xff] %vm629_vm4, %v3147_v35  ;;  %v3998_v39 = vadd.f32 %v3917_v38, %v3701_v33  ;;  %9641 = vmatmul.mubr.msk.bf16.gmra.mrb[172].mxu1 %vm138_vm3, %v4209_v29  ;;  %9803 = vmatmul.mubr.msk.bf16.gmra.mrb[172].mxu0 %vm138_vm3, %v4209_v29  ;;  %v4141_v34 = vld [vmem:[%s18941_s0 + $0xa4] sm:$0xff]  ;;  %v4142_v35 = vld [vmem:[%s18941_s0 + $0xac] sm:$0xff] }
 0x361   :  { %9644 = vmatprep.mubr.msk.bf16.mxu1 %vm10291_vm2, %v10289_v0  ;;  %9806 = vmatprep.mubr.msk.bf16.mxu0 %vm10291_vm2, %v10289_v0 }
 0x362   :  { %4079 = vst.msk [vmem:[%s18942_s3 + $0x128] sm:$0xff] %vm629_vm4, %v3998_v39 }
 0x363   :  { %v2861_v42 = vpop.f32.mrb[68].mxu1  ;;  %v3706_v44 = vpop.f32.mrb[68].mxu0 }
 0x364   :  { %v3148_v45 = vadd.f32 %v3067_v43, %v2861_v42  ;;  %v9370_v46 = vpop.f32.mrb[69].mxu1  ;;  %v9532_v47 = vpop.f32.mrb[69].mxu0  ;;  %v4213_v42 = vpack.c.bf16 %v4142_v35, %v4141_v34 }
 0x365   :  { %v3918_v49 = vld [vmem:[%s18942_s3 + $0x130] sm:$0xff]  ;;  %v2864_v50 = vpop.f32.mrb[70].mxu1  ;;  %v3709_v52 = vpop.f32.mrb[70].mxu0 }
 0x366   :  { %3229 = vst.msk [vmem:[%s18942_s3 + $0x140] sm:$0xff] %vm629_vm4, %v3148_v45  ;;  %v3999_v53 = vadd.f32 %v3918_v49, %v3706_v44  ;;  %v3149_v54 = vadd.f32 %v3068_v51, %v2864_v50  ;;  %v9371_v55 = vpop.f32.mrb[71].mxu1  ;;  %v9533_v56 = vpop.f32.mrb[71].mxu0  ;;  %v3074_v45 = vld [vmem:[%s18942_s3 + $0x178] sm:$0xff] }
 0x367   :  { %v3919_v57 = vld [vmem:[%s18942_s3 + $0x138] sm:$0xff]  ;;  %v3075_v56 = vld [vmem:[%s18942_s3 + $0x180] sm:$0xff] }
 0x368   :  { %4080 = vst.msk [vmem:[%s18942_s3 + $0x130] sm:$0xff] %vm629_vm4, %v3999_v53  ;;  %3230 = vst.msk [vmem:[%s18942_s3 + $0x148] sm:$0xff] %vm629_vm4, %v3149_v54  ;;  %v4000_v58 = vadd.f32 %v3919_v57, %v3709_v52  ;;  %9645 = vmatmul.mubr.msk.bf16.gmra.mrb[176].mxu1 %vm138_vm3, %v4210_v48  ;;  %9807 = vmatmul.mubr.msk.bf16.gmra.mrb[176].mxu0 %vm138_vm3, %v4210_v48  ;;  %v4143_v53 = vld [vmem:[%s18941_s0 + $0xb4] sm:$0xff]  ;;  %v4144_v54 = vld [vmem:[%s18941_s0 + $0xbc] sm:$0xff] }
 0x369   :  { %9648 = vmatprep.mubr.msk.bf16.mxu1 %vm10291_vm2, %v10289_v0  ;;  %9810 = vmatprep.mubr.msk.bf16.mxu0 %vm10291_vm2, %v10289_v0 }
 0x36a   :  { %4081 = vst.msk [vmem:[%s18942_s3 + $0x138] sm:$0xff] %vm629_vm4, %v4000_v58 }
 0x36b   :  { %v2869_v61 = vpop.f32.mrb[72].mxu1  ;;  %v3714_v63 = vpop.f32.mrb[72].mxu0 }
 0x36c   :  { %v3150_v1 = vadd.f32 %v3069_v62, %v2869_v61  ;;  %v9374_v2 = vpop.f32.mrb[73].mxu1  ;;  %v9536_v3 = vpop.f32.mrb[73].mxu0  ;;  %v4214_v61 = vpack.c.bf16 %v4144_v54, %v4143_v53 }
 0x36d   :  { %v3920_v5 = vld [vmem:[%s18942_s3 + $0x140] sm:$0xff]  ;;  %v2872_v7 = vpop.f32.mrb[74].mxu1  ;;  %v3717_v9 = vpop.f32.mrb[74].mxu0 }
 0x36e   :  { %3231 = vst.msk [vmem:[%s18942_s3 + $0x150] sm:$0xff] %vm629_vm4, %v3150_v1  ;;  %v4001_v10 = vadd.f32 %v3920_v5, %v3714_v63  ;;  %v3151_v11 = vadd.f32 %v3070_v8, %v2872_v7  ;;  %v9375_v12 = vpop.f32.mrb[75].mxu1  ;;  %v9537_v13 = vpop.f32.mrb[75].mxu0  ;;  %v3076_v1 = vld [vmem:[%s18942_s3 + $0x188] sm:$0xff] }
 0x36f   :  { %v3921_v14 = vld [vmem:[%s18942_s3 + $0x148] sm:$0xff]  ;;  %v3077_v13 = vld [vmem:[%s18942_s3 + $0x190] sm:$0xff] }
 0x370   :  { %4082 = vst.msk [vmem:[%s18942_s3 + $0x140] sm:$0xff] %vm629_vm4, %v4001_v10  ;;  %3232 = vst.msk [vmem:[%s18942_s3 + $0x158] sm:$0xff] %vm629_vm4, %v3151_v11  ;;  %v4002_v15 = vadd.f32 %v3921_v14, %v3717_v9  ;;  %9649 = vmatmul.mubr.msk.bf16.gmra.mrb[180].mxu1 %vm138_vm3, %v4211_v4  ;;  %9811 = vmatmul.mubr.msk.bf16.gmra.mrb[180].mxu0 %vm138_vm3, %v4211_v4  ;;  %v4145_v10 = vld [vmem:[%s18941_s0 + $0xc4] sm:$0xff]  ;;  %v4146_v11 = vld [vmem:[%s18941_s0 + $0xcc] sm:$0xff] }
 0x371   :  { %9652 = vmatprep.mubr.msk.bf16.mxu1 %vm10291_vm2, %v10289_v0  ;;  %9814 = vmatprep.mubr.msk.bf16.mxu0 %vm10291_vm2, %v10289_v0 }
 0x372   :  { %4083 = vst.msk [vmem:[%s18942_s3 + $0x148] sm:$0xff] %vm629_vm4, %v4002_v15 }
 0x373   :  { %v2877_v18 = vpop.f32.mrb[76].mxu1  ;;  %v3722_v20 = vpop.f32.mrb[76].mxu0 }
 0x374   :  { %v3152_v21 = vadd.f32 %v3071_v19, %v2877_v18  ;;  %v9378_v22 = vpop.f32.mrb[77].mxu1  ;;  %v9540_v23 = vpop.f32.mrb[77].mxu0  ;;  %v4215_v18 = vpack.c.bf16 %v4146_v11, %v4145_v10 }
 0x375   :  { %v3922_v25 = vld [vmem:[%s18942_s3 + $0x150] sm:$0xff]  ;;  %v2880_v26 = vpop.f32.mrb[78].mxu1  ;;  %v3725_v27 = vpop.f32.mrb[78].mxu0 }
 0x376   :  { %3233 = vst.msk [vmem:[%s18942_s3 + $0x160] sm:$0xff] %vm629_vm4, %v3152_v21  ;;  %v4003_v28 = vadd.f32 %v3922_v25, %v3722_v20  ;;  %v3153_v29 = vadd.f32 %v3072_v6, %v2880_v26  ;;  %v9379_v30 = vpop.f32.mrb[79].mxu1  ;;  %v9541_v31 = vpop.f32.mrb[79].mxu0  ;;  %v3078_v21 = vld [vmem:[%s18942_s3 + $0x198] sm:$0xff] }
 0x377   :  { %v3923_v32 = vld [vmem:[%s18942_s3 + $0x158] sm:$0xff]  ;;  %v3079_v31 = vld [vmem:[%s18942_s3 + $0x1a0] sm:$0xff] }
 0x378   :  { %4084 = vst.msk [vmem:[%s18942_s3 + $0x150] sm:$0xff] %vm629_vm4, %v4003_v28  ;;  %3234 = vst.msk [vmem:[%s18942_s3 + $0x168] sm:$0xff] %vm629_vm4, %v3153_v29  ;;  %v4004_v33 = vadd.f32 %v3923_v32, %v3725_v27  ;;  %9653 = vmatmul.mubr.msk.bf16.gmra.mrb[184].mxu1 %vm138_vm3, %v4212_v24  ;;  %9815 = vmatmul.mubr.msk.bf16.gmra.mrb[184].mxu0 %vm138_vm3, %v4212_v24  ;;  %v4147_v28 = vld [vmem:[%s18941_s0 + $0xd4] sm:$0xff]  ;;  %v4148_v29 = vld [vmem:[%s18941_s0 + $0xdc] sm:$0xff] }
 0x379   :  { %9656 = vmatprep.mubr.msk.bf16.mxu1 %vm10291_vm2, %v10289_v0  ;;  %9818 = vmatprep.mubr.msk.bf16.mxu0 %vm10291_vm2, %v10289_v0 }
 0x37a   :  { %4085 = vst.msk [vmem:[%s18942_s3 + $0x158] sm:$0xff] %vm629_vm4, %v4004_v33 }
 0x37b   :  { %v2885_v36 = vpop.f32.mrb[80].mxu1  ;;  %v3730_v38 = vpop.f32.mrb[80].mxu0 }
 0x37c   :  { %v3154_v39 = vadd.f32 %v3073_v37, %v2885_v36  ;;  %v9382_v40 = vpop.f32.mrb[81].mxu1  ;;  %v9544_v41 = vpop.f32.mrb[81].mxu0  ;;  %v4216_v36 = vpack.c.bf16 %v4148_v29, %v4147_v28 }
 0x37d   :  { %v3924_v43 = vld [vmem:[%s18942_s3 + $0x160] sm:$0xff]  ;;  %v2888_v44 = vpop.f32.mrb[82].mxu1  ;;  %v3733_v46 = vpop.f32.mrb[82].mxu0 }
 0x37e   :  { %3235 = vst.msk [vmem:[%s18942_s3 + $0x170] sm:$0xff] %vm629_vm4, %v3154_v39  ;;  %v4005_v47 = vadd.f32 %v3924_v43, %v3730_v38  ;;  %v3155_v48 = vadd.f32 %v3074_v45, %v2888_v44  ;;  %v9383_v49 = vpop.f32.mrb[83].mxu1  ;;  %v9545_v50 = vpop.f32.mrb[83].mxu0  ;;  %v3080_v39 = vld [vmem:[%s18942_s3 + $0x1a8] sm:$0xff] }
 0x37f   :  { %v3925_v51 = vld [vmem:[%s18942_s3 + $0x168] sm:$0xff]  ;;  %v3081_v50 = vld [vmem:[%s18942_s3 + $0x1b0] sm:$0xff] }
 0x380   :  { %4086 = vst.msk [vmem:[%s18942_s3 + $0x160] sm:$0xff] %vm629_vm4, %v4005_v47  ;;  %3236 = vst.msk [vmem:[%s18942_s3 + $0x178] sm:$0xff] %vm629_vm4, %v3155_v48  ;;  %v4006_v52 = vadd.f32 %v3925_v51, %v3733_v46  ;;  %9657 = vmatmul.mubr.msk.bf16.gmra.mrb[188].mxu1 %vm138_vm3, %v4213_v42  ;;  %9819 = vmatmul.mubr.msk.bf16.gmra.mrb[188].mxu0 %vm138_vm3, %v4213_v42  ;;  %v4149_v47 = vld [vmem:[%s18941_s0 + $0xe4] sm:$0xff]  ;;  %v4150_v48 = vld [vmem:[%s18941_s0 + $0xec] sm:$0xff] }
 0x381   :  { %9660 = vmatprep.mubr.msk.bf16.mxu1 %vm10291_vm2, %v10289_v0  ;;  %9822 = vmatprep.mubr.msk.bf16.mxu0 %vm10291_vm2, %v10289_v0 }
 0x382   :  { %4087 = vst.msk [vmem:[%s18942_s3 + $0x168] sm:$0xff] %vm629_vm4, %v4006_v52 }
 0x383   :  { %v2893_v55 = vpop.f32.mrb[84].mxu1  ;;  %v3738_v57 = vpop.f32.mrb[84].mxu0 }
 0x384   :  { %v3156_v58 = vadd.f32 %v3075_v56, %v2893_v55  ;;  %v9386_v59 = vpop.f32.mrb[85].mxu1  ;;  %v9548_v60 = vpop.f32.mrb[85].mxu0  ;;  %v4217_v55 = vpack.c.bf16 %v4150_v48, %v4149_v47 }
 0x385   :  { %v3926_v62 = vld [vmem:[%s18942_s3 + $0x170] sm:$0xff]  ;;  %v2896_v63 = vpop.f32.mrb[86].mxu1  ;;  %v3741_v2 = vpop.f32.mrb[86].mxu0 }
 0x386   :  { %3237 = vst.msk [vmem:[%s18942_s3 + $0x180] sm:$0xff] %vm629_vm4, %v3156_v58  ;;  %v4007_v3 = vadd.f32 %v3926_v62, %v3738_v57  ;;  %v3157_v4 = vadd.f32 %v3076_v1, %v2896_v63  ;;  %v9387_v5 = vpop.f32.mrb[87].mxu1  ;;  %v9549_v7 = vpop.f32.mrb[87].mxu0  ;;  %v3082_v58 = vld [vmem:[%s18942_s3 + $0x1b8] sm:$0xff] }
 0x387   :  { %v3927_v8 = vld [vmem:[%s18942_s3 + $0x178] sm:$0xff]  ;;  %v3083_v7 = vld [vmem:[%s18942_s3 + $0x1c0] sm:$0xff] }
 0x388   :  { %4088 = vst.msk [vmem:[%s18942_s3 + $0x170] sm:$0xff] %vm629_vm4, %v4007_v3  ;;  %3238 = vst.msk [vmem:[%s18942_s3 + $0x188] sm:$0xff] %vm629_vm4, %v3157_v4  ;;  %v4008_v9 = vadd.f32 %v3927_v8, %v3741_v2  ;;  %9661 = vmatmul.mubr.msk.bf16.gmra.mrb[192].mxu1 %vm138_vm3, %v4214_v61  ;;  %9823 = vmatmul.mubr.msk.bf16.gmra.mrb[192].mxu0 %vm138_vm3, %v4214_v61  ;;  %v4151_v3 = vld [vmem:[%s18941_s0 + $0xf4] sm:$0xff]  ;;  %v4152_v4 = vld [vmem:[%s18941_s0 + $0xfc] sm:$0xff] }
 0x389   :  { %9664 = vmatprep.mubr.msk.bf16.mxu1 %vm10291_vm2, %v10289_v0  ;;  %9826 = vmatprep.mubr.msk.bf16.mxu0 %vm10291_vm2, %v10289_v0 }
 0x38a   :  { %4089 = vst.msk [vmem:[%s18942_s3 + $0x178] sm:$0xff] %vm629_vm4, %v4008_v9 }
 0x38b   :  { %v2901_v12 = vpop.f32.mrb[88].mxu1  ;;  %v3746_v14 = vpop.f32.mrb[88].mxu0 }
 0x38c   :  { %v3158_v15 = vadd.f32 %v3077_v13, %v2901_v12  ;;  %v9390_v16 = vpop.f32.mrb[89].mxu1  ;;  %v9552_v17 = vpop.f32.mrb[89].mxu0  ;;  %v4218_v12 = vpack.c.bf16 %v4152_v4, %v4151_v3 }
 0x38d   :  { %v3928_v19 = vld [vmem:[%s18942_s3 + $0x180] sm:$0xff]  ;;  %v2904_v20 = vpop.f32.mrb[90].mxu1  ;;  %v3749_v22 = vpop.f32.mrb[90].mxu0 }
 0x38e   :  { %3239 = vst.msk [vmem:[%s18942_s3 + $0x190] sm:$0xff] %vm629_vm4, %v3158_v15  ;;  %v4009_v23 = vadd.f32 %v3928_v19, %v3746_v14  ;;  %v3159_v24 = vadd.f32 %v3078_v21, %v2904_v20  ;;  %v9391_v25 = vpop.f32.mrb[91].mxu1  ;;  %v9553_v26 = vpop.f32.mrb[91].mxu0  ;;  %v3084_v15 = vld [vmem:[%s18942_s3 + $0x1c8] sm:$0xff] }
 0x38f   :  { %v3929_v6 = vld [vmem:[%s18942_s3 + $0x188] sm:$0xff]  ;;  %v3085_v26 = vld [vmem:[%s18942_s3 + $0x1d0] sm:$0xff] }
 0x390   :  { %4090 = vst.msk [vmem:[%s18942_s3 + $0x180] sm:$0xff] %vm629_vm4, %v4009_v23  ;;  %3240 = vst.msk [vmem:[%s18942_s3 + $0x198] sm:$0xff] %vm629_vm4, %v3159_v24  ;;  %v4010_v27 = vadd.f32 %v3929_v6, %v3749_v22  ;;  %9665 = vmatmul.mubr.msk.bf16.gmra.mrb[196].mxu1 %vm138_vm3, %v4215_v18  ;;  %9827 = vmatmul.mubr.msk.bf16.gmra.mrb[196].mxu0 %vm138_vm3, %v4215_v18  ;;  %v4153_v23 = vld [vmem:[%s18941_s0 + $0x104] sm:$0xff]  ;;  %v4154_v24 = vld [vmem:[%s18941_s0 + $0x10c] sm:$0xff] }
 0x391   :  { %9668 = vmatprep.mubr.msk.bf16.mxu1 %vm10291_vm2, %v10289_v0  ;;  %9830 = vmatprep.mubr.msk.bf16.mxu0 %vm10291_vm2, %v10289_v0 }
 0x392   :  { %4091 = vst.msk [vmem:[%s18942_s3 + $0x188] sm:$0xff] %vm629_vm4, %v4010_v27 }
 0x393   :  { %v2909_v30 = vpop.f32.mrb[92].mxu1  ;;  %v3754_v32 = vpop.f32.mrb[92].mxu0 }
 0x394   :  { %v3160_v33 = vadd.f32 %v3079_v31, %v2909_v30  ;;  %v9394_v34 = vpop.f32.mrb[93].mxu1  ;;  %v9556_v35 = vpop.f32.mrb[93].mxu0  ;;  %v4219_v30 = vpack.c.bf16 %v4154_v24, %v4153_v23 }
 0x395   :  { %v3930_v37 = vld [vmem:[%s18942_s3 + $0x190] sm:$0xff]  ;;  %v2912_v38 = vpop.f32.mrb[94].mxu1  ;;  %v3757_v40 = vpop.f32.mrb[94].mxu0 }
 0x396   :  { %3241 = vst.msk [vmem:[%s18942_s3 + $0x1a0] sm:$0xff] %vm629_vm4, %v3160_v33  ;;  %v4011_v41 = vadd.f32 %v3930_v37, %v3754_v32  ;;  %v3161_v42 = vadd.f32 %v3080_v39, %v2912_v38  ;;  %v9395_v43 = vpop.f32.mrb[95].mxu1  ;;  %v9557_v44 = vpop.f32.mrb[95].mxu0  ;;  %v3086_v33 = vld [vmem:[%s18942_s3 + $0x1d8] sm:$0xff] }
 0x397   :  { %v3931_v45 = vld [vmem:[%s18942_s3 + $0x198] sm:$0xff]  ;;  %v3087_v44 = vld [vmem:[%s18942_s3 + $0x1e0] sm:$0xff] }
 0x398   :  { %4092 = vst.msk [vmem:[%s18942_s3 + $0x190] sm:$0xff] %vm629_vm4, %v4011_v41  ;;  %3242 = vst.msk [vmem:[%s18942_s3 + $0x1a8] sm:$0xff] %vm629_vm4, %v3161_v42  ;;  %v4012_v46 = vadd.f32 %v3931_v45, %v3757_v40  ;;  %9669 = vmatmul.mubr.msk.bf16.gmra.mrb[200].mxu1 %vm138_vm3, %v4216_v36  ;;  %9831 = vmatmul.mubr.msk.bf16.gmra.mrb[200].mxu0 %vm138_vm3, %v4216_v36  ;;  %v4155_v41 = vld [vmem:[%s18941_s0 + $0x114] sm:$0xff]  ;;  %v4156_v42 = vld [vmem:[%s18941_s0 + $0x11c] sm:$0xff] }
 0x399   :  { %9672 = vmatprep.mubr.msk.bf16.mxu1 %vm10291_vm2, %v10289_v0  ;;  %9834 = vmatprep.mubr.msk.bf16.mxu0 %vm10291_vm2, %v10289_v0 }
 0x39a   :  { %4093 = vst.msk [vmem:[%s18942_s3 + $0x198] sm:$0xff] %vm629_vm4, %v4012_v46 }
 0x39b   :  { %v2917_v49 = vpop.f32.mrb[96].mxu1  ;;  %v3762_v51 = vpop.f32.mrb[96].mxu0 }
 0x39c   :  { %v3162_v52 = vadd.f32 %v3081_v50, %v2917_v49  ;;  %v9398_v53 = vpop.f32.mrb[97].mxu1  ;;  %v9560_v54 = vpop.f32.mrb[97].mxu0  ;;  %v4220_v49 = vpack.c.bf16 %v4156_v42, %v4155_v41 }
 0x39d   :  { %v3932_v56 = vld [vmem:[%s18942_s3 + $0x1a0] sm:$0xff]  ;;  %v2920_v57 = vpop.f32.mrb[98].mxu1  ;;  %v3765_v59 = vpop.f32.mrb[98].mxu0 }
 0x39e   :  { %3243 = vst.msk [vmem:[%s18942_s3 + $0x1b0] sm:$0xff] %vm629_vm4, %v3162_v52  ;;  %v4013_v60 = vadd.f32 %v3932_v56, %v3762_v51  ;;  %v3163_v61 = vadd.f32 %v3082_v58, %v2920_v57  ;;  %v9399_v62 = vpop.f32.mrb[99].mxu1  ;;  %v9561_v63 = vpop.f32.mrb[99].mxu0  ;;  %v3088_v52 = vld [vmem:[%s18942_s3 + $0x1e8] sm:$0xff] }
 0x39f   :  { %v3933_v1 = vld [vmem:[%s18942_s3 + $0x1a8] sm:$0xff]  ;;  %v3089_v63 = vld [vmem:[%s18942_s3 + $0x1f0] sm:$0xff] }
 0x3a0   :  { %4094 = vst.msk [vmem:[%s18942_s3 + $0x1a0] sm:$0xff] %vm629_vm4, %v4013_v60  ;;  %3244 = vst.msk [vmem:[%s18942_s3 + $0x1b8] sm:$0xff] %vm629_vm4, %v3163_v61  ;;  %v4014_v2 = vadd.f32 %v3933_v1, %v3765_v59  ;;  %9673 = vmatmul.mubr.msk.bf16.gmra.mrb[204].mxu1 %vm138_vm3, %v4217_v55  ;;  %9835 = vmatmul.mubr.msk.bf16.gmra.mrb[204].mxu0 %vm138_vm3, %v4217_v55  ;;  %v4157_v60 = vld [vmem:[%s18941_s0 + $0x124] sm:$0xff]  ;;  %v4158_v61 = vld [vmem:[%s18941_s0 + $0x12c] sm:$0xff] }
 0x3a1   :  { %9676 = vmatprep.mubr.msk.bf16.mxu1 %vm10291_vm2, %v10289_v0  ;;  %9838 = vmatprep.mubr.msk.bf16.mxu0 %vm10291_vm2, %v10289_v0 }
 0x3a2   :  { %4095 = vst.msk [vmem:[%s18942_s3 + $0x1a8] sm:$0xff] %vm629_vm4, %v4014_v2 }
 0x3a3   :  { %v2925_v5 = vpop.f32.mrb[100].mxu1  ;;  %v3770_v8 = vpop.f32.mrb[100].mxu0 }
 0x3a4   :  { %v3164_v9 = vadd.f32 %v3083_v7, %v2925_v5  ;;  %v9402_v10 = vpop.f32.mrb[101].mxu1  ;;  %v9564_v11 = vpop.f32.mrb[101].mxu0  ;;  %v4221_v5 = vpack.c.bf16 %v4158_v61, %v4157_v60 }
 0x3a5   :  { %v3934_v13 = vld [vmem:[%s18942_s3 + $0x1b0] sm:$0xff]  ;;  %v2928_v14 = vpop.f32.mrb[102].mxu1  ;;  %v3773_v16 = vpop.f32.mrb[102].mxu0 }
 0x3a6   :  { %3245 = vst.msk [vmem:[%s18942_s3 + $0x1c0] sm:$0xff] %vm629_vm4, %v3164_v9  ;;  %v4015_v17 = vadd.f32 %v3934_v13, %v3770_v8  ;;  %v3165_v18 = vadd.f32 %v3084_v15, %v2928_v14  ;;  %v9403_v19 = vpop.f32.mrb[103].mxu1  ;;  %v9565_v20 = vpop.f32.mrb[103].mxu0  ;;  %v3090_v9 = vld [vmem:[%s18942_s3 + $0x1f8] sm:$0xff] }
 0x3a7   :  { %v3935_v21 = vld [vmem:[%s18942_s3 + $0x1b8] sm:$0xff]  ;;  %v3091_v20 = vld [vmem:[%s18942_s3 + $0x200] sm:$0xff] }
 0x3a8   :  { %4096 = vst.msk [vmem:[%s18942_s3 + $0x1b0] sm:$0xff] %vm629_vm4, %v4015_v17  ;;  %3246 = vst.msk [vmem:[%s18942_s3 + $0x1c8] sm:$0xff] %vm629_vm4, %v3165_v18  ;;  %v4016_v22 = vadd.f32 %v3935_v21, %v3773_v16  ;;  %9677 = vmatmul.mubr.msk.bf16.gmra.mrb[208].mxu1 %vm138_vm3, %v4218_v12  ;;  %9839 = vmatmul.mubr.msk.bf16.gmra.mrb[208].mxu0 %vm138_vm3, %v4218_v12  ;;  %v4159_v17 = vld [vmem:[%s18941_s0 + $0x134] sm:$0xff]  ;;  %v4160_v18 = vld [vmem:[%s18941_s0 + $0x13c] sm:$0xff] }
 0x3a9   :  { %9680 = vmatprep.mubr.msk.bf16.mxu1 %vm10291_vm2, %v10289_v0  ;;  %9842 = vmatprep.mubr.msk.bf16.mxu0 %vm10291_vm2, %v10289_v0 }
 0x3aa   :  { %4097 = vst.msk [vmem:[%s18942_s3 + $0x1b8] sm:$0xff] %vm629_vm4, %v4016_v22 }
 0x3ab   :  { %v2933_v25 = vpop.f32.mrb[104].mxu1  ;;  %v3778_v6 = vpop.f32.mrb[104].mxu0 }
 0x3ac   :  { %v3166_v27 = vadd.f32 %v3085_v26, %v2933_v25  ;;  %v9406_v28 = vpop.f32.mrb[105].mxu1  ;;  %v9568_v29 = vpop.f32.mrb[105].mxu0  ;;  %v4222_v25 = vpack.c.bf16 %v4160_v18, %v4159_v17 }
 0x3ad   :  { %v3936_v31 = vld [vmem:[%s18942_s3 + $0x1c0] sm:$0xff]  ;;  %v2936_v32 = vpop.f32.mrb[106].mxu1  ;;  %v3781_v34 = vpop.f32.mrb[106].mxu0 }
 0x3ae   :  { %3247 = vst.msk [vmem:[%s18942_s3 + $0x1d0] sm:$0xff] %vm629_vm4, %v3166_v27  ;;  %v4017_v35 = vadd.f32 %v3936_v31, %v3778_v6  ;;  %v3167_v36 = vadd.f32 %v3086_v33, %v2936_v32  ;;  %v9407_v37 = vpop.f32.mrb[107].mxu1  ;;  %v9569_v38 = vpop.f32.mrb[107].mxu0  ;;  %v3092_v27 = vld [vmem:[%s18942_s3 + $0x208] sm:$0xff] }
 0x3af   :  { %v3937_v39 = vld [vmem:[%s18942_s3 + $0x1c8] sm:$0xff]  ;;  %v3093_v38 = vld [vmem:[%s18942_s3 + $0x210] sm:$0xff] }
 0x3b0   :  { %4098 = vst.msk [vmem:[%s18942_s3 + $0x1c0] sm:$0xff] %vm629_vm4, %v4017_v35  ;;  %3248 = vst.msk [vmem:[%s18942_s3 + $0x1d8] sm:$0xff] %vm629_vm4, %v3167_v36  ;;  %v4018_v40 = vadd.f32 %v3937_v39, %v3781_v34  ;;  %9681 = vmatmul.mubr.msk.bf16.gmra.mrb[212].mxu1 %vm138_vm3, %v4219_v30  ;;  %9843 = vmatmul.mubr.msk.bf16.gmra.mrb[212].mxu0 %vm138_vm3, %v4219_v30  ;;  %v4161_v35 = vld [vmem:[%s18941_s0 + $0x144] sm:$0xff]  ;;  %v4162_v36 = vld [vmem:[%s18941_s0 + $0x14c] sm:$0xff] }
 0x3b1   :  { %9684 = vmatprep.mubr.msk.bf16.mxu1 %vm10291_vm2, %v10289_v0  ;;  %9846 = vmatprep.mubr.msk.bf16.mxu0 %vm10291_vm2, %v10289_v0 }
 0x3b2   :  { %4099 = vst.msk [vmem:[%s18942_s3 + $0x1c8] sm:$0xff] %vm629_vm4, %v4018_v40 }
 0x3b3   :  { %v2941_v43 = vpop.f32.mrb[108].mxu1  ;;  %v3786_v45 = vpop.f32.mrb[108].mxu0 }
 0x3b4   :  { %v3168_v46 = vadd.f32 %v3087_v44, %v2941_v43  ;;  %v9410_v47 = vpop.f32.mrb[109].mxu1  ;;  %v9572_v48 = vpop.f32.mrb[109].mxu0  ;;  %v4223_v43 = vpack.c.bf16 %v4162_v36, %v4161_v35 }
 0x3b5   :  { %v3938_v50 = vld [vmem:[%s18942_s3 + $0x1d0] sm:$0xff]  ;;  %v2944_v51 = vpop.f32.mrb[110].mxu1  ;;  %v3789_v53 = vpop.f32.mrb[110].mxu0 }
 0x3b6   :  { %3249 = vst.msk [vmem:[%s18942_s3 + $0x1e0] sm:$0xff] %vm629_vm4, %v3168_v46  ;;  %v4019_v54 = vadd.f32 %v3938_v50, %v3786_v45  ;;  %v3169_v55 = vadd.f32 %v3088_v52, %v2944_v51  ;;  %v9411_v56 = vpop.f32.mrb[111].mxu1  ;;  %v9573_v57 = vpop.f32.mrb[111].mxu0  ;;  %v3094_v46 = vld [vmem:[%s18942_s3 + $0x218] sm:$0xff] }
 0x3b7   :  { %v3939_v58 = vld [vmem:[%s18942_s3 + $0x1d8] sm:$0xff]  ;;  %v3095_v57 = vld [vmem:[%s18942_s3 + $0x220] sm:$0xff] }
 0x3b8   :  { %4100 = vst.msk [vmem:[%s18942_s3 + $0x1d0] sm:$0xff] %vm629_vm4, %v4019_v54  ;;  %3250 = vst.msk [vmem:[%s18942_s3 + $0x1e8] sm:$0xff] %vm629_vm4, %v3169_v55  ;;  %v4020_v59 = vadd.f32 %v3939_v58, %v3789_v53  ;;  %9685 = vmatmul.mubr.msk.bf16.gmra.mrb[216].mxu1 %vm138_vm3, %v4220_v49  ;;  %9847 = vmatmul.mubr.msk.bf16.gmra.mrb[216].mxu0 %vm138_vm3, %v4220_v49  ;;  %v4163_v54 = vld [vmem:[%s18941_s0 + $0x154] sm:$0xff]  ;;  %v4164_v55 = vld [vmem:[%s18941_s0 + $0x15c] sm:$0xff] }
 0x3b9   :  { %9688 = vmatprep.mubr.msk.bf16.mxu1 %vm10291_vm2, %v10289_v0  ;;  %9850 = vmatprep.mubr.msk.bf16.mxu0 %vm10291_vm2, %v10289_v0 }
 0x3ba   :  { %4101 = vst.msk [vmem:[%s18942_s3 + $0x1d8] sm:$0xff] %vm629_vm4, %v4020_v59 }
 0x3bb   :  { %v2949_v62 = vpop.f32.mrb[112].mxu1  ;;  %v3794_v1 = vpop.f32.mrb[112].mxu0 }
 0x3bc   :  { %v3170_v2 = vadd.f32 %v3089_v63, %v2949_v62  ;;  %v9414_v3 = vpop.f32.mrb[113].mxu1  ;;  %v9576_v4 = vpop.f32.mrb[113].mxu0  ;;  %v4224_v62 = vpack.c.bf16 %v4164_v55, %v4163_v54 }
 0x3bd   :  { %v3940_v7 = vld [vmem:[%s18942_s3 + $0x1e0] sm:$0xff]  ;;  %v2952_v8 = vpop.f32.mrb[114].mxu1  ;;  %v3797_v10 = vpop.f32.mrb[114].mxu0 }
 0x3be   :  { %3251 = vst.msk [vmem:[%s18942_s3 + $0x1f0] sm:$0xff] %vm629_vm4, %v3170_v2  ;;  %v4021_v11 = vadd.f32 %v3940_v7, %v3794_v1  ;;  %v3171_v12 = vadd.f32 %v3090_v9, %v2952_v8  ;;  %v9415_v13 = vpop.f32.mrb[115].mxu1  ;;  %v9577_v14 = vpop.f32.mrb[115].mxu0  ;;  %v3096_v2 = vld [vmem:[%s18942_s3 + $0x228] sm:$0xff] }
 0x3bf   :  { %v3941_v15 = vld [vmem:[%s18942_s3 + $0x1e8] sm:$0xff]  ;;  %v3097_v14 = vld [vmem:[%s18942_s3 + $0x230] sm:$0xff] }
 0x3c0   :  { %4102 = vst.msk [vmem:[%s18942_s3 + $0x1e0] sm:$0xff] %vm629_vm4, %v4021_v11  ;;  %3252 = vst.msk [vmem:[%s18942_s3 + $0x1f8] sm:$0xff] %vm629_vm4, %v3171_v12  ;;  %v4022_v16 = vadd.f32 %v3941_v15, %v3797_v10  ;;  %9689 = vmatmul.mubr.msk.bf16.gmra.mrb[220].mxu1 %vm138_vm3, %v4221_v5  ;;  %9851 = vmatmul.mubr.msk.bf16.gmra.mrb[220].mxu0 %vm138_vm3, %v4221_v5  ;;  %v4165_v11 = vld [vmem:[%s18941_s0 + $0x164] sm:$0xff]  ;;  %v4166_v12 = vld [vmem:[%s18941_s0 + $0x16c] sm:$0xff] }
 0x3c1   :  { %9692 = vmatprep.mubr.msk.bf16.mxu1 %vm10291_vm2, %v10289_v0  ;;  %9854 = vmatprep.mubr.msk.bf16.mxu0 %vm10291_vm2, %v10289_v0 }
 0x3c2   :  { %4103 = vst.msk [vmem:[%s18942_s3 + $0x1e8] sm:$0xff] %vm629_vm4, %v4022_v16 }
 0x3c3   :  { %v2957_v19 = vpop.f32.mrb[116].mxu1  ;;  %v3802_v21 = vpop.f32.mrb[116].mxu0 }
 0x3c4   :  { %v3172_v22 = vadd.f32 %v3091_v20, %v2957_v19  ;;  %v9418_v23 = vpop.f32.mrb[117].mxu1  ;;  %v9580_v24 = vpop.f32.mrb[117].mxu0  ;;  %v4225_v19 = vpack.c.bf16 %v4166_v12, %v4165_v11 }
 0x3c5   :  { %v3942_v26 = vld [vmem:[%s18942_s3 + $0x1f0] sm:$0xff]  ;;  %v2960_v6 = vpop.f32.mrb[118].mxu1  ;;  %v3805_v28 = vpop.f32.mrb[118].mxu0 }
 0x3c6   :  { %3253 = vst.msk [vmem:[%s18942_s3 + $0x200] sm:$0xff] %vm629_vm4, %v3172_v22  ;;  %v4023_v29 = vadd.f32 %v3942_v26, %v3802_v21  ;;  %v3173_v30 = vadd.f32 %v3092_v27, %v2960_v6  ;;  %v9419_v31 = vpop.f32.mrb[119].mxu1  ;;  %v9581_v32 = vpop.f32.mrb[119].mxu0  ;;  %v3098_v22 = vld [vmem:[%s18942_s3 + $0x238] sm:$0xff] }
 0x3c7   :  { %v3943_v33 = vld [vmem:[%s18942_s3 + $0x1f8] sm:$0xff]  ;;  %v3099_v32 = vld [vmem:[%s18942_s3 + $0x240] sm:$0xff] }
 0x3c8   :  { %4104 = vst.msk [vmem:[%s18942_s3 + $0x1f0] sm:$0xff] %vm629_vm4, %v4023_v29  ;;  %3254 = vst.msk [vmem:[%s18942_s3 + $0x208] sm:$0xff] %vm629_vm4, %v3173_v30  ;;  %v4024_v34 = vadd.f32 %v3943_v33, %v3805_v28  ;;  %9693 = vmatmul.mubr.msk.bf16.gmra.mrb[224].mxu1 %vm138_vm3, %v4222_v25  ;;  %9855 = vmatmul.mubr.msk.bf16.gmra.mrb[224].mxu0 %vm138_vm3, %v4222_v25  ;;  %v4167_v29 = vld [vmem:[%s18941_s0 + $0x174] sm:$0xff]  ;;  %v4168_v30 = vld [vmem:[%s18941_s0 + $0x17c] sm:$0xff] }
 0x3c9   :  { %9696 = vmatprep.mubr.msk.bf16.mxu1 %vm10291_vm2, %v10289_v0  ;;  %9858 = vmatprep.mubr.msk.bf16.mxu0 %vm10291_vm2, %v10289_v0 }
 0x3ca   :  { %4105 = vst.msk [vmem:[%s18942_s3 + $0x1f8] sm:$0xff] %vm629_vm4, %v4024_v34 }
 0x3cb   :  { %v2965_v37 = vpop.f32.mrb[120].mxu1  ;;  %v3810_v39 = vpop.f32.mrb[120].mxu0 }
 0x3cc   :  { %v3174_v40 = vadd.f32 %v3093_v38, %v2965_v37  ;;  %v9422_v41 = vpop.f32.mrb[121].mxu1  ;;  %v9584_v42 = vpop.f32.mrb[121].mxu0  ;;  %v4226_v37 = vpack.c.bf16 %v4168_v30, %v4167_v29 }
 0x3cd   :  { %v3944_v44 = vld [vmem:[%s18942_s3 + $0x200] sm:$0xff]  ;;  %v2968_v45 = vpop.f32.mrb[122].mxu1  ;;  %v3813_v47 = vpop.f32.mrb[122].mxu0 }
 0x3ce   :  { %3255 = vst.msk [vmem:[%s18942_s3 + $0x210] sm:$0xff] %vm629_vm4, %v3174_v40  ;;  %v4025_v48 = vadd.f32 %v3944_v44, %v3810_v39  ;;  %v3175_v49 = vadd.f32 %v3094_v46, %v2968_v45  ;;  %v9423_v50 = vpop.f32.mrb[123].mxu1  ;;  %v9585_v51 = vpop.f32.mrb[123].mxu0  ;;  %v3100_v40 = vld [vmem:[%s18942_s3 + $0x248] sm:$0xff] }
 0x3cf   :  { %v3945_v52 = vld [vmem:[%s18942_s3 + $0x208] sm:$0xff]  ;;  %v3101_v51 = vld [vmem:[%s18942_s3 + $0x250] sm:$0xff] }
 0x3d0   :  { %4106 = vst.msk [vmem:[%s18942_s3 + $0x200] sm:$0xff] %vm629_vm4, %v4025_v48  ;;  %3256 = vst.msk [vmem:[%s18942_s3 + $0x218] sm:$0xff] %vm629_vm4, %v3175_v49  ;;  %v4026_v53 = vadd.f32 %v3945_v52, %v3813_v47  ;;  %9697 = vmatmul.mubr.msk.bf16.gmra.mrb[228].mxu1 %vm138_vm3, %v4223_v43  ;;  %9859 = vmatmul.mubr.msk.bf16.gmra.mrb[228].mxu0 %vm138_vm3, %v4223_v43  ;;  %v4169_v48 = vld [vmem:[%s18941_s0 + $0x184] sm:$0xff]  ;;  %v4170_v49 = vld [vmem:[%s18941_s0 + $0x18c] sm:$0xff] }
 0x3d1   :  { %9700 = vmatprep.mubr.msk.bf16.mxu1 %vm10291_vm2, %v10289_v0  ;;  %9862 = vmatprep.mubr.msk.bf16.mxu0 %vm10291_vm2, %v10289_v0 }
 0x3d2   :  { %4107 = vst.msk [vmem:[%s18942_s3 + $0x208] sm:$0xff] %vm629_vm4, %v4026_v53 }
 0x3d3   :  { %v2973_v56 = vpop.f32.mrb[124].mxu1  ;;  %v3818_v58 = vpop.f32.mrb[124].mxu0 }
 0x3d4   :  { %v3176_v59 = vadd.f32 %v3095_v57, %v2973_v56  ;;  %v9426_v60 = vpop.f32.mrb[125].mxu1  ;;  %v9588_v61 = vpop.f32.mrb[125].mxu0  ;;  %v4227_v56 = vpack.c.bf16 %v4170_v49, %v4169_v48 }
 0x3d5   :  { %v3946_v63 = vld [vmem:[%s18942_s3 + $0x210] sm:$0xff]  ;;  %v2976_v1 = vpop.f32.mrb[126].mxu1  ;;  %v3821_v3 = vpop.f32.mrb[126].mxu0 }
 0x3d6   :  { %3257 = vst.msk [vmem:[%s18942_s3 + $0x220] sm:$0xff] %vm629_vm4, %v3176_v59  ;;  %v4027_v4 = vadd.f32 %v3946_v63, %v3818_v58  ;;  %v3177_v5 = vadd.f32 %v3096_v2, %v2976_v1  ;;  %v9427_v7 = vpop.f32.mrb[127].mxu1  ;;  %v9589_v8 = vpop.f32.mrb[127].mxu0  ;;  %v3102_v59 = vld [vmem:[%s18942_s3 + $0x258] sm:$0xff] }
 0x3d7   :  { %v3947_v9 = vld [vmem:[%s18942_s3 + $0x218] sm:$0xff]  ;;  %v3103_v8 = vld [vmem:[%s18942_s3 + $0x260] sm:$0xff] }
 0x3d8   :  { %4108 = vst.msk [vmem:[%s18942_s3 + $0x210] sm:$0xff] %vm629_vm4, %v4027_v4  ;;  %3258 = vst.msk [vmem:[%s18942_s3 + $0x228] sm:$0xff] %vm629_vm4, %v3177_v5  ;;  %v4028_v10 = vadd.f32 %v3947_v9, %v3821_v3  ;;  %9701 = vmatmul.mubr.msk.bf16.gmra.mrb[232].mxu1 %vm138_vm3, %v4224_v62  ;;  %9863 = vmatmul.mubr.msk.bf16.gmra.mrb[232].mxu0 %vm138_vm3, %v4224_v62  ;;  %v4171_v4 = vld [vmem:[%s18941_s0 + $0x194] sm:$0xff]  ;;  %v4172_v5 = vld [vmem:[%s18941_s0 + $0x19c] sm:$0xff] }
 0x3d9   :  { %9704 = vmatprep.mubr.msk.bf16.mxu1 %vm10291_vm2, %v10289_v0  ;;  %9866 = vmatprep.mubr.msk.bf16.mxu0 %vm10291_vm2, %v10289_v0 }
 0x3da   :  { %4109 = vst.msk [vmem:[%s18942_s3 + $0x218] sm:$0xff] %vm629_vm4, %v4028_v10 }
 0x3db   :  { %v2981_v13 = vpop.f32.mrb[128].mxu1  ;;  %v3826_v15 = vpop.f32.mrb[128].mxu0 }
 0x3dc   :  { %v3178_v16 = vadd.f32 %v3097_v14, %v2981_v13  ;;  %v9430_v17 = vpop.f32.mrb[129].mxu1  ;;  %v9592_v18 = vpop.f32.mrb[129].mxu0  ;;  %v4228_v13 = vpack.c.bf16 %v4172_v5, %v4171_v4 }
 0x3dd   :  { %v3948_v20 = vld [vmem:[%s18942_s3 + $0x220] sm:$0xff]  ;;  %v2984_v21 = vpop.f32.mrb[130].mxu1  ;;  %v3829_v23 = vpop.f32.mrb[130].mxu0 }
 0x3de   :  { %3259 = vst.msk [vmem:[%s18942_s3 + $0x230] sm:$0xff] %vm629_vm4, %v3178_v16  ;;  %v4029_v24 = vadd.f32 %v3948_v20, %v3826_v15  ;;  %v3179_v25 = vadd.f32 %v3098_v22, %v2984_v21  ;;  %v9431_v26 = vpop.f32.mrb[131].mxu1  ;;  %v9593_v6 = vpop.f32.mrb[131].mxu0  ;;  %v3104_v16 = vld [vmem:[%s18942_s3 + $0x268] sm:$0xff] }
 0x3df   :  { %v3949_v27 = vld [vmem:[%s18942_s3 + $0x228] sm:$0xff]  ;;  %v3105_v6 = vld [vmem:[%s18942_s3 + $0x270] sm:$0xff] }
 0x3e0   :  { %4110 = vst.msk [vmem:[%s18942_s3 + $0x220] sm:$0xff] %vm629_vm4, %v4029_v24  ;;  %3260 = vst.msk [vmem:[%s18942_s3 + $0x238] sm:$0xff] %vm629_vm4, %v3179_v25  ;;  %v4030_v28 = vadd.f32 %v3949_v27, %v3829_v23  ;;  %9705 = vmatmul.mubr.msk.bf16.gmra.mrb[236].mxu1 %vm138_vm3, %v4225_v19  ;;  %9867 = vmatmul.mubr.msk.bf16.gmra.mrb[236].mxu0 %vm138_vm3, %v4225_v19  ;;  %v4173_v24 = vld [vmem:[%s18941_s0 + $0x1a4] sm:$0xff]  ;;  %v4174_v25 = vld [vmem:[%s18941_s0 + $0x1ac] sm:$0xff] }
 0x3e1   :  { %9708 = vmatprep.mubr.msk.bf16.mxu1 %vm10291_vm2, %v10289_v0  ;;  %9870 = vmatprep.mubr.msk.bf16.mxu0 %vm10291_vm2, %v10289_v0 }
 0x3e2   :  { %4111 = vst.msk [vmem:[%s18942_s3 + $0x228] sm:$0xff] %vm629_vm4, %v4030_v28 }
 0x3e3   :  { %v2989_v31 = vpop.f32.mrb[132].mxu1  ;;  %v3834_v33 = vpop.f32.mrb[132].mxu0 }
 0x3e4   :  { %v3180_v34 = vadd.f32 %v3099_v32, %v2989_v31  ;;  %v9434_v35 = vpop.f32.mrb[133].mxu1  ;;  %v9596_v36 = vpop.f32.mrb[133].mxu0  ;;  %v4229_v31 = vpack.c.bf16 %v4174_v25, %v4173_v24  ;;  %v4736_v25 = vld [vmem:[%s18942_s3 + $0x18] sm:$0xff] }
 0x3e5   :  { %v3950_v38 = vld [vmem:[%s18942_s3 + $0x230] sm:$0xff]  ;;  %v2992_v39 = vpop.f32.mrb[134].mxu1  ;;  %v3837_v41 = vpop.f32.mrb[134].mxu0 }
 0x3e6   :  { %3261 = vst.msk [vmem:[%s18942_s3 + $0x240] sm:$0xff] %vm629_vm4, %v3180_v34  ;;  %v4031_v42 = vadd.f32 %v3950_v38, %v3834_v33  ;;  %v3181_v43 = vadd.f32 %v3100_v40, %v2992_v39  ;;  %v9435_v44 = vpop.f32.mrb[135].mxu1  ;;  %v9597_v45 = vpop.f32.mrb[135].mxu0  ;;  %v3106_v34 = vld [vmem:[%s18942_s3 + $0x278] sm:$0xff] }
 0x3e7   :  { %v3951_v46 = vld [vmem:[%s18942_s3 + $0x238] sm:$0xff]  ;;  %v3107_v45 = vld [vmem:[%s18942_s3 + $0x280] sm:$0xff] }
 0x3e8   :  { %4112 = vst.msk [vmem:[%s18942_s3 + $0x230] sm:$0xff] %vm629_vm4, %v4031_v42  ;;  %3262 = vst.msk [vmem:[%s18942_s3 + $0x248] sm:$0xff] %vm629_vm4, %v3181_v43  ;;  %v4032_v47 = vadd.f32 %v3951_v46, %v3837_v41  ;;  %9709 = vmatmul.mubr.msk.bf16.gmra.mrb[240].mxu1 %vm138_vm3, %v4226_v37  ;;  %9871 = vmatmul.mubr.msk.bf16.gmra.mrb[240].mxu0 %vm138_vm3, %v4226_v37  ;;  %v4175_v42 = vld [vmem:[%s18941_s0 + $0x1b4] sm:$0xff]  ;;  %v4176_v43 = vld [vmem:[%s18941_s0 + $0x1bc] sm:$0xff] }
 0x3e9   :  { %9712 = vmatprep.mubr.msk.bf16.mxu1 %vm10291_vm2, %v10289_v0  ;;  %9874 = vmatprep.mubr.msk.bf16.mxu0 %vm10291_vm2, %v10289_v0 }
 0x3ea   :  { %4113 = vst.msk [vmem:[%s18942_s3 + $0x238] sm:$0xff] %vm629_vm4, %v4032_v47 }
 0x3eb   :  { %v2997_v50 = vpop.f32.mrb[136].mxu1  ;;  %v3842_v52 = vpop.f32.mrb[136].mxu0 }
 0x3ec   :  { %v3182_v53 = vadd.f32 %v3101_v51, %v2997_v50  ;;  %v9438_v54 = vpop.f32.mrb[137].mxu1  ;;  %v9600_v55 = vpop.f32.mrb[137].mxu0  ;;  %v4230_v50 = vpack.c.bf16 %v4176_v43, %v4175_v42  ;;  %v4738_v43 = vld [vmem:[%s18942_s3 + $0x28] sm:$0xff] }
 0x3ed   :  { %v3952_v57 = vld [vmem:[%s18942_s3 + $0x240] sm:$0xff]  ;;  %v3000_v58 = vpop.f32.mrb[138].mxu1  ;;  %v3845_v60 = vpop.f32.mrb[138].mxu0 }
 0x3ee   :  { %3263 = vst.msk [vmem:[%s18942_s3 + $0x250] sm:$0xff] %vm629_vm4, %v3182_v53  ;;  %v4033_v61 = vadd.f32 %v3952_v57, %v3842_v52  ;;  %v3183_v62 = vadd.f32 %v3102_v59, %v3000_v58  ;;  %v9439_v63 = vpop.f32.mrb[139].mxu1  ;;  %v9601_v1 = vpop.f32.mrb[139].mxu0  ;;  %v4177_v59 = vld [vmem:[%s18941_s0 + $0x1c4] sm:$0xff] }
 0x3ef   :  { %v3953_v2 = vld [vmem:[%s18942_s3 + $0x248] sm:$0xff]  ;;  %v4733_v63 = vld [vmem:[%s18942_s3] sm:$0xff] }
 0x3f0   :  { %4114 = vst.msk [vmem:[%s18942_s3 + $0x240] sm:$0xff] %vm629_vm4, %v4033_v61  ;;  %3264 = vst.msk [vmem:[%s18942_s3 + $0x258] sm:$0xff] %vm629_vm4, %v3183_v62  ;;  %v4034_v3 = vadd.f32 %v3953_v2, %v3845_v60  ;;  %9713 = vmatmul.mubr.msk.bf16.gmra.mrb[244].mxu1 %vm138_vm3, %v4227_v56  ;;  %9875 = vmatmul.mubr.msk.bf16.gmra.mrb[244].mxu0 %vm138_vm3, %v4227_v56  ;;  %v4178_v60 = vld [vmem:[%s18941_s0 + $0x1cc] sm:$0xff] }
 0x3f1   :  { %9716 = vmatprep.mubr.msk.bf16.mxu1 %vm10291_vm2, %v10289_v0  ;;  %9878 = vmatprep.mubr.msk.bf16.mxu0 %vm10291_vm2, %v10289_v0  ;;  %v4231_v4 = vpack.c.bf16 %v4178_v60, %v4177_v59 }
 0x3f2   :  { %4115 = vst.msk [vmem:[%s18942_s3 + $0x248] sm:$0xff] %vm629_vm4, %v4034_v3 }
 0x3f3   :  { %v3005_v7 = vpop.f32.mrb[140].mxu1  ;;  %v3850_v9 = vpop.f32.mrb[140].mxu0 }
 0x3f4   :  { %v3184_v10 = vadd.f32 %v3103_v8, %v3005_v7  ;;  %v9442_v11 = vpop.f32.mrb[141].mxu1  ;;  %v9604_v12 = vpop.f32.mrb[141].mxu0 }
 0x3f5   :  { %v3954_v14 = vld [vmem:[%s18942_s3 + $0x250] sm:$0xff]  ;;  %v3008_v15 = vpop.f32.mrb[142].mxu1  ;;  %v3853_v17 = vpop.f32.mrb[142].mxu0 }
 0x3f6   :  { %3265 = vst.msk [vmem:[%s18942_s3 + $0x260] sm:$0xff] %vm629_vm4, %v3184_v10  ;;  %v4035_v18 = vadd.f32 %v3954_v14, %v3850_v9  ;;  %v3185_v19 = vadd.f32 %v3104_v16, %v3008_v15  ;;  %v9443_v20 = vpop.f32.mrb[143].mxu1  ;;  %v9605_v21 = vpop.f32.mrb[143].mxu0  ;;  %v4734_v9 = vld [vmem:[%s18942_s3 + $0x8] sm:$0xff]  ;;  %v4179_v14 = vld [vmem:[%s18941_s0 + $0x1d4] sm:$0xff]  ;;  %v4180_v15 = vld [vmem:[%s18941_s0 + $0x1dc] sm:$0xff] }
 0x3f7   :  { %v3955_v22 = vld [vmem:[%s18942_s3 + $0x258] sm:$0xff] }
 0x3f8   :  { %4116 = vst.msk [vmem:[%s18942_s3 + $0x250] sm:$0xff] %vm629_vm4, %v4035_v18  ;;  %3266 = vst.msk [vmem:[%s18942_s3 + $0x268] sm:$0xff] %vm629_vm4, %v3185_v19  ;;  %v4036_v23 = vadd.f32 %v3955_v22, %v3853_v17  ;;  %9717 = vmatmul.mubr.msk.bf16.gmra.mrb[248].mxu1 %vm138_vm3, %v4228_v13  ;;  %9879 = vmatmul.mubr.msk.bf16.gmra.mrb[248].mxu0 %vm138_vm3, %v4228_v13  ;;  %v4735_v17 = vld [vmem:[%s18942_s3 + $0x10] sm:$0xff]  ;;  %v4232_v22 = vpack.c.bf16 %v4180_v15, %v4179_v14 }
 0x3f9   :  { %9720 = vmatprep.mubr.msk.bf16.mxu1 %vm10291_vm2, %v10289_v0  ;;  %9882 = vmatprep.mubr.msk.bf16.mxu0 %vm10291_vm2, %v10289_v0 }
 0x3fa   :  { %4117 = vst.msk [vmem:[%s18942_s3 + $0x258] sm:$0xff] %vm629_vm4, %v4036_v23 }
 0x3fb   :  { %v3013_v26 = vpop.f32.mrb[144].mxu1  ;;  %v3858_v27 = vpop.f32.mrb[144].mxu0 }
 0x3fc   :  { %v3186_v28 = vadd.f32 %v3105_v6, %v3013_v26  ;;  %v9446_v29 = vpop.f32.mrb[145].mxu1  ;;  %v9608_v30 = vpop.f32.mrb[145].mxu0 }
 0x3fd   :  { %v3956_v32 = vld [vmem:[%s18942_s3 + $0x260] sm:$0xff]  ;;  %v3016_v33 = vpop.f32.mrb[146].mxu1  ;;  %v3861_v35 = vpop.f32.mrb[146].mxu0 }
 0x3fe   :  { %3267 = vst.msk [vmem:[%s18942_s3 + $0x270] sm:$0xff] %vm629_vm4, %v3186_v28  ;;  %v4037_v36 = vadd.f32 %v3956_v32, %v3858_v27  ;;  %v3187_v37 = vadd.f32 %v3106_v34, %v3016_v33  ;;  %v9447_v38 = vpop.f32.mrb[147].mxu1  ;;  %v9609_v39 = vpop.f32.mrb[147].mxu0  ;;  %v4181_v32 = vld [vmem:[%s18941_s0 + $0x1e4] sm:$0xff]  ;;  %v4182_v33 = vld [vmem:[%s18941_s0 + $0x1ec] sm:$0xff] }
 0x3ff   :  { %v3957_v40 = vld [vmem:[%s18942_s3 + $0x268] sm:$0xff] }
 0x400   :  { %4118 = vst.msk [vmem:[%s18942_s3 + $0x260] sm:$0xff] %vm629_vm4, %v4037_v36  ;;  %3268 = vst.msk [vmem:[%s18942_s3 + $0x278] sm:$0xff] %vm629_vm4, %v3187_v37  ;;  %v4038_v41 = vadd.f32 %v3957_v40, %v3861_v35  ;;  %9721 = vmatmul.mubr.msk.bf16.gmra.mrb[252].mxu1 %vm138_vm3, %v4229_v31  ;;  %9883 = vmatmul.mubr.msk.bf16.gmra.mrb[252].mxu0 %vm138_vm3, %v4229_v31  ;;  %v4737_v35 = vld [vmem:[%s18942_s3 + $0x20] sm:$0xff]  ;;  %v4233_v40 = vpack.c.bf16 %v4182_v33, %v4181_v32 }
 0x401   :  { %9724 = vmatprep.mubr.msk.bf16.mxu1 %vm10291_vm2, %v10289_v0  ;;  %9886 = vmatprep.mubr.msk.bf16.mxu0 %vm10291_vm2, %v10289_v0 }
 0x402   :  { %4119 = vst.msk [vmem:[%s18942_s3 + $0x268] sm:$0xff] %vm629_vm4, %v4038_v41 }
 0x403   :  { %v3021_v44 = vpop.f32.mrb[148].mxu1  ;;  %v3866_v46 = vpop.f32.mrb[148].mxu0 }
 0x404   :  { %v3188_v47 = vadd.f32 %v3107_v45, %v3021_v44  ;;  %v9450_v48 = vpop.f32.mrb[149].mxu1  ;;  %v9612_v49 = vpop.f32.mrb[149].mxu0 }
 0x405   :  { %v3958_v51 = vld [vmem:[%s18942_s3 + $0x270] sm:$0xff]  ;;  %v3024_v52 = vpop.f32.mrb[150].mxu1  ;;  %v3869_v53 = vpop.f32.mrb[150].mxu0 }
 0x406   :  { %3269 = vst.msk [vmem:[%s18942_s3 + $0x280] sm:$0xff] %vm629_vm4, %v3188_v47  ;;  %v4039_v54 = vadd.f32 %v3958_v51, %v3866_v46  ;;  %v9451_v55 = vpop.f32.mrb[151].mxu1  ;;  %v9613_v56 = vpop.f32.mrb[151].mxu0  ;;  %v4183_v51 = vld [vmem:[%s18941_s0 + $0x1f4] sm:$0xff]  ;;  %v4184_v52 = vld [vmem:[%s18941_s0 + $0x1fc] sm:$0xff] }
 0x407   :  { %v3959_v57 = vld [vmem:[%s18942_s3 + $0x278] sm:$0xff]  ;;  %v4234_v59 = vpack.c.bf16 %v4184_v52, %v4183_v51 }
 0x408   :  { %4120 = vst.msk [vmem:[%s18942_s3 + $0x270] sm:$0xff] %vm629_vm4, %v4039_v54  ;;  %v4040_v58 = vadd.f32 %v3959_v57, %v3869_v53  ;;  %9725 = vmatmul.mubr.msk.bf16.gmra.mrb[0].mxu1 %vm138_vm3, %v4230_v50  ;;  %9887 = vmatmul.mubr.msk.bf16.gmra.mrb[0].mxu0 %vm138_vm3, %v4230_v50  ;;  %v4739_v54 = vld [vmem:[%s18942_s3 + $0x30] sm:$0xff] }
 0x409   :  { %9728 = vmatprep.mubr.msk.bf16.mxu1 %vm10291_vm2, %v10289_v0  ;;  %9890 = vmatprep.mubr.msk.bf16.mxu0 %vm10291_vm2, %v10289_v0 }
 0x40a   :  { %4121 = vst.msk [vmem:[%s18942_s3 + $0x278] sm:$0xff] %vm629_vm4, %v4040_v58 }
 0x40b   :  { %v3874_v61 = vpop.f32.mrb[152].mxu0  ;;  %v4407_v62 = vpop.f32.mrb[152].mxu1 }
 0x40c   :  { %v4814_v1 = vadd.f32 %v4733_v63, %v4407_v62  ;;  %v9616_v2 = vpop.f32.mrb[153].mxu0  ;;  %v9622_v3 = vpop.f32.mrb[153].mxu1  ;;  %v4740_v62 = vld [vmem:[%s18942_s3 + $0x38] sm:$0xff] }
 0x40d   :  { %v3960_v5 = vld [vmem:[%s18942_s3 + $0x280] sm:$0xff]  ;;  %v3877_v7 = vpop.f32.mrb[154].mxu0  ;;  %v4410_v8 = vpop.f32.mrb[154].mxu1 }
 0x40e   :  { %v4041_v10 = vadd.f32 %v3960_v5, %v3874_v61  ;;  %4895 = vst.msk [vmem:[%s18942_s3] sm:$0xff] %vm629_vm4, %v4814_v1  ;;  %v4815_v11 = vadd.f32 %v4734_v9, %v4410_v8  ;;  %v9617_v12 = vpop.f32.mrb[155].mxu0  ;;  %v9623_v13 = vpop.f32.mrb[155].mxu1  ;;  %v4185_v8 = vld [vmem:[%s18941_s0 + $0x204] sm:$0xff]  ;;  %v4186_v9 = vld [vmem:[%s18941_s0 + $0x20c] sm:$0xff] }
 0x410   :  { %4122 = vst.msk [vmem:[%s18942_s3 + $0x280] sm:$0xff] %vm629_vm4, %v4041_v10  ;;  %4896 = vst.msk [vmem:[%s18942_s3 + $0x8] sm:$0xff] %vm629_vm4, %v4815_v11  ;;  %9729 = vmatmul.mubr.msk.bf16.gmra.mrb[4].mxu1 %vm138_vm3, %v4231_v4  ;;  %9891 = vmatmul.mubr.msk.bf16.gmra.mrb[4].mxu0 %vm138_vm3, %v4231_v4  ;;  %v4741_v11 = vld [vmem:[%s18942_s3 + $0x40] sm:$0xff] }
 0x411   :  { %9732 = vmatprep.mubr.msk.bf16.mxu1 %vm10291_vm2, %v10289_v0  ;;  %9894 = vmatprep.mubr.msk.bf16.mxu0 %vm10291_vm2, %v10289_v0 }
 0x413   :  { %v4415_v16 = vpop.f32.mrb[156].mxu1  ;;  %v5260_v18 = vpop.f32.mrb[156].mxu0 }
 0x414   :  { %v4816_v19 = vadd.f32 %v4735_v17, %v4415_v16  ;;  %v9626_v20 = vpop.f32.mrb[157].mxu1  ;;  %v9788_v21 = vpop.f32.mrb[157].mxu0  ;;  %v4235_v16 = vpack.c.bf16 %v4186_v9, %v4185_v8 }
 0x415   :  { %v5586_v23 = vld [vmem:[%s18942_s3] sm:$0xff]  ;;  %v4418_v24 = vpop.f32.mrb[158].mxu1  ;;  %v5263_v26 = vpop.f32.mrb[158].mxu0 }
 0x416   :  { %4897 = vst.msk [vmem:[%s18942_s3 + $0x10] sm:$0xff] %vm629_vm4, %v4816_v19  ;;  %v5667_v6 = vadd.f32 %v5586_v23, %v5260_v18  ;;  %v4817_v27 = vadd.f32 %v4736_v25, %v4418_v24  ;;  %v9627_v28 = vpop.f32.mrb[159].mxu1  ;;  %v9789_v29 = vpop.f32.mrb[159].mxu0  ;;  %v4742_v19 = vld [vmem:[%s18942_s3 + $0x48] sm:$0xff] }
 0x417   :  { %v5587_v30 = vld [vmem:[%s18942_s3 + $0x8] sm:$0xff]  ;;  %v4743_v29 = vld [vmem:[%s18942_s3 + $0x50] sm:$0xff] }
 0x418   :  { %5748 = vst.msk [vmem:[%s18942_s3] sm:$0xff] %vm629_vm4, %v5667_v6  ;;  %4898 = vst.msk [vmem:[%s18942_s3 + $0x18] sm:$0xff] %vm629_vm4, %v4817_v27  ;;  %v5668_v31 = vadd.f32 %v5587_v30, %v5263_v26  ;;  %9733 = vmatmul.mubr.msk.bf16.gmra.mrb[8].mxu1 %vm138_vm3, %v4232_v22  ;;  %9895 = vmatmul.mubr.msk.bf16.gmra.mrb[8].mxu0 %vm138_vm3, %v4232_v22  ;;  %v4187_v6 = vld [vmem:[%s18941_s0 + $0x214] sm:$0xff]  ;;  %v4188_v27 = vld [vmem:[%s18941_s0 + $0x21c] sm:$0xff] }
 0x419   :  { %9736 = vmatprep.mubr.msk.bf16.mxu1 %vm10291_vm2, %v10289_v0  ;;  %9898 = vmatprep.mubr.msk.bf16.mxu0 %vm10291_vm2, %v10289_v0 }
 0x41a   :  { %5749 = vst.msk [vmem:[%s18942_s3 + $0x8] sm:$0xff] %vm629_vm4, %v5668_v31 }
 0x41b   :  { %v4423_v34 = vpop.f32.mrb[160].mxu1  ;;  %v5268_v36 = vpop.f32.mrb[160].mxu0 }
 0x41c   :  { %v4818_v37 = vadd.f32 %v4737_v35, %v4423_v34  ;;  %v9630_v38 = vpop.f32.mrb[161].mxu1  ;;  %v9792_v39 = vpop.f32.mrb[161].mxu0  ;;  %v4236_v34 = vpack.c.bf16 %v4188_v27, %v4187_v6 }
 0x41d   :  { %v5588_v41 = vld [vmem:[%s18942_s3 + $0x10] sm:$0xff]  ;;  %v4426_v42 = vpop.f32.mrb[162].mxu1  ;;  %v5271_v44 = vpop.f32.mrb[162].mxu0 }
 0x41e   :  { %4899 = vst.msk [vmem:[%s18942_s3 + $0x20] sm:$0xff] %vm629_vm4, %v4818_v37  ;;  %v5669_v45 = vadd.f32 %v5588_v41, %v5268_v36  ;;  %v4819_v46 = vadd.f32 %v4738_v43, %v4426_v42  ;;  %v9631_v47 = vpop.f32.mrb[163].mxu1  ;;  %v9793_v48 = vpop.f32.mrb[163].mxu0  ;;  %v4744_v37 = vld [vmem:[%s18942_s3 + $0x58] sm:$0xff] }
 0x41f   :  { %v5589_v49 = vld [vmem:[%s18942_s3 + $0x18] sm:$0xff]  ;;  %v4745_v48 = vld [vmem:[%s18942_s3 + $0x60] sm:$0xff] }
 0x420   :  { %5750 = vst.msk [vmem:[%s18942_s3 + $0x10] sm:$0xff] %vm629_vm4, %v5669_v45  ;;  %4900 = vst.msk [vmem:[%s18942_s3 + $0x28] sm:$0xff] %vm629_vm4, %v4819_v46  ;;  %v5670_v50 = vadd.f32 %v5589_v49, %v5271_v44  ;;  %9737 = vmatmul.mubr.msk.bf16.gmra.mrb[12].mxu1 %vm138_vm3, %v4233_v40  ;;  %9899 = vmatmul.mubr.msk.bf16.gmra.mrb[12].mxu0 %vm138_vm3, %v4233_v40  ;;  %v4189_v45 = vld [vmem:[%s18941_s0 + $0x224] sm:$0xff]  ;;  %v4190_v46 = vld [vmem:[%s18941_s0 + $0x22c] sm:$0xff] }
 0x421   :  { %9740 = vmatprep.mubr.msk.bf16.mxu1 %vm10291_vm2, %v10289_v0  ;;  %9902 = vmatprep.mubr.msk.bf16.mxu0 %vm10291_vm2, %v10289_v0 }
 0x422   :  { %5751 = vst.msk [vmem:[%s18942_s3 + $0x18] sm:$0xff] %vm629_vm4, %v5670_v50 }
 0x423   :  { %v4431_v53 = vpop.f32.mrb[164].mxu1  ;;  %v5276_v55 = vpop.f32.mrb[164].mxu0 }
 0x424   :  { %v4820_v56 = vadd.f32 %v4739_v54, %v4431_v53  ;;  %v9634_v57 = vpop.f32.mrb[165].mxu1  ;;  %v9796_v58 = vpop.f32.mrb[165].mxu0  ;;  %v4237_v53 = vpack.c.bf16 %v4190_v46, %v4189_v45 }
 0x425   :  { %v5590_v60 = vld [vmem:[%s18942_s3 + $0x20] sm:$0xff]  ;;  %v4434_v61 = vpop.f32.mrb[166].mxu1  ;;  %v5279_v63 = vpop.f32.mrb[166].mxu0 }
 0x426   :  { %4901 = vst.msk [vmem:[%s18942_s3 + $0x30] sm:$0xff] %vm629_vm4, %v4820_v56  ;;  %v5671_v1 = vadd.f32 %v5590_v60, %v5276_v55  ;;  %v4821_v2 = vadd.f32 %v4740_v62, %v4434_v61  ;;  %v9635_v3 = vpop.f32.mrb[167].mxu1  ;;  %v9797_v4 = vpop.f32.mrb[167].mxu0  ;;  %v4746_v56 = vld [vmem:[%s18942_s3 + $0x68] sm:$0xff] }
 0x427   :  { %v5591_v5 = vld [vmem:[%s18942_s3 + $0x28] sm:$0xff]  ;;  %v4747_v4 = vld [vmem:[%s18942_s3 + $0x70] sm:$0xff] }
 0x428   :  { %5752 = vst.msk [vmem:[%s18942_s3 + $0x20] sm:$0xff] %vm629_vm4, %v5671_v1  ;;  %4902 = vst.msk [vmem:[%s18942_s3 + $0x38] sm:$0xff] %vm629_vm4, %v4821_v2  ;;  %v5672_v7 = vadd.f32 %v5591_v5, %v5279_v63  ;;  %9741 = vmatmul.mubr.msk.bf16.gmra.mrb[16].mxu1 %vm138_vm3, %v4234_v59  ;;  %9903 = vmatmul.mubr.msk.bf16.gmra.mrb[16].mxu0 %vm138_vm3, %v4234_v59  ;;  %v4191_v1 = vld [vmem:[%s18941_s0 + $0x234] sm:$0xff]  ;;  %v4192_v2 = vld [vmem:[%s18941_s0 + $0x23c] sm:$0xff] }
 0x429   :  { %9744 = vmatprep.mubr.msk.bf16.mxu1 %vm10291_vm2, %v10289_v0  ;;  %9906 = vmatprep.mubr.msk.bf16.mxu0 %vm10291_vm2, %v10289_v0 }
 0x42a   :  { %5753 = vst.msk [vmem:[%s18942_s3 + $0x28] sm:$0xff] %vm629_vm4, %v5672_v7 }
 0x42b   :  { %v4439_v10 = vpop.f32.mrb[168].mxu1  ;;  %v5284_v12 = vpop.f32.mrb[168].mxu0 }
 0x42c   :  { %v4822_v13 = vadd.f32 %v4741_v11, %v4439_v10  ;;  %v9638_v14 = vpop.f32.mrb[169].mxu1  ;;  %v9800_v15 = vpop.f32.mrb[169].mxu0  ;;  %v4238_v10 = vpack.c.bf16 %v4192_v2, %v4191_v1 }
 0x42d   :  { %v5592_v17 = vld [vmem:[%s18942_s3 + $0x30] sm:$0xff]  ;;  %v4442_v18 = vpop.f32.mrb[170].mxu1  ;;  %v5287_v20 = vpop.f32.mrb[170].mxu0 }
 0x42e   :  { %4903 = vst.msk [vmem:[%s18942_s3 + $0x40] sm:$0xff] %vm629_vm4, %v4822_v13  ;;  %v5673_v21 = vadd.f32 %v5592_v17, %v5284_v12  ;;  %v4823_v22 = vadd.f32 %v4742_v19, %v4442_v18  ;;  %v9639_v23 = vpop.f32.mrb[171].mxu1  ;;  %v9801_v24 = vpop.f32.mrb[171].mxu0  ;;  %v4748_v13 = vld [vmem:[%s18942_s3 + $0x78] sm:$0xff] }
 0x42f   :  { %v5593_v25 = vld [vmem:[%s18942_s3 + $0x38] sm:$0xff]  ;;  %v4749_v24 = vld [vmem:[%s18942_s3 + $0x80] sm:$0xff] }
 0x430   :  { %5754 = vst.msk [vmem:[%s18942_s3 + $0x30] sm:$0xff] %vm629_vm4, %v5673_v21  ;;  %4904 = vst.msk [vmem:[%s18942_s3 + $0x48] sm:$0xff] %vm629_vm4, %v4823_v22  ;;  %v5674_v26 = vadd.f32 %v5593_v25, %v5287_v20  ;;  %9745 = vmatmul.mubr.msk.bf16.gmra.mrb[20].mxu1 %vm138_vm3, %v4235_v16  ;;  %9907 = vmatmul.mubr.msk.bf16.gmra.mrb[20].mxu0 %vm138_vm3, %v4235_v16  ;;  %v4193_v21 = vld [vmem:[%s18941_s0 + $0x244] sm:$0xff]  ;;  %v4194_v22 = vld [vmem:[%s18941_s0 + $0x24c] sm:$0xff] }
 0x431   :  { %9748 = vmatprep.mubr.msk.bf16.mxu1 %vm10291_vm2, %v10289_v0  ;;  %9910 = vmatprep.mubr.msk.bf16.mxu0 %vm10291_vm2, %v10289_v0 }
 0x432   :  { %5755 = vst.msk [vmem:[%s18942_s3 + $0x38] sm:$0xff] %vm629_vm4, %v5674_v26 }
 0x433   :  { %v4447_v28 = vpop.f32.mrb[172].mxu1  ;;  %v5292_v30 = vpop.f32.mrb[172].mxu0 }
 0x434   :  { %v4824_v31 = vadd.f32 %v4743_v29, %v4447_v28  ;;  %v9642_v32 = vpop.f32.mrb[173].mxu1  ;;  %v9804_v33 = vpop.f32.mrb[173].mxu0  ;;  %v4239_v28 = vpack.c.bf16 %v4194_v22, %v4193_v21 }
 0x435   :  { %v5594_v35 = vld [vmem:[%s18942_s3 + $0x40] sm:$0xff]  ;;  %v4450_v36 = vpop.f32.mrb[174].mxu1  ;;  %v5295_v38 = vpop.f32.mrb[174].mxu0 }
 0x436   :  { %4905 = vst.msk [vmem:[%s18942_s3 + $0x50] sm:$0xff] %vm629_vm4, %v4824_v31  ;;  %v5675_v39 = vadd.f32 %v5594_v35, %v5292_v30  ;;  %v4825_v40 = vadd.f32 %v4744_v37, %v4450_v36  ;;  %v9643_v41 = vpop.f32.mrb[175].mxu1  ;;  %v9805_v42 = vpop.f32.mrb[175].mxu0  ;;  %v4750_v31 = vld [vmem:[%s18942_s3 + $0x88] sm:$0xff] }
 0x437   :  { %v5595_v43 = vld [vmem:[%s18942_s3 + $0x48] sm:$0xff]  ;;  %v4751_v42 = vld [vmem:[%s18942_s3 + $0x90] sm:$0xff] }
 0x438   :  { %5756 = vst.msk [vmem:[%s18942_s3 + $0x40] sm:$0xff] %vm629_vm4, %v5675_v39  ;;  %4906 = vst.msk [vmem:[%s18942_s3 + $0x58] sm:$0xff] %vm629_vm4, %v4825_v40  ;;  %v5676_v44 = vadd.f32 %v5595_v43, %v5295_v38  ;;  %9749 = vmatmul.mubr.msk.bf16.gmra.mrb[24].mxu1 %vm138_vm3, %v4236_v34  ;;  %9911 = vmatmul.mubr.msk.bf16.gmra.mrb[24].mxu0 %vm138_vm3, %v4236_v34  ;;  %v4195_v39 = vld [vmem:[%s18941_s0 + $0x254] sm:$0xff]  ;;  %v4196_v40 = vld [vmem:[%s18941_s0 + $0x25c] sm:$0xff] }
 0x439   :  { %9752 = vmatprep.mubr.msk.bf16.mxu1 %vm10291_vm2, %v10289_v0  ;;  %9914 = vmatprep.mubr.msk.bf16.mxu0 %vm10291_vm2, %v10289_v0 }
 0x43a   :  { %5757 = vst.msk [vmem:[%s18942_s3 + $0x48] sm:$0xff] %vm629_vm4, %v5676_v44 }
 0x43b   :  { %v4455_v47 = vpop.f32.mrb[176].mxu1  ;;  %v5300_v49 = vpop.f32.mrb[176].mxu0 }
 0x43c   :  { %v4826_v50 = vadd.f32 %v4745_v48, %v4455_v47  ;;  %v9646_v51 = vpop.f32.mrb[177].mxu1  ;;  %v9808_v52 = vpop.f32.mrb[177].mxu0  ;;  %v4240_v47 = vpack.c.bf16 %v4196_v40, %v4195_v39 }
 0x43d   :  { %v5596_v54 = vld [vmem:[%s18942_s3 + $0x50] sm:$0xff]  ;;  %v4458_v55 = vpop.f32.mrb[178].mxu1  ;;  %v5303_v57 = vpop.f32.mrb[178].mxu0 }
 0x43e   :  { %4907 = vst.msk [vmem:[%s18942_s3 + $0x60] sm:$0xff] %vm629_vm4, %v4826_v50  ;;  %v5677_v58 = vadd.f32 %v5596_v54, %v5300_v49  ;;  %v4827_v59 = vadd.f32 %v4746_v56, %v4458_v55  ;;  %v9647_v60 = vpop.f32.mrb[179].mxu1  ;;  %v9809_v61 = vpop.f32.mrb[179].mxu0  ;;  %v4752_v50 = vld [vmem:[%s18942_s3 + $0x98] sm:$0xff] }
 0x43f   :  { %v5597_v62 = vld [vmem:[%s18942_s3 + $0x58] sm:$0xff]  ;;  %v4753_v61 = vld [vmem:[%s18942_s3 + $0xa0] sm:$0xff] }
 0x440   :  { %5758 = vst.msk [vmem:[%s18942_s3 + $0x50] sm:$0xff] %vm629_vm4, %v5677_v58  ;;  %4908 = vst.msk [vmem:[%s18942_s3 + $0x68] sm:$0xff] %vm629_vm4, %v4827_v59  ;;  %v5678_v63 = vadd.f32 %v5597_v62, %v5303_v57  ;;  %9753 = vmatmul.mubr.msk.bf16.gmra.mrb[28].mxu1 %vm138_vm3, %v4237_v53  ;;  %9915 = vmatmul.mubr.msk.bf16.gmra.mrb[28].mxu0 %vm138_vm3, %v4237_v53  ;;  %v4197_v58 = vld [vmem:[%s18941_s0 + $0x264] sm:$0xff]  ;;  %v4198_v59 = vld [vmem:[%s18941_s0 + $0x26c] sm:$0xff] }
 0x441   :  { %9756 = vmatprep.mubr.msk.bf16.mxu1 %vm10291_vm2, %v10289_v0  ;;  %9918 = vmatprep.mubr.msk.bf16.mxu0 %vm10291_vm2, %v10289_v0 }
 0x442   :  { %5759 = vst.msk [vmem:[%s18942_s3 + $0x58] sm:$0xff] %vm629_vm4, %v5678_v63 }
 0x443   :  { %v4463_v3 = vpop.f32.mrb[180].mxu1  ;;  %v5308_v5 = vpop.f32.mrb[180].mxu0 }
 0x444   :  { %v4828_v7 = vadd.f32 %v4747_v4, %v4463_v3  ;;  %v9650_v8 = vpop.f32.mrb[181].mxu1  ;;  %v9812_v9 = vpop.f32.mrb[181].mxu0  ;;  %v4241_v3 = vpack.c.bf16 %v4198_v59, %v4197_v58 }
 0x445   :  { %v5598_v11 = vld [vmem:[%s18942_s3 + $0x60] sm:$0xff]  ;;  %v4466_v12 = vpop.f32.mrb[182].mxu1  ;;  %v5311_v14 = vpop.f32.mrb[182].mxu0 }
 0x446   :  { %4909 = vst.msk [vmem:[%s18942_s3 + $0x70] sm:$0xff] %vm629_vm4, %v4828_v7  ;;  %v5679_v15 = vadd.f32 %v5598_v11, %v5308_v5  ;;  %v4829_v16 = vadd.f32 %v4748_v13, %v4466_v12  ;;  %v9651_v17 = vpop.f32.mrb[183].mxu1  ;;  %v9813_v18 = vpop.f32.mrb[183].mxu0  ;;  %v4754_v7 = vld [vmem:[%s18942_s3 + $0xa8] sm:$0xff] }
 0x447   :  { %v5599_v19 = vld [vmem:[%s18942_s3 + $0x68] sm:$0xff]  ;;  %v4755_v18 = vld [vmem:[%s18942_s3 + $0xb0] sm:$0xff] }
 0x448   :  { %5760 = vst.msk [vmem:[%s18942_s3 + $0x60] sm:$0xff] %vm629_vm4, %v5679_v15  ;;  %4910 = vst.msk [vmem:[%s18942_s3 + $0x78] sm:$0xff] %vm629_vm4, %v4829_v16  ;;  %v5680_v20 = vadd.f32 %v5599_v19, %v5311_v14  ;;  %9757 = vmatmul.mubr.msk.bf16.gmra.mrb[32].mxu1 %vm138_vm3, %v4238_v10  ;;  %9919 = vmatmul.mubr.msk.bf16.gmra.mrb[32].mxu0 %vm138_vm3, %v4238_v10  ;;  %v4199_v15 = vld [vmem:[%s18941_s0 + $0x274] sm:$0xff]  ;;  %v4200_v16 = vld [vmem:[%s18941_s0 + $0x27c] sm:$0xff] }
 0x449   :  { %9760 = vmatprep.mubr.msk.bf16.mxu1 %vm10291_vm2, %v10289_v0  ;;  %9922 = vmatprep.mubr.msk.bf16.mxu0 %vm10291_vm2, %v10289_v0 }
 0x44a   :  { %5761 = vst.msk [vmem:[%s18942_s3 + $0x68] sm:$0xff] %vm629_vm4, %v5680_v20 }
 0x44b   :  { %v4471_v23 = vpop.f32.mrb[184].mxu1  ;;  %v5316_v25 = vpop.f32.mrb[184].mxu0 }
 0x44c   :  { %v4830_v26 = vadd.f32 %v4749_v24, %v4471_v23  ;;  %v9654_v6 = vpop.f32.mrb[185].mxu1  ;;  %v9816_v27 = vpop.f32.mrb[185].mxu0  ;;  %v4242_v23 = vpack.c.bf16 %v4200_v16, %v4199_v15 }
 0x44d   :  { %v5600_v29 = vld [vmem:[%s18942_s3 + $0x70] sm:$0xff]  ;;  %v4474_v30 = vpop.f32.mrb[186].mxu1  ;;  %v5319_v32 = vpop.f32.mrb[186].mxu0 }
 0x44e   :  { %4911 = vst.msk [vmem:[%s18942_s3 + $0x80] sm:$0xff] %vm629_vm4, %v4830_v26  ;;  %v5681_v33 = vadd.f32 %v5600_v29, %v5316_v25  ;;  %v4831_v34 = vadd.f32 %v4750_v31, %v4474_v30  ;;  %v9655_v35 = vpop.f32.mrb[187].mxu1  ;;  %v9817_v36 = vpop.f32.mrb[187].mxu0  ;;  %v4756_v26 = vld [vmem:[%s18942_s3 + $0xb8] sm:$0xff] }
 0x44f   :  { %v5601_v37 = vld [vmem:[%s18942_s3 + $0x78] sm:$0xff]  ;;  %v4757_v36 = vld [vmem:[%s18942_s3 + $0xc0] sm:$0xff] }
 0x450   :  { %5762 = vst.msk [vmem:[%s18942_s3 + $0x70] sm:$0xff] %vm629_vm4, %v5681_v33  ;;  %4912 = vst.msk [vmem:[%s18942_s3 + $0x88] sm:$0xff] %vm629_vm4, %v4831_v34  ;;  %v5682_v38 = vadd.f32 %v5601_v37, %v5319_v32  ;;  %9761 = vmatmul.mubr.msk.bf16.gmra.mrb[36].mxu1 %vm138_vm3, %v4239_v28  ;;  %9923 = vmatmul.mubr.msk.bf16.gmra.mrb[36].mxu0 %vm138_vm3, %v4239_v28  ;;  %v4201_v33 = vld [vmem:[%s18941_s0 + $0x284] sm:$0xff]  ;;  %v4202_v34 = vld [vmem:[%s18941_s0 + $0x28c] sm:$0xff] }
 0x451   :  { %9764 = vmatprep.mubr.msk.bf16.mxu1 %vm10291_vm2, %v10289_v0  ;;  %9926 = vmatprep.mubr.msk.bf16.mxu0 %vm10291_vm2, %v10289_v0 }
 0x452   :  { %5763 = vst.msk [vmem:[%s18942_s3 + $0x78] sm:$0xff] %vm629_vm4, %v5682_v38 }
 0x453   :  { %v4479_v41 = vpop.f32.mrb[188].mxu1  ;;  %v5324_v43 = vpop.f32.mrb[188].mxu0 }
 0x454   :  { %v4832_v44 = vadd.f32 %v4751_v42, %v4479_v41  ;;  %v9658_v45 = vpop.f32.mrb[189].mxu1  ;;  %v9820_v46 = vpop.f32.mrb[189].mxu0  ;;  %v4243_v41 = vpack.c.bf16 %v4202_v34, %v4201_v33  ;;  %v6683_v33 = vld [vmem:[%s18941_s0 + $0x2e] sm:$0xff] }
 0x455   :  { %v5602_v48 = vld [vmem:[%s18942_s3 + $0x80] sm:$0xff]  ;;  %v4482_v49 = vpop.f32.mrb[190].mxu1  ;;  %v5327_v51 = vpop.f32.mrb[190].mxu0 }
 0x456   :  { %4913 = vst.msk [vmem:[%s18942_s3 + $0x90] sm:$0xff] %vm629_vm4, %v4832_v44  ;;  %v5683_v52 = vadd.f32 %v5602_v48, %v5324_v43  ;;  %v4833_v53 = vadd.f32 %v4752_v50, %v4482_v49  ;;  %v9659_v54 = vpop.f32.mrb[191].mxu1  ;;  %v9821_v55 = vpop.f32.mrb[191].mxu0  ;;  %v4758_v44 = vld [vmem:[%s18942_s3 + $0xc8] sm:$0xff] }
 0x457   :  { %v5603_v56 = vld [vmem:[%s18942_s3 + $0x88] sm:$0xff]  ;;  %v4759_v55 = vld [vmem:[%s18942_s3 + $0xd0] sm:$0xff] }
 0x458   :  { %5764 = vst.msk [vmem:[%s18942_s3 + $0x80] sm:$0xff] %vm629_vm4, %v5683_v52  ;;  %4914 = vst.msk [vmem:[%s18942_s3 + $0x98] sm:$0xff] %vm629_vm4, %v4833_v53  ;;  %v5684_v57 = vadd.f32 %v5603_v56, %v5327_v51  ;;  %9765 = vmatmul.mubr.msk.bf16.gmra.mrb[40].mxu1 %vm138_vm3, %v4240_v47  ;;  %9927 = vmatmul.mubr.msk.bf16.gmra.mrb[40].mxu0 %vm138_vm3, %v4240_v47  ;;  %v4203_v52 = vld [vmem:[%s18941_s0 + $0x294] sm:$0xff]  ;;  %v5055_v53 = vld [vmem:[%s18941_s0 + $0x29c] sm:$0xff] }
 0x459   :  { %9768 = vmatprep.mubr.msk.bf16.mxu1 %vm10291_vm2, %v10289_v0  ;;  %9930 = vmatprep.mubr.msk.bf16.mxu0 %vm10291_vm2, %v10289_v0 }
 0x45a   :  { %5765 = vst.msk [vmem:[%s18942_s3 + $0x88] sm:$0xff] %vm629_vm4, %v5684_v57 }
 0x45b   :  { %v4487_v60 = vpop.f32.mrb[192].mxu1  ;;  %v5332_v62 = vpop.f32.mrb[192].mxu0 }
 0x45c   :  { %v4834_v63 = vadd.f32 %v4753_v61, %v4487_v60  ;;  %v9662_v1 = vpop.f32.mrb[193].mxu1  ;;  %v9824_v2 = vpop.f32.mrb[193].mxu0  ;;  %v4244_v60 = vpack.c.bf16 %v4203_v52, %v4203_v52  ;;  %v5096_v61 = vpack.c.bf16 %v5055_v53, %v4203_v52  ;;  %v5833_v52 = vld [vmem:[%s18941_s0 + $0x45] sm:$0xff]  ;;  %v5834_v53 = vld [vmem:[%s18941_s0 + $0x4d] sm:$0xff] }
 0x45d   :  { %v5604_v4 = vld [vmem:[%s18942_s3 + $0x90] sm:$0xff]  ;;  %v4490_v5 = vpop.f32.mrb[194].mxu1  ;;  %v5335_v8 = vpop.f32.mrb[194].mxu0  ;;  %v4760_v1 = vld [vmem:[%s18942_s3 + $0xd8] sm:$0xff] }
 0x45e   :  { %4915 = vst.msk [vmem:[%s18942_s3 + $0xa0] sm:$0xff] %vm629_vm4, %v4834_v63  ;;  %v5685_v9 = vadd.f32 %v5604_v4, %v5332_v62  ;;  %v4835_v10 = vadd.f32 %v4754_v7, %v4490_v5  ;;  %v9663_v11 = vpop.f32.mrb[195].mxu1  ;;  %v9825_v12 = vpop.f32.mrb[195].mxu0 }
 0x45f   :  { %v5605_v13 = vld [vmem:[%s18942_s3 + $0x98] sm:$0xff]  ;;  %v5829_v11 = vld [vmem:[%s18941_s0 + $0x25] sm:$0xff]  ;;  %v5830_v12 = vld [vmem:[%s18941_s0 + $0x2d] sm:$0xff] }
 0x460   :  { %5766 = vst.msk [vmem:[%s18942_s3 + $0x90] sm:$0xff] %vm629_vm4, %v5685_v9  ;;  %4916 = vst.msk [vmem:[%s18942_s3 + $0xa8] sm:$0xff] %vm629_vm4, %v4835_v10  ;;  %v5686_v14 = vadd.f32 %v5605_v13, %v5335_v8  ;;  %9769 = vmatmul.mubr.msk.bf16.gmra.mrb[44].mxu1 %vm138_vm3, %v4241_v3  ;;  %9931 = vmatmul.mubr.msk.bf16.gmra.mrb[44].mxu0 %vm138_vm3, %v4241_v3  ;;  %v5056_v10 = vld [vmem:[%s18941_s0 + $0x2a4] sm:$0xff] }
 0x461   :  { %9772 = vmatprep.mubr.msk.bf16.mxu1 %vm10291_vm2, %v10289_v0  ;;  %9934 = vmatprep.mubr.msk.bf16.mxu0 %vm10291_vm2, %v10289_v0 }
 0x462   :  { %5767 = vst.msk [vmem:[%s18942_s3 + $0x98] sm:$0xff] %vm629_vm4, %v5686_v14  ;;  %v4761_v14 = vld [vmem:[%s18942_s3 + $0xe0] sm:$0xff] }
 0x463   :  { %v4495_v17 = vpop.f32.mrb[196].mxu1  ;;  %v5340_v19 = vpop.f32.mrb[196].mxu0 }
 0x464   :  { %v4836_v20 = vadd.f32 %v4755_v18, %v4495_v17  ;;  %v9666_v21 = vpop.f32.mrb[197].mxu1  ;;  %v9828_v22 = vpop.f32.mrb[197].mxu0 }
 0x465   :  { %v5606_v24 = vld [vmem:[%s18942_s3 + $0xa0] sm:$0xff]  ;;  %v4498_v25 = vpop.f32.mrb[198].mxu1  ;;  %v5343_v6 = vpop.f32.mrb[198].mxu0 }
 0x466   :  { %4917 = vst.msk [vmem:[%s18942_s3 + $0xb0] sm:$0xff] %vm629_vm4, %v4836_v20  ;;  %v5687_v27 = vadd.f32 %v5606_v24, %v5340_v19  ;;  %v4837_v28 = vadd.f32 %v4756_v26, %v4498_v25  ;;  %v9667_v29 = vpop.f32.mrb[199].mxu1  ;;  %v9829_v30 = vpop.f32.mrb[199].mxu0  ;;  %v5097_v19 = vpack.c.bf16 %v5056_v10, %v5056_v10  ;;  %v5910_v20 = vpack.c.bf16 %v5830_v12, %v5829_v11  ;;  %v5835_v12 = vld [vmem:[%s18941_s0 + $0x55] sm:$0xff] }
 0x467   :  { %v5607_v31 = vld [vmem:[%s18942_s3 + $0xa8] sm:$0xff]  ;;  %v5831_v30 = vld [vmem:[%s18941_s0 + $0x35] sm:$0xff] }
 0x468   :  { %5768 = vst.msk [vmem:[%s18942_s3 + $0xa0] sm:$0xff] %vm629_vm4, %v5687_v27  ;;  %4918 = vst.msk [vmem:[%s18942_s3 + $0xb8] sm:$0xff] %vm629_vm4, %v4837_v28  ;;  %v5688_v32 = vadd.f32 %v5607_v31, %v5343_v6  ;;  %9773 = vmatmul.mubr.msk.bf16.gmra.mrb[48].mxu1 %vm138_vm3, %v4242_v23  ;;  %9935 = vmatmul.mubr.msk.bf16.gmra.mrb[48].mxu0 %vm138_vm3, %v4242_v23  ;;  %v4762_v23 = vld [vmem:[%s18942_s3 + $0xe8] sm:$0xff]  ;;  %v5832_v31 = vld [vmem:[%s18941_s0 + $0x3d] sm:$0xff] }
 0x469   :  { %9776 = vmatprep.mubr.msk.bf16.mxu1 %vm10291_vm2, %v10289_v0  ;;  %9938 = vmatprep.mubr.msk.bf16.mxu0 %vm10291_vm2, %v10289_v0 }
 0x46a   :  { %5769 = vst.msk [vmem:[%s18942_s3 + $0xa8] sm:$0xff] %vm629_vm4, %v5688_v32  ;;  %v6682_v32 = vld [vmem:[%s18941_s0 + $0x26] sm:$0xff] }
 0x46b   :  { %v4503_v35 = vpop.f32.mrb[200].mxu1  ;;  %v5348_v37 = vpop.f32.mrb[200].mxu0 }
 0x46c   :  { %v4838_v38 = vadd.f32 %v4757_v36, %v4503_v35  ;;  %v9670_v39 = vpop.f32.mrb[201].mxu1  ;;  %v9832_v40 = vpop.f32.mrb[201].mxu0  ;;  %v4763_v35 = vld [vmem:[%s18942_s3 + $0xf0] sm:$0xff] }
 0x46d   :  { %v5608_v42 = vld [vmem:[%s18942_s3 + $0xb0] sm:$0xff]  ;;  %v4506_v43 = vpop.f32.mrb[202].mxu1  ;;  %v5351_v45 = vpop.f32.mrb[202].mxu0  ;;  %v5911_v40 = vpack.c.bf16 %v5832_v31, %v5831_v30 }
 0x46e   :  { %4919 = vst.msk [vmem:[%s18942_s3 + $0xc0] sm:$0xff] %vm629_vm4, %v4838_v38  ;;  %v5689_v46 = vadd.f32 %v5608_v42, %v5348_v37  ;;  %v4839_v47 = vadd.f32 %v4758_v44, %v4506_v43  ;;  %v9671_v48 = vpop.f32.mrb[203].mxu1  ;;  %v9833_v49 = vpop.f32.mrb[203].mxu0  ;;  %v4764_v44 = vld [vmem:[%s18942_s3 + $0xf8] sm:$0xff] }
 0x46f   :  { %v5609_v50 = vld [vmem:[%s18942_s3 + $0xb8] sm:$0xff] }
 0x470   :  { %5770 = vst.msk [vmem:[%s18942_s3 + $0xb0] sm:$0xff] %vm629_vm4, %v5689_v46  ;;  %4920 = vst.msk [vmem:[%s18942_s3 + $0xc8] sm:$0xff] %vm629_vm4, %v4839_v47  ;;  %v5690_v51 = vadd.f32 %v5609_v50, %v5351_v45  ;;  %9777 = vmatmul.mubr.msk.bf16.gmra.mrb[52].mxu1 %vm138_vm3, %v4243_v41  ;;  %9939 = vmatmul.mubr.msk.bf16.gmra.mrb[52].mxu0 %vm138_vm3, %v4243_v41  ;;  %v6763_v41 = vpack.c.bf16 %v6683_v33, %v6682_v32  ;;  %v5837_v33 = vld [vmem:[%s18941_s0 + $0x65] sm:$0xff] }
 0x471   :  { %9780 = vmatprep.mubr.msk.bf16.mxu1 %vm10291_vm2, %v10289_v0  ;;  %9942 = vmatprep.mubr.msk.bf16.mxu0 %vm10291_vm2, %v10289_v0 }
 0x472   :  { %5771 = vst.msk [vmem:[%s18942_s3 + $0xb8] sm:$0xff] %vm629_vm4, %v5690_v51 }
 0x473   :  { %v4511_v54 = vpop.f32.mrb[204].mxu1  ;;  %v5356_v56 = vpop.f32.mrb[204].mxu0 }
 0x474   :  { %v4840_v57 = vadd.f32 %v4759_v55, %v4511_v54  ;;  %v9674_v58 = vpop.f32.mrb[205].mxu1  ;;  %v9836_v59 = vpop.f32.mrb[205].mxu0  ;;  %v6684_v54 = vld [vmem:[%s18941_s0 + $0x36] sm:$0xff]  ;;  %v6685_v55 = vld [vmem:[%s18941_s0 + $0x3e] sm:$0xff] }
 0x475   :  { %v5610_v62 = vld [vmem:[%s18942_s3 + $0xc0] sm:$0xff]  ;;  %v4514_v63 = vpop.f32.mrb[206].mxu1  ;;  %v5359_v2 = vpop.f32.mrb[206].mxu0 }
 0x476   :  { %4921 = vst.msk [vmem:[%s18942_s3 + $0xd0] sm:$0xff] %vm629_vm4, %v4840_v57  ;;  %v5691_v3 = vadd.f32 %v5610_v62, %v5356_v56  ;;  %v4841_v4 = vadd.f32 %v4760_v1, %v4514_v63  ;;  %v9675_v5 = vpop.f32.mrb[207].mxu1  ;;  %v9837_v7 = vpop.f32.mrb[207].mxu0  ;;  %v4765_v57 = vld [vmem:[%s18942_s3 + $0x100] sm:$0xff]  ;;  %v5912_v62 = vpack.c.bf16 %v5834_v53, %v5833_v52  ;;  %v6764_v63 = vpack.c.bf16 %v6685_v55, %v6684_v54  ;;  %v5839_v55 = vld [vmem:[%s18941_s0 + $0x75] sm:$0xff] }
 0x477   :  { %v5611_v8 = vld [vmem:[%s18942_s3 + $0xc8] sm:$0xff] }
 0x478   :  { %5772 = vst.msk [vmem:[%s18942_s3 + $0xc0] sm:$0xff] %vm629_vm4, %v5691_v3  ;;  %4922 = vst.msk [vmem:[%s18942_s3 + $0xd8] sm:$0xff] %vm629_vm4, %v4841_v4  ;;  %v5692_v9 = vadd.f32 %v5611_v8, %v5359_v2  ;;  %9781 = vmatmul.mubr.msk.bf16.gmra.mrb[56].mxu1 %vm138_vm3, %v4244_v60  ;;  %9943 = vmatmul.mubr.msk.bf16.gmra.mrb[56].mxu0 %vm138_vm3, %v5096_v61  ;;  %v4766_v3 = vld [vmem:[%s18942_s3 + $0x108] sm:$0xff] }
 0x479   :  { %9946 = vmatprep.mubr.msk.bf16.mxu0 %vm10291_vm2, %v10289_v0  ;;  %9952 = vmatprep.mubr.msk.bf16.mxu1 %vm10291_vm2, %v10289_v0 }
 0x47a   :  { %5773 = vst.msk [vmem:[%s18942_s3 + $0xc8] sm:$0xff] %vm629_vm4, %v5692_v9 }
 0x47b   :  { %v4519_v13 = vpop.f32.mrb[208].mxu1  ;;  %v5364_v15 = vpop.f32.mrb[208].mxu0 }
 0x47c   :  { %v4842_v16 = vadd.f32 %v4761_v14, %v4519_v13  ;;  %v9678_v17 = vpop.f32.mrb[209].mxu1  ;;  %v9840_v18 = vpop.f32.mrb[209].mxu0  ;;  %v5836_v13 = vld [vmem:[%s18941_s0 + $0x5d] sm:$0xff]  ;;  %v6686_v14 = vld [vmem:[%s18941_s0 + $0x46] sm:$0xff] }
 0x47d   :  { %v5612_v21 = vld [vmem:[%s18942_s3 + $0xd0] sm:$0xff]  ;;  %v4522_v22 = vpop.f32.mrb[210].mxu1  ;;  %v5367_v24 = vpop.f32.mrb[210].mxu0 }
 0x47e   :  { %4923 = vst.msk [vmem:[%s18942_s3 + $0xe0] sm:$0xff] %vm629_vm4, %v4842_v16  ;;  %v5693_v25 = vadd.f32 %v5612_v21, %v5364_v15  ;;  %v4843_v26 = vadd.f32 %v4762_v23, %v4522_v22  ;;  %v9679_v6 = vpop.f32.mrb[211].mxu1  ;;  %v9841_v27 = vpop.f32.mrb[211].mxu0  ;;  %v6687_v15 = vld [vmem:[%s18941_s0 + $0x4e] sm:$0xff]  ;;  %v5913_v22 = vpack.c.bf16 %v5836_v13, %v5835_v12 }
 0x47f   :  { %v5613_v28 = vld [vmem:[%s18942_s3 + $0xd8] sm:$0xff]  ;;  %v4767_v17 = vld [vmem:[%s18942_s3 + $0x110] sm:$0xff]  ;;  %v6765_v23 = vpack.c.bf16 %v6687_v15, %v6686_v14  ;;  %v5841_v15 = vld [vmem:[%s18941_s0 + $0x85] sm:$0xff] }
 0x480   :  { %5774 = vst.msk [vmem:[%s18942_s3 + $0xd0] sm:$0xff] %vm629_vm4, %v5693_v25  ;;  %4924 = vst.msk [vmem:[%s18942_s3 + $0xe8] sm:$0xff] %vm629_vm4, %v4843_v26  ;;  %v5694_v29 = vadd.f32 %v5613_v28, %v5367_v24  ;;  %9947 = vmatmul.mubr.msk.bf16.gmra.mrb[60].mxu0 %vm138_vm3, %v5097_v19  ;;  %9953 = vmatmul.mubr.msk.bf16.vlgmr.msra.gmra.mrb[60].mxu1 %vm138_vm3, %v5910_v20  ;;  %v4768_v26 = vld [vmem:[%s18942_s3 + $0x118] sm:$0xff] }
 0x481   :  { %9956 = vmatprep.mubr.msk.bf16.mxu1 %vm10291_vm2, %v10289_v0  ;;  %10118 = vmatprep.mubr.msk.bf16.mxu0 %vm10291_vm2, %v10289_v0 }
 0x482   :  { %5775 = vst.msk [vmem:[%s18942_s3 + $0xd8] sm:$0xff] %vm629_vm4, %v5694_v29 }
 0x483   :  { %v4527_v34 = vpop.f32.mrb[212].mxu1  ;;  %v5372_v36 = vpop.f32.mrb[212].mxu0 }
 0x484   :  { %v4844_v37 = vadd.f32 %v4763_v35, %v4527_v34  ;;  %v9682_v38 = vpop.f32.mrb[213].mxu1  ;;  %v9844_v39 = vpop.f32.mrb[213].mxu0  ;;  %v5838_v34 = vld [vmem:[%s18941_s0 + $0x6d] sm:$0xff]  ;;  %v6688_v35 = vld [vmem:[%s18941_s0 + $0x56] sm:$0xff] }
 0x485   :  { %v5614_v42 = vld [vmem:[%s18942_s3 + $0xe0] sm:$0xff]  ;;  %v4530_v43 = vpop.f32.mrb[214].mxu1  ;;  %v5375_v45 = vpop.f32.mrb[214].mxu0 }
 0x486   :  { %4925 = vst.msk [vmem:[%s18942_s3 + $0xf0] sm:$0xff] %vm629_vm4, %v4844_v37  ;;  %v5695_v46 = vadd.f32 %v5614_v42, %v5372_v36  ;;  %v4845_v47 = vadd.f32 %v4764_v44, %v4530_v43  ;;  %v9683_v48 = vpop.f32.mrb[215].mxu1  ;;  %v9845_v49 = vpop.f32.mrb[215].mxu0  ;;  %v6689_v36 = vld [vmem:[%s18941_s0 + $0x5e] sm:$0xff]  ;;  %v5914_v43 = vpack.c.bf16 %v5838_v34, %v5837_v33 }
 0x487   :  { %v5615_v50 = vld [vmem:[%s18942_s3 + $0xe8] sm:$0xff]  ;;  %v4769_v38 = vld [vmem:[%s18942_s3 + $0x120] sm:$0xff]  ;;  %v6766_v44 = vpack.c.bf16 %v6689_v36, %v6688_v35  ;;  %v5843_v36 = vld [vmem:[%s18941_s0 + $0x95] sm:$0xff] }
 0x488   :  { %5776 = vst.msk [vmem:[%s18942_s3 + $0xe0] sm:$0xff] %vm629_vm4, %v5695_v46  ;;  %4926 = vst.msk [vmem:[%s18942_s3 + $0xf8] sm:$0xff] %vm629_vm4, %v4845_v47  ;;  %v5696_v51 = vadd.f32 %v5615_v50, %v5375_v45  ;;  %9957 = vmatmul.mubr.msk.bf16.gmra.mrb[64].mxu1 %vm138_vm3, %v5911_v40  ;;  %10119 = vmatmul.mubr.msk.bf16.vlgmr.msra.gmra.mrb[64].mxu0 %vm138_vm3, %v6763_v41  ;;  %v4770_v47 = vld [vmem:[%s18942_s3 + $0x128] sm:$0xff] }
 0x489   :  { %9960 = vmatprep.mubr.msk.bf16.mxu1 %vm10291_vm2, %v10289_v0  ;;  %10122 = vmatprep.mubr.msk.bf16.mxu0 %vm10291_vm2, %v10289_v0 }
 0x48a   :  { %5777 = vst.msk [vmem:[%s18942_s3 + $0xe8] sm:$0xff] %vm629_vm4, %v5696_v51 }
 0x48b   :  { %v4535_v56 = vpop.f32.mrb[216].mxu1  ;;  %v5380_v58 = vpop.f32.mrb[216].mxu0 }
 0x48c   :  { %v4846_v59 = vadd.f32 %v4765_v57, %v4535_v56  ;;  %v9686_v60 = vpop.f32.mrb[217].mxu1  ;;  %v9848_v61 = vpop.f32.mrb[217].mxu0  ;;  %v5840_v56 = vld [vmem:[%s18941_s0 + $0x7d] sm:$0xff]  ;;  %v6690_v57 = vld [vmem:[%s18941_s0 + $0x66] sm:$0xff] }
 0x48d   :  { %v5616_v1 = vld [vmem:[%s18942_s3 + $0xf0] sm:$0xff]  ;;  %v4538_v2 = vpop.f32.mrb[218].mxu1  ;;  %v5383_v4 = vpop.f32.mrb[218].mxu0 }
 0x48e   :  { %4927 = vst.msk [vmem:[%s18942_s3 + $0x100] sm:$0xff] %vm629_vm4, %v4846_v59  ;;  %v5697_v5 = vadd.f32 %v5616_v1, %v5380_v58  ;;  %v4847_v7 = vadd.f32 %v4766_v3, %v4538_v2  ;;  %v9687_v8 = vpop.f32.mrb[219].mxu1  ;;  %v9849_v9 = vpop.f32.mrb[219].mxu0  ;;  %v6691_v58 = vld [vmem:[%s18941_s0 + $0x6e] sm:$0xff]  ;;  %v5915_v2 = vpack.c.bf16 %v5840_v56, %v5839_v55 }
 0x48f   :  { %v5617_v10 = vld [vmem:[%s18942_s3 + $0xf8] sm:$0xff]  ;;  %v4771_v60 = vld [vmem:[%s18942_s3 + $0x130] sm:$0xff]  ;;  %v6767_v3 = vpack.c.bf16 %v6691_v58, %v6690_v57  ;;  %v5845_v58 = vld [vmem:[%s18941_s0 + $0xa5] sm:$0xff] }
 0x490   :  { %5778 = vst.msk [vmem:[%s18942_s3 + $0xf0] sm:$0xff] %vm629_vm4, %v5697_v5  ;;  %4928 = vst.msk [vmem:[%s18942_s3 + $0x108] sm:$0xff] %vm629_vm4, %v4847_v7  ;;  %v5698_v11 = vadd.f32 %v5617_v10, %v5383_v4  ;;  %9961 = vmatmul.mubr.msk.bf16.gmra.mrb[68].mxu1 %vm138_vm3, %v5912_v62  ;;  %10123 = vmatmul.mubr.msk.bf16.gmra.mrb[68].mxu0 %vm138_vm3, %v6764_v63  ;;  %v4772_v7 = vld [vmem:[%s18942_s3 + $0x138] sm:$0xff] }
 0x491   :  { %9964 = vmatprep.mubr.msk.bf16.mxu1 %vm10291_vm2, %v10289_v0  ;;  %10126 = vmatprep.mubr.msk.bf16.mxu0 %vm10291_vm2, %v10289_v0 }
 0x492   :  { %5779 = vst.msk [vmem:[%s18942_s3 + $0xf8] sm:$0xff] %vm629_vm4, %v5698_v11 }
 0x493   :  { %v4543_v16 = vpop.f32.mrb[220].mxu1  ;;  %v5388_v18 = vpop.f32.mrb[220].mxu0 }
 0x494   :  { %v4848_v19 = vadd.f32 %v4767_v17, %v4543_v16  ;;  %v9690_v20 = vpop.f32.mrb[221].mxu1  ;;  %v9852_v21 = vpop.f32.mrb[221].mxu0  ;;  %v5842_v16 = vld [vmem:[%s18941_s0 + $0x8d] sm:$0xff]  ;;  %v6692_v17 = vld [vmem:[%s18941_s0 + $0x76] sm:$0xff] }
 0x495   :  { %v5618_v24 = vld [vmem:[%s18942_s3 + $0x100] sm:$0xff]  ;;  %v4546_v25 = vpop.f32.mrb[222].mxu1  ;;  %v5391_v6 = vpop.f32.mrb[222].mxu0 }
 0x496   :  { %4929 = vst.msk [vmem:[%s18942_s3 + $0x110] sm:$0xff] %vm629_vm4, %v4848_v19  ;;  %v5699_v27 = vadd.f32 %v5618_v24, %v5388_v18  ;;  %v4849_v28 = vadd.f32 %v4768_v26, %v4546_v25  ;;  %v9691_v29 = vpop.f32.mrb[223].mxu1  ;;  %v9853_v30 = vpop.f32.mrb[223].mxu0  ;;  %v6693_v18 = vld [vmem:[%s18941_s0 + $0x7e] sm:$0xff]  ;;  %v5916_v25 = vpack.c.bf16 %v5842_v16, %v5841_v15 }
 0x497   :  { %v5619_v31 = vld [vmem:[%s18942_s3 + $0x108] sm:$0xff]  ;;  %v4773_v20 = vld [vmem:[%s18942_s3 + $0x140] sm:$0xff]  ;;  %v6768_v26 = vpack.c.bf16 %v6693_v18, %v6692_v17  ;;  %v5847_v18 = vld [vmem:[%s18941_s0 + $0xb5] sm:$0xff] }
 0x498   :  { %5780 = vst.msk [vmem:[%s18942_s3 + $0x100] sm:$0xff] %vm629_vm4, %v5699_v27  ;;  %4930 = vst.msk [vmem:[%s18942_s3 + $0x118] sm:$0xff] %vm629_vm4, %v4849_v28  ;;  %v5700_v32 = vadd.f32 %v5619_v31, %v5391_v6  ;;  %9965 = vmatmul.mubr.msk.bf16.gmra.mrb[72].mxu1 %vm138_vm3, %v5913_v22  ;;  %10127 = vmatmul.mubr.msk.bf16.gmra.mrb[72].mxu0 %vm138_vm3, %v6765_v23  ;;  %v4774_v28 = vld [vmem:[%s18942_s3 + $0x148] sm:$0xff] }
 0x499   :  { %9968 = vmatprep.mubr.msk.bf16.mxu1 %vm10291_vm2, %v10289_v0  ;;  %10130 = vmatprep.mubr.msk.bf16.mxu0 %vm10291_vm2, %v10289_v0 }
 0x49a   :  { %5781 = vst.msk [vmem:[%s18942_s3 + $0x108] sm:$0xff] %vm629_vm4, %v5700_v32 }
 0x49b   :  { %v4551_v37 = vpop.f32.mrb[224].mxu1  ;;  %v5396_v39 = vpop.f32.mrb[224].mxu0 }
 0x49c   :  { %v4850_v40 = vadd.f32 %v4769_v38, %v4551_v37  ;;  %v9694_v41 = vpop.f32.mrb[225].mxu1  ;;  %v9856_v42 = vpop.f32.mrb[225].mxu0  ;;  %v5844_v37 = vld [vmem:[%s18941_s0 + $0x9d] sm:$0xff]  ;;  %v6694_v38 = vld [vmem:[%s18941_s0 + $0x86] sm:$0xff] }
 0x49d   :  { %v5620_v45 = vld [vmem:[%s18942_s3 + $0x110] sm:$0xff]  ;;  %v4554_v46 = vpop.f32.mrb[226].mxu1  ;;  %v5399_v48 = vpop.f32.mrb[226].mxu0 }
 0x49e   :  { %4931 = vst.msk [vmem:[%s18942_s3 + $0x120] sm:$0xff] %vm629_vm4, %v4850_v40  ;;  %v5701_v49 = vadd.f32 %v5620_v45, %v5396_v39  ;;  %v4851_v50 = vadd.f32 %v4770_v47, %v4554_v46  ;;  %v9695_v51 = vpop.f32.mrb[227].mxu1  ;;  %v9857_v52 = vpop.f32.mrb[227].mxu0  ;;  %v6695_v39 = vld [vmem:[%s18941_s0 + $0x8e] sm:$0xff]  ;;  %v5917_v46 = vpack.c.bf16 %v5844_v37, %v5843_v36 }
 0x49f   :  { %v5621_v53 = vld [vmem:[%s18942_s3 + $0x118] sm:$0xff]  ;;  %v4775_v41 = vld [vmem:[%s18942_s3 + $0x150] sm:$0xff]  ;;  %v6769_v47 = vpack.c.bf16 %v6695_v39, %v6694_v38  ;;  %v5849_v39 = vld [vmem:[%s18941_s0 + $0xc5] sm:$0xff] }
 0x4a0   :  { %5782 = vst.msk [vmem:[%s18942_s3 + $0x110] sm:$0xff] %vm629_vm4, %v5701_v49  ;;  %4932 = vst.msk [vmem:[%s18942_s3 + $0x128] sm:$0xff] %vm629_vm4, %v4851_v50  ;;  %v5702_v54 = vadd.f32 %v5621_v53, %v5399_v48  ;;  %9969 = vmatmul.mubr.msk.bf16.gmra.mrb[76].mxu1 %vm138_vm3, %v5914_v43  ;;  %10131 = vmatmul.mubr.msk.bf16.gmra.mrb[76].mxu0 %vm138_vm3, %v6766_v44  ;;  %v4776_v50 = vld [vmem:[%s18942_s3 + $0x158] sm:$0xff] }
 0x4a1   :  { %9972 = vmatprep.mubr.msk.bf16.mxu1 %vm10291_vm2, %v10289_v0  ;;  %10134 = vmatprep.mubr.msk.bf16.mxu0 %vm10291_vm2, %v10289_v0 }
 0x4a2   :  { %5783 = vst.msk [vmem:[%s18942_s3 + $0x118] sm:$0xff] %vm629_vm4, %v5702_v54 }
 0x4a3   :  { %v4559_v59 = vpop.f32.mrb[228].mxu1  ;;  %v5404_v61 = vpop.f32.mrb[228].mxu0 }
 0x4a4   :  { %v4852_v62 = vadd.f32 %v4771_v60, %v4559_v59  ;;  %v9698_v63 = vpop.f32.mrb[229].mxu1  ;;  %v9860_v1 = vpop.f32.mrb[229].mxu0  ;;  %v5846_v59 = vld [vmem:[%s18941_s0 + $0xad] sm:$0xff]  ;;  %v6696_v60 = vld [vmem:[%s18941_s0 + $0x96] sm:$0xff] }
 0x4a5   :  { %v5622_v4 = vld [vmem:[%s18942_s3 + $0x120] sm:$0xff]  ;;  %v4562_v5 = vpop.f32.mrb[230].mxu1  ;;  %v5407_v8 = vpop.f32.mrb[230].mxu0 }
 0x4a6   :  { %4933 = vst.msk [vmem:[%s18942_s3 + $0x130] sm:$0xff] %vm629_vm4, %v4852_v62  ;;  %v5703_v9 = vadd.f32 %v5622_v4, %v5404_v61  ;;  %v4853_v10 = vadd.f32 %v4772_v7, %v4562_v5  ;;  %v9699_v11 = vpop.f32.mrb[231].mxu1  ;;  %v9861_v12 = vpop.f32.mrb[231].mxu0  ;;  %v6697_v61 = vld [vmem:[%s18941_s0 + $0x9e] sm:$0xff]  ;;  %v5918_v5 = vpack.c.bf16 %v5846_v59, %v5845_v58 }
 0x4a7   :  { %v5623_v13 = vld [vmem:[%s18942_s3 + $0x128] sm:$0xff]  ;;  %v4777_v63 = vld [vmem:[%s18942_s3 + $0x160] sm:$0xff]  ;;  %v6770_v7 = vpack.c.bf16 %v6697_v61, %v6696_v60  ;;  %v5851_v61 = vld [vmem:[%s18941_s0 + $0xd5] sm:$0xff] }
 0x4a8   :  { %5784 = vst.msk [vmem:[%s18942_s3 + $0x120] sm:$0xff] %vm629_vm4, %v5703_v9  ;;  %4934 = vst.msk [vmem:[%s18942_s3 + $0x138] sm:$0xff] %vm629_vm4, %v4853_v10  ;;  %v5704_v14 = vadd.f32 %v5623_v13, %v5407_v8  ;;  %9973 = vmatmul.mubr.msk.bf16.gmra.mrb[80].mxu1 %vm138_vm3, %v5915_v2  ;;  %10135 = vmatmul.mubr.msk.bf16.gmra.mrb[80].mxu0 %vm138_vm3, %v6767_v3  ;;  %v4778_v10 = vld [vmem:[%s18942_s3 + $0x168] sm:$0xff] }
 0x4a9   :  { %9976 = vmatprep.mubr.msk.bf16.mxu1 %vm10291_vm2, %v10289_v0  ;;  %10138 = vmatprep.mubr.msk.bf16.mxu0 %vm10291_vm2, %v10289_v0 }
 0x4aa   :  { %5785 = vst.msk [vmem:[%s18942_s3 + $0x128] sm:$0xff] %vm629_vm4, %v5704_v14 }
 0x4ab   :  { %v4567_v19 = vpop.f32.mrb[232].mxu1  ;;  %v5412_v21 = vpop.f32.mrb[232].mxu0 }
 0x4ac   :  { %v4854_v22 = vadd.f32 %v4773_v20, %v4567_v19  ;;  %v9702_v23 = vpop.f32.mrb[233].mxu1  ;;  %v9864_v24 = vpop.f32.mrb[233].mxu0  ;;  %v5848_v19 = vld [vmem:[%s18941_s0 + $0xbd] sm:$0xff]  ;;  %v6698_v20 = vld [vmem:[%s18941_s0 + $0xa6] sm:$0xff] }
 0x4ad   :  { %v5624_v6 = vld [vmem:[%s18942_s3 + $0x130] sm:$0xff]  ;;  %v4570_v27 = vpop.f32.mrb[234].mxu1  ;;  %v5415_v29 = vpop.f32.mrb[234].mxu0 }
 0x4ae   :  { %4935 = vst.msk [vmem:[%s18942_s3 + $0x140] sm:$0xff] %vm629_vm4, %v4854_v22  ;;  %v5705_v30 = vadd.f32 %v5624_v6, %v5412_v21  ;;  %v4855_v31 = vadd.f32 %v4774_v28, %v4570_v27  ;;  %v9703_v32 = vpop.f32.mrb[235].mxu1  ;;  %v9865_v33 = vpop.f32.mrb[235].mxu0  ;;  %v6699_v21 = vld [vmem:[%s18941_s0 + $0xae] sm:$0xff]  ;;  %v5919_v27 = vpack.c.bf16 %v5848_v19, %v5847_v18 }
 0x4af   :  { %v5625_v34 = vld [vmem:[%s18942_s3 + $0x138] sm:$0xff]  ;;  %v4779_v23 = vld [vmem:[%s18942_s3 + $0x170] sm:$0xff]  ;;  %v6771_v28 = vpack.c.bf16 %v6699_v21, %v6698_v20  ;;  %v5853_v21 = vld [vmem:[%s18941_s0 + $0xe5] sm:$0xff] }
 0x4b0   :  { %5786 = vst.msk [vmem:[%s18942_s3 + $0x130] sm:$0xff] %vm629_vm4, %v5705_v30  ;;  %4936 = vst.msk [vmem:[%s18942_s3 + $0x148] sm:$0xff] %vm629_vm4, %v4855_v31  ;;  %v5706_v35 = vadd.f32 %v5625_v34, %v5415_v29  ;;  %9977 = vmatmul.mubr.msk.bf16.gmra.mrb[84].mxu1 %vm138_vm3, %v5916_v25  ;;  %10139 = vmatmul.mubr.msk.bf16.gmra.mrb[84].mxu0 %vm138_vm3, %v6768_v26  ;;  %v4780_v31 = vld [vmem:[%s18942_s3 + $0x178] sm:$0xff] }
 0x4b1   :  { %9980 = vmatprep.mubr.msk.bf16.mxu1 %vm10291_vm2, %v10289_v0  ;;  %10142 = vmatprep.mubr.msk.bf16.mxu0 %vm10291_vm2, %v10289_v0 }
 0x4b2   :  { %5787 = vst.msk [vmem:[%s18942_s3 + $0x138] sm:$0xff] %vm629_vm4, %v5706_v35 }
 0x4b3   :  { %v4575_v40 = vpop.f32.mrb[236].mxu1  ;;  %v5420_v42 = vpop.f32.mrb[236].mxu0 }
 0x4b4   :  { %v4856_v43 = vadd.f32 %v4775_v41, %v4575_v40  ;;  %v9706_v44 = vpop.f32.mrb[237].mxu1  ;;  %v9868_v45 = vpop.f32.mrb[237].mxu0  ;;  %v5850_v40 = vld [vmem:[%s18941_s0 + $0xcd] sm:$0xff]  ;;  %v6700_v41 = vld [vmem:[%s18941_s0 + $0xb6] sm:$0xff] }
 0x4b5   :  { %v5626_v48 = vld [vmem:[%s18942_s3 + $0x140] sm:$0xff]  ;;  %v4578_v49 = vpop.f32.mrb[238].mxu1  ;;  %v5423_v51 = vpop.f32.mrb[238].mxu0 }
 0x4b6   :  { %4937 = vst.msk [vmem:[%s18942_s3 + $0x150] sm:$0xff] %vm629_vm4, %v4856_v43  ;;  %v5707_v52 = vadd.f32 %v5626_v48, %v5420_v42  ;;  %v4857_v53 = vadd.f32 %v4776_v50, %v4578_v49  ;;  %v9707_v54 = vpop.f32.mrb[239].mxu1  ;;  %v9869_v55 = vpop.f32.mrb[239].mxu0  ;;  %v6701_v42 = vld [vmem:[%s18941_s0 + $0xbe] sm:$0xff]  ;;  %v5920_v49 = vpack.c.bf16 %v5850_v40, %v5849_v39 }
 0x4b7   :  { %v5627_v56 = vld [vmem:[%s18942_s3 + $0x148] sm:$0xff]  ;;  %v4781_v44 = vld [vmem:[%s18942_s3 + $0x180] sm:$0xff]  ;;  %v6772_v50 = vpack.c.bf16 %v6701_v42, %v6700_v41  ;;  %v5855_v42 = vld [vmem:[%s18941_s0 + $0xf5] sm:$0xff] }
 0x4b8   :  { %5788 = vst.msk [vmem:[%s18942_s3 + $0x140] sm:$0xff] %vm629_vm4, %v5707_v52  ;;  %4938 = vst.msk [vmem:[%s18942_s3 + $0x158] sm:$0xff] %vm629_vm4, %v4857_v53  ;;  %v5708_v57 = vadd.f32 %v5627_v56, %v5423_v51  ;;  %9981 = vmatmul.mubr.msk.bf16.gmra.mrb[88].mxu1 %vm138_vm3, %v5917_v46  ;;  %10143 = vmatmul.mubr.msk.bf16.gmra.mrb[88].mxu0 %vm138_vm3, %v6769_v47  ;;  %v4782_v53 = vld [vmem:[%s18942_s3 + $0x188] sm:$0xff] }
 0x4b9   :  { %9984 = vmatprep.mubr.msk.bf16.mxu1 %vm10291_vm2, %v10289_v0  ;;  %10146 = vmatprep.mubr.msk.bf16.mxu0 %vm10291_vm2, %v10289_v0 }
 0x4ba   :  { %5789 = vst.msk [vmem:[%s18942_s3 + $0x148] sm:$0xff] %vm629_vm4, %v5708_v57 }
 0x4bb   :  { %v4583_v62 = vpop.f32.mrb[240].mxu1  ;;  %v5428_v1 = vpop.f32.mrb[240].mxu0 }
 0x4bc   :  { %v4858_v2 = vadd.f32 %v4777_v63, %v4583_v62  ;;  %v9710_v3 = vpop.f32.mrb[241].mxu1  ;;  %v9872_v4 = vpop.f32.mrb[241].mxu0  ;;  %v5852_v62 = vld [vmem:[%s18941_s0 + $0xdd] sm:$0xff]  ;;  %v6702_v63 = vld [vmem:[%s18941_s0 + $0xc6] sm:$0xff] }
 0x4bd   :  { %v5628_v8 = vld [vmem:[%s18942_s3 + $0x150] sm:$0xff]  ;;  %v4586_v9 = vpop.f32.mrb[242].mxu1  ;;  %v5431_v11 = vpop.f32.mrb[242].mxu0 }
 0x4be   :  { %4939 = vst.msk [vmem:[%s18942_s3 + $0x160] sm:$0xff] %vm629_vm4, %v4858_v2  ;;  %v5709_v12 = vadd.f32 %v5628_v8, %v5428_v1  ;;  %v4859_v13 = vadd.f32 %v4778_v10, %v4586_v9  ;;  %v9711_v14 = vpop.f32.mrb[243].mxu1  ;;  %v9873_v15 = vpop.f32.mrb[243].mxu0  ;;  %v6703_v1 = vld [vmem:[%s18941_s0 + $0xce] sm:$0xff]  ;;  %v5921_v9 = vpack.c.bf16 %v5852_v62, %v5851_v61 }
 0x4bf   :  { %v5629_v16 = vld [vmem:[%s18942_s3 + $0x158] sm:$0xff]  ;;  %v4783_v3 = vld [vmem:[%s18942_s3 + $0x190] sm:$0xff]  ;;  %v6773_v10 = vpack.c.bf16 %v6703_v1, %v6702_v63  ;;  %v5857_v1 = vld [vmem:[%s18941_s0 + $0x105] sm:$0xff] }
 0x4c0   :  { %5790 = vst.msk [vmem:[%s18942_s3 + $0x150] sm:$0xff] %vm629_vm4, %v5709_v12  ;;  %4940 = vst.msk [vmem:[%s18942_s3 + $0x168] sm:$0xff] %vm629_vm4, %v4859_v13  ;;  %v5710_v17 = vadd.f32 %v5629_v16, %v5431_v11  ;;  %9985 = vmatmul.mubr.msk.bf16.gmra.mrb[92].mxu1 %vm138_vm3, %v5918_v5  ;;  %10147 = vmatmul.mubr.msk.bf16.gmra.mrb[92].mxu0 %vm138_vm3, %v6770_v7  ;;  %v4784_v13 = vld [vmem:[%s18942_s3 + $0x198] sm:$0xff] }
 0x4c1   :  { %9988 = vmatprep.mubr.msk.bf16.mxu1 %vm10291_vm2, %v10289_v0  ;;  %10150 = vmatprep.mubr.msk.bf16.mxu0 %vm10291_vm2, %v10289_v0 }
 0x4c2   :  { %5791 = vst.msk [vmem:[%s18942_s3 + $0x158] sm:$0xff] %vm629_vm4, %v5710_v17 }
 0x4c3   :  { %v4591_v22 = vpop.f32.mrb[244].mxu1  ;;  %v5436_v24 = vpop.f32.mrb[244].mxu0 }
 0x4c4   :  { %v4860_v25 = vadd.f32 %v4779_v23, %v4591_v22  ;;  %v9714_v26 = vpop.f32.mrb[245].mxu1  ;;  %v9876_v6 = vpop.f32.mrb[245].mxu0  ;;  %v5854_v22 = vld [vmem:[%s18941_s0 + $0xed] sm:$0xff]  ;;  %v6704_v23 = vld [vmem:[%s18941_s0 + $0xd6] sm:$0xff] }
 0x4c5   :  { %v5630_v29 = vld [vmem:[%s18942_s3 + $0x160] sm:$0xff]  ;;  %v4594_v30 = vpop.f32.mrb[246].mxu1  ;;  %v5439_v32 = vpop.f32.mrb[246].mxu0 }
 0x4c6   :  { %4941 = vst.msk [vmem:[%s18942_s3 + $0x170] sm:$0xff] %vm629_vm4, %v4860_v25  ;;  %v5711_v33 = vadd.f32 %v5630_v29, %v5436_v24  ;;  %v4861_v34 = vadd.f32 %v4780_v31, %v4594_v30  ;;  %v9715_v35 = vpop.f32.mrb[247].mxu1  ;;  %v9877_v36 = vpop.f32.mrb[247].mxu0  ;;  %v6705_v24 = vld [vmem:[%s18941_s0 + $0xde] sm:$0xff]  ;;  %v5922_v30 = vpack.c.bf16 %v5854_v22, %v5853_v21 }
 0x4c7   :  { %v5631_v37 = vld [vmem:[%s18942_s3 + $0x168] sm:$0xff]  ;;  %v4785_v26 = vld [vmem:[%s18942_s3 + $0x1a0] sm:$0xff]  ;;  %v6774_v31 = vpack.c.bf16 %v6705_v24, %v6704_v23  ;;  %v5859_v24 = vld [vmem:[%s18941_s0 + $0x115] sm:$0xff] }
 0x4c8   :  { %5792 = vst.msk [vmem:[%s18942_s3 + $0x160] sm:$0xff] %vm629_vm4, %v5711_v33  ;;  %4942 = vst.msk [vmem:[%s18942_s3 + $0x178] sm:$0xff] %vm629_vm4, %v4861_v34  ;;  %v5712_v38 = vadd.f32 %v5631_v37, %v5439_v32  ;;  %9989 = vmatmul.mubr.msk.bf16.gmra.mrb[96].mxu1 %vm138_vm3, %v5919_v27  ;;  %10151 = vmatmul.mubr.msk.bf16.gmra.mrb[96].mxu0 %vm138_vm3, %v6771_v28  ;;  %v4786_v34 = vld [vmem:[%s18942_s3 + $0x1a8] sm:$0xff] }
 0x4c9   :  { %9992 = vmatprep.mubr.msk.bf16.mxu1 %vm10291_vm2, %v10289_v0  ;;  %10154 = vmatprep.mubr.msk.bf16.mxu0 %vm10291_vm2, %v10289_v0 }
 0x4ca   :  { %5793 = vst.msk [vmem:[%s18942_s3 + $0x168] sm:$0xff] %vm629_vm4, %v5712_v38 }
 0x4cb   :  { %v4599_v43 = vpop.f32.mrb[248].mxu1  ;;  %v5444_v45 = vpop.f32.mrb[248].mxu0 }
 0x4cc   :  { %v4862_v46 = vadd.f32 %v4781_v44, %v4599_v43  ;;  %v9718_v47 = vpop.f32.mrb[249].mxu1  ;;  %v9880_v48 = vpop.f32.mrb[249].mxu0  ;;  %v5856_v43 = vld [vmem:[%s18941_s0 + $0xfd] sm:$0xff]  ;;  %v6706_v44 = vld [vmem:[%s18941_s0 + $0xe6] sm:$0xff] }
 0x4cd   :  { %v5632_v51 = vld [vmem:[%s18942_s3 + $0x170] sm:$0xff]  ;;  %v4602_v52 = vpop.f32.mrb[250].mxu1  ;;  %v5447_v54 = vpop.f32.mrb[250].mxu0 }
 0x4ce   :  { %4943 = vst.msk [vmem:[%s18942_s3 + $0x180] sm:$0xff] %vm629_vm4, %v4862_v46  ;;  %v5713_v55 = vadd.f32 %v5632_v51, %v5444_v45  ;;  %v4863_v56 = vadd.f32 %v4782_v53, %v4602_v52  ;;  %v9719_v57 = vpop.f32.mrb[251].mxu1  ;;  %v9881_v58 = vpop.f32.mrb[251].mxu0  ;;  %v6707_v45 = vld [vmem:[%s18941_s0 + $0xee] sm:$0xff]  ;;  %v5923_v52 = vpack.c.bf16 %v5856_v43, %v5855_v42 }
 0x4cf   :  { %v5633_v59 = vld [vmem:[%s18942_s3 + $0x178] sm:$0xff]  ;;  %v4787_v47 = vld [vmem:[%s18942_s3 + $0x1b0] sm:$0xff]  ;;  %v6775_v53 = vpack.c.bf16 %v6707_v45, %v6706_v44  ;;  %v5861_v45 = vld [vmem:[%s18941_s0 + $0x125] sm:$0xff] }
 0x4d0   :  { %5794 = vst.msk [vmem:[%s18942_s3 + $0x170] sm:$0xff] %vm629_vm4, %v5713_v55  ;;  %4944 = vst.msk [vmem:[%s18942_s3 + $0x188] sm:$0xff] %vm629_vm4, %v4863_v56  ;;  %v5714_v60 = vadd.f32 %v5633_v59, %v5447_v54  ;;  %9993 = vmatmul.mubr.msk.bf16.gmra.mrb[100].mxu1 %vm138_vm3, %v5920_v49  ;;  %10155 = vmatmul.mubr.msk.bf16.gmra.mrb[100].mxu0 %vm138_vm3, %v6772_v50  ;;  %v4788_v56 = vld [vmem:[%s18942_s3 + $0x1b8] sm:$0xff] }
 0x4d1   :  { %9996 = vmatprep.mubr.msk.bf16.mxu1 %vm10291_vm2, %v10289_v0  ;;  %10158 = vmatprep.mubr.msk.bf16.mxu0 %vm10291_vm2, %v10289_v0 }
 0x4d2   :  { %5795 = vst.msk [vmem:[%s18942_s3 + $0x178] sm:$0xff] %vm629_vm4, %v5714_v60 }
 0x4d3   :  { %v4607_v2 = vpop.f32.mrb[252].mxu1  ;;  %v5452_v4 = vpop.f32.mrb[252].mxu0 }
 0x4d4   :  { %v4864_v5 = vadd.f32 %v4783_v3, %v4607_v2  ;;  %v9722_v7 = vpop.f32.mrb[253].mxu1  ;;  %v9884_v8 = vpop.f32.mrb[253].mxu0  ;;  %v5858_v2 = vld [vmem:[%s18941_s0 + $0x10d] sm:$0xff]  ;;  %v6708_v3 = vld [vmem:[%s18941_s0 + $0xf6] sm:$0xff] }
 0x4d5   :  { %v5634_v11 = vld [vmem:[%s18942_s3 + $0x180] sm:$0xff]  ;;  %v4610_v12 = vpop.f32.mrb[254].mxu1  ;;  %v5455_v14 = vpop.f32.mrb[254].mxu0 }
 0x4d6   :  { %4945 = vst.msk [vmem:[%s18942_s3 + $0x190] sm:$0xff] %vm629_vm4, %v4864_v5  ;;  %v5715_v15 = vadd.f32 %v5634_v11, %v5452_v4  ;;  %v4865_v16 = vadd.f32 %v4784_v13, %v4610_v12  ;;  %v9723_v17 = vpop.f32.mrb[255].mxu1  ;;  %v9885_v18 = vpop.f32.mrb[255].mxu0  ;;  %v6709_v4 = vld [vmem:[%s18941_s0 + $0xfe] sm:$0xff]  ;;  %v5924_v12 = vpack.c.bf16 %v5858_v2, %v5857_v1 }
 0x4d7   :  { %v5635_v19 = vld [vmem:[%s18942_s3 + $0x188] sm:$0xff]  ;;  %v4789_v7 = vld [vmem:[%s18942_s3 + $0x1c0] sm:$0xff]  ;;  %v6776_v13 = vpack.c.bf16 %v6709_v4, %v6708_v3  ;;  %v5863_v4 = vld [vmem:[%s18941_s0 + $0x135] sm:$0xff] }
 0x4d8   :  { %5796 = vst.msk [vmem:[%s18942_s3 + $0x180] sm:$0xff] %vm629_vm4, %v5715_v15  ;;  %4946 = vst.msk [vmem:[%s18942_s3 + $0x198] sm:$0xff] %vm629_vm4, %v4865_v16  ;;  %v5716_v20 = vadd.f32 %v5635_v19, %v5455_v14  ;;  %9997 = vmatmul.mubr.msk.bf16.gmra.mrb[104].mxu1 %vm138_vm3, %v5921_v9  ;;  %10159 = vmatmul.mubr.msk.bf16.gmra.mrb[104].mxu0 %vm138_vm3, %v6773_v10  ;;  %v4790_v16 = vld [vmem:[%s18942_s3 + $0x1c8] sm:$0xff] }
 0x4d9   :  { %10000 = vmatprep.mubr.msk.bf16.mxu1 %vm10291_vm2, %v10289_v0  ;;  %10162 = vmatprep.mubr.msk.bf16.mxu0 %vm10291_vm2, %v10289_v0 }
 0x4da   :  { %5797 = vst.msk [vmem:[%s18942_s3 + $0x188] sm:$0xff] %vm629_vm4, %v5716_v20 }
 0x4db   :  { %v4615_v25 = vpop.f32.mrb[0].mxu1  ;;  %v5460_v6 = vpop.f32.mrb[0].mxu0 }
 0x4dc   :  { %v4866_v27 = vadd.f32 %v4785_v26, %v4615_v25  ;;  %v9726_v28 = vpop.f32.mrb[1].mxu1  ;;  %v9888_v29 = vpop.f32.mrb[1].mxu0  ;;  %v5860_v25 = vld [vmem:[%s18941_s0 + $0x11d] sm:$0xff]  ;;  %v6710_v26 = vld [vmem:[%s18941_s0 + $0x106] sm:$0xff] }
 0x4dd   :  { %v5636_v32 = vld [vmem:[%s18942_s3 + $0x190] sm:$0xff]  ;;  %v4618_v33 = vpop.f32.mrb[2].mxu1  ;;  %v5463_v35 = vpop.f32.mrb[2].mxu0 }
 0x4de   :  { %4947 = vst.msk [vmem:[%s18942_s3 + $0x1a0] sm:$0xff] %vm629_vm4, %v4866_v27  ;;  %v5717_v36 = vadd.f32 %v5636_v32, %v5460_v6  ;;  %v4867_v37 = vadd.f32 %v4786_v34, %v4618_v33  ;;  %v9727_v38 = vpop.f32.mrb[3].mxu1  ;;  %v9889_v39 = vpop.f32.mrb[3].mxu0  ;;  %v6711_v6 = vld [vmem:[%s18941_s0 + $0x10e] sm:$0xff]  ;;  %v5925_v33 = vpack.c.bf16 %v5860_v25, %v5859_v24 }
 0x4df   :  { %v5637_v40 = vld [vmem:[%s18942_s3 + $0x198] sm:$0xff]  ;;  %v4791_v28 = vld [vmem:[%s18942_s3 + $0x1d0] sm:$0xff]  ;;  %v6777_v34 = vpack.c.bf16 %v6711_v6, %v6710_v26  ;;  %v5865_v6 = vld [vmem:[%s18941_s0 + $0x145] sm:$0xff] }
 0x4e0   :  { %5798 = vst.msk [vmem:[%s18942_s3 + $0x190] sm:$0xff] %vm629_vm4, %v5717_v36  ;;  %4948 = vst.msk [vmem:[%s18942_s3 + $0x1a8] sm:$0xff] %vm629_vm4, %v4867_v37  ;;  %v5718_v41 = vadd.f32 %v5637_v40, %v5463_v35  ;;  %10001 = vmatmul.mubr.msk.bf16.gmra.mrb[108].mxu1 %vm138_vm3, %v5922_v30  ;;  %10163 = vmatmul.mubr.msk.bf16.gmra.mrb[108].mxu0 %vm138_vm3, %v6774_v31  ;;  %v4792_v37 = vld [vmem:[%s18942_s3 + $0x1d8] sm:$0xff] }
 0x4e1   :  { %10004 = vmatprep.mubr.msk.bf16.mxu1 %vm10291_vm2, %v10289_v0  ;;  %10166 = vmatprep.mubr.msk.bf16.mxu0 %vm10291_vm2, %v10289_v0 }
 0x4e2   :  { %5799 = vst.msk [vmem:[%s18942_s3 + $0x198] sm:$0xff] %vm629_vm4, %v5718_v41 }
 0x4e3   :  { %v4623_v46 = vpop.f32.mrb[4].mxu1  ;;  %v5468_v48 = vpop.f32.mrb[4].mxu0 }
 0x4e4   :  { %v4868_v49 = vadd.f32 %v4787_v47, %v4623_v46  ;;  %v9730_v50 = vpop.f32.mrb[5].mxu1  ;;  %v9892_v51 = vpop.f32.mrb[5].mxu0  ;;  %v5862_v46 = vld [vmem:[%s18941_s0 + $0x12d] sm:$0xff]  ;;  %v6712_v47 = vld [vmem:[%s18941_s0 + $0x116] sm:$0xff] }
 0x4e5   :  { %v5638_v54 = vld [vmem:[%s18942_s3 + $0x1a0] sm:$0xff]  ;;  %v4626_v55 = vpop.f32.mrb[6].mxu1  ;;  %v5471_v57 = vpop.f32.mrb[6].mxu0 }
 0x4e6   :  { %4949 = vst.msk [vmem:[%s18942_s3 + $0x1b0] sm:$0xff] %vm629_vm4, %v4868_v49  ;;  %v5719_v58 = vadd.f32 %v5638_v54, %v5468_v48  ;;  %v4869_v59 = vadd.f32 %v4788_v56, %v4626_v55  ;;  %v9731_v60 = vpop.f32.mrb[7].mxu1  ;;  %v9893_v61 = vpop.f32.mrb[7].mxu0  ;;  %v6713_v48 = vld [vmem:[%s18941_s0 + $0x11e] sm:$0xff]  ;;  %v5926_v55 = vpack.c.bf16 %v5862_v46, %v5861_v45 }
 0x4e7   :  { %v5639_v62 = vld [vmem:[%s18942_s3 + $0x1a8] sm:$0xff]  ;;  %v4793_v50 = vld [vmem:[%s18942_s3 + $0x1e0] sm:$0xff]  ;;  %v6778_v56 = vpack.c.bf16 %v6713_v48, %v6712_v47  ;;  %v5867_v48 = vld [vmem:[%s18941_s0 + $0x155] sm:$0xff] }
 0x4e8   :  { %5800 = vst.msk [vmem:[%s18942_s3 + $0x1a0] sm:$0xff] %vm629_vm4, %v5719_v58  ;;  %4950 = vst.msk [vmem:[%s18942_s3 + $0x1b8] sm:$0xff] %vm629_vm4, %v4869_v59  ;;  %v5720_v63 = vadd.f32 %v5639_v62, %v5471_v57  ;;  %10005 = vmatmul.mubr.msk.bf16.gmra.mrb[112].mxu1 %vm138_vm3, %v5923_v52  ;;  %10167 = vmatmul.mubr.msk.bf16.gmra.mrb[112].mxu0 %vm138_vm3, %v6775_v53  ;;  %v4794_v59 = vld [vmem:[%s18942_s3 + $0x1e8] sm:$0xff] }
 0x4e9   :  { %10008 = vmatprep.mubr.msk.bf16.mxu1 %vm10291_vm2, %v10289_v0  ;;  %10170 = vmatprep.mubr.msk.bf16.mxu0 %vm10291_vm2, %v10289_v0 }
 0x4ea   :  { %5801 = vst.msk [vmem:[%s18942_s3 + $0x1a8] sm:$0xff] %vm629_vm4, %v5720_v63 }
 0x4eb   :  { %v4631_v5 = vpop.f32.mrb[8].mxu1  ;;  %v5476_v8 = vpop.f32.mrb[8].mxu0 }
 0x4ec   :  { %v4870_v9 = vadd.f32 %v4789_v7, %v4631_v5  ;;  %v9734_v10 = vpop.f32.mrb[9].mxu1  ;;  %v9896_v11 = vpop.f32.mrb[9].mxu0  ;;  %v5864_v5 = vld [vmem:[%s18941_s0 + $0x13d] sm:$0xff]  ;;  %v6714_v7 = vld [vmem:[%s18941_s0 + $0x126] sm:$0xff] }
 0x4ed   :  { %v5640_v14 = vld [vmem:[%s18942_s3 + $0x1b0] sm:$0xff]  ;;  %v4634_v15 = vpop.f32.mrb[10].mxu1  ;;  %v5479_v17 = vpop.f32.mrb[10].mxu0 }
 0x4ee   :  { %4951 = vst.msk [vmem:[%s18942_s3 + $0x1c0] sm:$0xff] %vm629_vm4, %v4870_v9  ;;  %v5721_v18 = vadd.f32 %v5640_v14, %v5476_v8  ;;  %v4871_v19 = vadd.f32 %v4790_v16, %v4634_v15  ;;  %v9735_v20 = vpop.f32.mrb[11].mxu1  ;;  %v9897_v21 = vpop.f32.mrb[11].mxu0  ;;  %v6715_v8 = vld [vmem:[%s18941_s0 + $0x12e] sm:$0xff]  ;;  %v5927_v15 = vpack.c.bf16 %v5864_v5, %v5863_v4 }
 0x4ef   :  { %v5641_v22 = vld [vmem:[%s18942_s3 + $0x1b8] sm:$0xff]  ;;  %v4795_v10 = vld [vmem:[%s18942_s3 + $0x1f0] sm:$0xff]  ;;  %v6779_v16 = vpack.c.bf16 %v6715_v8, %v6714_v7  ;;  %v5869_v8 = vld [vmem:[%s18941_s0 + $0x165] sm:$0xff] }
 0x4f0   :  { %5802 = vst.msk [vmem:[%s18942_s3 + $0x1b0] sm:$0xff] %vm629_vm4, %v5721_v18  ;;  %4952 = vst.msk [vmem:[%s18942_s3 + $0x1c8] sm:$0xff] %vm629_vm4, %v4871_v19  ;;  %v5722_v23 = vadd.f32 %v5641_v22, %v5479_v17  ;;  %10009 = vmatmul.mubr.msk.bf16.gmra.mrb[116].mxu1 %vm138_vm3, %v5924_v12  ;;  %10171 = vmatmul.mubr.msk.bf16.gmra.mrb[116].mxu0 %vm138_vm3, %v6776_v13  ;;  %v4796_v19 = vld [vmem:[%s18942_s3 + $0x1f8] sm:$0xff] }
 0x4f1   :  { %10012 = vmatprep.mubr.msk.bf16.mxu1 %vm10291_vm2, %v10289_v0  ;;  %10174 = vmatprep.mubr.msk.bf16.mxu0 %vm10291_vm2, %v10289_v0 }
 0x4f2   :  { %5803 = vst.msk [vmem:[%s18942_s3 + $0x1b8] sm:$0xff] %vm629_vm4, %v5722_v23 }
 0x4f3   :  { %v4639_v27 = vpop.f32.mrb[12].mxu1  ;;  %v5484_v29 = vpop.f32.mrb[12].mxu0 }
 0x4f4   :  { %v4872_v30 = vadd.f32 %v4791_v28, %v4639_v27  ;;  %v9738_v31 = vpop.f32.mrb[13].mxu1  ;;  %v9900_v32 = vpop.f32.mrb[13].mxu0  ;;  %v5866_v27 = vld [vmem:[%s18941_s0 + $0x14d] sm:$0xff]  ;;  %v6716_v28 = vld [vmem:[%s18941_s0 + $0x136] sm:$0xff] }
 0x4f5   :  { %v5642_v35 = vld [vmem:[%s18942_s3 + $0x1c0] sm:$0xff]  ;;  %v4642_v36 = vpop.f32.mrb[14].mxu1  ;;  %v5487_v38 = vpop.f32.mrb[14].mxu0 }
 0x4f6   :  { %4953 = vst.msk [vmem:[%s18942_s3 + $0x1d0] sm:$0xff] %vm629_vm4, %v4872_v30  ;;  %v5723_v39 = vadd.f32 %v5642_v35, %v5484_v29  ;;  %v4873_v40 = vadd.f32 %v4792_v37, %v4642_v36  ;;  %v9739_v41 = vpop.f32.mrb[15].mxu1  ;;  %v9901_v42 = vpop.f32.mrb[15].mxu0  ;;  %v6717_v29 = vld [vmem:[%s18941_s0 + $0x13e] sm:$0xff]  ;;  %v5928_v36 = vpack.c.bf16 %v5866_v27, %v5865_v6 }
 0x4f7   :  { %v5643_v43 = vld [vmem:[%s18942_s3 + $0x1c8] sm:$0xff]  ;;  %v4797_v31 = vld [vmem:[%s18942_s3 + $0x200] sm:$0xff]  ;;  %v6780_v37 = vpack.c.bf16 %v6717_v29, %v6716_v28  ;;  %v5871_v29 = vld [vmem:[%s18941_s0 + $0x175] sm:$0xff] }
 0x4f8   :  { %5804 = vst.msk [vmem:[%s18942_s3 + $0x1c0] sm:$0xff] %vm629_vm4, %v5723_v39  ;;  %4954 = vst.msk [vmem:[%s18942_s3 + $0x1d8] sm:$0xff] %vm629_vm4, %v4873_v40  ;;  %v5724_v44 = vadd.f32 %v5643_v43, %v5487_v38  ;;  %10013 = vmatmul.mubr.msk.bf16.gmra.mrb[120].mxu1 %vm138_vm3, %v5925_v33  ;;  %10175 = vmatmul.mubr.msk.bf16.gmra.mrb[120].mxu0 %vm138_vm3, %v6777_v34  ;;  %v4798_v40 = vld [vmem:[%s18942_s3 + $0x208] sm:$0xff] }
 0x4f9   :  { %10016 = vmatprep.mubr.msk.bf16.mxu1 %vm10291_vm2, %v10289_v0  ;;  %10178 = vmatprep.mubr.msk.bf16.mxu0 %vm10291_vm2, %v10289_v0 }
 0x4fa   :  { %5805 = vst.msk [vmem:[%s18942_s3 + $0x1c8] sm:$0xff] %vm629_vm4, %v5724_v44 }
 0x4fb   :  { %v4647_v49 = vpop.f32.mrb[16].mxu1  ;;  %v5492_v51 = vpop.f32.mrb[16].mxu0 }
 0x4fc   :  { %v4874_v52 = vadd.f32 %v4793_v50, %v4647_v49  ;;  %v9742_v53 = vpop.f32.mrb[17].mxu1  ;;  %v9904_v54 = vpop.f32.mrb[17].mxu0  ;;  %v5868_v49 = vld [vmem:[%s18941_s0 + $0x15d] sm:$0xff]  ;;  %v6718_v50 = vld [vmem:[%s18941_s0 + $0x146] sm:$0xff] }
 0x4fd   :  { %v5644_v57 = vld [vmem:[%s18942_s3 + $0x1d0] sm:$0xff]  ;;  %v4650_v58 = vpop.f32.mrb[18].mxu1  ;;  %v5495_v60 = vpop.f32.mrb[18].mxu0 }
 0x4fe   :  { %4955 = vst.msk [vmem:[%s18942_s3 + $0x1e0] sm:$0xff] %vm629_vm4, %v4874_v52  ;;  %v5725_v61 = vadd.f32 %v5644_v57, %v5492_v51  ;;  %v4875_v62 = vadd.f32 %v4794_v59, %v4650_v58  ;;  %v9743_v63 = vpop.f32.mrb[19].mxu1  ;;  %v9905_v1 = vpop.f32.mrb[19].mxu0  ;;  %v6719_v51 = vld [vmem:[%s18941_s0 + $0x14e] sm:$0xff]  ;;  %v5929_v58 = vpack.c.bf16 %v5868_v49, %v5867_v48 }
 0x4ff   :  { %v5645_v2 = vld [vmem:[%s18942_s3 + $0x1d8] sm:$0xff]  ;;  %v4799_v53 = vld [vmem:[%s18942_s3 + $0x210] sm:$0xff]  ;;  %v6781_v59 = vpack.c.bf16 %v6719_v51, %v6718_v50  ;;  %v5873_v51 = vld [vmem:[%s18941_s0 + $0x185] sm:$0xff] }
 0x500   :  { %5806 = vst.msk [vmem:[%s18942_s3 + $0x1d0] sm:$0xff] %vm629_vm4, %v5725_v61  ;;  %4956 = vst.msk [vmem:[%s18942_s3 + $0x1e8] sm:$0xff] %vm629_vm4, %v4875_v62  ;;  %v5726_v3 = vadd.f32 %v5645_v2, %v5495_v60  ;;  %10017 = vmatmul.mubr.msk.bf16.gmra.mrb[124].mxu1 %vm138_vm3, %v5926_v55  ;;  %10179 = vmatmul.mubr.msk.bf16.gmra.mrb[124].mxu0 %vm138_vm3, %v6778_v56  ;;  %v4800_v62 = vld [vmem:[%s18942_s3 + $0x218] sm:$0xff] }
 0x501   :  { %10020 = vmatprep.mubr.msk.bf16.mxu1 %vm10291_vm2, %v10289_v0  ;;  %10182 = vmatprep.mubr.msk.bf16.mxu0 %vm10291_vm2, %v10289_v0 }
 0x502   :  { %5807 = vst.msk [vmem:[%s18942_s3 + $0x1d8] sm:$0xff] %vm629_vm4, %v5726_v3 }
 0x503   :  { %v4655_v9 = vpop.f32.mrb[20].mxu1  ;;  %v5500_v11 = vpop.f32.mrb[20].mxu0 }
 0x504   :  { %v4876_v12 = vadd.f32 %v4795_v10, %v4655_v9  ;;  %v9746_v13 = vpop.f32.mrb[21].mxu1  ;;  %v9908_v14 = vpop.f32.mrb[21].mxu0  ;;  %v5870_v9 = vld [vmem:[%s18941_s0 + $0x16d] sm:$0xff]  ;;  %v6720_v10 = vld [vmem:[%s18941_s0 + $0x156] sm:$0xff] }
 0x505   :  { %v5646_v17 = vld [vmem:[%s18942_s3 + $0x1e0] sm:$0xff]  ;;  %v4658_v18 = vpop.f32.mrb[22].mxu1  ;;  %v5503_v20 = vpop.f32.mrb[22].mxu0 }
 0x506   :  { %4957 = vst.msk [vmem:[%s18942_s3 + $0x1f0] sm:$0xff] %vm629_vm4, %v4876_v12  ;;  %v5727_v21 = vadd.f32 %v5646_v17, %v5500_v11  ;;  %v4877_v22 = vadd.f32 %v4796_v19, %v4658_v18  ;;  %v9747_v23 = vpop.f32.mrb[23].mxu1  ;;  %v9909_v24 = vpop.f32.mrb[23].mxu0  ;;  %v6721_v11 = vld [vmem:[%s18941_s0 + $0x15e] sm:$0xff]  ;;  %v5930_v18 = vpack.c.bf16 %v5870_v9, %v5869_v8 }
 0x507   :  { %v5647_v25 = vld [vmem:[%s18942_s3 + $0x1e8] sm:$0xff]  ;;  %v4801_v13 = vld [vmem:[%s18942_s3 + $0x220] sm:$0xff]  ;;  %v6782_v19 = vpack.c.bf16 %v6721_v11, %v6720_v10  ;;  %v5875_v11 = vld [vmem:[%s18941_s0 + $0x195] sm:$0xff] }
 0x508   :  { %5808 = vst.msk [vmem:[%s18942_s3 + $0x1e0] sm:$0xff] %vm629_vm4, %v5727_v21  ;;  %4958 = vst.msk [vmem:[%s18942_s3 + $0x1f8] sm:$0xff] %vm629_vm4, %v4877_v22  ;;  %v5728_v26 = vadd.f32 %v5647_v25, %v5503_v20  ;;  %10021 = vmatmul.mubr.msk.bf16.gmra.mrb[128].mxu1 %vm138_vm3, %v5927_v15  ;;  %10183 = vmatmul.mubr.msk.bf16.gmra.mrb[128].mxu0 %vm138_vm3, %v6779_v16  ;;  %v4802_v22 = vld [vmem:[%s18942_s3 + $0x228] sm:$0xff] }
 0x509   :  { %10024 = vmatprep.mubr.msk.bf16.mxu1 %vm10291_vm2, %v10289_v0  ;;  %10186 = vmatprep.mubr.msk.bf16.mxu0 %vm10291_vm2, %v10289_v0 }
 0x50a   :  { %5809 = vst.msk [vmem:[%s18942_s3 + $0x1e8] sm:$0xff] %vm629_vm4, %v5728_v26 }
 0x50b   :  { %v4663_v30 = vpop.f32.mrb[24].mxu1  ;;  %v5508_v32 = vpop.f32.mrb[24].mxu0 }
 0x50c   :  { %v4878_v33 = vadd.f32 %v4797_v31, %v4663_v30  ;;  %v9750_v34 = vpop.f32.mrb[25].mxu1  ;;  %v9912_v35 = vpop.f32.mrb[25].mxu0  ;;  %v5872_v30 = vld [vmem:[%s18941_s0 + $0x17d] sm:$0xff]  ;;  %v6722_v31 = vld [vmem:[%s18941_s0 + $0x166] sm:$0xff] }
 0x50d   :  { %v5648_v38 = vld [vmem:[%s18942_s3 + $0x1f0] sm:$0xff]  ;;  %v4666_v39 = vpop.f32.mrb[26].mxu1  ;;  %v5511_v41 = vpop.f32.mrb[26].mxu0 }
 0x50e   :  { %4959 = vst.msk [vmem:[%s18942_s3 + $0x200] sm:$0xff] %vm629_vm4, %v4878_v33  ;;  %v5729_v42 = vadd.f32 %v5648_v38, %v5508_v32  ;;  %v4879_v43 = vadd.f32 %v4798_v40, %v4666_v39  ;;  %v9751_v44 = vpop.f32.mrb[27].mxu1  ;;  %v9913_v45 = vpop.f32.mrb[27].mxu0  ;;  %v6723_v32 = vld [vmem:[%s18941_s0 + $0x16e] sm:$0xff]  ;;  %v5931_v39 = vpack.c.bf16 %v5872_v30, %v5871_v29 }
 0x50f   :  { %v5649_v46 = vld [vmem:[%s18942_s3 + $0x1f8] sm:$0xff]  ;;  %v4803_v34 = vld [vmem:[%s18942_s3 + $0x230] sm:$0xff]  ;;  %v6783_v40 = vpack.c.bf16 %v6723_v32, %v6722_v31  ;;  %v5877_v32 = vld [vmem:[%s18941_s0 + $0x1a5] sm:$0xff] }
 0x510   :  { %5810 = vst.msk [vmem:[%s18942_s3 + $0x1f0] sm:$0xff] %vm629_vm4, %v5729_v42  ;;  %4960 = vst.msk [vmem:[%s18942_s3 + $0x208] sm:$0xff] %vm629_vm4, %v4879_v43  ;;  %v5730_v47 = vadd.f32 %v5649_v46, %v5511_v41  ;;  %10025 = vmatmul.mubr.msk.bf16.gmra.mrb[132].mxu1 %vm138_vm3, %v5928_v36  ;;  %10187 = vmatmul.mubr.msk.bf16.gmra.mrb[132].mxu0 %vm138_vm3, %v6780_v37  ;;  %v4804_v43 = vld [vmem:[%s18942_s3 + $0x238] sm:$0xff] }
 0x511   :  { %10028 = vmatprep.mubr.msk.bf16.mxu1 %vm10291_vm2, %v10289_v0  ;;  %10190 = vmatprep.mubr.msk.bf16.mxu0 %vm10291_vm2, %v10289_v0 }
 0x512   :  { %5811 = vst.msk [vmem:[%s18942_s3 + $0x1f8] sm:$0xff] %vm629_vm4, %v5730_v47 }
 0x513   :  { %v4671_v52 = vpop.f32.mrb[28].mxu1  ;;  %v5516_v54 = vpop.f32.mrb[28].mxu0 }
 0x514   :  { %v4880_v55 = vadd.f32 %v4799_v53, %v4671_v52  ;;  %v9754_v56 = vpop.f32.mrb[29].mxu1  ;;  %v9916_v57 = vpop.f32.mrb[29].mxu0  ;;  %v5874_v52 = vld [vmem:[%s18941_s0 + $0x18d] sm:$0xff]  ;;  %v6724_v53 = vld [vmem:[%s18941_s0 + $0x176] sm:$0xff] }
 0x515   :  { %v5650_v60 = vld [vmem:[%s18942_s3 + $0x200] sm:$0xff]  ;;  %v4674_v61 = vpop.f32.mrb[30].mxu1  ;;  %v5519_v63 = vpop.f32.mrb[30].mxu0 }
 0x516   :  { %4961 = vst.msk [vmem:[%s18942_s3 + $0x210] sm:$0xff] %vm629_vm4, %v4880_v55  ;;  %v5731_v1 = vadd.f32 %v5650_v60, %v5516_v54  ;;  %v4881_v2 = vadd.f32 %v4800_v62, %v4674_v61  ;;  %v9755_v3 = vpop.f32.mrb[31].mxu1  ;;  %v9917_v4 = vpop.f32.mrb[31].mxu0  ;;  %v6725_v54 = vld [vmem:[%s18941_s0 + $0x17e] sm:$0xff]  ;;  %v5932_v61 = vpack.c.bf16 %v5874_v52, %v5873_v51 }
 0x517   :  { %v5651_v5 = vld [vmem:[%s18942_s3 + $0x208] sm:$0xff]  ;;  %v4805_v56 = vld [vmem:[%s18942_s3 + $0x240] sm:$0xff]  ;;  %v6784_v62 = vpack.c.bf16 %v6725_v54, %v6724_v53  ;;  %v5879_v54 = vld [vmem:[%s18941_s0 + $0x1b5] sm:$0xff] }
 0x518   :  { %5812 = vst.msk [vmem:[%s18942_s3 + $0x200] sm:$0xff] %vm629_vm4, %v5731_v1  ;;  %4962 = vst.msk [vmem:[%s18942_s3 + $0x218] sm:$0xff] %vm629_vm4, %v4881_v2  ;;  %v5732_v7 = vadd.f32 %v5651_v5, %v5519_v63  ;;  %10029 = vmatmul.mubr.msk.bf16.gmra.mrb[136].mxu1 %vm138_vm3, %v5929_v58  ;;  %10191 = vmatmul.mubr.msk.bf16.gmra.mrb[136].mxu0 %vm138_vm3, %v6781_v59  ;;  %v4806_v2 = vld [vmem:[%s18942_s3 + $0x248] sm:$0xff] }
 0x519   :  { %10032 = vmatprep.mubr.msk.bf16.mxu1 %vm10291_vm2, %v10289_v0  ;;  %10194 = vmatprep.mubr.msk.bf16.mxu0 %vm10291_vm2, %v10289_v0 }
 0x51a   :  { %5813 = vst.msk [vmem:[%s18942_s3 + $0x208] sm:$0xff] %vm629_vm4, %v5732_v7 }
 0x51b   :  { %v4679_v12 = vpop.f32.mrb[32].mxu1  ;;  %v5524_v14 = vpop.f32.mrb[32].mxu0 }
 0x51c   :  { %v4882_v15 = vadd.f32 %v4801_v13, %v4679_v12  ;;  %v9758_v16 = vpop.f32.mrb[33].mxu1  ;;  %v9920_v17 = vpop.f32.mrb[33].mxu0  ;;  %v5876_v12 = vld [vmem:[%s18941_s0 + $0x19d] sm:$0xff]  ;;  %v6726_v13 = vld [vmem:[%s18941_s0 + $0x186] sm:$0xff] }
 0x51d   :  { %v5652_v20 = vld [vmem:[%s18942_s3 + $0x210] sm:$0xff]  ;;  %v4682_v21 = vpop.f32.mrb[34].mxu1  ;;  %v5527_v23 = vpop.f32.mrb[34].mxu0 }
 0x51e   :  { %4963 = vst.msk [vmem:[%s18942_s3 + $0x220] sm:$0xff] %vm629_vm4, %v4882_v15  ;;  %v5733_v24 = vadd.f32 %v5652_v20, %v5524_v14  ;;  %v4883_v25 = vadd.f32 %v4802_v22, %v4682_v21  ;;  %v9759_v26 = vpop.f32.mrb[35].mxu1  ;;  %v9921_v6 = vpop.f32.mrb[35].mxu0  ;;  %v6727_v14 = vld [vmem:[%s18941_s0 + $0x18e] sm:$0xff]  ;;  %v5933_v21 = vpack.c.bf16 %v5876_v12, %v5875_v11 }
 0x51f   :  { %v5653_v27 = vld [vmem:[%s18942_s3 + $0x218] sm:$0xff]  ;;  %v4807_v16 = vld [vmem:[%s18942_s3 + $0x250] sm:$0xff]  ;;  %v6785_v22 = vpack.c.bf16 %v6727_v14, %v6726_v13  ;;  %v5881_v14 = vld [vmem:[%s18941_s0 + $0x1c5] sm:$0xff] }
 0x520   :  { %5814 = vst.msk [vmem:[%s18942_s3 + $0x210] sm:$0xff] %vm629_vm4, %v5733_v24  ;;  %4964 = vst.msk [vmem:[%s18942_s3 + $0x228] sm:$0xff] %vm629_vm4, %v4883_v25  ;;  %v5734_v28 = vadd.f32 %v5653_v27, %v5527_v23  ;;  %10033 = vmatmul.mubr.msk.bf16.gmra.mrb[140].mxu1 %vm138_vm3, %v5930_v18  ;;  %10195 = vmatmul.mubr.msk.bf16.gmra.mrb[140].mxu0 %vm138_vm3, %v6782_v19  ;;  %v4808_v25 = vld [vmem:[%s18942_s3 + $0x258] sm:$0xff] }
 0x521   :  { %10036 = vmatprep.mubr.msk.bf16.mxu1 %vm10291_vm2, %v10289_v0  ;;  %10198 = vmatprep.mubr.msk.bf16.mxu0 %vm10291_vm2, %v10289_v0 }
 0x522   :  { %5815 = vst.msk [vmem:[%s18942_s3 + $0x218] sm:$0xff] %vm629_vm4, %v5734_v28 }
 0x523   :  { %v4687_v33 = vpop.f32.mrb[36].mxu1  ;;  %v5532_v35 = vpop.f32.mrb[36].mxu0 }
 0x524   :  { %v4884_v36 = vadd.f32 %v4803_v34, %v4687_v33  ;;  %v9762_v37 = vpop.f32.mrb[37].mxu1  ;;  %v9924_v38 = vpop.f32.mrb[37].mxu0  ;;  %v5878_v33 = vld [vmem:[%s18941_s0 + $0x1ad] sm:$0xff]  ;;  %v6728_v34 = vld [vmem:[%s18941_s0 + $0x196] sm:$0xff] }
 0x525   :  { %v5654_v41 = vld [vmem:[%s18942_s3 + $0x220] sm:$0xff]  ;;  %v4690_v42 = vpop.f32.mrb[38].mxu1  ;;  %v5535_v44 = vpop.f32.mrb[38].mxu0 }
 0x526   :  { %4965 = vst.msk [vmem:[%s18942_s3 + $0x230] sm:$0xff] %vm629_vm4, %v4884_v36  ;;  %v5735_v45 = vadd.f32 %v5654_v41, %v5532_v35  ;;  %v4885_v46 = vadd.f32 %v4804_v43, %v4690_v42  ;;  %v9763_v47 = vpop.f32.mrb[39].mxu1  ;;  %v9925_v48 = vpop.f32.mrb[39].mxu0  ;;  %v6729_v35 = vld [vmem:[%s18941_s0 + $0x19e] sm:$0xff]  ;;  %v5934_v42 = vpack.c.bf16 %v5878_v33, %v5877_v32  ;;  %v5883_v33 = vld [vmem:[%s18941_s0 + $0x1d5] sm:$0xff] }
 0x527   :  { %v5655_v49 = vld [vmem:[%s18942_s3 + $0x228] sm:$0xff]  ;;  %v4809_v37 = vld [vmem:[%s18942_s3 + $0x260] sm:$0xff]  ;;  %v6786_v43 = vpack.c.bf16 %v6729_v35, %v6728_v34 }
 0x528   :  { %5816 = vst.msk [vmem:[%s18942_s3 + $0x220] sm:$0xff] %vm629_vm4, %v5735_v45  ;;  %4966 = vst.msk [vmem:[%s18942_s3 + $0x238] sm:$0xff] %vm629_vm4, %v4885_v46  ;;  %v5736_v50 = vadd.f32 %v5655_v49, %v5535_v44  ;;  %10037 = vmatmul.mubr.msk.bf16.gmra.mrb[144].mxu1 %vm138_vm3, %v5931_v39  ;;  %10199 = vmatmul.mubr.msk.bf16.gmra.mrb[144].mxu0 %vm138_vm3, %v6783_v40  ;;  %v4810_v46 = vld [vmem:[%s18942_s3 + $0x268] sm:$0xff]  ;;  %v5884_v34 = vld [vmem:[%s18941_s0 + $0x1dd] sm:$0xff] }
 0x529   :  { %10040 = vmatprep.mubr.msk.bf16.mxu1 %vm10291_vm2, %v10289_v0  ;;  %10202 = vmatprep.mubr.msk.bf16.mxu0 %vm10291_vm2, %v10289_v0  ;;  %v6734_v35 = vld [vmem:[%s18941_s0 + $0x1c6] sm:$0xff] }
 0x52a   :  { %5817 = vst.msk [vmem:[%s18942_s3 + $0x228] sm:$0xff] %vm629_vm4, %v5736_v50 }
 0x52b   :  { %v4695_v55 = vpop.f32.mrb[40].mxu1  ;;  %v5540_v57 = vpop.f32.mrb[40].mxu0 }
 0x52c   :  { %v4886_v58 = vadd.f32 %v4805_v56, %v4695_v55  ;;  %v9766_v59 = vpop.f32.mrb[41].mxu1  ;;  %v9928_v60 = vpop.f32.mrb[41].mxu0  ;;  %v5880_v55 = vld [vmem:[%s18941_s0 + $0x1bd] sm:$0xff]  ;;  %v6730_v56 = vld [vmem:[%s18941_s0 + $0x1a6] sm:$0xff] }
 0x52d   :  { %v5656_v63 = vld [vmem:[%s18942_s3 + $0x230] sm:$0xff]  ;;  %v4698_v1 = vpop.f32.mrb[42].mxu1  ;;  %v5543_v3 = vpop.f32.mrb[42].mxu0 }
 0x52e   :  { %4967 = vst.msk [vmem:[%s18942_s3 + $0x240] sm:$0xff] %vm629_vm4, %v4886_v58  ;;  %v5737_v4 = vadd.f32 %v5656_v63, %v5540_v57  ;;  %v4887_v5 = vadd.f32 %v4806_v2, %v4698_v1  ;;  %v9767_v7 = vpop.f32.mrb[43].mxu1  ;;  %v9929_v8 = vpop.f32.mrb[43].mxu0  ;;  %v6731_v57 = vld [vmem:[%s18941_s0 + $0x1ae] sm:$0xff]  ;;  %v5935_v1 = vpack.c.bf16 %v5880_v55, %v5879_v54  ;;  %v6736_v55 = vld [vmem:[%s18941_s0 + $0x1d6] sm:$0xff] }
 0x52f   :  { %v5657_v9 = vld [vmem:[%s18942_s3 + $0x238] sm:$0xff]  ;;  %v4811_v59 = vld [vmem:[%s18942_s3 + $0x270] sm:$0xff]  ;;  %v6787_v2 = vpack.c.bf16 %v6731_v57, %v6730_v56 }
 0x530   :  { %5818 = vst.msk [vmem:[%s18942_s3 + $0x230] sm:$0xff] %vm629_vm4, %v5737_v4  ;;  %4968 = vst.msk [vmem:[%s18942_s3 + $0x248] sm:$0xff] %vm629_vm4, %v4887_v5  ;;  %v5738_v10 = vadd.f32 %v5657_v9, %v5543_v3  ;;  %10041 = vmatmul.mubr.msk.bf16.gmra.mrb[148].mxu1 %vm138_vm3, %v5932_v61  ;;  %10203 = vmatmul.mubr.msk.bf16.gmra.mrb[148].mxu0 %vm138_vm3, %v6784_v62  ;;  %v4812_v5 = vld [vmem:[%s18942_s3 + $0x278] sm:$0xff]  ;;  %v5886_v54 = vld [vmem:[%s18941_s0 + $0x1ed] sm:$0xff] }
 0x531   :  { %10044 = vmatprep.mubr.msk.bf16.mxu1 %vm10291_vm2, %v10289_v0  ;;  %10206 = vmatprep.mubr.msk.bf16.mxu0 %vm10291_vm2, %v10289_v0  ;;  %v6737_v56 = vld [vmem:[%s18941_s0 + $0x1de] sm:$0xff] }
 0x532   :  { %5819 = vst.msk [vmem:[%s18942_s3 + $0x238] sm:$0xff] %vm629_vm4, %v5738_v10 }
 0x533   :  { %v4703_v15 = vpop.f32.mrb[44].mxu1  ;;  %v5548_v17 = vpop.f32.mrb[44].mxu0 }
 0x534   :  { %v4888_v18 = vadd.f32 %v4807_v16, %v4703_v15  ;;  %v9770_v19 = vpop.f32.mrb[45].mxu1  ;;  %v9932_v20 = vpop.f32.mrb[45].mxu0  ;;  %v5882_v15 = vld [vmem:[%s18941_s0 + $0x1cd] sm:$0xff]  ;;  %v6732_v16 = vld [vmem:[%s18941_s0 + $0x1b6] sm:$0xff] }
 0x535   :  { %v5658_v23 = vld [vmem:[%s18942_s3 + $0x240] sm:$0xff]  ;;  %v4706_v24 = vpop.f32.mrb[46].mxu1  ;;  %v5551_v26 = vpop.f32.mrb[46].mxu0 }
 0x536   :  { %4969 = vst.msk [vmem:[%s18942_s3 + $0x250] sm:$0xff] %vm629_vm4, %v4888_v18  ;;  %v5739_v6 = vadd.f32 %v5658_v23, %v5548_v17  ;;  %v4889_v27 = vadd.f32 %v4808_v25, %v4706_v24  ;;  %v9771_v28 = vpop.f32.mrb[47].mxu1  ;;  %v9933_v29 = vpop.f32.mrb[47].mxu0  ;;  %v6733_v17 = vld [vmem:[%s18941_s0 + $0x1be] sm:$0xff]  ;;  %v5936_v24 = vpack.c.bf16 %v5882_v15, %v5881_v14  ;;  %v6738_v15 = vld [vmem:[%s18941_s0 + $0x1e6] sm:$0xff] }
 0x537   :  { %v5659_v30 = vld [vmem:[%s18942_s3 + $0x248] sm:$0xff]  ;;  %v4813_v19 = vld [vmem:[%s18942_s3 + $0x280] sm:$0xff]  ;;  %v6788_v25 = vpack.c.bf16 %v6733_v17, %v6732_v16 }
 0x538   :  { %5820 = vst.msk [vmem:[%s18942_s3 + $0x240] sm:$0xff] %vm629_vm4, %v5739_v6  ;;  %4970 = vst.msk [vmem:[%s18942_s3 + $0x258] sm:$0xff] %vm629_vm4, %v4889_v27  ;;  %v5740_v31 = vadd.f32 %v5659_v30, %v5551_v26  ;;  %10045 = vmatmul.mubr.msk.bf16.gmra.mrb[152].mxu1 %vm138_vm3, %v5933_v21  ;;  %10207 = vmatmul.mubr.msk.bf16.gmra.mrb[152].mxu0 %vm138_vm3, %v6785_v22  ;;  %v5888_v14 = vld [vmem:[%s18941_s0 + $0x1fd] sm:$0xff]  ;;  %v6739_v16 = vld [vmem:[%s18941_s0 + $0x1ee] sm:$0xff] }
 0x539   :  { %10048 = vmatprep.mubr.msk.bf16.mxu1 %vm10291_vm2, %v10289_v0  ;;  %10210 = vmatprep.mubr.msk.bf16.mxu0 %vm10291_vm2, %v10289_v0 }
 0x53a   :  { %5821 = vst.msk [vmem:[%s18942_s3 + $0x248] sm:$0xff] %vm629_vm4, %v5740_v31 }
 0x53b   :  { %v4711_v36 = vpop.f32.mrb[48].mxu1  ;;  %v5556_v38 = vpop.f32.mrb[48].mxu0 }
 0x53c   :  { %v4890_v39 = vadd.f32 %v4809_v37, %v4711_v36  ;;  %v9774_v40 = vpop.f32.mrb[49].mxu1  ;;  %v9936_v41 = vpop.f32.mrb[49].mxu0  ;;  %v6735_v36 = vld [vmem:[%s18941_s0 + $0x1ce] sm:$0xff] }
 0x53d   :  { %v5660_v44 = vld [vmem:[%s18942_s3 + $0x250] sm:$0xff]  ;;  %v4714_v45 = vpop.f32.mrb[50].mxu1  ;;  %v5559_v47 = vpop.f32.mrb[50].mxu0 }
 0x53e   :  { %4971 = vst.msk [vmem:[%s18942_s3 + $0x260] sm:$0xff] %vm629_vm4, %v4890_v39  ;;  %v5741_v48 = vadd.f32 %v5660_v44, %v5556_v38  ;;  %v4891_v49 = vadd.f32 %v4810_v46, %v4714_v45  ;;  %v9775_v50 = vpop.f32.mrb[51].mxu1  ;;  %v9937_v51 = vpop.f32.mrb[51].mxu0  ;;  %v6439_v39 = vld [vmem:[%s18942_s3] sm:$0xff]  ;;  %v6789_v44 = vpack.c.bf16 %v6735_v36, %v6734_v35 }
 0x53f   :  { %v5661_v52 = vld [vmem:[%s18942_s3 + $0x258] sm:$0xff]  ;;  %v5889_v35 = vld [vmem:[%s18941_s0 + $0x205] sm:$0xff] }
 0x540   :  { %5822 = vst.msk [vmem:[%s18942_s3 + $0x250] sm:$0xff] %vm629_vm4, %v5741_v48  ;;  %4972 = vst.msk [vmem:[%s18942_s3 + $0x268] sm:$0xff] %vm629_vm4, %v4891_v49  ;;  %v5742_v53 = vadd.f32 %v5661_v52, %v5559_v47  ;;  %10049 = vmatmul.mubr.msk.bf16.gmra.mrb[156].mxu1 %vm138_vm3, %v5934_v42  ;;  %10211 = vmatmul.mubr.msk.bf16.gmra.mrb[156].mxu0 %vm138_vm3, %v6786_v43  ;;  %v5937_v43 = vpack.c.bf16 %v5884_v34, %v5883_v33  ;;  %v6440_v48 = vld [vmem:[%s18942_s3 + $0x8] sm:$0xff] }
 0x541   :  { %10052 = vmatprep.mubr.msk.bf16.mxu1 %vm10291_vm2, %v10289_v0  ;;  %10214 = vmatprep.mubr.msk.bf16.mxu0 %vm10291_vm2, %v10289_v0 }
 0x542   :  { %5823 = vst.msk [vmem:[%s18942_s3 + $0x258] sm:$0xff] %vm629_vm4, %v5742_v53  ;;  %v5885_v53 = vld [vmem:[%s18941_s0 + $0x1e5] sm:$0xff] }
 0x543   :  { %v4719_v58 = vpop.f32.mrb[52].mxu1  ;;  %v5564_v60 = vpop.f32.mrb[52].mxu0 }
 0x544   :  { %v4892_v61 = vadd.f32 %v4811_v59, %v4719_v58  ;;  %v9778_v62 = vpop.f32.mrb[53].mxu1  ;;  %v9940_v63 = vpop.f32.mrb[53].mxu0  ;;  %v6441_v58 = vld [vmem:[%s18942_s3 + $0x10] sm:$0xff] }
 0x545   :  { %v5662_v3 = vld [vmem:[%s18942_s3 + $0x260] sm:$0xff]  ;;  %v4722_v4 = vpop.f32.mrb[54].mxu1  ;;  %v5567_v7 = vpop.f32.mrb[54].mxu0  ;;  %v5938_v63 = vpack.c.bf16 %v5886_v54, %v5885_v53 }
 0x546   :  { %4973 = vst.msk [vmem:[%s18942_s3 + $0x270] sm:$0xff] %vm629_vm4, %v4892_v61  ;;  %v5743_v8 = vadd.f32 %v5662_v3, %v5564_v60  ;;  %v4893_v9 = vadd.f32 %v4812_v5, %v4722_v4  ;;  %v9779_v10 = vpop.f32.mrb[55].mxu1  ;;  %v9941_v11 = vpop.f32.mrb[55].mxu0  ;;  %v6442_v4 = vld [vmem:[%s18942_s3 + $0x18] sm:$0xff] }
 0x547   :  { %v5663_v12 = vld [vmem:[%s18942_s3 + $0x268] sm:$0xff] }
 0x548   :  { %5824 = vst.msk [vmem:[%s18942_s3 + $0x260] sm:$0xff] %vm629_vm4, %v5743_v8  ;;  %4974 = vst.msk [vmem:[%s18942_s3 + $0x278] sm:$0xff] %vm629_vm4, %v4893_v9  ;;  %v5744_v13 = vadd.f32 %v5663_v12, %v5567_v7  ;;  %10053 = vmatmul.mubr.msk.bf16.gmra.mrb[160].mxu1 %vm138_vm3, %v5935_v1  ;;  %10215 = vmatmul.mubr.msk.bf16.gmra.mrb[160].mxu0 %vm138_vm3, %v6787_v2  ;;  %v6790_v1 = vpack.c.bf16 %v6737_v56, %v6736_v55  ;;  %v6446_v56 = vld [vmem:[%s18942_s3 + $0x38] sm:$0xff] }
 0x549   :  { %10056 = vmatprep.mubr.msk.bf16.mxu1 %vm10291_vm2, %v10289_v0  ;;  %10218 = vmatprep.mubr.msk.bf16.mxu0 %vm10291_vm2, %v10289_v0 }
 0x54a   :  { %5825 = vst.msk [vmem:[%s18942_s3 + $0x268] sm:$0xff] %vm629_vm4, %v5744_v13  ;;  %v5887_v13 = vld [vmem:[%s18941_s0 + $0x1f5] sm:$0xff] }
 0x54b   :  { %v4727_v18 = vpop.f32.mrb[56].mxu1  ;;  %v5572_v20 = vpop.f32.mrb[56].mxu0 }
 0x54c   :  { %v4894_v21 = vadd.f32 %v4813_v19, %v4727_v18  ;;  %v9782_v22 = vpop.f32.mrb[57].mxu1  ;;  %v9944_v23 = vpop.f32.mrb[57].mxu0  ;;  %v6443_v18 = vld [vmem:[%s18942_s3 + $0x20] sm:$0xff] }
 0x54d   :  { %v5664_v26 = vld [vmem:[%s18942_s3 + $0x270] sm:$0xff]  ;;  %v4730_v6 = vpop.f32.mrb[58].mxu1  ;;  %v5575_v27 = vpop.f32.mrb[58].mxu0  ;;  %v5939_v23 = vpack.c.bf16 %v5888_v14, %v5887_v13  ;;  %v6447_v13 = vld [vmem:[%s18942_s3 + $0x40] sm:$0xff] }
 0x54e   :  { %4975 = vst.msk [vmem:[%s18942_s3 + $0x280] sm:$0xff] %vm629_vm4, %v4894_v21  ;;  %v5745_v28 = vadd.f32 %v5664_v26, %v5572_v20  ;;  %v9783_v29 = vpop.f32.mrb[59].mxu1  ;;  %v9945_v30 = vpop.f32.mrb[59].mxu0 }
 0x54f   :  { %v5665_v31 = vld [vmem:[%s18942_s3 + $0x278] sm:$0xff] }
 0x550   :  { %5826 = vst.msk [vmem:[%s18942_s3 + $0x270] sm:$0xff] %vm629_vm4, %v5745_v28  ;;  %v5746_v32 = vadd.f32 %v5665_v31, %v5575_v27  ;;  %10057 = vmatmul.mubr.msk.bf16.gmra.mrb[164].mxu1 %vm138_vm3, %v5936_v24  ;;  %10219 = vmatmul.mubr.msk.bf16.gmra.mrb[164].mxu0 %vm138_vm3, %v6788_v25  ;;  %v6791_v24 = vpack.c.bf16 %v6739_v16, %v6738_v15  ;;  %v16988_v25 = vld [vmem:[%s18943_s2] ss:$0 sm:$0xff]  ;;  %v6444_v27 = vld [vmem:[%s18942_s3 + $0x28] sm:$0xff] }
 0x551   :  { %10060 = vmatprep.mubr.msk.bf16.mxu1 %vm10291_vm2, %v10289_v0  ;;  %10222 = vmatprep.mubr.msk.bf16.mxu0 %vm10291_vm2, %v10289_v0 }
 0x552   :  { %5827 = vst.msk [vmem:[%s18942_s3 + $0x278] sm:$0xff] %vm629_vm4, %v5746_v32 }
 0x553   :  { %v5580_v37 = vpop.f32.mrb[60].mxu0  ;;  %v6113_v38 = vpop.f32.mrb[60].mxu1 }
 0x554   :  { %v6520_v40 = vadd.f32 %v6439_v39, %v6113_v38  ;;  %v9948_v41 = vpop.f32.mrb[61].mxu0  ;;  %v9954_v42 = vpop.f32.mrb[61].mxu1  ;;  %v5890_v38 = vld [vmem:[%s18941_s0 + $0x20d] sm:$0xff]  ;;  %v6740_v39 = vld [vmem:[%s18941_s0 + $0x1f6] sm:$0xff] }
 0x555   :  { %v5666_v45 = vld [vmem:[%s18942_s3 + $0x280] sm:$0xff]  ;;  %v5583_v46 = vpop.f32.mrb[62].mxu0  ;;  %v6116_v47 = vpop.f32.mrb[62].mxu1 }
 0x556   :  { %v5747_v49 = vadd.f32 %v5666_v45, %v5580_v37  ;;  %6601 = vst.msk [vmem:[%s18942_s3] sm:$0xff] %vm629_vm4, %v6520_v40  ;;  %v6521_v50 = vadd.f32 %v6440_v48, %v6116_v47  ;;  %v9949_v51 = vpop.f32.mrb[63].mxu0  ;;  %v9955_v52 = vpop.f32.mrb[63].mxu1  ;;  %v6741_v40 = vld [vmem:[%s18941_s0 + $0x1fe] sm:$0xff]  ;;  %v6445_v45 = vld [vmem:[%s18942_s3 + $0x30] sm:$0xff]  ;;  %v5940_v47 = vpack.c.bf16 %v5890_v38, %v5889_v35 }
 0x557   :  { %v6792_v48 = vpack.c.bf16 %v6741_v40, %v6740_v39  ;;  %v6745_v38 = vld [vmem:[%s18941_s0 + $0x21e] sm:$0xff] }
 0x558   :  { %5828 = vst.msk [vmem:[%s18942_s3 + $0x280] sm:$0xff] %vm629_vm4, %v5747_v49  ;;  %6602 = vst.msk [vmem:[%s18942_s3 + $0x8] sm:$0xff] %vm629_vm4, %v6521_v50  ;;  %10061 = vmatmul.mubr.msk.bf16.gmra.mrb[168].mxu1 %vm138_vm3, %v5937_v43  ;;  %10223 = vmatmul.mubr.msk.bf16.gmra.mrb[168].mxu0 %vm138_vm3, %v6789_v44 }
 0x559   :  { %10064 = vmatprep.mubr.msk.bf16.mxu1 %vm10291_vm2, %v10289_v0  ;;  %10226 = vmatprep.mubr.msk.bf16.mxu0 %vm10291_vm2, %v10289_v0 }
 0x55b   :  { %v6121_v57 = vpop.f32.mrb[64].mxu1  ;;  %v6966_v59 = vpop.f32.mrb[64].mxu0 }
 0x55c   :  { %v6522_v60 = vadd.f32 %v6441_v58, %v6121_v57  ;;  %v9958_v61 = vpop.f32.mrb[65].mxu1  ;;  %v10120_v62 = vpop.f32.mrb[65].mxu0 }
 0x55d   :  { %v7292_v2 = vld [vmem:[%s18942_s3] sm:$0xff]  ;;  %v6124_v3 = vpop.f32.mrb[66].mxu1  ;;  %v6969_v5 = vpop.f32.mrb[66].mxu0 }
 0x55e   :  { %6603 = vst.msk [vmem:[%s18942_s3 + $0x10] sm:$0xff] %vm629_vm4, %v6522_v60  ;;  %v7373_v7 = vadd.f32 %v7292_v2, %v6966_v59  ;;  %v6523_v8 = vadd.f32 %v6442_v4, %v6124_v3  ;;  %v9959_v9 = vpop.f32.mrb[67].mxu1  ;;  %v10121_v10 = vpop.f32.mrb[67].mxu0  ;;  %v5891_v2 = vld [vmem:[%s18941_s0 + $0x215] sm:$0xff] }
 0x55f   :  { %v7293_v11 = vld [vmem:[%s18942_s3 + $0x8] sm:$0xff] }
 0x560   :  { %7454 = vst.msk [vmem:[%s18942_s3] sm:$0xff] %vm629_vm4, %v7373_v7  ;;  %6604 = vst.msk [vmem:[%s18942_s3 + $0x18] sm:$0xff] %vm629_vm4, %v6523_v8  ;;  %v7374_v12 = vadd.f32 %v7293_v11, %v6969_v5  ;;  %10065 = vmatmul.mubr.msk.bf16.gmra.mrb[172].mxu1 %vm138_vm3, %v5938_v63  ;;  %10227 = vmatmul.mubr.msk.bf16.gmra.mrb[172].mxu0 %vm138_vm3, %v6790_v1  ;;  %v5892_v5 = vld [vmem:[%s18941_s0 + $0x21d] sm:$0xff]  ;;  %v6742_v7 = vld [vmem:[%s18941_s0 + $0x206] sm:$0xff] }
 0x561   :  { %10068 = vmatprep.mubr.msk.bf16.mxu1 %vm10291_vm2, %v10289_v0  ;;  %10230 = vmatprep.mubr.msk.bf16.mxu0 %vm10291_vm2, %v10289_v0  ;;  %v6743_v8 = vld [vmem:[%s18941_s0 + $0x20e] sm:$0xff]  ;;  %v5941_v15 = vpack.c.bf16 %v5892_v5, %v5891_v2 }
 0x562   :  { %7455 = vst.msk [vmem:[%s18942_s3 + $0x8] sm:$0xff] %vm629_vm4, %v7374_v12  ;;  %v6793_v16 = vpack.c.bf16 %v6743_v8, %v6742_v7  ;;  %v6747_v5 = vld [vmem:[%s18941_s0 + $0x22e] sm:$0xff] }
 0x563   :  { %v6129_v17 = vpop.f32.mrb[68].mxu1  ;;  %v6974_v19 = vpop.f32.mrb[68].mxu0 }
 0x564   :  { %v6524_v20 = vadd.f32 %v6443_v18, %v6129_v17  ;;  %v9962_v21 = vpop.f32.mrb[69].mxu1  ;;  %v10124_v22 = vpop.f32.mrb[69].mxu0 }
 0x565   :  { %v7294_v26 = vld [vmem:[%s18942_s3 + $0x10] sm:$0xff]  ;;  %v6132_v6 = vpop.f32.mrb[70].mxu1  ;;  %v6977_v28 = vpop.f32.mrb[70].mxu0 }
 0x566   :  { %6605 = vst.msk [vmem:[%s18942_s3 + $0x20] sm:$0xff] %vm629_vm4, %v6524_v20  ;;  %v7375_v29 = vadd.f32 %v7294_v26, %v6974_v19  ;;  %v6525_v30 = vadd.f32 %v6444_v27, %v6132_v6  ;;  %v9963_v31 = vpop.f32.mrb[71].mxu1  ;;  %v10125_v32 = vpop.f32.mrb[71].mxu0 }
 0x567   :  { %v7535_v33 = vld [vmem:[%s18942_s3] sm:$0xff]  ;;  %v7295_v34 = vld [vmem:[%s18942_s3 + $0x18] sm:$0xff] }
 0x568   :  { %v7623_v36 = vadd.f32 %v16988_v25, %v7535_v33  ;;  %7456 = vst.msk [vmem:[%s18942_s3 + $0x10] sm:$0xff] %vm629_vm4, %v7375_v29  ;;  %6606 = vst.msk [vmem:[%s18942_s3 + $0x28] sm:$0xff] %vm629_vm4, %v6525_v30  ;;  %v7376_v37 = vadd.f32 %v7295_v34, %v6977_v28  ;;  %10069 = vmatmul.mubr.msk.bf16.gmra.mrb[176].mxu1 %vm138_vm3, %v5939_v23  ;;  %10231 = vmatmul.mubr.msk.bf16.gmra.mrb[176].mxu0 %vm138_vm3, %v6791_v24  ;;  %v6448_v24 = vld [vmem:[%s18942_s3 + $0x48] sm:$0xff] }
 0x569   :  { %v7536_v41 = vld [vmem:[%s18942_s3 + $0x8] sm:$0xff]  ;;  %10072 = vmatprep.mubr.msk.bf16.mxu1 %vm10291_vm2, %v10289_v0  ;;  %10234 = vmatprep.mubr.msk.bf16.mxu0 %vm10291_vm2, %v10289_v0 }
 0x56a   :  { %vm7704_vm5 = vcmp.gt.f32.partialorder %v7623_v36, 0.0  ;;  %v7785_v42 = vmul.f32 0.1, %v7623_v36  ;;  %v7624_v43 = vadd.f32 %v16988_v25, %v7536_v41  ;;  %7457 = vst.msk [vmem:[%s18942_s3 + $0x18] sm:$0xff] %vm629_vm4, %v7376_v37  ;;  %v5893_v33 = vld [vmem:[%s18941_s0 + $0x225] sm:$0xff]  ;;  %v6744_v37 = vld [vmem:[%s18941_s0 + $0x216] sm:$0xff] }
 0x56b   :  { %v6137_v44 = vpop.f32.mrb[72].mxu1  ;;  %v6982_v46 = vpop.f32.mrb[72].mxu0 }
 0x56c   :  { %v7866_v49 = vsel %vm7704_vm5, %v7623_v36, %v7785_v42  ;;  %vm7705_vm6 = vcmp.gt.f32.partialorder %v7624_v43, 0.0  ;;  %v7786_v50 = vmul.f32 0.1, %v7624_v43  ;;  %v6526_v51 = vadd.f32 %v6445_v45, %v6137_v44  ;;  %v9966_v52 = vpop.f32.mrb[73].mxu1  ;;  %v10128_v53 = vpop.f32.mrb[73].mxu0  ;;  %v5894_v36 = vld [vmem:[%s18941_s0 + $0x22d] sm:$0xff] }
 0x56d   :  { %7947 = vst.msk [vmem:[%s18942_s3] sm:$0xff] %vm629_vm4, %v7866_v49  ;;  %v7296_v54 = vld [vmem:[%s18942_s3 + $0x20] sm:$0xff]  ;;  %v6140_v55 = vpop.f32.mrb[74].mxu1  ;;  %v6985_v57 = vpop.f32.mrb[74].mxu0  ;;  %v5942_v45 = vpack.c.bf16 %v5894_v36, %v5893_v33 }
 0x56e   :  { %v7867_v58 = vsel %vm7705_vm6, %v7624_v43, %v7786_v50  ;;  %6607 = vst.msk [vmem:[%s18942_s3 + $0x30] sm:$0xff] %vm629_vm4, %v6526_v51  ;;  %v7377_v59 = vadd.f32 %v7296_v54, %v6982_v46  ;;  %v6527_v60 = vadd.f32 %v6446_v56, %v6140_v55  ;;  %v9967_v61 = vpop.f32.mrb[75].mxu1  ;;  %v10129_v62 = vpop.f32.mrb[75].mxu0  ;;  %v6449_v43 = vld [vmem:[%s18942_s3 + $0x50] sm:$0xff]  ;;  %v6794_v46 = vpack.c.bf16 %v6745_v38, %v6744_v37  ;;  %v6450_v54 = vld [vmem:[%s18942_s3 + $0x58] sm:$0xff] }
 0x56f   :  { %7948 = vst.msk [vmem:[%s18942_s3 + $0x8] sm:$0xff] %vm629_vm4, %v7867_v58  ;;  %v7537_v63 = vld [vmem:[%s18942_s3 + $0x10] sm:$0xff]  ;;  %v7297_v1 = vld [vmem:[%s18942_s3 + $0x28] sm:$0xff]  ;;  %v6749_v36 = vld [vmem:[%s18941_s0 + $0x23e] sm:$0xff] }
 0x570   :  { %v7625_v3 = vadd.f32 %v16988_v25, %v7537_v63  ;;  %7458 = vst.msk [vmem:[%s18942_s3 + $0x20] sm:$0xff] %vm629_vm4, %v7377_v59  ;;  %6608 = vst.msk [vmem:[%s18942_s3 + $0x38] sm:$0xff] %vm629_vm4, %v6527_v60  ;;  %v7378_v4 = vadd.f32 %v7297_v1, %v6985_v57  ;;  %10073 = vmatmul.mubr.msk.bf16.gmra.mrb[180].mxu1 %vm138_vm3, %v5940_v47  ;;  %10235 = vmatmul.mubr.msk.bf16.gmra.mrb[180].mxu0 %vm138_vm3, %v6792_v48  ;;  %v5895_v63 = vld [vmem:[%s18941_s0 + $0x235] sm:$0xff] }
 0x571   :  { %v7538_v9 = vld [vmem:[%s18942_s3 + $0x18] sm:$0xff]  ;;  %10076 = vmatprep.mubr.msk.bf16.mxu1 %vm10291_vm2, %v10289_v0  ;;  %10238 = vmatprep.mubr.msk.bf16.mxu0 %vm10291_vm2, %v10289_v0 }
 0x572   :  { %vm7706_vm7 = vcmp.gt.f32.partialorder %v7625_v3, 0.0  ;;  %v7787_v10 = vmul.f32 0.1, %v7625_v3  ;;  %v7626_v11 = vadd.f32 %v16988_v25, %v7538_v9  ;;  %7459 = vst.msk [vmem:[%s18942_s3 + $0x28] sm:$0xff] %vm629_vm4, %v7378_v4  ;;  %v6746_v4 = vld [vmem:[%s18941_s0 + $0x226] sm:$0xff] }
 0x573   :  { %v6145_v12 = vpop.f32.mrb[76].mxu1  ;;  %v6990_v14 = vpop.f32.mrb[76].mxu0 }
 0x574   :  { %v7868_v17 = vsel %vm7706_vm7, %v7625_v3, %v7787_v10  ;;  %vm7707_vm8 = vcmp.gt.f32.partialorder %v7626_v11, 0.0  ;;  %v7788_v18 = vmul.f32 0.1, %v7626_v11  ;;  %v6528_v19 = vadd.f32 %v6447_v13, %v6145_v12  ;;  %v9970_v20 = vpop.f32.mrb[77].mxu1  ;;  %v10132_v21 = vpop.f32.mrb[77].mxu0  ;;  %v5896_v3 = vld [vmem:[%s18941_s0 + $0x23d] sm:$0xff] }
 0x575   :  { %7949 = vst.msk [vmem:[%s18942_s3 + $0x10] sm:$0xff] %vm629_vm4, %v7868_v17  ;;  %v7298_v22 = vld [vmem:[%s18942_s3 + $0x30] sm:$0xff]  ;;  %v6148_v23 = vpop.f32.mrb[78].mxu1  ;;  %v6993_v26 = vpop.f32.mrb[78].mxu0  ;;  %v5943_v13 = vpack.c.bf16 %v5896_v3, %v5895_v63 }
 0x576   :  { %v7869_v6 = vsel %vm7707_vm8, %v7626_v11, %v7788_v18  ;;  %6609 = vst.msk [vmem:[%s18942_s3 + $0x40] sm:$0xff] %vm629_vm4, %v6528_v19  ;;  %v7379_v27 = vadd.f32 %v7298_v22, %v6990_v14  ;;  %v6529_v28 = vadd.f32 %v6448_v24, %v6148_v23  ;;  %v9971_v29 = vpop.f32.mrb[79].mxu1  ;;  %v10133_v30 = vpop.f32.mrb[79].mxu0  ;;  %v6451_v11 = vld [vmem:[%s18942_s3 + $0x60] sm:$0xff]  ;;  %v6795_v14 = vpack.c.bf16 %v6747_v5, %v6746_v4  ;;  %v6452_v22 = vld [vmem:[%s18942_s3 + $0x68] sm:$0xff] }
 0x577   :  { %7950 = vst.msk [vmem:[%s18942_s3 + $0x18] sm:$0xff] %vm629_vm4, %v7869_v6  ;;  %v7539_v31 = vld [vmem:[%s18942_s3 + $0x20] sm:$0xff]  ;;  %v7299_v32 = vld [vmem:[%s18942_s3 + $0x38] sm:$0xff]  ;;  %v6751_v3 = vld [vmem:[%s18941_s0 + $0x24e] sm:$0xff] }
 0x578   :  { %v7627_v34 = vadd.f32 %v16988_v25, %v7539_v31  ;;  %7460 = vst.msk [vmem:[%s18942_s3 + $0x30] sm:$0xff] %vm629_vm4, %v7379_v27  ;;  %6610 = vst.msk [vmem:[%s18942_s3 + $0x48] sm:$0xff] %vm629_vm4, %v6529_v28  ;;  %v7380_v35 = vadd.f32 %v7299_v32, %v6993_v26  ;;  %10077 = vmatmul.mubr.msk.bf16.gmra.mrb[184].mxu1 %vm138_vm3, %v5941_v15  ;;  %10239 = vmatmul.mubr.msk.bf16.gmra.mrb[184].mxu0 %vm138_vm3, %v6793_v16  ;;  %v5897_v31 = vld [vmem:[%s18941_s0 + $0x245] sm:$0xff] }
 0x579   :  { %v7540_v39 = vld [vmem:[%s18942_s3 + $0x28] sm:$0xff]  ;;  %10080 = vmatprep.mubr.msk.bf16.mxu1 %vm10291_vm2, %v10289_v0  ;;  %10242 = vmatprep.mubr.msk.bf16.mxu0 %vm10291_vm2, %v10289_v0 }
 0x57a   :  { %vm7708_vm9 = vcmp.gt.f32.partialorder %v7627_v34, 0.0  ;;  %v7789_v40 = vmul.f32 0.1, %v7627_v34  ;;  %v7628_v41 = vadd.f32 %v16988_v25, %v7540_v39  ;;  %7461 = vst.msk [vmem:[%s18942_s3 + $0x38] sm:$0xff] %vm629_vm4, %v7380_v35  ;;  %v6748_v35 = vld [vmem:[%s18941_s0 + $0x236] sm:$0xff] }
 0x57b   :  { %v6153_v42 = vpop.f32.mrb[80].mxu1  ;;  %v6998_v44 = vpop.f32.mrb[80].mxu0 }
 0x57c   :  { %v7870_v47 = vsel %vm7708_vm9, %v7627_v34, %v7789_v40  ;;  %vm7709_vm10 = vcmp.gt.f32.partialorder %v7628_v41, 0.0  ;;  %v7790_v48 = vmul.f32 0.1, %v7628_v41  ;;  %v6530_v49 = vadd.f32 %v6449_v43, %v6153_v42  ;;  %v9974_v50 = vpop.f32.mrb[81].mxu1  ;;  %v10136_v51 = vpop.f32.mrb[81].mxu0  ;;  %v5898_v34 = vld [vmem:[%s18941_s0 + $0x24d] sm:$0xff] }
 0x57d   :  { %7951 = vst.msk [vmem:[%s18942_s3 + $0x20] sm:$0xff] %vm629_vm4, %v7870_v47  ;;  %v7300_v52 = vld [vmem:[%s18942_s3 + $0x40] sm:$0xff]  ;;  %v6156_v53 = vpop.f32.mrb[82].mxu1  ;;  %v7001_v55 = vpop.f32.mrb[82].mxu0  ;;  %v5944_v43 = vpack.c.bf16 %v5898_v34, %v5897_v31 }
 0x57e   :  { %v7871_v56 = vsel %vm7709_vm10, %v7628_v41, %v7790_v48  ;;  %6611 = vst.msk [vmem:[%s18942_s3 + $0x50] sm:$0xff] %vm629_vm4, %v6530_v49  ;;  %v7381_v57 = vadd.f32 %v7300_v52, %v6998_v44  ;;  %v6531_v58 = vadd.f32 %v6450_v54, %v6156_v53  ;;  %v9975_v59 = vpop.f32.mrb[83].mxu1  ;;  %v10137_v60 = vpop.f32.mrb[83].mxu0  ;;  %v6453_v41 = vld [vmem:[%s18942_s3 + $0x70] sm:$0xff]  ;;  %v6796_v44 = vpack.c.bf16 %v6749_v36, %v6748_v35  ;;  %v6454_v52 = vld [vmem:[%s18942_s3 + $0x78] sm:$0xff] }
 0x57f   :  { %7952 = vst.msk [vmem:[%s18942_s3 + $0x28] sm:$0xff] %vm629_vm4, %v7871_v56  ;;  %v7541_v61 = vld [vmem:[%s18942_s3 + $0x30] sm:$0xff]  ;;  %v7301_v62 = vld [vmem:[%s18942_s3 + $0x48] sm:$0xff]  ;;  %v6753_v34 = vld [vmem:[%s18941_s0 + $0x25e] sm:$0xff] }
 0x580   :  { %v7629_v1 = vadd.f32 %v16988_v25, %v7541_v61  ;;  %7462 = vst.msk [vmem:[%s18942_s3 + $0x40] sm:$0xff] %vm629_vm4, %v7381_v57  ;;  %6612 = vst.msk [vmem:[%s18942_s3 + $0x58] sm:$0xff] %vm629_vm4, %v6531_v58  ;;  %v7382_v2 = vadd.f32 %v7301_v62, %v7001_v55  ;;  %10081 = vmatmul.mubr.msk.bf16.gmra.mrb[188].mxu1 %vm138_vm3, %v5942_v45  ;;  %10243 = vmatmul.mubr.msk.bf16.gmra.mrb[188].mxu0 %vm138_vm3, %v6794_v46  ;;  %v5899_v61 = vld [vmem:[%s18941_s0 + $0x255] sm:$0xff] }
 0x581   :  { %v7542_v7 = vld [vmem:[%s18942_s3 + $0x38] sm:$0xff]  ;;  %10084 = vmatprep.mubr.msk.bf16.mxu1 %vm10291_vm2, %v10289_v0  ;;  %10246 = vmatprep.mubr.msk.bf16.mxu0 %vm10291_vm2, %v10289_v0 }
 0x582   :  { %vm7710_vm11 = vcmp.gt.f32.partialorder %v7629_v1, 0.0  ;;  %v7791_v8 = vmul.f32 0.1, %v7629_v1  ;;  %v7630_v9 = vadd.f32 %v16988_v25, %v7542_v7  ;;  %7463 = vst.msk [vmem:[%s18942_s3 + $0x48] sm:$0xff] %vm629_vm4, %v7382_v2  ;;  %v6750_v2 = vld [vmem:[%s18941_s0 + $0x246] sm:$0xff] }
 0x583   :  { %v6161_v10 = vpop.f32.mrb[84].mxu1  ;;  %v7006_v12 = vpop.f32.mrb[84].mxu0 }
 0x584   :  { %v7872_v15 = vsel %vm7710_vm11, %v7629_v1, %v7791_v8  ;;  %vm7711_vm12 = vcmp.gt.f32.partialorder %v7630_v9, 0.0  ;;  %v7792_v16 = vmul.f32 0.1, %v7630_v9  ;;  %v6532_v17 = vadd.f32 %v6451_v11, %v6161_v10  ;;  %v9978_v18 = vpop.f32.mrb[85].mxu1  ;;  %v10140_v19 = vpop.f32.mrb[85].mxu0  ;;  %v5900_v1 = vld [vmem:[%s18941_s0 + $0x25d] sm:$0xff] }
 0x585   :  { %7953 = vst.msk [vmem:[%s18942_s3 + $0x30] sm:$0xff] %vm629_vm4, %v7872_v15  ;;  %v7302_v20 = vld [vmem:[%s18942_s3 + $0x50] sm:$0xff]  ;;  %v6164_v21 = vpop.f32.mrb[86].mxu1  ;;  %v7009_v23 = vpop.f32.mrb[86].mxu0  ;;  %v5945_v11 = vpack.c.bf16 %v5900_v1, %v5899_v61 }
 0x586   :  { %v7873_v24 = vsel %vm7711_vm12, %v7630_v9, %v7792_v16  ;;  %6613 = vst.msk [vmem:[%s18942_s3 + $0x60] sm:$0xff] %vm629_vm4, %v6532_v17  ;;  %v7383_v26 = vadd.f32 %v7302_v20, %v7006_v12  ;;  %v6533_v6 = vadd.f32 %v6452_v22, %v6164_v21  ;;  %v9979_v27 = vpop.f32.mrb[87].mxu1  ;;  %v10141_v28 = vpop.f32.mrb[87].mxu0  ;;  %v6455_v9 = vld [vmem:[%s18942_s3 + $0x80] sm:$0xff]  ;;  %v6797_v12 = vpack.c.bf16 %v6751_v3, %v6750_v2  ;;  %v6456_v20 = vld [vmem:[%s18942_s3 + $0x88] sm:$0xff] }
 0x587   :  { %7954 = vst.msk [vmem:[%s18942_s3 + $0x38] sm:$0xff] %vm629_vm4, %v7873_v24  ;;  %v7543_v29 = vld [vmem:[%s18942_s3 + $0x40] sm:$0xff]  ;;  %v7303_v30 = vld [vmem:[%s18942_s3 + $0x58] sm:$0xff]  ;;  %v6755_v1 = vld [vmem:[%s18941_s0 + $0x26e] sm:$0xff] }
 0x588   :  { %v7631_v32 = vadd.f32 %v16988_v25, %v7543_v29  ;;  %7464 = vst.msk [vmem:[%s18942_s3 + $0x50] sm:$0xff] %vm629_vm4, %v7383_v26  ;;  %6614 = vst.msk [vmem:[%s18942_s3 + $0x68] sm:$0xff] %vm629_vm4, %v6533_v6  ;;  %v7384_v33 = vadd.f32 %v7303_v30, %v7009_v23  ;;  %10085 = vmatmul.mubr.msk.bf16.gmra.mrb[192].mxu1 %vm138_vm3, %v5943_v13  ;;  %10247 = vmatmul.mubr.msk.bf16.gmra.mrb[192].mxu0 %vm138_vm3, %v6795_v14  ;;  %v5901_v29 = vld [vmem:[%s18941_s0 + $0x265] sm:$0xff] }
 0x589   :  { %v7544_v37 = vld [vmem:[%s18942_s3 + $0x48] sm:$0xff]  ;;  %10088 = vmatprep.mubr.msk.bf16.mxu1 %vm10291_vm2, %v10289_v0  ;;  %10250 = vmatprep.mubr.msk.bf16.mxu0 %vm10291_vm2, %v10289_v0 }
 0x58a   :  { %vm7712_vm13 = vcmp.gt.f32.partialorder %v7631_v32, 0.0  ;;  %v7793_v38 = vmul.f32 0.1, %v7631_v32  ;;  %v7632_v39 = vadd.f32 %v16988_v25, %v7544_v37  ;;  %7465 = vst.msk [vmem:[%s18942_s3 + $0x58] sm:$0xff] %vm629_vm4, %v7384_v33  ;;  %v6752_v33 = vld [vmem:[%s18941_s0 + $0x256] sm:$0xff] }
 0x58b   :  { %v6169_v40 = vpop.f32.mrb[88].mxu1  ;;  %v7014_v42 = vpop.f32.mrb[88].mxu0 }
 0x58c   :  { %v7874_v45 = vsel %vm7712_vm13, %v7631_v32, %v7793_v38  ;;  %vm7713_vm14 = vcmp.gt.f32.partialorder %v7632_v39, 0.0  ;;  %v7794_v46 = vmul.f32 0.1, %v7632_v39  ;;  %v6534_v47 = vadd.f32 %v6453_v41, %v6169_v40  ;;  %v9982_v48 = vpop.f32.mrb[89].mxu1  ;;  %v10144_v49 = vpop.f32.mrb[89].mxu0  ;;  %v5902_v32 = vld [vmem:[%s18941_s0 + $0x26d] sm:$0xff] }
 0x58d   :  { %7955 = vst.msk [vmem:[%s18942_s3 + $0x40] sm:$0xff] %vm629_vm4, %v7874_v45  ;;  %v7304_v50 = vld [vmem:[%s18942_s3 + $0x60] sm:$0xff]  ;;  %v6172_v51 = vpop.f32.mrb[90].mxu1  ;;  %v7017_v53 = vpop.f32.mrb[90].mxu0  ;;  %v5946_v41 = vpack.c.bf16 %v5902_v32, %v5901_v29 }
 0x58e   :  { %v7875_v54 = vsel %vm7713_vm14, %v7632_v39, %v7794_v46  ;;  %6615 = vst.msk [vmem:[%s18942_s3 + $0x70] sm:$0xff] %vm629_vm4, %v6534_v47  ;;  %v7385_v55 = vadd.f32 %v7304_v50, %v7014_v42  ;;  %v6535_v56 = vadd.f32 %v6454_v52, %v6172_v51  ;;  %v9983_v57 = vpop.f32.mrb[91].mxu1  ;;  %v10145_v58 = vpop.f32.mrb[91].mxu0  ;;  %v6457_v39 = vld [vmem:[%s18942_s3 + $0x90] sm:$0xff]  ;;  %v6798_v42 = vpack.c.bf16 %v6753_v34, %v6752_v33  ;;  %v6458_v50 = vld [vmem:[%s18942_s3 + $0x98] sm:$0xff] }
 0x58f   :  { %7956 = vst.msk [vmem:[%s18942_s3 + $0x48] sm:$0xff] %vm629_vm4, %v7875_v54  ;;  %v7545_v59 = vld [vmem:[%s18942_s3 + $0x50] sm:$0xff]  ;;  %v7305_v60 = vld [vmem:[%s18942_s3 + $0x68] sm:$0xff]  ;;  %v6757_v32 = vld [vmem:[%s18941_s0 + $0x27e] sm:$0xff] }
 0x590   :  { %v7633_v62 = vadd.f32 %v16988_v25, %v7545_v59  ;;  %7466 = vst.msk [vmem:[%s18942_s3 + $0x60] sm:$0xff] %vm629_vm4, %v7385_v55  ;;  %6616 = vst.msk [vmem:[%s18942_s3 + $0x78] sm:$0xff] %vm629_vm4, %v6535_v56  ;;  %v7386_v63 = vadd.f32 %v7305_v60, %v7017_v53  ;;  %10089 = vmatmul.mubr.msk.bf16.gmra.mrb[196].mxu1 %vm138_vm3, %v5944_v43  ;;  %10251 = vmatmul.mubr.msk.bf16.gmra.mrb[196].mxu0 %vm138_vm3, %v6796_v44  ;;  %v5903_v59 = vld [vmem:[%s18941_s0 + $0x275] sm:$0xff] }
 0x591   :  { %v7546_v4 = vld [vmem:[%s18942_s3 + $0x58] sm:$0xff]  ;;  %10092 = vmatprep.mubr.msk.bf16.mxu1 %vm10291_vm2, %v10289_v0  ;;  %10254 = vmatprep.mubr.msk.bf16.mxu0 %vm10291_vm2, %v10289_v0 }
 0x592   :  { %vm7714_vm15 = vcmp.gt.f32.partialorder %v7633_v62, 0.0  ;;  %v7795_v5 = vmul.f32 0.1, %v7633_v62  ;;  %v7634_v7 = vadd.f32 %v16988_v25, %v7546_v4  ;;  %7467 = vst.msk [vmem:[%s18942_s3 + $0x68] sm:$0xff] %vm629_vm4, %v7386_v63  ;;  %v6754_v63 = vld [vmem:[%s18941_s0 + $0x266] sm:$0xff] }
 0x593   :  { %v6177_v8 = vpop.f32.mrb[92].mxu1  ;;  %v7022_v10 = vpop.f32.mrb[92].mxu0 }
 0x594   :  { %v7876_v13 = vsel %vm7714_vm15, %v7633_v62, %v7795_v5  ;;  %vm7715_vm0 = vcmp.gt.f32.partialorder %v7634_v7, 0.0  ;;  %v7796_v14 = vmul.f32 0.1, %v7634_v7  ;;  %v6536_v15 = vadd.f32 %v6455_v9, %v6177_v8  ;;  %v9986_v16 = vpop.f32.mrb[93].mxu1  ;;  %v10148_v17 = vpop.f32.mrb[93].mxu0  ;;  %v5904_v62 = vld [vmem:[%s18941_s0 + $0x27d] sm:$0xff] }
 0x595   :  { %7957 = vst.msk [vmem:[%s18942_s3 + $0x50] sm:$0xff] %vm629_vm4, %v7876_v13  ;;  %v7306_v18 = vld [vmem:[%s18942_s3 + $0x70] sm:$0xff]  ;;  %v6180_v19 = vpop.f32.mrb[94].mxu1  ;;  %v7025_v21 = vpop.f32.mrb[94].mxu0  ;;  %v5947_v9 = vpack.c.bf16 %v5904_v62, %v5903_v59 }
 0x596   :  { %v7877_v22 = vsel %vm7715_vm0, %v7634_v7, %v7796_v14  ;;  %6617 = vst.msk [vmem:[%s18942_s3 + $0x80] sm:$0xff] %vm629_vm4, %v6536_v15  ;;  %v7387_v23 = vadd.f32 %v7306_v18, %v7022_v10  ;;  %v6537_v24 = vadd.f32 %v6456_v20, %v6180_v19  ;;  %v9987_v26 = vpop.f32.mrb[95].mxu1  ;;  %v10149_v6 = vpop.f32.mrb[95].mxu0  ;;  %v6459_v7 = vld [vmem:[%s18942_s3 + $0xa0] sm:$0xff]  ;;  %v6799_v10 = vpack.c.bf16 %v6755_v1, %v6754_v63  ;;  %v6460_v18 = vld [vmem:[%s18942_s3 + $0xa8] sm:$0xff] }
 0x597   :  { %7958 = vst.msk [vmem:[%s18942_s3 + $0x58] sm:$0xff] %vm629_vm4, %v7877_v22  ;;  %v7547_v27 = vld [vmem:[%s18942_s3 + $0x60] sm:$0xff]  ;;  %v7307_v28 = vld [vmem:[%s18942_s3 + $0x78] sm:$0xff]  ;;  %v6759_v62 = vld [vmem:[%s18941_s0 + $0x28e] sm:$0xff] }
 0x598   :  { %v7635_v30 = vadd.f32 %v16988_v25, %v7547_v27  ;;  %7468 = vst.msk [vmem:[%s18942_s3 + $0x70] sm:$0xff] %vm629_vm4, %v7387_v23  ;;  %6618 = vst.msk [vmem:[%s18942_s3 + $0x88] sm:$0xff] %vm629_vm4, %v6537_v24  ;;  %v7388_v31 = vadd.f32 %v7307_v28, %v7025_v21  ;;  %10093 = vmatmul.mubr.msk.bf16.gmra.mrb[200].mxu1 %vm138_vm3, %v5945_v11  ;;  %10255 = vmatmul.mubr.msk.bf16.gmra.mrb[200].mxu0 %vm138_vm3, %v6797_v12  ;;  %v5905_v27 = vld [vmem:[%s18941_s0 + $0x285] sm:$0xff] }
 0x599   :  { %v7548_v35 = vld [vmem:[%s18942_s3 + $0x68] sm:$0xff]  ;;  %10096 = vmatprep.mubr.msk.bf16.mxu1 %vm10291_vm2, %v10289_v0  ;;  %10258 = vmatprep.mubr.msk.bf16.mxu0 %vm10291_vm2, %v10289_v0 }
 0x59a   :  { %vm7716_vm1 = vcmp.gt.f32.partialorder %v7635_v30, 0.0  ;;  %v7797_v36 = vmul.f32 0.1, %v7635_v30  ;;  %v7636_v37 = vadd.f32 %v16988_v25, %v7548_v35  ;;  %7469 = vst.msk [vmem:[%s18942_s3 + $0x78] sm:$0xff] %vm629_vm4, %v7388_v31  ;;  %v6756_v31 = vld [vmem:[%s18941_s0 + $0x276] sm:$0xff] }
 0x59b   :  { %v6185_v38 = vpop.f32.mrb[96].mxu1  ;;  %v7030_v40 = vpop.f32.mrb[96].mxu0 }
 0x59c   :  { %v7878_v43 = vsel %vm7716_vm1, %v7635_v30, %v7797_v36  ;;  %vm7717_vm5 = vcmp.gt.f32.partialorder %v7636_v37, 0.0  ;;  %v7798_v44 = vmul.f32 0.1, %v7636_v37  ;;  %v6538_v45 = vadd.f32 %v6457_v39, %v6185_v38  ;;  %v9990_v46 = vpop.f32.mrb[97].mxu1  ;;  %v10152_v47 = vpop.f32.mrb[97].mxu0  ;;  %v5906_v30 = vld [vmem:[%s18941_s0 + $0x28d] sm:$0xff] }
 0x59d   :  { %7959 = vst.msk [vmem:[%s18942_s3 + $0x60] sm:$0xff] %vm629_vm4, %v7878_v43  ;;  %v7308_v48 = vld [vmem:[%s18942_s3 + $0x80] sm:$0xff]  ;;  %v6188_v49 = vpop.f32.mrb[98].mxu1  ;;  %v7033_v51 = vpop.f32.mrb[98].mxu0  ;;  %v5948_v39 = vpack.c.bf16 %v5906_v30, %v5905_v27 }
 0x59e   :  { %v7879_v52 = vsel %vm7717_vm5, %v7636_v37, %v7798_v44  ;;  %6619 = vst.msk [vmem:[%s18942_s3 + $0x90] sm:$0xff] %vm629_vm4, %v6538_v45  ;;  %v7389_v53 = vadd.f32 %v7308_v48, %v7030_v40  ;;  %v6539_v54 = vadd.f32 %v6458_v50, %v6188_v49  ;;  %v9991_v55 = vpop.f32.mrb[99].mxu1  ;;  %v10153_v56 = vpop.f32.mrb[99].mxu0  ;;  %v6461_v37 = vld [vmem:[%s18942_s3 + $0xb0] sm:$0xff]  ;;  %v6800_v40 = vpack.c.bf16 %v6757_v32, %v6756_v31  ;;  %v6462_v48 = vld [vmem:[%s18942_s3 + $0xb8] sm:$0xff]  ;;  %v5909_v27 = vld [vmem:[%s18941_s0 + $0x2a5] sm:$0xff] }
 0x59f   :  { %7960 = vst.msk [vmem:[%s18942_s3 + $0x68] sm:$0xff] %vm629_vm4, %v7879_v52  ;;  %v7549_v57 = vld [vmem:[%s18942_s3 + $0x70] sm:$0xff]  ;;  %v7309_v58 = vld [vmem:[%s18942_s3 + $0x88] sm:$0xff] }
 0x5a0   :  { %v7637_v60 = vadd.f32 %v16988_v25, %v7549_v57  ;;  %7470 = vst.msk [vmem:[%s18942_s3 + $0x80] sm:$0xff] %vm629_vm4, %v7389_v53  ;;  %6620 = vst.msk [vmem:[%s18942_s3 + $0x98] sm:$0xff] %vm629_vm4, %v6539_v54  ;;  %v7390_v61 = vadd.f32 %v7309_v58, %v7033_v51  ;;  %10097 = vmatmul.mubr.msk.bf16.gmra.mrb[204].mxu1 %vm138_vm3, %v5946_v41  ;;  %10259 = vmatmul.mubr.msk.bf16.gmra.mrb[204].mxu0 %vm138_vm3, %v6798_v42  ;;  %v5907_v57 = vld [vmem:[%s18941_s0 + $0x295] sm:$0xff] }
 0x5a1   :  { %v7550_v2 = vld [vmem:[%s18942_s3 + $0x78] sm:$0xff]  ;;  %10100 = vmatprep.mubr.msk.bf16.mxu1 %vm10291_vm2, %v10289_v0  ;;  %10262 = vmatprep.mubr.msk.bf16.mxu0 %vm10291_vm2, %v10289_v0 }
 0x5a2   :  { %vm7718_vm6 = vcmp.gt.f32.partialorder %v7637_v60, 0.0  ;;  %v7799_v3 = vmul.f32 0.1, %v7637_v60  ;;  %v7638_v4 = vadd.f32 %v16988_v25, %v7550_v2  ;;  %7471 = vst.msk [vmem:[%s18942_s3 + $0x88] sm:$0xff] %vm629_vm4, %v7390_v61  ;;  %v6758_v61 = vld [vmem:[%s18941_s0 + $0x286] sm:$0xff] }
 0x5a3   :  { %v6193_v5 = vpop.f32.mrb[100].mxu1  ;;  %v7038_v8 = vpop.f32.mrb[100].mxu0 }
 0x5a4   :  { %v7880_v11 = vsel %vm7718_vm6, %v7637_v60, %v7799_v3  ;;  %vm7719_vm7 = vcmp.gt.f32.partialorder %v7638_v4, 0.0  ;;  %v7800_v12 = vmul.f32 0.1, %v7638_v4  ;;  %v6540_v13 = vadd.f32 %v6459_v7, %v6193_v5  ;;  %v9994_v14 = vpop.f32.mrb[101].mxu1  ;;  %v10156_v15 = vpop.f32.mrb[101].mxu0  ;;  %v5908_v60 = vld [vmem:[%s18941_s0 + $0x29d] sm:$0xff] }
 0x5a5   :  { %7961 = vst.msk [vmem:[%s18942_s3 + $0x70] sm:$0xff] %vm629_vm4, %v7880_v11  ;;  %v7310_v16 = vld [vmem:[%s18942_s3 + $0x90] sm:$0xff]  ;;  %v6196_v17 = vpop.f32.mrb[102].mxu1  ;;  %v7041_v19 = vpop.f32.mrb[102].mxu0  ;;  %v5949_v7 = vpack.c.bf16 %v5908_v60, %v5907_v57 }
 0x5a6   :  { %v7881_v20 = vsel %vm7719_vm7, %v7638_v4, %v7800_v12  ;;  %6621 = vst.msk [vmem:[%s18942_s3 + $0xa0] sm:$0xff] %vm629_vm4, %v6540_v13  ;;  %v7391_v21 = vadd.f32 %v7310_v16, %v7038_v8  ;;  %v6541_v22 = vadd.f32 %v6460_v18, %v6196_v17  ;;  %v9995_v23 = vpop.f32.mrb[103].mxu1  ;;  %v10157_v24 = vpop.f32.mrb[103].mxu0  ;;  %v6463_v4 = vld [vmem:[%s18942_s3 + $0xc0] sm:$0xff]  ;;  %v6801_v8 = vpack.c.bf16 %v6759_v62, %v6758_v61  ;;  %v6464_v16 = vld [vmem:[%s18942_s3 + $0xc8] sm:$0xff] }
 0x5a7   :  { %7962 = vst.msk [vmem:[%s18942_s3 + $0x78] sm:$0xff] %vm629_vm4, %v7881_v20  ;;  %v7551_v26 = vld [vmem:[%s18942_s3 + $0x80] sm:$0xff]  ;;  %v7311_v6 = vld [vmem:[%s18942_s3 + $0x98] sm:$0xff] }
 0x5a8   :  { %v7639_v28 = vadd.f32 %v16988_v25, %v7551_v26  ;;  %7472 = vst.msk [vmem:[%s18942_s3 + $0x90] sm:$0xff] %vm629_vm4, %v7391_v21  ;;  %6622 = vst.msk [vmem:[%s18942_s3 + $0xa8] sm:$0xff] %vm629_vm4, %v6541_v22  ;;  %v7392_v29 = vadd.f32 %v7311_v6, %v7041_v19  ;;  %10101 = vmatmul.mubr.msk.bf16.gmra.mrb[208].mxu1 %vm138_vm3, %v5947_v9  ;;  %10263 = vmatmul.mubr.msk.bf16.gmra.mrb[208].mxu0 %vm138_vm3, %v6799_v10  ;;  %v6467_v61 = vld [vmem:[%s18942_s3 + $0xe0] sm:$0xff] }
 0x5a9   :  { %v7552_v33 = vld [vmem:[%s18942_s3 + $0x88] sm:$0xff]  ;;  %10104 = vmatprep.mubr.msk.bf16.mxu1 %vm10291_vm2, %v10289_v0  ;;  %10266 = vmatprep.mubr.msk.bf16.mxu0 %vm10291_vm2, %v10289_v0 }
 0x5aa   :  { %vm7720_vm8 = vcmp.gt.f32.partialorder %v7639_v28, 0.0  ;;  %v7801_v34 = vmul.f32 0.1, %v7639_v28  ;;  %v7640_v35 = vadd.f32 %v16988_v25, %v7552_v33  ;;  %7473 = vst.msk [vmem:[%s18942_s3 + $0x98] sm:$0xff] %vm629_vm4, %v7392_v29  ;;  %v6761_v29 = vld [vmem:[%s18941_s0 + $0x29e] sm:$0xff] }
 0x5ab   :  { %v6201_v36 = vpop.f32.mrb[104].mxu1  ;;  %v7046_v38 = vpop.f32.mrb[104].mxu0 }
 0x5ac   :  { %v7882_v41 = vsel %vm7720_vm8, %v7639_v28, %v7801_v34  ;;  %vm7721_vm9 = vcmp.gt.f32.partialorder %v7640_v35, 0.0  ;;  %v7802_v42 = vmul.f32 0.1, %v7640_v35  ;;  %v6542_v43 = vadd.f32 %v6461_v37, %v6201_v36  ;;  %v9998_v44 = vpop.f32.mrb[105].mxu1  ;;  %v10160_v45 = vpop.f32.mrb[105].mxu0  ;;  %v6760_v28 = vld [vmem:[%s18941_s0 + $0x296] sm:$0xff] }
 0x5ad   :  { %7963 = vst.msk [vmem:[%s18942_s3 + $0x80] sm:$0xff] %vm629_vm4, %v7882_v41  ;;  %v7312_v46 = vld [vmem:[%s18942_s3 + $0xa0] sm:$0xff]  ;;  %v6204_v47 = vpop.f32.mrb[106].mxu1  ;;  %v7049_v49 = vpop.f32.mrb[106].mxu0  ;;  %v6465_v34 = vld [vmem:[%s18942_s3 + $0xd0] sm:$0xff]  ;;  %v5950_v36 = vpack.c.bf16 %v5909_v27, %v5909_v27  ;;  %v6802_v37 = vpack.c.bf16 %v6761_v29, %v6760_v28  ;;  %v6466_v45 = vld [vmem:[%s18942_s3 + $0xd8] sm:$0xff] }
 0x5ae   :  { %v7883_v50 = vsel %vm7721_vm9, %v7640_v35, %v7802_v42  ;;  %6623 = vst.msk [vmem:[%s18942_s3 + $0xb0] sm:$0xff] %vm629_vm4, %v6542_v43  ;;  %v7393_v51 = vadd.f32 %v7312_v46, %v7046_v38  ;;  %v6543_v52 = vadd.f32 %v6462_v48, %v6204_v47  ;;  %v9999_v53 = vpop.f32.mrb[107].mxu1  ;;  %v10161_v54 = vpop.f32.mrb[107].mxu0 }
 0x5af   :  { %7964 = vst.msk [vmem:[%s18942_s3 + $0x88] sm:$0xff] %vm629_vm4, %v7883_v50  ;;  %v7553_v55 = vld [vmem:[%s18942_s3 + $0x90] sm:$0xff]  ;;  %v7313_v56 = vld [vmem:[%s18942_s3 + $0xa8] sm:$0xff] }
 0x5b0   :  { %v7641_v58 = vadd.f32 %v16988_v25, %v7553_v55  ;;  %7474 = vst.msk [vmem:[%s18942_s3 + $0xa0] sm:$0xff] %vm629_vm4, %v7393_v51  ;;  %6624 = vst.msk [vmem:[%s18942_s3 + $0xb8] sm:$0xff] %vm629_vm4, %v6543_v52  ;;  %v7394_v59 = vadd.f32 %v7313_v56, %v7049_v49  ;;  %10105 = vmatmul.mubr.msk.bf16.gmra.mrb[212].mxu1 %vm138_vm3, %v5948_v39  ;;  %10267 = vmatmul.mubr.msk.bf16.gmra.mrb[212].mxu0 %vm138_vm3, %v6800_v40  ;;  %v6762_v56 = vld [vmem:[%s18941_s0 + $0x2a6] sm:$0xff] }
 0x5b1   :  { %v7554_v63 = vld [vmem:[%s18942_s3 + $0x98] sm:$0xff]  ;;  %10108 = vmatprep.mubr.msk.bf16.mxu1 %vm10291_vm2, %v10289_v0  ;;  %10270 = vmatprep.mubr.msk.bf16.mxu0 %vm10291_vm2, %v10289_v0 }
 0x5b2   :  { %vm7722_vm10 = vcmp.gt.f32.partialorder %v7641_v58, 0.0  ;;  %v7803_v1 = vmul.f32 0.1, %v7641_v58  ;;  %v7642_v2 = vadd.f32 %v16988_v25, %v7554_v63  ;;  %7475 = vst.msk [vmem:[%s18942_s3 + $0xa8] sm:$0xff] %vm629_vm4, %v7394_v59  ;;  %v6803_v63 = vpack.c.bf16 %v6762_v56, %v6762_v56  ;;  %v6472_v56 = vld [vmem:[%s18942_s3 + $0x108] sm:$0xff] }
 0x5b3   :  { %v6209_v3 = vpop.f32.mrb[108].mxu1  ;;  %v7054_v5 = vpop.f32.mrb[108].mxu0 }
 0x5b4   :  { %v7884_v9 = vsel %vm7722_vm10, %v7641_v58, %v7803_v1  ;;  %vm7723_vm11 = vcmp.gt.f32.partialorder %v7642_v2, 0.0  ;;  %v7804_v10 = vmul.f32 0.1, %v7642_v2  ;;  %v6544_v11 = vadd.f32 %v6463_v4, %v6209_v3  ;;  %v10002_v12 = vpop.f32.mrb[109].mxu1  ;;  %v10164_v13 = vpop.f32.mrb[109].mxu0 }
 0x5b5   :  { %7965 = vst.msk [vmem:[%s18942_s3 + $0x90] sm:$0xff] %vm629_vm4, %v7884_v9  ;;  %v7314_v14 = vld [vmem:[%s18942_s3 + $0xb0] sm:$0xff]  ;;  %v6212_v15 = vpop.f32.mrb[110].mxu1  ;;  %v7057_v17 = vpop.f32.mrb[110].mxu0 }
 0x5b6   :  { %v7885_v18 = vsel %vm7723_vm11, %v7642_v2, %v7804_v10  ;;  %6625 = vst.msk [vmem:[%s18942_s3 + $0xc0] sm:$0xff] %vm629_vm4, %v6544_v11  ;;  %v7395_v19 = vadd.f32 %v7314_v14, %v7054_v5  ;;  %v6545_v20 = vadd.f32 %v6464_v16, %v6212_v15  ;;  %v10003_v21 = vpop.f32.mrb[111].mxu1  ;;  %v10165_v22 = vpop.f32.mrb[111].mxu0 }
 0x5b7   :  { %7966 = vst.msk [vmem:[%s18942_s3 + $0x98] sm:$0xff] %vm629_vm4, %v7885_v18  ;;  %v7555_v23 = vld [vmem:[%s18942_s3 + $0xa0] sm:$0xff]  ;;  %v7315_v24 = vld [vmem:[%s18942_s3 + $0xb8] sm:$0xff] }
 0x5b8   :  { %v7643_v26 = vadd.f32 %v16988_v25, %v7555_v23  ;;  %7476 = vst.msk [vmem:[%s18942_s3 + $0xb0] sm:$0xff] %vm629_vm4, %v7395_v19  ;;  %6626 = vst.msk [vmem:[%s18942_s3 + $0xc8] sm:$0xff] %vm629_vm4, %v6545_v20  ;;  %v7396_v6 = vadd.f32 %v7315_v24, %v7057_v17  ;;  %10109 = vmatmul.mubr.msk.bf16.gmra.mrb[216].mxu1 %vm138_vm3, %v5949_v7  ;;  %10271 = vmatmul.mubr.msk.bf16.gmra.mrb[216].mxu0 %vm138_vm3, %v6801_v8  ;;  %v6468_v8 = vld [vmem:[%s18942_s3 + $0xe8] sm:$0xff]  ;;  %v6469_v23 = vld [vmem:[%s18942_s3 + $0xf0] sm:$0xff] }
 0x5b9   :  { %v7556_v30 = vld [vmem:[%s18942_s3 + $0xa8] sm:$0xff]  ;;  %10112 = vmatprep.mubr.msk.bf16.mxu1 %vm10291_vm2, %v10289_v0  ;;  %10274 = vmatprep.mubr.msk.bf16.mxu0 %vm10291_vm2, %v10289_v0 }
 0x5ba   :  { %vm7724_vm12 = vcmp.gt.f32.partialorder %v7643_v26, 0.0  ;;  %v7805_v31 = vmul.f32 0.1, %v7643_v26  ;;  %v7644_v32 = vadd.f32 %v16988_v25, %v7556_v30  ;;  %7477 = vst.msk [vmem:[%s18942_s3 + $0xb8] sm:$0xff] %vm629_vm4, %v7396_v6 }
 0x5bb   :  { %v6217_v33 = vpop.f32.mrb[112].mxu1  ;;  %v7062_v35 = vpop.f32.mrb[112].mxu0 }
 0x5bc   :  { %v7886_v38 = vsel %vm7724_vm12, %v7643_v26, %v7805_v31  ;;  %vm7725_vm13 = vcmp.gt.f32.partialorder %v7644_v32, 0.0  ;;  %v7806_v39 = vmul.f32 0.1, %v7644_v32  ;;  %v6546_v40 = vadd.f32 %v6465_v34, %v6217_v33  ;;  %v10006_v41 = vpop.f32.mrb[113].mxu1  ;;  %v10168_v42 = vpop.f32.mrb[113].mxu0 }
 0x5bd   :  { %7967 = vst.msk [vmem:[%s18942_s3 + $0xa0] sm:$0xff] %vm629_vm4, %v7886_v38  ;;  %v7316_v43 = vld [vmem:[%s18942_s3 + $0xc0] sm:$0xff]  ;;  %v6220_v44 = vpop.f32.mrb[114].mxu1  ;;  %v7065_v46 = vpop.f32.mrb[114].mxu0 }
 0x5be   :  { %v7887_v47 = vsel %vm7725_vm13, %v7644_v32, %v7806_v39  ;;  %6627 = vst.msk [vmem:[%s18942_s3 + $0xd0] sm:$0xff] %vm629_vm4, %v6546_v40  ;;  %v7397_v48 = vadd.f32 %v7316_v43, %v7062_v35  ;;  %v6547_v49 = vadd.f32 %v6466_v45, %v6220_v44  ;;  %v10007_v50 = vpop.f32.mrb[115].mxu1  ;;  %v10169_v51 = vpop.f32.mrb[115].mxu0  ;;  %v6470_v32 = vld [vmem:[%s18942_s3 + $0xf8] sm:$0xff] }
 0x5bf   :  { %7968 = vst.msk [vmem:[%s18942_s3 + $0xa8] sm:$0xff] %vm629_vm4, %v7887_v47  ;;  %v7557_v52 = vld [vmem:[%s18942_s3 + $0xb0] sm:$0xff]  ;;  %v7317_v53 = vld [vmem:[%s18942_s3 + $0xc8] sm:$0xff]  ;;  %v6471_v47 = vld [vmem:[%s18942_s3 + $0x100] sm:$0xff] }
 0x5c0   :  { %v7645_v54 = vadd.f32 %v16988_v25, %v7557_v52  ;;  %7478 = vst.msk [vmem:[%s18942_s3 + $0xc0] sm:$0xff] %vm629_vm4, %v7397_v48  ;;  %6628 = vst.msk [vmem:[%s18942_s3 + $0xd8] sm:$0xff] %vm629_vm4, %v6547_v49  ;;  %v7398_v55 = vadd.f32 %v7317_v53, %v7065_v46  ;;  %10113 = vmatmul.mubr.msk.bf16.gmra.mrb[220].mxu1 %vm138_vm3, %v5950_v36  ;;  %10275 = vmatmul.mubr.msk.bf16.gmra.mrb[220].mxu0 %vm138_vm3, %v6802_v37 }
 0x5c1   :  { %v7558_v57 = vld [vmem:[%s18942_s3 + $0xb8] sm:$0xff]  ;;  %10278 = vmatprep.mubr.msk.bf16.mxu0 %vm10291_vm2, %v10289_v0 }
 0x5c2   :  { %vm7726_vm14 = vcmp.gt.f32.partialorder %v7645_v54, 0.0  ;;  %v7807_v58 = vmul.f32 0.1, %v7645_v54  ;;  %v7646_v59 = vadd.f32 %v16988_v25, %v7558_v57  ;;  %7479 = vst.msk [vmem:[%s18942_s3 + $0xc8] sm:$0xff] %vm629_vm4, %v7398_v55 }
 0x5c3   :  { %v6225_v60 = vpop.f32.mrb[116].mxu1  ;;  %v7070_v62 = vpop.f32.mrb[116].mxu0 }
 0x5c4   :  { %v7888_v1 = vsel %vm7726_vm14, %v7645_v54, %v7807_v58  ;;  %vm7727_vm15 = vcmp.gt.f32.partialorder %v7646_v59, 0.0  ;;  %v7808_v2 = vmul.f32 0.1, %v7646_v59  ;;  %v6548_v0 = vadd.f32 %v6467_v61, %v6225_v60  ;;  %v10010_v3 = vpop.f32.mrb[117].mxu1  ;;  %v10172_v4 = vpop.f32.mrb[117].mxu0 }
 0x5c5   :  { %7969 = vst.msk [vmem:[%s18942_s3 + $0xb0] sm:$0xff] %vm629_vm4, %v7888_v1  ;;  %v7318_v5 = vld [vmem:[%s18942_s3 + $0xd0] sm:$0xff]  ;;  %v6228_v7 = vpop.f32.mrb[118].mxu1  ;;  %v7073_v9 = vpop.f32.mrb[118].mxu0 }
 0x5c6   :  { %v7889_v10 = vsel %vm7727_vm15, %v7646_v59, %v7808_v2  ;;  %6629 = vst.msk [vmem:[%s18942_s3 + $0xe0] sm:$0xff] %vm629_vm4, %v6548_v0  ;;  %v7399_v11 = vadd.f32 %v7318_v5, %v7070_v62  ;;  %v6549_v12 = vadd.f32 %v6468_v8, %v6228_v7  ;;  %v10011_v13 = vpop.f32.mrb[119].mxu1  ;;  %v10173_v14 = vpop.f32.mrb[119].mxu0  ;;  %v6473_v8 = vld [vmem:[%s18942_s3 + $0x110] sm:$0xff] }
 0x5c7   :  { %7970 = vst.msk [vmem:[%s18942_s3 + $0xb8] sm:$0xff] %vm629_vm4, %v7889_v10  ;;  %v7559_v15 = vld [vmem:[%s18942_s3 + $0xc0] sm:$0xff]  ;;  %v7319_v16 = vld [vmem:[%s18942_s3 + $0xd8] sm:$0xff] }
 0x5c8   :  { %v7647_v17 = vadd.f32 %v16988_v25, %v7559_v15  ;;  %7480 = vst.msk [vmem:[%s18942_s3 + $0xd0] sm:$0xff] %vm629_vm4, %v7399_v11  ;;  %6630 = vst.msk [vmem:[%s18942_s3 + $0xe8] sm:$0xff] %vm629_vm4, %v6549_v12  ;;  %v7400_v18 = vadd.f32 %v7319_v16, %v7073_v9  ;;  %10279 = vmatmul.mubr.msk.bf16.gmra.mrb[224].mxu0 %vm138_vm3, %v6803_v63  ;;  %v17752_v25 = vld [vmem:[%s18943_s2] ss:$0 sm:$0xff] }
 0x5c9   :  { %v7560_v19 = vld [vmem:[%s18942_s3 + $0xc8] sm:$0xff] }
 0x5ca   :  { %vm7728_vm2 = vcmp.gt.f32.partialorder %v7647_v17, 0.0  ;;  %v7809_v20 = vmul.f32 0.1, %v7647_v17  ;;  %v7648_v21 = vadd.f32 %v17752_v25, %v7560_v19  ;;  %7481 = vst.msk [vmem:[%s18942_s3 + $0xd8] sm:$0xff] %vm629_vm4, %v7400_v18 }
 0x5cb   :  { %v6233_v22 = vpop.f32.mrb[120].mxu1  ;;  %v7078_v24 = vpop.f32.mrb[120].mxu0 }
 0x5cc   :  { %v7890_v26 = vsel %vm7728_vm2, %v7647_v17, %v7809_v20  ;;  %vm7729_vm3 = vcmp.gt.f32.partialorder %v7648_v21, 0.0  ;;  %v7810_v6 = vmul.f32 0.1, %v7648_v21  ;;  %v6550_v27 = vadd.f32 %v6469_v23, %v6233_v22  ;;  %v10014_v28 = vpop.f32.mrb[121].mxu1  ;;  %v10176_v29 = vpop.f32.mrb[121].mxu0  ;;  %v6474_v17 = vld [vmem:[%s18942_s3 + $0x118] sm:$0xff] }
 0x5cd   :  { %7971 = vst.msk [vmem:[%s18942_s3 + $0xc0] sm:$0xff] %vm629_vm4, %v7890_v26  ;;  %v7320_v30 = vld [vmem:[%s18942_s3 + $0xe0] sm:$0xff]  ;;  %v6236_v31 = vpop.f32.mrb[122].mxu1  ;;  %v7081_v33 = vpop.f32.mrb[122].mxu0 }
 0x5ce   :  { %v7891_v34 = vsel %vm7729_vm3, %v7648_v21, %v7810_v6  ;;  %6631 = vst.msk [vmem:[%s18942_s3 + $0xf0] sm:$0xff] %vm629_vm4, %v6550_v27  ;;  %v7401_v35 = vadd.f32 %v7320_v30, %v7078_v24  ;;  %v6551_v36 = vadd.f32 %v6470_v32, %v6236_v31  ;;  %v10015_v37 = vpop.f32.mrb[123].mxu1  ;;  %v10177_v38 = vpop.f32.mrb[123].mxu0  ;;  %v6475_v32 = vld [vmem:[%s18942_s3 + $0x120] sm:$0xff] }
 0x5cf   :  { %7972 = vst.msk [vmem:[%s18942_s3 + $0xc8] sm:$0xff] %vm629_vm4, %v7891_v34  ;;  %v7561_v39 = vld [vmem:[%s18942_s3 + $0xd0] sm:$0xff]  ;;  %v7321_v40 = vld [vmem:[%s18942_s3 + $0xe8] sm:$0xff] }
 0x5d0   :  { %v7649_v41 = vadd.f32 %v17752_v25, %v7561_v39  ;;  %7482 = vst.msk [vmem:[%s18942_s3 + $0xe0] sm:$0xff] %vm629_vm4, %v7401_v35  ;;  %6632 = vst.msk [vmem:[%s18942_s3 + $0xf8] sm:$0xff] %vm629_vm4, %v6551_v36  ;;  %v7402_v42 = vadd.f32 %v7321_v40, %v7081_v33 }
 0x5d1   :  { %v7562_v43 = vld [vmem:[%s18942_s3 + $0xd8] sm:$0xff] }
 0x5d2   :  { %vm7730_vm0 = vcmp.gt.f32.partialorder %v7649_v41, 0.0  ;;  %v7811_v44 = vmul.f32 0.1, %v7649_v41  ;;  %v7650_v45 = vadd.f32 %v17752_v25, %v7562_v43  ;;  %7483 = vst.msk [vmem:[%s18942_s3 + $0xe8] sm:$0xff] %vm629_vm4, %v7402_v42 }
 0x5d3   :  { %v6241_v46 = vpop.f32.mrb[124].mxu1  ;;  %v7086_v48 = vpop.f32.mrb[124].mxu0 }
 0x5d4   :  { %v7892_v49 = vsel %vm7730_vm0, %v7649_v41, %v7811_v44  ;;  %vm7731_vm1 = vcmp.gt.f32.partialorder %v7650_v45, 0.0  ;;  %v7812_v50 = vmul.f32 0.1, %v7650_v45  ;;  %v6552_v51 = vadd.f32 %v6471_v47, %v6241_v46  ;;  %v10018_v52 = vpop.f32.mrb[125].mxu1  ;;  %v10180_v53 = vpop.f32.mrb[125].mxu0  ;;  %v6476_v41 = vld [vmem:[%s18942_s3 + $0x128] sm:$0xff] }
 0x5d5   :  { %7973 = vst.msk [vmem:[%s18942_s3 + $0xd0] sm:$0xff] %vm629_vm4, %v7892_v49  ;;  %v7322_v54 = vld [vmem:[%s18942_s3 + $0xf0] sm:$0xff]  ;;  %v6244_v55 = vpop.f32.mrb[126].mxu1  ;;  %v7089_v57 = vpop.f32.mrb[126].mxu0 }
 0x5d6   :  { %v7893_v58 = vsel %vm7731_vm1, %v7650_v45, %v7812_v50  ;;  %6633 = vst.msk [vmem:[%s18942_s3 + $0x100] sm:$0xff] %vm629_vm4, %v6552_v51  ;;  %v7403_v59 = vadd.f32 %v7322_v54, %v7086_v48  ;;  %v6553_v60 = vadd.f32 %v6472_v56, %v6244_v55  ;;  %v10019_v61 = vpop.f32.mrb[127].mxu1  ;;  %v10181_v62 = vpop.f32.mrb[127].mxu0  ;;  %v6477_v56 = vld [vmem:[%s18942_s3 + $0x130] sm:$0xff] }
 0x5d7   :  { %7974 = vst.msk [vmem:[%s18942_s3 + $0xd8] sm:$0xff] %vm629_vm4, %v7893_v58  ;;  %v7563_v63 = vld [vmem:[%s18942_s3 + $0xe0] sm:$0xff]  ;;  %v7323_v1 = vld [vmem:[%s18942_s3 + $0xf8] sm:$0xff] }
 0x5d8   :  { %v7651_v2 = vadd.f32 %v17752_v25, %v7563_v63  ;;  %7484 = vst.msk [vmem:[%s18942_s3 + $0xf0] sm:$0xff] %vm629_vm4, %v7403_v59  ;;  %6634 = vst.msk [vmem:[%s18942_s3 + $0x108] sm:$0xff] %vm629_vm4, %v6553_v60  ;;  %v7404_v0 = vadd.f32 %v7323_v1, %v7089_v57 }
 0x5d9   :  { %v7564_v3 = vld [vmem:[%s18942_s3 + $0xe8] sm:$0xff] }
 0x5da   :  { %vm7732_vm5 = vcmp.gt.f32.partialorder %v7651_v2, 0.0  ;;  %v7813_v4 = vmul.f32 0.1, %v7651_v2  ;;  %v7652_v5 = vadd.f32 %v17752_v25, %v7564_v3  ;;  %7485 = vst.msk [vmem:[%s18942_s3 + $0xf8] sm:$0xff] %vm629_vm4, %v7404_v0 }
 0x5db   :  { %v6249_v7 = vpop.f32.mrb[128].mxu1  ;;  %v7094_v9 = vpop.f32.mrb[128].mxu0 }
 0x5dc   :  { %v7894_v10 = vsel %vm7732_vm5, %v7651_v2, %v7813_v4  ;;  %vm7733_vm6 = vcmp.gt.f32.partialorder %v7652_v5, 0.0  ;;  %v7814_v11 = vmul.f32 0.1, %v7652_v5  ;;  %v6554_v12 = vadd.f32 %v6473_v8, %v6249_v7  ;;  %v10022_v13 = vpop.f32.mrb[129].mxu1  ;;  %v10184_v14 = vpop.f32.mrb[129].mxu0  ;;  %v6478_v2 = vld [vmem:[%s18942_s3 + $0x138] sm:$0xff] }
 0x5dd   :  { %7975 = vst.msk [vmem:[%s18942_s3 + $0xe0] sm:$0xff] %vm629_vm4, %v7894_v10  ;;  %v7324_v15 = vld [vmem:[%s18942_s3 + $0x100] sm:$0xff]  ;;  %v6252_v16 = vpop.f32.mrb[130].mxu1  ;;  %v7097_v18 = vpop.f32.mrb[130].mxu0 }
 0x5de   :  { %v7895_v19 = vsel %vm7733_vm6, %v7652_v5, %v7814_v11  ;;  %6635 = vst.msk [vmem:[%s18942_s3 + $0x110] sm:$0xff] %vm629_vm4, %v6554_v12  ;;  %v7405_v20 = vadd.f32 %v7324_v15, %v7094_v9  ;;  %v6555_v21 = vadd.f32 %v6474_v17, %v6252_v16  ;;  %v10023_v22 = vpop.f32.mrb[131].mxu1  ;;  %v10185_v23 = vpop.f32.mrb[131].mxu0  ;;  %v6479_v17 = vld [vmem:[%s18942_s3 + $0x140] sm:$0xff] }
 0x5df   :  { %7976 = vst.msk [vmem:[%s18942_s3 + $0xe8] sm:$0xff] %vm629_vm4, %v7895_v19  ;;  %v7565_v24 = vld [vmem:[%s18942_s3 + $0xf0] sm:$0xff]  ;;  %v7325_v26 = vld [vmem:[%s18942_s3 + $0x108] sm:$0xff] }
 0x5e0   :  { %v7653_v6 = vadd.f32 %v17752_v25, %v7565_v24  ;;  %7486 = vst.msk [vmem:[%s18942_s3 + $0x100] sm:$0xff] %vm629_vm4, %v7405_v20  ;;  %6636 = vst.msk [vmem:[%s18942_s3 + $0x118] sm:$0xff] %vm629_vm4, %v6555_v21  ;;  %v7406_v27 = vadd.f32 %v7325_v26, %v7097_v18 }
 0x5e1   :  { %v7566_v28 = vld [vmem:[%s18942_s3 + $0xf8] sm:$0xff] }
 0x5e2   :  { %vm7734_vm7 = vcmp.gt.f32.partialorder %v7653_v6, 0.0  ;;  %v7815_v29 = vmul.f32 0.1, %v7653_v6  ;;  %v7654_v30 = vadd.f32 %v17752_v25, %v7566_v28  ;;  %7487 = vst.msk [vmem:[%s18942_s3 + $0x108] sm:$0xff] %vm629_vm4, %v7406_v27 }
 0x5e3   :  { %v6257_v31 = vpop.f32.mrb[132].mxu1  ;;  %v7102_v33 = vpop.f32.mrb[132].mxu0 }
 0x5e4   :  { %v7896_v34 = vsel %vm7734_vm7, %v7653_v6, %v7815_v29  ;;  %vm7735_vm8 = vcmp.gt.f32.partialorder %v7654_v30, 0.0  ;;  %v7816_v35 = vmul.f32 0.1, %v7654_v30  ;;  %v6556_v36 = vadd.f32 %v6475_v32, %v6257_v31  ;;  %v10026_v37 = vpop.f32.mrb[133].mxu1  ;;  %v10188_v38 = vpop.f32.mrb[133].mxu0  ;;  %v6480_v6 = vld [vmem:[%s18942_s3 + $0x148] sm:$0xff] }
 0x5e5   :  { %7977 = vst.msk [vmem:[%s18942_s3 + $0xf0] sm:$0xff] %vm629_vm4, %v7896_v34  ;;  %v7326_v39 = vld [vmem:[%s18942_s3 + $0x110] sm:$0xff]  ;;  %v6260_v40 = vpop.f32.mrb[134].mxu1  ;;  %v7105_v42 = vpop.f32.mrb[134].mxu0 }
 0x5e6   :  { %v7897_v43 = vsel %vm7735_vm8, %v7654_v30, %v7816_v35  ;;  %6637 = vst.msk [vmem:[%s18942_s3 + $0x120] sm:$0xff] %vm629_vm4, %v6556_v36  ;;  %v7407_v44 = vadd.f32 %v7326_v39, %v7102_v33  ;;  %v6557_v45 = vadd.f32 %v6476_v41, %v6260_v40  ;;  %v10027_v46 = vpop.f32.mrb[135].mxu1  ;;  %v10189_v47 = vpop.f32.mrb[135].mxu0  ;;  %v6481_v41 = vld [vmem:[%s18942_s3 + $0x150] sm:$0xff] }
 0x5e7   :  { %7978 = vst.msk [vmem:[%s18942_s3 + $0xf8] sm:$0xff] %vm629_vm4, %v7897_v43  ;;  %v7567_v48 = vld [vmem:[%s18942_s3 + $0x100] sm:$0xff]  ;;  %v7327_v49 = vld [vmem:[%s18942_s3 + $0x118] sm:$0xff] }
 0x5e8   :  { %v7655_v50 = vadd.f32 %v17752_v25, %v7567_v48  ;;  %7488 = vst.msk [vmem:[%s18942_s3 + $0x110] sm:$0xff] %vm629_vm4, %v7407_v44  ;;  %6638 = vst.msk [vmem:[%s18942_s3 + $0x128] sm:$0xff] %vm629_vm4, %v6557_v45  ;;  %v7408_v51 = vadd.f32 %v7327_v49, %v7105_v42 }
 0x5e9   :  { %v7568_v52 = vld [vmem:[%s18942_s3 + $0x108] sm:$0xff] }
 0x5ea   :  { %vm7736_vm9 = vcmp.gt.f32.partialorder %v7655_v50, 0.0  ;;  %v7817_v53 = vmul.f32 0.1, %v7655_v50  ;;  %v7656_v54 = vadd.f32 %v17752_v25, %v7568_v52  ;;  %7489 = vst.msk [vmem:[%s18942_s3 + $0x118] sm:$0xff] %vm629_vm4, %v7408_v51 }
 0x5eb   :  { %v6265_v55 = vpop.f32.mrb[136].mxu1  ;;  %v7110_v57 = vpop.f32.mrb[136].mxu0 }
 0x5ec   :  { %v7898_v58 = vsel %vm7736_vm9, %v7655_v50, %v7817_v53  ;;  %vm7737_vm10 = vcmp.gt.f32.partialorder %v7656_v54, 0.0  ;;  %v7818_v59 = vmul.f32 0.1, %v7656_v54  ;;  %v6558_v60 = vadd.f32 %v6477_v56, %v6265_v55  ;;  %v10030_v61 = vpop.f32.mrb[137].mxu1  ;;  %v10192_v62 = vpop.f32.mrb[137].mxu0  ;;  %v6482_v50 = vld [vmem:[%s18942_s3 + $0x158] sm:$0xff] }
 0x5ed   :  { %7979 = vst.msk [vmem:[%s18942_s3 + $0x100] sm:$0xff] %vm629_vm4, %v7898_v58  ;;  %v7328_v63 = vld [vmem:[%s18942_s3 + $0x120] sm:$0xff]  ;;  %v6268_v1 = vpop.f32.mrb[138].mxu1  ;;  %v7113_v0 = vpop.f32.mrb[138].mxu0 }
 0x5ee   :  { %v7899_v3 = vsel %vm7737_vm10, %v7656_v54, %v7818_v59  ;;  %6639 = vst.msk [vmem:[%s18942_s3 + $0x130] sm:$0xff] %vm629_vm4, %v6558_v60  ;;  %v7409_v4 = vadd.f32 %v7328_v63, %v7110_v57  ;;  %v6559_v5 = vadd.f32 %v6478_v2, %v6268_v1  ;;  %v10031_v7 = vpop.f32.mrb[139].mxu1  ;;  %v10193_v8 = vpop.f32.mrb[139].mxu0  ;;  %v6483_v2 = vld [vmem:[%s18942_s3 + $0x160] sm:$0xff] }
 0x5ef   :  { %7980 = vst.msk [vmem:[%s18942_s3 + $0x108] sm:$0xff] %vm629_vm4, %v7899_v3  ;;  %v7569_v9 = vld [vmem:[%s18942_s3 + $0x110] sm:$0xff]  ;;  %v7329_v10 = vld [vmem:[%s18942_s3 + $0x128] sm:$0xff] }
 0x5f0   :  { %v7657_v11 = vadd.f32 %v17752_v25, %v7569_v9  ;;  %7490 = vst.msk [vmem:[%s18942_s3 + $0x120] sm:$0xff] %vm629_vm4, %v7409_v4  ;;  %6640 = vst.msk [vmem:[%s18942_s3 + $0x138] sm:$0xff] %vm629_vm4, %v6559_v5  ;;  %v7410_v12 = vadd.f32 %v7329_v10, %v7113_v0 }
 0x5f1   :  { %v7570_v13 = vld [vmem:[%s18942_s3 + $0x118] sm:$0xff] }
 0x5f2   :  { %vm7738_vm11 = vcmp.gt.f32.partialorder %v7657_v11, 0.0  ;;  %v7819_v14 = vmul.f32 0.1, %v7657_v11  ;;  %v7658_v15 = vadd.f32 %v17752_v25, %v7570_v13  ;;  %7491 = vst.msk [vmem:[%s18942_s3 + $0x128] sm:$0xff] %vm629_vm4, %v7410_v12 }
 0x5f3   :  { %v6273_v16 = vpop.f32.mrb[140].mxu1  ;;  %v7118_v18 = vpop.f32.mrb[140].mxu0 }
 0x5f4   :  { %v7900_v19 = vsel %vm7738_vm11, %v7657_v11, %v7819_v14  ;;  %vm7739_vm12 = vcmp.gt.f32.partialorder %v7658_v15, 0.0  ;;  %v7820_v20 = vmul.f32 0.1, %v7658_v15  ;;  %v6560_v21 = vadd.f32 %v6479_v17, %v6273_v16  ;;  %v10034_v22 = vpop.f32.mrb[141].mxu1  ;;  %v10196_v23 = vpop.f32.mrb[141].mxu0  ;;  %v6484_v11 = vld [vmem:[%s18942_s3 + $0x168] sm:$0xff] }
 0x5f5   :  { %7981 = vst.msk [vmem:[%s18942_s3 + $0x110] sm:$0xff] %vm629_vm4, %v7900_v19  ;;  %v7330_v24 = vld [vmem:[%s18942_s3 + $0x130] sm:$0xff]  ;;  %v6276_v26 = vpop.f32.mrb[142].mxu1  ;;  %v7121_v27 = vpop.f32.mrb[142].mxu0 }
 0x5f6   :  { %v7901_v28 = vsel %vm7739_vm12, %v7658_v15, %v7820_v20  ;;  %6641 = vst.msk [vmem:[%s18942_s3 + $0x140] sm:$0xff] %vm629_vm4, %v6560_v21  ;;  %v7411_v29 = vadd.f32 %v7330_v24, %v7118_v18  ;;  %v6561_v30 = vadd.f32 %v6480_v6, %v6276_v26  ;;  %v10035_v31 = vpop.f32.mrb[143].mxu1  ;;  %v10197_v32 = vpop.f32.mrb[143].mxu0  ;;  %v6485_v6 = vld [vmem:[%s18942_s3 + $0x170] sm:$0xff] }
 0x5f7   :  { %7982 = vst.msk [vmem:[%s18942_s3 + $0x118] sm:$0xff] %vm629_vm4, %v7901_v28  ;;  %v7571_v33 = vld [vmem:[%s18942_s3 + $0x120] sm:$0xff]  ;;  %v7331_v34 = vld [vmem:[%s18942_s3 + $0x138] sm:$0xff] }
 0x5f8   :  { %v7659_v35 = vadd.f32 %v17752_v25, %v7571_v33  ;;  %7492 = vst.msk [vmem:[%s18942_s3 + $0x130] sm:$0xff] %vm629_vm4, %v7411_v29  ;;  %6642 = vst.msk [vmem:[%s18942_s3 + $0x148] sm:$0xff] %vm629_vm4, %v6561_v30  ;;  %v7412_v36 = vadd.f32 %v7331_v34, %v7121_v27 }
 0x5f9   :  { %v7572_v37 = vld [vmem:[%s18942_s3 + $0x128] sm:$0xff] }
 0x5fa   :  { %vm7740_vm13 = vcmp.gt.f32.partialorder %v7659_v35, 0.0  ;;  %v7821_v38 = vmul.f32 0.1, %v7659_v35  ;;  %v7660_v39 = vadd.f32 %v17752_v25, %v7572_v37  ;;  %7493 = vst.msk [vmem:[%s18942_s3 + $0x138] sm:$0xff] %vm629_vm4, %v7412_v36 }
 0x5fb   :  { %v6281_v40 = vpop.f32.mrb[144].mxu1  ;;  %v7126_v42 = vpop.f32.mrb[144].mxu0 }
 0x5fc   :  { %v7902_v43 = vsel %vm7740_vm13, %v7659_v35, %v7821_v38  ;;  %vm7741_vm14 = vcmp.gt.f32.partialorder %v7660_v39, 0.0  ;;  %v7822_v44 = vmul.f32 0.1, %v7660_v39  ;;  %v6562_v45 = vadd.f32 %v6481_v41, %v6281_v40  ;;  %v10038_v46 = vpop.f32.mrb[145].mxu1  ;;  %v10200_v47 = vpop.f32.mrb[145].mxu0  ;;  %v6486_v35 = vld [vmem:[%s18942_s3 + $0x178] sm:$0xff] }
 0x5fd   :  { %7983 = vst.msk [vmem:[%s18942_s3 + $0x120] sm:$0xff] %vm629_vm4, %v7902_v43  ;;  %v7332_v48 = vld [vmem:[%s18942_s3 + $0x140] sm:$0xff]  ;;  %v6284_v49 = vpop.f32.mrb[146].mxu1  ;;  %v7129_v51 = vpop.f32.mrb[146].mxu0 }
 0x5fe   :  { %v7903_v52 = vsel %vm7741_vm14, %v7660_v39, %v7822_v44  ;;  %6643 = vst.msk [vmem:[%s18942_s3 + $0x150] sm:$0xff] %vm629_vm4, %v6562_v45  ;;  %v7413_v53 = vadd.f32 %v7332_v48, %v7126_v42  ;;  %v6563_v54 = vadd.f32 %v6482_v50, %v6284_v49  ;;  %v10039_v55 = vpop.f32.mrb[147].mxu1  ;;  %v10201_v56 = vpop.f32.mrb[147].mxu0  ;;  %v6487_v50 = vld [vmem:[%s18942_s3 + $0x180] sm:$0xff] }
 0x5ff   :  { %7984 = vst.msk [vmem:[%s18942_s3 + $0x128] sm:$0xff] %vm629_vm4, %v7903_v52  ;;  %v7573_v57 = vld [vmem:[%s18942_s3 + $0x130] sm:$0xff]  ;;  %v7333_v58 = vld [vmem:[%s18942_s3 + $0x148] sm:$0xff] }
 0x600   :  { %v7661_v59 = vadd.f32 %v17752_v25, %v7573_v57  ;;  %7494 = vst.msk [vmem:[%s18942_s3 + $0x140] sm:$0xff] %vm629_vm4, %v7413_v53  ;;  %6644 = vst.msk [vmem:[%s18942_s3 + $0x158] sm:$0xff] %vm629_vm4, %v6563_v54  ;;  %v7414_v60 = vadd.f32 %v7333_v58, %v7129_v51 }
 0x601   :  { %v7574_v61 = vld [vmem:[%s18942_s3 + $0x138] sm:$0xff] }
 0x602   :  { %vm7742_vm15 = vcmp.gt.f32.partialorder %v7661_v59, 0.0  ;;  %v7823_v62 = vmul.f32 0.1, %v7661_v59  ;;  %v7662_v63 = vadd.f32 %v17752_v25, %v7574_v61  ;;  %7495 = vst.msk [vmem:[%s18942_s3 + $0x148] sm:$0xff] %vm629_vm4, %v7414_v60 }
 0x603   :  { %v6289_v1 = vpop.f32.mrb[148].mxu1  ;;  %v7134_v0 = vpop.f32.mrb[148].mxu0 }
 0x604   :  { %v7904_v3 = vsel %vm7742_vm15, %v7661_v59, %v7823_v62  ;;  %vm7743_vm2 = vcmp.gt.f32.partialorder %v7662_v63, 0.0  ;;  %v7824_v4 = vmul.f32 0.1, %v7662_v63  ;;  %v6564_v5 = vadd.f32 %v6483_v2, %v6289_v1  ;;  %v10042_v7 = vpop.f32.mrb[149].mxu1  ;;  %v10204_v8 = vpop.f32.mrb[149].mxu0  ;;  %v6488_v59 = vld [vmem:[%s18942_s3 + $0x188] sm:$0xff] }
 0x605   :  { %7985 = vst.msk [vmem:[%s18942_s3 + $0x130] sm:$0xff] %vm629_vm4, %v7904_v3  ;;  %v7334_v9 = vld [vmem:[%s18942_s3 + $0x150] sm:$0xff]  ;;  %v6292_v10 = vpop.f32.mrb[150].mxu1  ;;  %v7137_v12 = vpop.f32.mrb[150].mxu0 }
 0x606   :  { %v7905_v13 = vsel %vm7743_vm2, %v7662_v63, %v7824_v4  ;;  %6645 = vst.msk [vmem:[%s18942_s3 + $0x160] sm:$0xff] %vm629_vm4, %v6564_v5  ;;  %v7415_v14 = vadd.f32 %v7334_v9, %v7134_v0  ;;  %v6565_v15 = vadd.f32 %v6484_v11, %v6292_v10  ;;  %v10043_v16 = vpop.f32.mrb[151].mxu1  ;;  %v10205_v17 = vpop.f32.mrb[151].mxu0  ;;  %v6489_v11 = vld [vmem:[%s18942_s3 + $0x190] sm:$0xff] }
 0x607   :  { %7986 = vst.msk [vmem:[%s18942_s3 + $0x138] sm:$0xff] %vm629_vm4, %v7905_v13  ;;  %v7575_v18 = vld [vmem:[%s18942_s3 + $0x140] sm:$0xff]  ;;  %v7335_v19 = vld [vmem:[%s18942_s3 + $0x158] sm:$0xff] }
 0x608   :  { %v7663_v20 = vadd.f32 %v17752_v25, %v7575_v18  ;;  %7496 = vst.msk [vmem:[%s18942_s3 + $0x150] sm:$0xff] %vm629_vm4, %v7415_v14  ;;  %6646 = vst.msk [vmem:[%s18942_s3 + $0x168] sm:$0xff] %vm629_vm4, %v6565_v15  ;;  %v7416_v21 = vadd.f32 %v7335_v19, %v7137_v12 }
 0x609   :  { %v7576_v22 = vld [vmem:[%s18942_s3 + $0x148] sm:$0xff] }
 0x60a   :  { %vm7744_vm3 = vcmp.gt.f32.partialorder %v7663_v20, 0.0  ;;  %v7825_v23 = vmul.f32 0.1, %v7663_v20  ;;  %v7664_v24 = vadd.f32 %v17752_v25, %v7576_v22  ;;  %7497 = vst.msk [vmem:[%s18942_s3 + $0x158] sm:$0xff] %vm629_vm4, %v7416_v21 }
 0x60b   :  { %v6297_v26 = vpop.f32.mrb[152].mxu1  ;;  %v7142_v27 = vpop.f32.mrb[152].mxu0 }
 0x60c   :  { %v7906_v28 = vsel %vm7744_vm3, %v7663_v20, %v7825_v23  ;;  %vm7745_vm0 = vcmp.gt.f32.partialorder %v7664_v24, 0.0  ;;  %v7826_v29 = vmul.f32 0.1, %v7664_v24  ;;  %v6566_v30 = vadd.f32 %v6485_v6, %v6297_v26  ;;  %v10046_v31 = vpop.f32.mrb[153].mxu1  ;;  %v10208_v32 = vpop.f32.mrb[153].mxu0  ;;  %v6490_v20 = vld [vmem:[%s18942_s3 + $0x198] sm:$0xff] }
 0x60d   :  { %7987 = vst.msk [vmem:[%s18942_s3 + $0x140] sm:$0xff] %vm629_vm4, %v7906_v28  ;;  %v7336_v33 = vld [vmem:[%s18942_s3 + $0x160] sm:$0xff]  ;;  %v6300_v34 = vpop.f32.mrb[154].mxu1  ;;  %v7145_v36 = vpop.f32.mrb[154].mxu0 }
 0x60e   :  { %v7907_v37 = vsel %vm7745_vm0, %v7664_v24, %v7826_v29  ;;  %6647 = vst.msk [vmem:[%s18942_s3 + $0x170] sm:$0xff] %vm629_vm4, %v6566_v30  ;;  %v7417_v38 = vadd.f32 %v7336_v33, %v7142_v27  ;;  %v6567_v39 = vadd.f32 %v6486_v35, %v6300_v34  ;;  %v10047_v40 = vpop.f32.mrb[155].mxu1  ;;  %v10209_v41 = vpop.f32.mrb[155].mxu0  ;;  %v6491_v35 = vld [vmem:[%s18942_s3 + $0x1a0] sm:$0xff] }
 0x60f   :  { %7988 = vst.msk [vmem:[%s18942_s3 + $0x148] sm:$0xff] %vm629_vm4, %v7907_v37  ;;  %v7577_v42 = vld [vmem:[%s18942_s3 + $0x150] sm:$0xff]  ;;  %v7337_v43 = vld [vmem:[%s18942_s3 + $0x168] sm:$0xff] }
 0x610   :  { %v7665_v44 = vadd.f32 %v17752_v25, %v7577_v42  ;;  %7498 = vst.msk [vmem:[%s18942_s3 + $0x160] sm:$0xff] %vm629_vm4, %v7417_v38  ;;  %6648 = vst.msk [vmem:[%s18942_s3 + $0x178] sm:$0xff] %vm629_vm4, %v6567_v39  ;;  %v7418_v45 = vadd.f32 %v7337_v43, %v7145_v36 }
 0x611   :  { %v7578_v46 = vld [vmem:[%s18942_s3 + $0x158] sm:$0xff] }
 0x612   :  { %vm7746_vm1 = vcmp.gt.f32.partialorder %v7665_v44, 0.0  ;;  %v7827_v47 = vmul.f32 0.1, %v7665_v44  ;;  %v7666_v48 = vadd.f32 %v17752_v25, %v7578_v46  ;;  %7499 = vst.msk [vmem:[%s18942_s3 + $0x168] sm:$0xff] %vm629_vm4, %v7418_v45 }
 0x613   :  { %v6305_v49 = vpop.f32.mrb[156].mxu1  ;;  %v7150_v51 = vpop.f32.mrb[156].mxu0 }
 0x614   :  { %v7908_v52 = vsel %vm7746_vm1, %v7665_v44, %v7827_v47  ;;  %vm7747_vm5 = vcmp.gt.f32.partialorder %v7666_v48, 0.0  ;;  %v7828_v53 = vmul.f32 0.1, %v7666_v48  ;;  %v6568_v54 = vadd.f32 %v6487_v50, %v6305_v49  ;;  %v10050_v55 = vpop.f32.mrb[157].mxu1  ;;  %v10212_v56 = vpop.f32.mrb[157].mxu0  ;;  %v6492_v44 = vld [vmem:[%s18942_s3 + $0x1a8] sm:$0xff] }
 0x615   :  { %7989 = vst.msk [vmem:[%s18942_s3 + $0x150] sm:$0xff] %vm629_vm4, %v7908_v52  ;;  %v7338_v57 = vld [vmem:[%s18942_s3 + $0x170] sm:$0xff]  ;;  %v6308_v58 = vpop.f32.mrb[158].mxu1  ;;  %v7153_v60 = vpop.f32.mrb[158].mxu0 }
 0x616   :  { %v7909_v61 = vsel %vm7747_vm5, %v7666_v48, %v7828_v53  ;;  %6649 = vst.msk [vmem:[%s18942_s3 + $0x180] sm:$0xff] %vm629_vm4, %v6568_v54  ;;  %v7419_v62 = vadd.f32 %v7338_v57, %v7150_v51  ;;  %v6569_v63 = vadd.f32 %v6488_v59, %v6308_v58  ;;  %v10051_v1 = vpop.f32.mrb[159].mxu1  ;;  %v10213_v2 = vpop.f32.mrb[159].mxu0  ;;  %v6493_v59 = vld [vmem:[%s18942_s3 + $0x1b0] sm:$0xff] }
 0x617   :  { %7990 = vst.msk [vmem:[%s18942_s3 + $0x158] sm:$0xff] %vm629_vm4, %v7909_v61  ;;  %v7579_v0 = vld [vmem:[%s18942_s3 + $0x160] sm:$0xff]  ;;  %v7339_v3 = vld [vmem:[%s18942_s3 + $0x178] sm:$0xff] }
 0x618   :  { %v7667_v4 = vadd.f32 %v17752_v25, %v7579_v0  ;;  %7500 = vst.msk [vmem:[%s18942_s3 + $0x170] sm:$0xff] %vm629_vm4, %v7419_v62  ;;  %6650 = vst.msk [vmem:[%s18942_s3 + $0x188] sm:$0xff] %vm629_vm4, %v6569_v63  ;;  %v7420_v5 = vadd.f32 %v7339_v3, %v7153_v60 }
 0x619   :  { %v7580_v7 = vld [vmem:[%s18942_s3 + $0x168] sm:$0xff] }
 0x61a   :  { %vm7748_vm6 = vcmp.gt.f32.partialorder %v7667_v4, 0.0  ;;  %v7829_v8 = vmul.f32 0.1, %v7667_v4  ;;  %v7668_v9 = vadd.f32 %v17752_v25, %v7580_v7  ;;  %7501 = vst.msk [vmem:[%s18942_s3 + $0x178] sm:$0xff] %vm629_vm4, %v7420_v5 }
 0x61b   :  { %v6313_v10 = vpop.f32.mrb[160].mxu1  ;;  %v7158_v12 = vpop.f32.mrb[160].mxu0 }
 0x61c   :  { %v7910_v13 = vsel %vm7748_vm6, %v7667_v4, %v7829_v8  ;;  %vm7749_vm7 = vcmp.gt.f32.partialorder %v7668_v9, 0.0  ;;  %v7830_v14 = vmul.f32 0.1, %v7668_v9  ;;  %v6570_v15 = vadd.f32 %v6489_v11, %v6313_v10  ;;  %v10054_v16 = vpop.f32.mrb[161].mxu1  ;;  %v10216_v17 = vpop.f32.mrb[161].mxu0  ;;  %v6494_v4 = vld [vmem:[%s18942_s3 + $0x1b8] sm:$0xff] }
 0x61d   :  { %7991 = vst.msk [vmem:[%s18942_s3 + $0x160] sm:$0xff] %vm629_vm4, %v7910_v13  ;;  %v7340_v18 = vld [vmem:[%s18942_s3 + $0x180] sm:$0xff]  ;;  %v6316_v19 = vpop.f32.mrb[162].mxu1  ;;  %v7161_v21 = vpop.f32.mrb[162].mxu0 }
 0x61e   :  { %v7911_v22 = vsel %vm7749_vm7, %v7668_v9, %v7830_v14  ;;  %6651 = vst.msk [vmem:[%s18942_s3 + $0x190] sm:$0xff] %vm629_vm4, %v6570_v15  ;;  %v7421_v23 = vadd.f32 %v7340_v18, %v7158_v12  ;;  %v6571_v24 = vadd.f32 %v6490_v20, %v6316_v19  ;;  %v10055_v26 = vpop.f32.mrb[163].mxu1  ;;  %v10217_v6 = vpop.f32.mrb[163].mxu0  ;;  %v6495_v20 = vld [vmem:[%s18942_s3 + $0x1c0] sm:$0xff] }
 0x61f   :  { %7992 = vst.msk [vmem:[%s18942_s3 + $0x168] sm:$0xff] %vm629_vm4, %v7911_v22  ;;  %v7581_v27 = vld [vmem:[%s18942_s3 + $0x170] sm:$0xff]  ;;  %v7341_v28 = vld [vmem:[%s18942_s3 + $0x188] sm:$0xff] }
 0x620   :  { %v7669_v29 = vadd.f32 %v17752_v25, %v7581_v27  ;;  %7502 = vst.msk [vmem:[%s18942_s3 + $0x180] sm:$0xff] %vm629_vm4, %v7421_v23  ;;  %6652 = vst.msk [vmem:[%s18942_s3 + $0x198] sm:$0xff] %vm629_vm4, %v6571_v24  ;;  %v7422_v30 = vadd.f32 %v7341_v28, %v7161_v21 }
 0x621   :  { %v7582_v31 = vld [vmem:[%s18942_s3 + $0x178] sm:$0xff] }
 0x622   :  { %vm7750_vm8 = vcmp.gt.f32.partialorder %v7669_v29, 0.0  ;;  %v7831_v32 = vmul.f32 0.1, %v7669_v29  ;;  %v7670_v33 = vadd.f32 %v17752_v25, %v7582_v31  ;;  %7503 = vst.msk [vmem:[%s18942_s3 + $0x188] sm:$0xff] %vm629_vm4, %v7422_v30 }
 0x623   :  { %v6321_v34 = vpop.f32.mrb[164].mxu1  ;;  %v7166_v36 = vpop.f32.mrb[164].mxu0 }
 0x624   :  { %v7912_v37 = vsel %vm7750_vm8, %v7669_v29, %v7831_v32  ;;  %vm7751_vm9 = vcmp.gt.f32.partialorder %v7670_v33, 0.0  ;;  %v7832_v38 = vmul.f32 0.1, %v7670_v33  ;;  %v6572_v39 = vadd.f32 %v6491_v35, %v6321_v34  ;;  %v10058_v40 = vpop.f32.mrb[165].mxu1  ;;  %v10220_v41 = vpop.f32.mrb[165].mxu0  ;;  %v6496_v29 = vld [vmem:[%s18942_s3 + $0x1c8] sm:$0xff] }
 0x625   :  { %7993 = vst.msk [vmem:[%s18942_s3 + $0x170] sm:$0xff] %vm629_vm4, %v7912_v37  ;;  %v7342_v42 = vld [vmem:[%s18942_s3 + $0x190] sm:$0xff]  ;;  %v6324_v43 = vpop.f32.mrb[166].mxu1  ;;  %v7169_v45 = vpop.f32.mrb[166].mxu0 }
 0x626   :  { %v7913_v46 = vsel %vm7751_vm9, %v7670_v33, %v7832_v38  ;;  %6653 = vst.msk [vmem:[%s18942_s3 + $0x1a0] sm:$0xff] %vm629_vm4, %v6572_v39  ;;  %v7423_v47 = vadd.f32 %v7342_v42, %v7166_v36  ;;  %v6573_v48 = vadd.f32 %v6492_v44, %v6324_v43  ;;  %v10059_v49 = vpop.f32.mrb[167].mxu1  ;;  %v10221_v50 = vpop.f32.mrb[167].mxu0  ;;  %v6497_v44 = vld [vmem:[%s18942_s3 + $0x1d0] sm:$0xff] }
 0x627   :  { %7994 = vst.msk [vmem:[%s18942_s3 + $0x178] sm:$0xff] %vm629_vm4, %v7913_v46  ;;  %v7583_v51 = vld [vmem:[%s18942_s3 + $0x180] sm:$0xff]  ;;  %v7343_v52 = vld [vmem:[%s18942_s3 + $0x198] sm:$0xff] }
 0x628   :  { %v7671_v53 = vadd.f32 %v17752_v25, %v7583_v51  ;;  %7504 = vst.msk [vmem:[%s18942_s3 + $0x190] sm:$0xff] %vm629_vm4, %v7423_v47  ;;  %6654 = vst.msk [vmem:[%s18942_s3 + $0x1a8] sm:$0xff] %vm629_vm4, %v6573_v48  ;;  %v7424_v54 = vadd.f32 %v7343_v52, %v7169_v45 }
 0x629   :  { %v7584_v55 = vld [vmem:[%s18942_s3 + $0x188] sm:$0xff] }
 0x62a   :  { %vm7752_vm10 = vcmp.gt.f32.partialorder %v7671_v53, 0.0  ;;  %v7833_v56 = vmul.f32 0.1, %v7671_v53  ;;  %v7672_v57 = vadd.f32 %v17752_v25, %v7584_v55  ;;  %7505 = vst.msk [vmem:[%s18942_s3 + $0x198] sm:$0xff] %vm629_vm4, %v7424_v54 }
 0x62b   :  { %v6329_v58 = vpop.f32.mrb[168].mxu1  ;;  %v7174_v60 = vpop.f32.mrb[168].mxu0 }
 0x62c   :  { %v7914_v61 = vsel %vm7752_vm10, %v7671_v53, %v7833_v56  ;;  %vm7753_vm11 = vcmp.gt.f32.partialorder %v7672_v57, 0.0  ;;  %v7834_v62 = vmul.f32 0.1, %v7672_v57  ;;  %v6574_v63 = vadd.f32 %v6493_v59, %v6329_v58  ;;  %v10062_v1 = vpop.f32.mrb[169].mxu1  ;;  %v10224_v2 = vpop.f32.mrb[169].mxu0  ;;  %v6498_v53 = vld [vmem:[%s18942_s3 + $0x1d8] sm:$0xff] }
 0x62d   :  { %7995 = vst.msk [vmem:[%s18942_s3 + $0x180] sm:$0xff] %vm629_vm4, %v7914_v61  ;;  %v7344_v0 = vld [vmem:[%s18942_s3 + $0x1a0] sm:$0xff]  ;;  %v6332_v3 = vpop.f32.mrb[170].mxu1  ;;  %v7177_v5 = vpop.f32.mrb[170].mxu0 }
 0x62e   :  { %v7915_v7 = vsel %vm7753_vm11, %v7672_v57, %v7834_v62  ;;  %6655 = vst.msk [vmem:[%s18942_s3 + $0x1b0] sm:$0xff] %vm629_vm4, %v6574_v63  ;;  %v7425_v8 = vadd.f32 %v7344_v0, %v7174_v60  ;;  %v6575_v9 = vadd.f32 %v6494_v4, %v6332_v3  ;;  %v10063_v10 = vpop.f32.mrb[171].mxu1  ;;  %v10225_v11 = vpop.f32.mrb[171].mxu0  ;;  %v6499_v4 = vld [vmem:[%s18942_s3 + $0x1e0] sm:$0xff] }
 0x62f   :  { %7996 = vst.msk [vmem:[%s18942_s3 + $0x188] sm:$0xff] %vm629_vm4, %v7915_v7  ;;  %v7585_v12 = vld [vmem:[%s18942_s3 + $0x190] sm:$0xff]  ;;  %v7345_v13 = vld [vmem:[%s18942_s3 + $0x1a8] sm:$0xff] }
 0x630   :  { %v7673_v14 = vadd.f32 %v17752_v25, %v7585_v12  ;;  %7506 = vst.msk [vmem:[%s18942_s3 + $0x1a0] sm:$0xff] %vm629_vm4, %v7425_v8  ;;  %6656 = vst.msk [vmem:[%s18942_s3 + $0x1b8] sm:$0xff] %vm629_vm4, %v6575_v9  ;;  %v7426_v15 = vadd.f32 %v7345_v13, %v7177_v5 }
 0x631   :  { %v7586_v16 = vld [vmem:[%s18942_s3 + $0x198] sm:$0xff] }
 0x632   :  { %vm7754_vm12 = vcmp.gt.f32.partialorder %v7673_v14, 0.0  ;;  %v7835_v17 = vmul.f32 0.1, %v7673_v14  ;;  %v7674_v18 = vadd.f32 %v17752_v25, %v7586_v16  ;;  %7507 = vst.msk [vmem:[%s18942_s3 + $0x1a8] sm:$0xff] %vm629_vm4, %v7426_v15 }
 0x633   :  { %v6337_v19 = vpop.f32.mrb[172].mxu1  ;;  %v7182_v21 = vpop.f32.mrb[172].mxu0 }
 0x634   :  { %v7916_v22 = vsel %vm7754_vm12, %v7673_v14, %v7835_v17  ;;  %vm7755_vm13 = vcmp.gt.f32.partialorder %v7674_v18, 0.0  ;;  %v7836_v23 = vmul.f32 0.1, %v7674_v18  ;;  %v6576_v24 = vadd.f32 %v6495_v20, %v6337_v19  ;;  %v10066_v26 = vpop.f32.mrb[173].mxu1  ;;  %v10228_v6 = vpop.f32.mrb[173].mxu0  ;;  %v6500_v14 = vld [vmem:[%s18942_s3 + $0x1e8] sm:$0xff] }
 0x635   :  { %7997 = vst.msk [vmem:[%s18942_s3 + $0x190] sm:$0xff] %vm629_vm4, %v7916_v22  ;;  %v7346_v27 = vld [vmem:[%s18942_s3 + $0x1b0] sm:$0xff]  ;;  %v6340_v28 = vpop.f32.mrb[174].mxu1  ;;  %v7185_v30 = vpop.f32.mrb[174].mxu0 }
 0x636   :  { %v7917_v31 = vsel %vm7755_vm13, %v7674_v18, %v7836_v23  ;;  %6657 = vst.msk [vmem:[%s18942_s3 + $0x1c0] sm:$0xff] %vm629_vm4, %v6576_v24  ;;  %v7427_v32 = vadd.f32 %v7346_v27, %v7182_v21  ;;  %v6577_v33 = vadd.f32 %v6496_v29, %v6340_v28  ;;  %v10067_v34 = vpop.f32.mrb[175].mxu1  ;;  %v10229_v35 = vpop.f32.mrb[175].mxu0  ;;  %v6501_v29 = vld [vmem:[%s18942_s3 + $0x1f0] sm:$0xff] }
 0x637   :  { %7998 = vst.msk [vmem:[%s18942_s3 + $0x198] sm:$0xff] %vm629_vm4, %v7917_v31  ;;  %v7587_v36 = vld [vmem:[%s18942_s3 + $0x1a0] sm:$0xff]  ;;  %v7347_v37 = vld [vmem:[%s18942_s3 + $0x1b8] sm:$0xff] }
 0x638   :  { %v7675_v38 = vadd.f32 %v17752_v25, %v7587_v36  ;;  %7508 = vst.msk [vmem:[%s18942_s3 + $0x1b0] sm:$0xff] %vm629_vm4, %v7427_v32  ;;  %6658 = vst.msk [vmem:[%s18942_s3 + $0x1c8] sm:$0xff] %vm629_vm4, %v6577_v33  ;;  %v7428_v39 = vadd.f32 %v7347_v37, %v7185_v30 }
 0x639   :  { %v7588_v40 = vld [vmem:[%s18942_s3 + $0x1a8] sm:$0xff] }
 0x63a   :  { %vm7756_vm14 = vcmp.gt.f32.partialorder %v7675_v38, 0.0  ;;  %v7837_v41 = vmul.f32 0.1, %v7675_v38  ;;  %v7676_v42 = vadd.f32 %v17752_v25, %v7588_v40  ;;  %7509 = vst.msk [vmem:[%s18942_s3 + $0x1b8] sm:$0xff] %vm629_vm4, %v7428_v39 }
 0x63b   :  { %v6345_v43 = vpop.f32.mrb[176].mxu1  ;;  %v7190_v45 = vpop.f32.mrb[176].mxu0 }
 0x63c   :  { %v7918_v46 = vsel %vm7756_vm14, %v7675_v38, %v7837_v41  ;;  %vm7757_vm15 = vcmp.gt.f32.partialorder %v7676_v42, 0.0  ;;  %v7838_v47 = vmul.f32 0.1, %v7676_v42  ;;  %v6578_v48 = vadd.f32 %v6497_v44, %v6345_v43  ;;  %v10070_v49 = vpop.f32.mrb[177].mxu1  ;;  %v10232_v50 = vpop.f32.mrb[177].mxu0  ;;  %v6502_v38 = vld [vmem:[%s18942_s3 + $0x1f8] sm:$0xff] }
 0x63d   :  { %7999 = vst.msk [vmem:[%s18942_s3 + $0x1a0] sm:$0xff] %vm629_vm4, %v7918_v46  ;;  %v7348_v51 = vld [vmem:[%s18942_s3 + $0x1c0] sm:$0xff]  ;;  %v6348_v52 = vpop.f32.mrb[178].mxu1  ;;  %v7193_v54 = vpop.f32.mrb[178].mxu0 }
 0x63e   :  { %v7919_v55 = vsel %vm7757_vm15, %v7676_v42, %v7838_v47  ;;  %6659 = vst.msk [vmem:[%s18942_s3 + $0x1d0] sm:$0xff] %vm629_vm4, %v6578_v48  ;;  %v7429_v56 = vadd.f32 %v7348_v51, %v7190_v45  ;;  %v6579_v57 = vadd.f32 %v6498_v53, %v6348_v52  ;;  %v10071_v58 = vpop.f32.mrb[179].mxu1  ;;  %v10233_v59 = vpop.f32.mrb[179].mxu0  ;;  %v6503_v53 = vld [vmem:[%s18942_s3 + $0x200] sm:$0xff] }
 0x63f   :  { %8000 = vst.msk [vmem:[%s18942_s3 + $0x1a8] sm:$0xff] %vm629_vm4, %v7919_v55  ;;  %v7589_v60 = vld [vmem:[%s18942_s3 + $0x1b0] sm:$0xff]  ;;  %v7349_v61 = vld [vmem:[%s18942_s3 + $0x1c8] sm:$0xff] }
 0x640   :  { %v7677_v62 = vadd.f32 %v17752_v25, %v7589_v60  ;;  %7510 = vst.msk [vmem:[%s18942_s3 + $0x1c0] sm:$0xff] %vm629_vm4, %v7429_v56  ;;  %6660 = vst.msk [vmem:[%s18942_s3 + $0x1d8] sm:$0xff] %vm629_vm4, %v6579_v57  ;;  %v7430_v63 = vadd.f32 %v7349_v61, %v7193_v54 }
 0x641   :  { %v7590_v1 = vld [vmem:[%s18942_s3 + $0x1b8] sm:$0xff] }
 0x642   :  { %vm7758_vm2 = vcmp.gt.f32.partialorder %v7677_v62, 0.0  ;;  %v7839_v2 = vmul.f32 0.1, %v7677_v62  ;;  %v7678_v0 = vadd.f32 %v17752_v25, %v7590_v1  ;;  %7511 = vst.msk [vmem:[%s18942_s3 + $0x1c8] sm:$0xff] %vm629_vm4, %v7430_v63 }
 0x643   :  { %v6353_v3 = vpop.f32.mrb[180].mxu1  ;;  %v7198_v5 = vpop.f32.mrb[180].mxu0 }
 0x644   :  { %v7920_v7 = vsel %vm7758_vm2, %v7677_v62, %v7839_v2  ;;  %vm7759_vm3 = vcmp.gt.f32.partialorder %v7678_v0, 0.0  ;;  %v7840_v8 = vmul.f32 0.1, %v7678_v0  ;;  %v6580_v9 = vadd.f32 %v6499_v4, %v6353_v3  ;;  %v10074_v10 = vpop.f32.mrb[181].mxu1  ;;  %v10236_v11 = vpop.f32.mrb[181].mxu0  ;;  %v6504_v62 = vld [vmem:[%s18942_s3 + $0x208] sm:$0xff] }
 0x645   :  { %8001 = vst.msk [vmem:[%s18942_s3 + $0x1b0] sm:$0xff] %vm629_vm4, %v7920_v7  ;;  %v7350_v12 = vld [vmem:[%s18942_s3 + $0x1d0] sm:$0xff]  ;;  %v6356_v13 = vpop.f32.mrb[182].mxu1  ;;  %v7201_v15 = vpop.f32.mrb[182].mxu0 }
 0x646   :  { %v7921_v16 = vsel %vm7759_vm3, %v7678_v0, %v7840_v8  ;;  %6661 = vst.msk [vmem:[%s18942_s3 + $0x1e0] sm:$0xff] %vm629_vm4, %v6580_v9  ;;  %v7431_v17 = vadd.f32 %v7350_v12, %v7198_v5  ;;  %v6581_v18 = vadd.f32 %v6500_v14, %v6356_v13  ;;  %v10075_v19 = vpop.f32.mrb[183].mxu1  ;;  %v10237_v20 = vpop.f32.mrb[183].mxu0  ;;  %v6505_v14 = vld [vmem:[%s18942_s3 + $0x210] sm:$0xff] }
 0x647   :  { %8002 = vst.msk [vmem:[%s18942_s3 + $0x1b8] sm:$0xff] %vm629_vm4, %v7921_v16  ;;  %v7591_v21 = vld [vmem:[%s18942_s3 + $0x1c0] sm:$0xff]  ;;  %v7351_v22 = vld [vmem:[%s18942_s3 + $0x1d8] sm:$0xff] }
 0x648   :  { %v7679_v23 = vadd.f32 %v17752_v25, %v7591_v21  ;;  %7512 = vst.msk [vmem:[%s18942_s3 + $0x1d0] sm:$0xff] %vm629_vm4, %v7431_v17  ;;  %6662 = vst.msk [vmem:[%s18942_s3 + $0x1e8] sm:$0xff] %vm629_vm4, %v6581_v18  ;;  %v7432_v24 = vadd.f32 %v7351_v22, %v7201_v15  ;;  %v18461_v25 = vld [vmem:[%s18943_s2] ss:$0 sm:$0xff] }
 0x649   :  { %v7592_v26 = vld [vmem:[%s18942_s3 + $0x1c8] sm:$0xff] }
 0x64a   :  { %vm7760_vm0 = vcmp.gt.f32.partialorder %v7679_v23, 0.0  ;;  %v7841_v6 = vmul.f32 0.1, %v7679_v23  ;;  %v7680_v27 = vadd.f32 %v18461_v25, %v7592_v26  ;;  %7513 = vst.msk [vmem:[%s18942_s3 + $0x1d8] sm:$0xff] %vm629_vm4, %v7432_v24 }
 0x64b   :  { %v6361_v28 = vpop.f32.mrb[184].mxu1  ;;  %v7206_v30 = vpop.f32.mrb[184].mxu0 }
 0x64c   :  { %v7922_v31 = vsel %vm7760_vm0, %v7679_v23, %v7841_v6  ;;  %vm7761_vm1 = vcmp.gt.f32.partialorder %v7680_v27, 0.0  ;;  %v7842_v32 = vmul.f32 0.1, %v7680_v27  ;;  %v6582_v33 = vadd.f32 %v6501_v29, %v6361_v28  ;;  %v10078_v34 = vpop.f32.mrb[185].mxu1  ;;  %v10240_v35 = vpop.f32.mrb[185].mxu0  ;;  %v6506_v23 = vld [vmem:[%s18942_s3 + $0x218] sm:$0xff] }
 0x64d   :  { %8003 = vst.msk [vmem:[%s18942_s3 + $0x1c0] sm:$0xff] %vm629_vm4, %v7922_v31  ;;  %v7352_v36 = vld [vmem:[%s18942_s3 + $0x1e0] sm:$0xff]  ;;  %v6364_v37 = vpop.f32.mrb[186].mxu1  ;;  %v7209_v39 = vpop.f32.mrb[186].mxu0 }
 0x64e   :  { %v7923_v40 = vsel %vm7761_vm1, %v7680_v27, %v7842_v32  ;;  %6663 = vst.msk [vmem:[%s18942_s3 + $0x1f0] sm:$0xff] %vm629_vm4, %v6582_v33  ;;  %v7433_v41 = vadd.f32 %v7352_v36, %v7206_v30  ;;  %v6583_v42 = vadd.f32 %v6502_v38, %v6364_v37  ;;  %v10079_v43 = vpop.f32.mrb[187].mxu1  ;;  %v10241_v44 = vpop.f32.mrb[187].mxu0  ;;  %v6507_v38 = vld [vmem:[%s18942_s3 + $0x220] sm:$0xff] }
 0x64f   :  { %8004 = vst.msk [vmem:[%s18942_s3 + $0x1c8] sm:$0xff] %vm629_vm4, %v7923_v40  ;;  %v7593_v45 = vld [vmem:[%s18942_s3 + $0x1d0] sm:$0xff]  ;;  %v7353_v46 = vld [vmem:[%s18942_s3 + $0x1e8] sm:$0xff] }
 0x650   :  { %v7681_v47 = vadd.f32 %v18461_v25, %v7593_v45  ;;  %7514 = vst.msk [vmem:[%s18942_s3 + $0x1e0] sm:$0xff] %vm629_vm4, %v7433_v41  ;;  %6664 = vst.msk [vmem:[%s18942_s3 + $0x1f8] sm:$0xff] %vm629_vm4, %v6583_v42  ;;  %v7434_v48 = vadd.f32 %v7353_v46, %v7209_v39 }
 0x651   :  { %v7594_v49 = vld [vmem:[%s18942_s3 + $0x1d8] sm:$0xff] }
 0x652   :  { %vm7762_vm5 = vcmp.gt.f32.partialorder %v7681_v47, 0.0  ;;  %v7843_v50 = vmul.f32 0.1, %v7681_v47  ;;  %v7682_v51 = vadd.f32 %v18461_v25, %v7594_v49  ;;  %7515 = vst.msk [vmem:[%s18942_s3 + $0x1e8] sm:$0xff] %vm629_vm4, %v7434_v48 }
 0x653   :  { %v6369_v52 = vpop.f32.mrb[188].mxu1  ;;  %v7214_v54 = vpop.f32.mrb[188].mxu0 }
 0x654   :  { %v7924_v55 = vsel %vm7762_vm5, %v7681_v47, %v7843_v50  ;;  %vm7763_vm6 = vcmp.gt.f32.partialorder %v7682_v51, 0.0  ;;  %v7844_v56 = vmul.f32 0.1, %v7682_v51  ;;  %v6584_v57 = vadd.f32 %v6503_v53, %v6369_v52  ;;  %v10082_v58 = vpop.f32.mrb[189].mxu1  ;;  %v10244_v59 = vpop.f32.mrb[189].mxu0  ;;  %v6508_v47 = vld [vmem:[%s18942_s3 + $0x228] sm:$0xff] }
 0x655   :  { %8005 = vst.msk [vmem:[%s18942_s3 + $0x1d0] sm:$0xff] %vm629_vm4, %v7924_v55  ;;  %v7354_v60 = vld [vmem:[%s18942_s3 + $0x1f0] sm:$0xff]  ;;  %v6372_v61 = vpop.f32.mrb[190].mxu1  ;;  %v7217_v63 = vpop.f32.mrb[190].mxu0 }
 0x656   :  { %v7925_v1 = vsel %vm7763_vm6, %v7682_v51, %v7844_v56  ;;  %6665 = vst.msk [vmem:[%s18942_s3 + $0x200] sm:$0xff] %vm629_vm4, %v6584_v57  ;;  %v7435_v2 = vadd.f32 %v7354_v60, %v7214_v54  ;;  %v6585_v0 = vadd.f32 %v6504_v62, %v6372_v61  ;;  %v10083_v3 = vpop.f32.mrb[191].mxu1  ;;  %v10245_v4 = vpop.f32.mrb[191].mxu0  ;;  %v6509_v62 = vld [vmem:[%s18942_s3 + $0x230] sm:$0xff] }
 0x657   :  { %8006 = vst.msk [vmem:[%s18942_s3 + $0x1d8] sm:$0xff] %vm629_vm4, %v7925_v1  ;;  %v7595_v5 = vld [vmem:[%s18942_s3 + $0x1e0] sm:$0xff]  ;;  %v7355_v7 = vld [vmem:[%s18942_s3 + $0x1f8] sm:$0xff] }
 0x658   :  { %v7683_v8 = vadd.f32 %v18461_v25, %v7595_v5  ;;  %7516 = vst.msk [vmem:[%s18942_s3 + $0x1f0] sm:$0xff] %vm629_vm4, %v7435_v2  ;;  %6666 = vst.msk [vmem:[%s18942_s3 + $0x208] sm:$0xff] %vm629_vm4, %v6585_v0  ;;  %v7436_v9 = vadd.f32 %v7355_v7, %v7217_v63 }
 0x659   :  { %v7596_v10 = vld [vmem:[%s18942_s3 + $0x1e8] sm:$0xff] }
 0x65a   :  { %vm7764_vm7 = vcmp.gt.f32.partialorder %v7683_v8, 0.0  ;;  %v7845_v11 = vmul.f32 0.1, %v7683_v8  ;;  %v7684_v12 = vadd.f32 %v18461_v25, %v7596_v10  ;;  %7517 = vst.msk [vmem:[%s18942_s3 + $0x1f8] sm:$0xff] %vm629_vm4, %v7436_v9 }
 0x65b   :  { %v6377_v13 = vpop.f32.mrb[192].mxu1  ;;  %v7222_v15 = vpop.f32.mrb[192].mxu0 }
 0x65c   :  { %v7926_v16 = vsel %vm7764_vm7, %v7683_v8, %v7845_v11  ;;  %vm7765_vm8 = vcmp.gt.f32.partialorder %v7684_v12, 0.0  ;;  %v7846_v17 = vmul.f32 0.1, %v7684_v12  ;;  %v6586_v18 = vadd.f32 %v6505_v14, %v6377_v13  ;;  %v10086_v19 = vpop.f32.mrb[193].mxu1  ;;  %v10248_v20 = vpop.f32.mrb[193].mxu0  ;;  %v6510_v8 = vld [vmem:[%s18942_s3 + $0x238] sm:$0xff] }
 0x65d   :  { %8007 = vst.msk [vmem:[%s18942_s3 + $0x1e0] sm:$0xff] %vm629_vm4, %v7926_v16  ;;  %v7356_v21 = vld [vmem:[%s18942_s3 + $0x200] sm:$0xff]  ;;  %v6380_v22 = vpop.f32.mrb[194].mxu1  ;;  %v7225_v24 = vpop.f32.mrb[194].mxu0 }
 0x65e   :  { %v7927_v26 = vsel %vm7765_vm8, %v7684_v12, %v7846_v17  ;;  %6667 = vst.msk [vmem:[%s18942_s3 + $0x210] sm:$0xff] %vm629_vm4, %v6586_v18  ;;  %v7437_v6 = vadd.f32 %v7356_v21, %v7222_v15  ;;  %v6587_v27 = vadd.f32 %v6506_v23, %v6380_v22  ;;  %v10087_v28 = vpop.f32.mrb[195].mxu1  ;;  %v10249_v29 = vpop.f32.mrb[195].mxu0  ;;  %v6511_v23 = vld [vmem:[%s18942_s3 + $0x240] sm:$0xff] }
 0x65f   :  { %8008 = vst.msk [vmem:[%s18942_s3 + $0x1e8] sm:$0xff] %vm629_vm4, %v7927_v26  ;;  %v7597_v30 = vld [vmem:[%s18942_s3 + $0x1f0] sm:$0xff]  ;;  %v7357_v31 = vld [vmem:[%s18942_s3 + $0x208] sm:$0xff] }
 0x660   :  { %v7685_v32 = vadd.f32 %v18461_v25, %v7597_v30  ;;  %7518 = vst.msk [vmem:[%s18942_s3 + $0x200] sm:$0xff] %vm629_vm4, %v7437_v6  ;;  %6668 = vst.msk [vmem:[%s18942_s3 + $0x218] sm:$0xff] %vm629_vm4, %v6587_v27  ;;  %v7438_v33 = vadd.f32 %v7357_v31, %v7225_v24 }
 0x661   :  { %v7598_v34 = vld [vmem:[%s18942_s3 + $0x1f8] sm:$0xff] }
 0x662   :  { %vm7766_vm9 = vcmp.gt.f32.partialorder %v7685_v32, 0.0  ;;  %v7847_v35 = vmul.f32 0.1, %v7685_v32  ;;  %v7686_v36 = vadd.f32 %v18461_v25, %v7598_v34  ;;  %7519 = vst.msk [vmem:[%s18942_s3 + $0x208] sm:$0xff] %vm629_vm4, %v7438_v33 }
 0x663   :  { %v6385_v37 = vpop.f32.mrb[196].mxu1  ;;  %v7230_v39 = vpop.f32.mrb[196].mxu0 }
 0x664   :  { %v7928_v40 = vsel %vm7766_vm9, %v7685_v32, %v7847_v35  ;;  %vm7767_vm10 = vcmp.gt.f32.partialorder %v7686_v36, 0.0  ;;  %v7848_v41 = vmul.f32 0.1, %v7686_v36  ;;  %v6588_v42 = vadd.f32 %v6507_v38, %v6385_v37  ;;  %v10090_v43 = vpop.f32.mrb[197].mxu1  ;;  %v10252_v44 = vpop.f32.mrb[197].mxu0  ;;  %v6512_v32 = vld [vmem:[%s18942_s3 + $0x248] sm:$0xff] }
 0x665   :  { %8009 = vst.msk [vmem:[%s18942_s3 + $0x1f0] sm:$0xff] %vm629_vm4, %v7928_v40  ;;  %v7358_v45 = vld [vmem:[%s18942_s3 + $0x210] sm:$0xff]  ;;  %v6388_v46 = vpop.f32.mrb[198].mxu1  ;;  %v7233_v48 = vpop.f32.mrb[198].mxu0 }
 0x666   :  { %v7929_v49 = vsel %vm7767_vm10, %v7686_v36, %v7848_v41  ;;  %6669 = vst.msk [vmem:[%s18942_s3 + $0x220] sm:$0xff] %vm629_vm4, %v6588_v42  ;;  %v7439_v50 = vadd.f32 %v7358_v45, %v7230_v39  ;;  %v6589_v51 = vadd.f32 %v6508_v47, %v6388_v46  ;;  %v10091_v52 = vpop.f32.mrb[199].mxu1  ;;  %v10253_v53 = vpop.f32.mrb[199].mxu0  ;;  %v6513_v47 = vld [vmem:[%s18942_s3 + $0x250] sm:$0xff] }
 0x667   :  { %8010 = vst.msk [vmem:[%s18942_s3 + $0x1f8] sm:$0xff] %vm629_vm4, %v7929_v49  ;;  %v7599_v54 = vld [vmem:[%s18942_s3 + $0x200] sm:$0xff]  ;;  %v7359_v55 = vld [vmem:[%s18942_s3 + $0x218] sm:$0xff] }
 0x668   :  { %v7687_v56 = vadd.f32 %v18461_v25, %v7599_v54  ;;  %7520 = vst.msk [vmem:[%s18942_s3 + $0x210] sm:$0xff] %vm629_vm4, %v7439_v50  ;;  %6670 = vst.msk [vmem:[%s18942_s3 + $0x228] sm:$0xff] %vm629_vm4, %v6589_v51  ;;  %v7440_v57 = vadd.f32 %v7359_v55, %v7233_v48 }
 0x669   :  { %v7600_v58 = vld [vmem:[%s18942_s3 + $0x208] sm:$0xff] }
 0x66a   :  { %vm7768_vm11 = vcmp.gt.f32.partialorder %v7687_v56, 0.0  ;;  %v7849_v59 = vmul.f32 0.1, %v7687_v56  ;;  %v7688_v60 = vadd.f32 %v18461_v25, %v7600_v58  ;;  %7521 = vst.msk [vmem:[%s18942_s3 + $0x218] sm:$0xff] %vm629_vm4, %v7440_v57 }
 0x66b   :  { %v6393_v61 = vpop.f32.mrb[200].mxu1  ;;  %v7238_v63 = vpop.f32.mrb[200].mxu0 }
 0x66c   :  { %v7930_v1 = vsel %vm7768_vm11, %v7687_v56, %v7849_v59  ;;  %vm7769_vm12 = vcmp.gt.f32.partialorder %v7688_v60, 0.0  ;;  %v7850_v2 = vmul.f32 0.1, %v7688_v60  ;;  %v6590_v0 = vadd.f32 %v6509_v62, %v6393_v61  ;;  %v10094_v3 = vpop.f32.mrb[201].mxu1  ;;  %v10256_v4 = vpop.f32.mrb[201].mxu0  ;;  %v6514_v56 = vld [vmem:[%s18942_s3 + $0x258] sm:$0xff] }
 0x66d   :  { %8011 = vst.msk [vmem:[%s18942_s3 + $0x200] sm:$0xff] %vm629_vm4, %v7930_v1  ;;  %v7360_v5 = vld [vmem:[%s18942_s3 + $0x220] sm:$0xff]  ;;  %v6396_v7 = vpop.f32.mrb[202].mxu1  ;;  %v7241_v9 = vpop.f32.mrb[202].mxu0 }
 0x66e   :  { %v7931_v10 = vsel %vm7769_vm12, %v7688_v60, %v7850_v2  ;;  %6671 = vst.msk [vmem:[%s18942_s3 + $0x230] sm:$0xff] %vm629_vm4, %v6590_v0  ;;  %v7441_v11 = vadd.f32 %v7360_v5, %v7238_v63  ;;  %v6591_v12 = vadd.f32 %v6510_v8, %v6396_v7  ;;  %v10095_v13 = vpop.f32.mrb[203].mxu1  ;;  %v10257_v14 = vpop.f32.mrb[203].mxu0  ;;  %v6515_v8 = vld [vmem:[%s18942_s3 + $0x260] sm:$0xff] }
 0x66f   :  { %8012 = vst.msk [vmem:[%s18942_s3 + $0x208] sm:$0xff] %vm629_vm4, %v7931_v10  ;;  %v7601_v15 = vld [vmem:[%s18942_s3 + $0x210] sm:$0xff]  ;;  %v7361_v16 = vld [vmem:[%s18942_s3 + $0x228] sm:$0xff] }
 0x670   :  { %v7689_v17 = vadd.f32 %v18461_v25, %v7601_v15  ;;  %7522 = vst.msk [vmem:[%s18942_s3 + $0x220] sm:$0xff] %vm629_vm4, %v7441_v11  ;;  %6672 = vst.msk [vmem:[%s18942_s3 + $0x238] sm:$0xff] %vm629_vm4, %v6591_v12  ;;  %v7442_v18 = vadd.f32 %v7361_v16, %v7241_v9 }
 0x671   :  { %v7602_v19 = vld [vmem:[%s18942_s3 + $0x218] sm:$0xff] }
 0x672   :  { %vm7770_vm13 = vcmp.gt.f32.partialorder %v7689_v17, 0.0  ;;  %v7851_v20 = vmul.f32 0.1, %v7689_v17  ;;  %v7690_v21 = vadd.f32 %v18461_v25, %v7602_v19  ;;  %7523 = vst.msk [vmem:[%s18942_s3 + $0x228] sm:$0xff] %vm629_vm4, %v7442_v18 }
 0x673   :  { %v6401_v22 = vpop.f32.mrb[204].mxu1  ;;  %v7246_v24 = vpop.f32.mrb[204].mxu0 }
 0x674   :  { %v7932_v26 = vsel %vm7770_vm13, %v7689_v17, %v7851_v20  ;;  %vm7771_vm14 = vcmp.gt.f32.partialorder %v7690_v21, 0.0  ;;  %v7852_v6 = vmul.f32 0.1, %v7690_v21  ;;  %v6592_v27 = vadd.f32 %v6511_v23, %v6401_v22  ;;  %v10098_v28 = vpop.f32.mrb[205].mxu1  ;;  %v10260_v29 = vpop.f32.mrb[205].mxu0  ;;  %v6516_v17 = vld [vmem:[%s18942_s3 + $0x268] sm:$0xff] }
 0x675   :  { %8013 = vst.msk [vmem:[%s18942_s3 + $0x210] sm:$0xff] %vm629_vm4, %v7932_v26  ;;  %v7362_v30 = vld [vmem:[%s18942_s3 + $0x230] sm:$0xff]  ;;  %v6404_v31 = vpop.f32.mrb[206].mxu1  ;;  %v7249_v33 = vpop.f32.mrb[206].mxu0 }
 0x676   :  { %v7933_v34 = vsel %vm7771_vm14, %v7690_v21, %v7852_v6  ;;  %6673 = vst.msk [vmem:[%s18942_s3 + $0x240] sm:$0xff] %vm629_vm4, %v6592_v27  ;;  %v7443_v35 = vadd.f32 %v7362_v30, %v7246_v24  ;;  %v6593_v36 = vadd.f32 %v6512_v32, %v6404_v31  ;;  %v10099_v37 = vpop.f32.mrb[207].mxu1  ;;  %v10261_v38 = vpop.f32.mrb[207].mxu0  ;;  %v6517_v32 = vld [vmem:[%s18942_s3 + $0x270] sm:$0xff] }
 0x677   :  { %8014 = vst.msk [vmem:[%s18942_s3 + $0x218] sm:$0xff] %vm629_vm4, %v7933_v34  ;;  %v7603_v39 = vld [vmem:[%s18942_s3 + $0x220] sm:$0xff]  ;;  %v7363_v40 = vld [vmem:[%s18942_s3 + $0x238] sm:$0xff] }
 0x678   :  { %v7691_v41 = vadd.f32 %v18461_v25, %v7603_v39  ;;  %7524 = vst.msk [vmem:[%s18942_s3 + $0x230] sm:$0xff] %vm629_vm4, %v7443_v35  ;;  %6674 = vst.msk [vmem:[%s18942_s3 + $0x248] sm:$0xff] %vm629_vm4, %v6593_v36  ;;  %v7444_v42 = vadd.f32 %v7363_v40, %v7249_v33 }
 0x679   :  { %v7604_v43 = vld [vmem:[%s18942_s3 + $0x228] sm:$0xff] }
 0x67a   :  { %vm7772_vm15 = vcmp.gt.f32.partialorder %v7691_v41, 0.0  ;;  %v7853_v44 = vmul.f32 0.1, %v7691_v41  ;;  %v7692_v45 = vadd.f32 %v18461_v25, %v7604_v43  ;;  %7525 = vst.msk [vmem:[%s18942_s3 + $0x238] sm:$0xff] %vm629_vm4, %v7444_v42 }
 0x67b   :  { %v6409_v46 = vpop.f32.mrb[208].mxu1  ;;  %v7254_v48 = vpop.f32.mrb[208].mxu0 }
 0x67c   :  { %v7934_v49 = vsel %vm7772_vm15, %v7691_v41, %v7853_v44  ;;  %vm7773_vm2 = vcmp.gt.f32.partialorder %v7692_v45, 0.0  ;;  %v7854_v50 = vmul.f32 0.1, %v7692_v45  ;;  %v6594_v51 = vadd.f32 %v6513_v47, %v6409_v46  ;;  %v10102_v52 = vpop.f32.mrb[209].mxu1  ;;  %v10264_v53 = vpop.f32.mrb[209].mxu0  ;;  %v6518_v41 = vld [vmem:[%s18942_s3 + $0x278] sm:$0xff] }
 0x67d   :  { %8015 = vst.msk [vmem:[%s18942_s3 + $0x220] sm:$0xff] %vm629_vm4, %v7934_v49  ;;  %v7364_v54 = vld [vmem:[%s18942_s3 + $0x240] sm:$0xff]  ;;  %v6412_v55 = vpop.f32.mrb[210].mxu1  ;;  %v7257_v57 = vpop.f32.mrb[210].mxu0 }
 0x67e   :  { %v7935_v58 = vsel %vm7773_vm2, %v7692_v45, %v7854_v50  ;;  %6675 = vst.msk [vmem:[%s18942_s3 + $0x250] sm:$0xff] %vm629_vm4, %v6594_v51  ;;  %v7445_v59 = vadd.f32 %v7364_v54, %v7254_v48  ;;  %v6595_v60 = vadd.f32 %v6514_v56, %v6412_v55  ;;  %v10103_v61 = vpop.f32.mrb[211].mxu1  ;;  %v10265_v62 = vpop.f32.mrb[211].mxu0  ;;  %v6519_v56 = vld [vmem:[%s18942_s3 + $0x280] sm:$0xff] }
 0x67f   :  { %8016 = vst.msk [vmem:[%s18942_s3 + $0x228] sm:$0xff] %vm629_vm4, %v7935_v58  ;;  %v7605_v63 = vld [vmem:[%s18942_s3 + $0x230] sm:$0xff]  ;;  %v7365_v1 = vld [vmem:[%s18942_s3 + $0x248] sm:$0xff] }
 0x680   :  { %v7693_v2 = vadd.f32 %v18461_v25, %v7605_v63  ;;  %7526 = vst.msk [vmem:[%s18942_s3 + $0x240] sm:$0xff] %vm629_vm4, %v7445_v59  ;;  %6676 = vst.msk [vmem:[%s18942_s3 + $0x258] sm:$0xff] %vm629_vm4, %v6595_v60  ;;  %v7446_v0 = vadd.f32 %v7365_v1, %v7257_v57 }
 0x681   :  { %v7606_v3 = vld [vmem:[%s18942_s3 + $0x238] sm:$0xff] }
 0x682   :  { %vm7774_vm3 = vcmp.gt.f32.partialorder %v7693_v2, 0.0  ;;  %v7855_v4 = vmul.f32 0.1, %v7693_v2  ;;  %v7694_v5 = vadd.f32 %v18461_v25, %v7606_v3  ;;  %7527 = vst.msk [vmem:[%s18942_s3 + $0x248] sm:$0xff] %vm629_vm4, %v7446_v0 }
 0x683   :  { %v6417_v7 = vpop.f32.mrb[212].mxu1  ;;  %v7262_v9 = vpop.f32.mrb[212].mxu0 }
 0x684   :  { %v7936_v10 = vsel %vm7774_vm3, %v7693_v2, %v7855_v4  ;;  %vm7775_vm0 = vcmp.gt.f32.partialorder %v7694_v5, 0.0  ;;  %v7856_v11 = vmul.f32 0.1, %v7694_v5  ;;  %v6596_v12 = vadd.f32 %v6515_v8, %v6417_v7  ;;  %v10106_v13 = vpop.f32.mrb[213].mxu1  ;;  %v10268_v14 = vpop.f32.mrb[213].mxu0 }
 0x685   :  { %8017 = vst.msk [vmem:[%s18942_s3 + $0x230] sm:$0xff] %vm629_vm4, %v7936_v10  ;;  %v7366_v15 = vld [vmem:[%s18942_s3 + $0x250] sm:$0xff]  ;;  %v6420_v16 = vpop.f32.mrb[214].mxu1  ;;  %v7265_v18 = vpop.f32.mrb[214].mxu0 }
 0x686   :  { %v7937_v19 = vsel %vm7775_vm0, %v7694_v5, %v7856_v11  ;;  %6677 = vst.msk [vmem:[%s18942_s3 + $0x260] sm:$0xff] %vm629_vm4, %v6596_v12  ;;  %v7447_v20 = vadd.f32 %v7366_v15, %v7262_v9  ;;  %v6597_v21 = vadd.f32 %v6516_v17, %v6420_v16  ;;  %v10107_v22 = vpop.f32.mrb[215].mxu1  ;;  %v10269_v23 = vpop.f32.mrb[215].mxu0 }
 0x687   :  { %8018 = vst.msk [vmem:[%s18942_s3 + $0x238] sm:$0xff] %vm629_vm4, %v7937_v19  ;;  %v7607_v24 = vld [vmem:[%s18942_s3 + $0x240] sm:$0xff]  ;;  %v7367_v26 = vld [vmem:[%s18942_s3 + $0x258] sm:$0xff] }
 0x688   :  { %v7695_v6 = vadd.f32 %v18461_v25, %v7607_v24  ;;  %7528 = vst.msk [vmem:[%s18942_s3 + $0x250] sm:$0xff] %vm629_vm4, %v7447_v20  ;;  %6678 = vst.msk [vmem:[%s18942_s3 + $0x268] sm:$0xff] %vm629_vm4, %v6597_v21  ;;  %v7448_v27 = vadd.f32 %v7367_v26, %v7265_v18 }
 0x689   :  { %v7608_v28 = vld [vmem:[%s18942_s3 + $0x248] sm:$0xff] }
 0x68a   :  { %vm7776_vm1 = vcmp.gt.f32.partialorder %v7695_v6, 0.0  ;;  %v7857_v29 = vmul.f32 0.1, %v7695_v6  ;;  %v7696_v30 = vadd.f32 %v18461_v25, %v7608_v28  ;;  %7529 = vst.msk [vmem:[%s18942_s3 + $0x258] sm:$0xff] %vm629_vm4, %v7448_v27 }
 0x68b   :  { %v6425_v31 = vpop.f32.mrb[216].mxu1  ;;  %v7270_v33 = vpop.f32.mrb[216].mxu0 }
 0x68c   :  { %v7938_v34 = vsel %vm7776_vm1, %v7695_v6, %v7857_v29  ;;  %vm7777_vm5 = vcmp.gt.f32.partialorder %v7696_v30, 0.0  ;;  %v7858_v35 = vmul.f32 0.1, %v7696_v30  ;;  %v6598_v36 = vadd.f32 %v6517_v32, %v6425_v31  ;;  %v10110_v37 = vpop.f32.mrb[217].mxu1  ;;  %v10272_v38 = vpop.f32.mrb[217].mxu0 }
 0x68d   :  { %8019 = vst.msk [vmem:[%s18942_s3 + $0x240] sm:$0xff] %vm629_vm4, %v7938_v34  ;;  %v7368_v39 = vld [vmem:[%s18942_s3 + $0x260] sm:$0xff]  ;;  %v6428_v40 = vpop.f32.mrb[218].mxu1  ;;  %v7273_v42 = vpop.f32.mrb[218].mxu0 }
 0x68e   :  { %v7939_v43 = vsel %vm7777_vm5, %v7696_v30, %v7858_v35  ;;  %6679 = vst.msk [vmem:[%s18942_s3 + $0x270] sm:$0xff] %vm629_vm4, %v6598_v36  ;;  %v7449_v44 = vadd.f32 %v7368_v39, %v7270_v33  ;;  %v6599_v45 = vadd.f32 %v6518_v41, %v6428_v40  ;;  %v10111_v46 = vpop.f32.mrb[219].mxu1  ;;  %v10273_v47 = vpop.f32.mrb[219].mxu0 }
 0x68f   :  { %8020 = vst.msk [vmem:[%s18942_s3 + $0x248] sm:$0xff] %vm629_vm4, %v7939_v43  ;;  %v7609_v48 = vld [vmem:[%s18942_s3 + $0x250] sm:$0xff]  ;;  %v7369_v49 = vld [vmem:[%s18942_s3 + $0x268] sm:$0xff] }
 0x690   :  { %v7697_v50 = vadd.f32 %v18461_v25, %v7609_v48  ;;  %7530 = vst.msk [vmem:[%s18942_s3 + $0x260] sm:$0xff] %vm629_vm4, %v7449_v44  ;;  %6680 = vst.msk [vmem:[%s18942_s3 + $0x278] sm:$0xff] %vm629_vm4, %v6599_v45  ;;  %v7450_v51 = vadd.f32 %v7369_v49, %v7273_v42 }
 0x691   :  { %v7610_v52 = vld [vmem:[%s18942_s3 + $0x258] sm:$0xff] }
 0x692   :  { %vm7778_vm6 = vcmp.gt.f32.partialorder %v7697_v50, 0.0  ;;  %v7859_v53 = vmul.f32 0.1, %v7697_v50  ;;  %v7698_v54 = vadd.f32 %v18461_v25, %v7610_v52  ;;  %7531 = vst.msk [vmem:[%s18942_s3 + $0x268] sm:$0xff] %vm629_vm4, %v7450_v51 }
 0x693   :  { %v6433_v55 = vpop.f32.mrb[220].mxu1  ;;  %v7278_v57 = vpop.f32.mrb[220].mxu0 }
 0x694   :  { %v7940_v58 = vsel %vm7778_vm6, %v7697_v50, %v7859_v53  ;;  %vm7779_vm7 = vcmp.gt.f32.partialorder %v7698_v54, 0.0  ;;  %v7860_v59 = vmul.f32 0.1, %v7698_v54  ;;  %v6600_v60 = vadd.f32 %v6519_v56, %v6433_v55  ;;  %v10114_v61 = vpop.f32.mrb[221].mxu1  ;;  %v10276_v62 = vpop.f32.mrb[221].mxu0 }
 0x695   :  { %8021 = vst.msk [vmem:[%s18942_s3 + $0x250] sm:$0xff] %vm629_vm4, %v7940_v58  ;;  %v7370_v63 = vld [vmem:[%s18942_s3 + $0x270] sm:$0xff]  ;;  %v6436_v1 = vpop.f32.mrb[222].mxu1  ;;  %v7281_v2 = vpop.f32.mrb[222].mxu0 }
 0x696   :  { %v7941_v0 = vsel %vm7779_vm7, %v7698_v54, %v7860_v59  ;;  %6681 = vst.msk [vmem:[%s18942_s3 + $0x280] sm:$0xff] %vm629_vm4, %v6600_v60  ;;  %v7451_v3 = vadd.f32 %v7370_v63, %v7278_v57  ;;  %v10115_v4 = vpop.f32.mrb[223].mxu1  ;;  %v10277_v5 = vpop.f32.mrb[223].mxu0 }
 0x697   :  { %8022 = vst.msk [vmem:[%s18942_s3 + $0x258] sm:$0xff] %vm629_vm4, %v7941_v0  ;;  %v7611_v7 = vld [vmem:[%s18942_s3 + $0x260] sm:$0xff]  ;;  %v7371_v8 = vld [vmem:[%s18942_s3 + $0x278] sm:$0xff] }
 0x698   :  { %v7699_v9 = vadd.f32 %v18461_v25, %v7611_v7  ;;  %7532 = vst.msk [vmem:[%s18942_s3 + $0x270] sm:$0xff] %vm629_vm4, %v7451_v3  ;;  %v7452_v10 = vadd.f32 %v7371_v8, %v7281_v2 }
 0x699   :  { %v7612_v11 = vld [vmem:[%s18942_s3 + $0x268] sm:$0xff] }
 0x69a   :  { %vm7780_vm8 = vcmp.gt.f32.partialorder %v7699_v9, 0.0  ;;  %v7861_v12 = vmul.f32 0.1, %v7699_v9  ;;  %v7700_v13 = vadd.f32 %v18461_v25, %v7612_v11  ;;  %7533 = vst.msk [vmem:[%s18942_s3 + $0x278] sm:$0xff] %vm629_vm4, %v7452_v10 }
 0x69b   :  { %v7286_v14 = vpop.f32.mrb[224].mxu0 }
 0x69c   :  { %v7942_v15 = vsel %vm7780_vm8, %v7699_v9, %v7861_v12  ;;  %vm7781_vm9 = vcmp.gt.f32.partialorder %v7700_v13, 0.0  ;;  %v7862_v16 = vmul.f32 0.1, %v7700_v13  ;;  %v10280_v17 = vpop.f32.mrb[225].mxu0 }
 0x69d   :  { %8023 = vst.msk [vmem:[%s18942_s3 + $0x260] sm:$0xff] %vm629_vm4, %v7942_v15  ;;  %v7372_v18 = vld [vmem:[%s18942_s3 + $0x280] sm:$0xff]  ;;  %v7289_v19 = vpop.f32.mrb[226].mxu0 }
 0x69e   :  { %v7943_v20 = vsel %vm7781_vm9, %v7700_v13, %v7862_v16  ;;  %v7453_v21 = vadd.f32 %v7372_v18, %v7286_v14  ;;  %v10281_v22 = vpop.f32.mrb[227].mxu0 }
 0x69f   :  { %8024 = vst.msk [vmem:[%s18942_s3 + $0x268] sm:$0xff] %vm629_vm4, %v7943_v20  ;;  %v7613_v23 = vld [vmem:[%s18942_s3 + $0x270] sm:$0xff] }
 0x6a0   :  { %v7701_v24 = vadd.f32 %v18461_v25, %v7613_v23  ;;  %7534 = vst.msk [vmem:[%s18942_s3 + $0x280] sm:$0xff] %vm629_vm4, %v7453_v21 }
 0x6a1   :  { %v7614_v26 = vld [vmem:[%s18942_s3 + $0x278] sm:$0xff] }
 0x6a2   :  { %vm7782_vm10 = vcmp.gt.f32.partialorder %v7701_v24, 0.0  ;;  %v7863_v6 = vmul.f32 0.1, %v7701_v24  ;;  %v7702_v27 = vadd.f32 %v18461_v25, %v7614_v26 }
 0x6a4   :  { %v7944_v28 = vsel %vm7782_vm10, %v7701_v24, %v7863_v6  ;;  %vm7783_vm11 = vcmp.gt.f32.partialorder %v7702_v27, 0.0  ;;  %v7864_v29 = vmul.f32 0.1, %v7702_v27 }
 0x6a5   :  { %8025 = vst.msk [vmem:[%s18942_s3 + $0x270] sm:$0xff] %vm629_vm4, %v7944_v28 }
 0x6a6   :  { %v7945_v30 = vsel %vm7783_vm11, %v7702_v27, %v7864_v29 }
 0x6a7   :  { %8026 = vst.msk [vmem:[%s18942_s3 + $0x278] sm:$0xff] %vm629_vm4, %v7945_v30  ;;  %v7615_v31 = vld [vmem:[%s18942_s3 + $0x280] sm:$0xff] }
 0x6a8   :  { %v7703_v32 = vadd.f32 %v18461_v25, %v7615_v31 }
 0x6aa   :  { %vm7784_vm12 = vcmp.gt.f32.partialorder %v7703_v32, 0.0  ;;  %v7865_v33 = vmul.f32 0.1, %v7703_v32 }
 0x6ac   :  { %v7946_v34 = vsel %vm7784_vm12, %v7703_v32, %v7865_v33 }
 0x6ad   :  { %8027 = vst.msk [vmem:[%s18942_s3 + $0x280] sm:$0xff] %vm629_vm4, %v7946_v34 }

</bundles_post_ra>
